<compile_context>
chip_gen: v7x
topology: tpu7x:2x2x1
jax: 0.10.0
libtpu: 0.0.40
codegen_flags: <defaults>
</compile_context>

<pallas_src>
import functools
import math

import jax
import jax.numpy as jnp
from jax.experimental import pallas as pl
from jax.experimental.pallas import tpu as pltpu


D_MODEL = 256
N_HEAD = 8
DH = D_MODEL // N_HEAD          # 32
DIM_FF = 2048
L_DIM = 768                     # language feature width
LN_EPS = 1e-5
NEG_INF = -1e30


# ------------------------------ fused kernel ------------------------------

def _layernorm(x, g, b, eps=LN_EPS):
    mean = jnp.mean(x, axis=-1, keepdims=True)
    var = jnp.mean(jnp.square(x - mean), axis=-1, keepdims=True)
    return (x - mean) * jax.lax.rsqrt(var + eps) * g + b


def _vlfusion_kernel(
    # per-batch tiles
    fv_ref, fl_ref,
    # resident (constant index_map) tensors
    pos_ref,
    vw_ref, vb_ref, lw_ref, lb_ref, pr_ref,
    wq_ref, bq_ref, wk_ref, bk_ref, wv_ref, bv_ref, wo_ref, bo_ref,
    ln1g_ref, ln1b_ref,
    w1_ref, b1_ref, w2_ref, b2_ref,
    ln2g_ref, ln2b_ref,
    # output
    out_ref,
    # scratch
    x0_scr,
    *, hw, nl, l_pad,
):
    f32 = jnp.float32
    bf16 = jnp.bfloat16
    l_tok = hw + nl + 1
    pr_row = hw + nl
    q_start = (pr_row // 8) * 8          # sublane-aligned 8-row query tile
    pr_off = pr_row - q_start
    q_rows = 8

    # ---- input projections: bf16 matmul, f32 accumulate, f32 ReLU ----
    pv = jnp.dot(fv_ref[0], vw_ref[...], preferred_element_type=f32)
    pv = jnp.maximum(pv + vb_ref[...], 0.0)                        # (hw, D)
    pl_tok = jnp.dot(fl_ref[0], lw_ref[...], preferred_element_type=f32)
    pl_tok = jnp.maximum(pl_tok + lb_ref[...], 0.0)                # (nl, D)

    # ---- token sequence x0 = [visual | language | pr | zero-pad], (l_pad, D) ----
    # Only the pad tail is zero-filled (must stay zero: those rows are the
    # masked key columns); real rows are written directly.
    x0_scr[pl.ds(pr_row, l_pad - pr_row), :] = jnp.zeros(
        (l_pad - pr_row, D_MODEL), f32)
    x0_scr[pl.ds(0, hw), :] = pv
    x0_scr[pl.ds(hw, nl), :] = pl_tok
    x0_scr[pl.ds(pr_row, 1), :] = pr_ref[...]

    src = x0_scr[...]                                              # (l_pad, D) f32
    pos = pos_ref[...]                                             # (l_pad, D) f32

    # query-side inputs: only the 8-row tile containing the [pr] token
    q_src = x0_scr[pl.ds(q_start, q_rows), :]                      # (8, D) f32
    q_in = (q_src + pos_ref[pl.ds(q_start, q_rows), :]).astype(bf16)
    k_in = (src + pos).astype(bf16)                                # (l_pad, D)
    v_in = src.astype(bf16)

    # ---- full-width QKV projections (1/sqrt(dh) folded into wq/bq) ----
    q = (jnp.dot(q_in, wq_ref[...], preferred_element_type=f32)
         + bq_ref[...]).astype(bf16)                               # (8, D)
    k = (jnp.dot(k_in, wk_ref[...], preferred_element_type=f32)
         + bk_ref[...]).astype(bf16)                               # (l_pad, D)
    v = (jnp.dot(v_in, wv_ref[...], preferred_element_type=f32)
         + bv_ref[...]).astype(bf16)                               # (l_pad, D)

    # key-padding mask for the padded token columns (l_tok..l_pad-1)
    col = jax.lax.broadcasted_iota(jnp.int32, (1, l_pad), 1)
    key_mask = jnp.where(col < l_tok, 0.0, NEG_INF).astype(f32)    # (1, l_pad)

    # ---- per-head attention, query restricted to the 8-row tile ----
    heads = []
    for h in range(N_HEAD):                                        # unrolled
        sl = slice(h * DH, (h + 1) * DH)
        s = jax.lax.dot_general(                                   # q_h @ k_h^T
            q[:, sl], k[:, sl],
            dimension_numbers=(((1,), (1,)), ((), ())),
            preferred_element_type=f32) + key_mask                 # (8, l_pad)
        m = jnp.max(s, axis=-1, keepdims=True)
        p = jnp.exp(s - m)
        p = p / jnp.sum(p, axis=-1, keepdims=True)                 # exact divide
        heads.append(jnp.dot(p.astype(bf16), v[:, sl],
                             preferred_element_type=f32))          # (8, DH)
    # one concat-heads output projection (full-depth K=256 matmul)
    o_cat = jnp.concatenate(heads, axis=-1).astype(bf16)           # (8, D)
    attn = jnp.dot(o_cat, wo_ref[...], preferred_element_type=f32) + bo_ref[...]

    x = _layernorm(q_src + attn, ln1g_ref[...], ln1b_ref[...])     # (8, D) f32

    # ---- FFN on the 8-row tile: single full-width pair, no chunking ----
    x_b = x.astype(bf16)
    h1 = jnp.dot(x_b, w1_ref[...], preferred_element_type=f32) + b1_ref[...]
    h1 = jnp.maximum(h1, 0.0).astype(bf16)                         # (8, 2048)
    ffn = jnp.dot(h1, w2_ref[...], preferred_element_type=f32) + b2_ref[...]

    y = _layernorm(x + ffn, ln2g_ref[...], ln2b_ref[...])          # (8, D) f32

    # out[-1] of the (L, bs, d) transformer memory == the [pr] token row
    out_ref[0, :, :] = y[pr_off:pr_off + 1, :]


# ------------------------------ parameters ------------------------------

def sine_pos_1d(L, d):
    """1D sine positional encoding stand-in, (L, d)."""
    pos = jnp.arange(L, dtype=jnp.float32)[:, None]
    dim_t = jnp.arange(d // 2, dtype=jnp.float32)
    inv_freq = jnp.power(10000.0, 2.0 * dim_t / d)
    ang = pos / inv_freq[None, :]
    return jnp.concatenate([jnp.sin(ang), jnp.cos(ang)], axis=-1)


def init_params(key):
    """x@W-layout f32 parameters (stand-in for the torch checkpoint)."""
    ks = jax.random.split(key, 10)

    def w(k, shape, scale=0.02):
        return scale * jax.random.normal(k, shape, dtype=jnp.float32)

    z = lambda n: jnp.zeros((n,), jnp.float32)
    return {
        # VLFusion projections
        "v_w": w(ks[0], (256, 256)), "v_b": z(256),
        "l_w": w(ks[1], (L_DIM, 256)), "l_b": z(256),
        "pr": w(ks[2], (1, D_MODEL)),                     # nn.Embedding(1, d)
        # transformer encoder layer (stand-in)
        "wq": w(ks[3], (D_MODEL, D_MODEL)), "bq": z(D_MODEL),
        "wk": w(ks[4], (D_MODEL, D_MODEL)), "bk": z(D_MODEL),
        "wv": w(ks[5], (D_MODEL, D_MODEL)), "bv": z(D_MODEL),
        "wo": w(ks[6], (D_MODEL, D_MODEL)), "bo": z(D_MODEL),
        "ln1_g": jnp.ones((D_MODEL,), jnp.float32), "ln1_b": z(D_MODEL),
        "w1": w(ks[7], (D_MODEL, DIM_FF)), "b1": z(DIM_FF),
        "w2": w(ks[8], (DIM_FF, D_MODEL)), "b2": z(D_MODEL),
        "ln2_g": jnp.ones((D_MODEL,), jnp.float32), "ln2_b": z(D_MODEL),
    }


def pack_params(p):
    """Lane-dense packing: matmul weights -> contiguous bf16 (last dim >= 128);
    biases / LN params -> (1, N) f32 rows; 1/sqrt(dh) folded into wq/bq.
    TODO(synk): real torch nn.Linear / in_proj weights are (out, in) and packed
    q/k/v row-wise — transpose/split is needed when loading a real checkpoint."""
    bf16 = jnp.bfloat16
    f32 = jnp.float32
    row = lambda v: v.reshape(1, -1).astype(f32)
    scale = 1.0 / math.sqrt(DH)
    return {
        "vw": p["v_w"].astype(bf16), "vb": row(p["v_b"]),
        "lw": p["l_w"].astype(bf16), "lb": row(p["l_b"]),
        "pr": p["pr"].astype(f32),
        "wq": (p["wq"] * scale).astype(bf16), "bq": row(p["bq"] * scale),
        "wk": p["wk"].astype(bf16), "bk": row(p["bk"]),
        "wv": p["wv"].astype(bf16), "bv": row(p["bv"]),
        "wo": p["wo"].astype(bf16), "bo": row(p["bo"]),
        "ln1g": row(p["ln1_g"]), "ln1b": row(p["ln1_b"]),
        "w1": p["w1"].astype(bf16), "b1": row(p["b1"]),
        "w2": p["w2"].astype(bf16), "b2": row(p["b2"]),
        "ln2g": row(p["ln2_g"]), "ln2b": row(p["ln2_b"]),
    }


# ------------------------------ forward wrapper ------------------------------

def vlfusion_forward(fv, fl, kp):
    """fv: (bs, 256, h, w) NCHW visual feats; fl: (bs, Nl, 768) language feats;
    kp: packed params from pack_params().  Returns (bs, 256) == out[-1]."""
    bs, c, h, w = fv.shape
    _, nl, ld = fl.shape
    hw = h * w
    l_tok = hw + nl + 1
    l_pad = max(128, ((l_tok + 127) // 128) * 128)

    # NCHW -> (bs, hw, c) token-major layout; bf16 matmul operands.
    fv_t = jnp.transpose(fv.reshape(bs, c, hw), (0, 2, 1)).astype(jnp.bfloat16)
    fl_b = fl.astype(jnp.bfloat16)
    pos = sine_pos_1d(l_pad, D_MODEL)      # padded key rows are masked anyway

    weights = [kp["vw"], kp["vb"], kp["lw"], kp["lb"], kp["pr"],
               kp["wq"], kp["bq"], kp["wk"], kp["bk"], kp["wv"], kp["bv"],
               kp["wo"], kp["bo"], kp["ln1g"], kp["ln1b"],
               kp["w1"], kp["b1"], kp["w2"], kp["b2"], kp["ln2g"], kp["ln2b"]]

    def resident(arr):   # constant index_map -> DMA'd once, stays in VMEM
        nd = arr.ndim
        return pl.BlockSpec(arr.shape, lambda b, _nd=nd: (0,) * _nd)

    kernel = functools.partial(_vlfusion_kernel, hw=hw, nl=nl, l_pad=l_pad)

    out = pl.pallas_call(
        kernel,
        out_shape=jax.ShapeDtypeStruct((bs, 1, D_MODEL), jnp.float32),
        grid=(bs,),
        in_specs=[
            pl.BlockSpec((1, hw, c), lambda b: (b, 0, 0)),
            pl.BlockSpec((1, nl, ld), lambda b: (b, 0, 0)),
            resident(pos),
        ] + [resident(wgt) for wgt in weights],
        out_specs=pl.BlockSpec((1, 1, D_MODEL), lambda b: (b, 0, 0)),
        scratch_shapes=[pltpu.VMEM((l_pad, D_MODEL), jnp.float32)],
        compiler_params=pltpu.CompilerParams(
            dimension_semantics=("parallel",),          # v7x: 2 TCs split batch
            vmem_limit_bytes=32 * 1024 * 1024),
    )(fv_t, fl_b, pos, *weights)
    return out[:, 0, :]


if __name__ == "__main__":
    key = jax.random.PRNGKey(0)
    kfv, kfl, kpar = jax.random.split(key, 3)

    bs, c, h, w = 2, 256, 8, 8        # c fixed at 256 by v_proj: Linear(256, 256)
    nl = 8                            # language tokens; l_proj: Linear(768, 256)
    fv = jax.random.normal(kfv, (bs, c, h, w), dtype=jnp.float32)
    fl = jax.random.normal(kfl, (bs, nl, L_DIM), dtype=jnp.float32)

    params = init_params(kpar)
    kparams = pack_params(params)     # packed once; weights stay resident per call

    fwd = jax.jit(vlfusion_forward)
    out = jax.block_until_ready(fwd(fv, fl, kparams))

    assert out.shape == (bs, D_MODEL) and out.dtype == jnp.float32
    assert bool(jnp.isfinite(out).all())
    print("KERNEL_OK")
</pallas_src>

<mosaic_0001>
module attributes {stable_mosaic.version = 11 : i64} {
  func.func @_vlfusion_kernel(%arg0: i32, %arg1: memref<1x64x256xbf16, #tpu.memory_space<vmem>>, %arg2: memref<1x8x768xbf16, #tpu.memory_space<vmem>>, %arg3: memref<128x256xf32, #tpu.memory_space<vmem>>, %arg4: memref<256x256xbf16, #tpu.memory_space<vmem>>, %arg5: memref<1x256xf32, #tpu.memory_space<vmem>>, %arg6: memref<768x256xbf16, #tpu.memory_space<vmem>>, %arg7: memref<1x256xf32, #tpu.memory_space<vmem>>, %arg8: memref<1x256xf32, #tpu.memory_space<vmem>>, %arg9: memref<256x256xbf16, #tpu.memory_space<vmem>>, %arg10: memref<1x256xf32, #tpu.memory_space<vmem>>, %arg11: memref<256x256xbf16, #tpu.memory_space<vmem>>, %arg12: memref<1x256xf32, #tpu.memory_space<vmem>>, %arg13: memref<256x256xbf16, #tpu.memory_space<vmem>>, %arg14: memref<1x256xf32, #tpu.memory_space<vmem>>, %arg15: memref<256x256xbf16, #tpu.memory_space<vmem>>, %arg16: memref<1x256xf32, #tpu.memory_space<vmem>>, %arg17: memref<1x256xf32, #tpu.memory_space<vmem>>, %arg18: memref<1x256xf32, #tpu.memory_space<vmem>>, %arg19: memref<256x2048xbf16, #tpu.memory_space<vmem>>, %arg20: memref<1x2048xf32, #tpu.memory_space<vmem>>, %arg21: memref<2048x256xbf16, #tpu.memory_space<vmem>>, %arg22: memref<1x256xf32, #tpu.memory_space<vmem>>, %arg23: memref<1x256xf32, #tpu.memory_space<vmem>>, %arg24: memref<1x256xf32, #tpu.memory_space<vmem>>, %arg25: memref<1x1x256xf32, #tpu.memory_space<vmem>>, %arg26: memref<128x256xf32, #tpu.memory_space<vmem>>) attributes {dimension_semantics = [#tpu.dimension_semantics<parallel>], iteration_bounds = array<i64: 2>, scalar_prefetch = 0 : i64, scratch_operands = 1 : i64, tpu.core_type = #tpu.core_type<tc>, window_params = [{transform_indices = @transform_0, window_bounds = array<i64: 1, 64, 256>}, {transform_indices = @transform_1, window_bounds = array<i64: 1, 8, 768>}, {pipeline_mode = #tpu.pipeline_mode<synchronous>, transform_indices = @transform_2, window_bounds = array<i64: 128, 256>}, {pipeline_mode = #tpu.pipeline_mode<synchronous>, transform_indices = @transform_3, window_bounds = array<i64: 256, 256>}, {pipeline_mode = #tpu.pipeline_mode<synchronous>, transform_indices = @transform_4, window_bounds = array<i64: 1, 256>}, {pipeline_mode = #tpu.pipeline_mode<synchronous>, transform_indices = @transform_5, window_bounds = array<i64: 768, 256>}, {pipeline_mode = #tpu.pipeline_mode<synchronous>, transform_indices = @transform_6, window_bounds = array<i64: 1, 256>}, {pipeline_mode = #tpu.pipeline_mode<synchronous>, transform_indices = @transform_7, window_bounds = array<i64: 1, 256>}, {pipeline_mode = #tpu.pipeline_mode<synchronous>, transform_indices = @transform_8, window_bounds = array<i64: 256, 256>}, {pipeline_mode = #tpu.pipeline_mode<synchronous>, transform_indices = @transform_9, window_bounds = array<i64: 1, 256>}, {pipeline_mode = #tpu.pipeline_mode<synchronous>, transform_indices = @transform_10, window_bounds = array<i64: 256, 256>}, {pipeline_mode = #tpu.pipeline_mode<synchronous>, transform_indices = @transform_11, window_bounds = array<i64: 1, 256>}, {pipeline_mode = #tpu.pipeline_mode<synchronous>, transform_indices = @transform_12, window_bounds = array<i64: 256, 256>}, {pipeline_mode = #tpu.pipeline_mode<synchronous>, transform_indices = @transform_13, window_bounds = array<i64: 1, 256>}, {pipeline_mode = #tpu.pipeline_mode<synchronous>, transform_indices = @transform_14, window_bounds = array<i64: 256, 256>}, {pipeline_mode = #tpu.pipeline_mode<synchronous>, transform_indices = @transform_15, window_bounds = array<i64: 1, 256>}, {pipeline_mode = #tpu.pipeline_mode<synchronous>, transform_indices = @transform_16, window_bounds = array<i64: 1, 256>}, {pipeline_mode = #tpu.pipeline_mode<synchronous>, transform_indices = @transform_17, window_bounds = array<i64: 1, 256>}, {pipeline_mode = #tpu.pipeline_mode<synchronous>, transform_indices = @transform_18, window_bounds = array<i64: 256, 2048>}, {pipeline_mode = #tpu.pipeline_mode<synchronous>, transform_indices = @transform_19, window_bounds = array<i64: 1, 2048>}, {pipeline_mode = #tpu.pipeline_mode<synchronous>, transform_indices = @transform_20, window_bounds = array<i64: 2048, 256>}, {pipeline_mode = #tpu.pipeline_mode<synchronous>, transform_indices = @transform_21, window_bounds = array<i64: 1, 256>}, {pipeline_mode = #tpu.pipeline_mode<synchronous>, transform_indices = @transform_22, window_bounds = array<i64: 1, 256>}, {pipeline_mode = #tpu.pipeline_mode<synchronous>, transform_indices = @transform_23, window_bounds = array<i64: 1, 256>}, {transform_indices = @transform_24, window_bounds = array<i64: 1, 1, 256>}]} {
    %c0 = arith.constant 0 : index
    %c0_0 = arith.constant 0 : index
    %c0_1 = arith.constant 0 : index
    %0 = vector.load %arg1[%c0, %c0_0, %c0_1] : memref<1x64x256xbf16, #tpu.memory_space<vmem>>, vector<1x64x256xbf16>
    %1 = vector.shape_cast %0 : vector<1x64x256xbf16> to vector<64x256xbf16>
    %c0_2 = arith.constant 0 : index
    %c0_3 = arith.constant 0 : index
    %2 = vector.load %arg4[%c0_2, %c0_3] : memref<256x256xbf16, #tpu.memory_space<vmem>>, vector<256x256xbf16>
    %cst = arith.constant dense<0.000000e+00> : vector<64x256xf32>
    %3 = tpu.matmul %1, %2, %cst {dimension_numbers = #tpu.dot_dimension_numbers<[1], [0], [0], [1], [0, 0, 1, 1], [], []>} : vector<64x256xbf16>, vector<256x256xbf16>, vector<64x256xf32> -> vector<64x256xf32>
    %c0_4 = arith.constant 0 : index
    %c0_5 = arith.constant 0 : index
    %4 = vector.load %arg5[%c0_4, %c0_5] : memref<1x256xf32, #tpu.memory_space<vmem>>, vector<1x256xf32>
    %5 = vector.broadcast %4 : vector<1x256xf32> to vector<64x256xf32>
    %6 = arith.addf %3, %5 : vector<64x256xf32>
    %cst_6 = arith.constant 0.000000e+00 : f32
    %7 = vector.broadcast %cst_6 : f32 to vector<64x256xf32>
    %8 = arith.maximumf %6, %7 : vector<64x256xf32>
    %c0_7 = arith.constant 0 : index
    %c0_8 = arith.constant 0 : index
    %c0_9 = arith.constant 0 : index
    %9 = vector.load %arg2[%c0_7, %c0_8, %c0_9] : memref<1x8x768xbf16, #tpu.memory_space<vmem>>, vector<1x8x768xbf16>
    %10 = vector.shape_cast %9 : vector<1x8x768xbf16> to vector<8x768xbf16>
    %c0_10 = arith.constant 0 : index
    %c0_11 = arith.constant 0 : index
    %11 = vector.load %arg6[%c0_10, %c0_11] : memref<768x256xbf16, #tpu.memory_space<vmem>>, vector<768x256xbf16>
    %cst_12 = arith.constant dense<0.000000e+00> : vector<8x256xf32>
    %12 = tpu.matmul %10, %11, %cst_12 {dimension_numbers = #tpu.dot_dimension_numbers<[1], [0], [0], [1], [0, 0, 1, 1], [], []>} : vector<8x768xbf16>, vector<768x256xbf16>, vector<8x256xf32> -> vector<8x256xf32>
    %c0_13 = arith.constant 0 : index
    %c0_14 = arith.constant 0 : index
    %13 = vector.load %arg7[%c0_13, %c0_14] : memref<1x256xf32, #tpu.memory_space<vmem>>, vector<1x256xf32>
    %14 = vector.broadcast %13 : vector<1x256xf32> to vector<8x256xf32>
    %15 = arith.addf %12, %14 : vector<8x256xf32>
    %cst_15 = arith.constant 0.000000e+00 : f32
    %16 = vector.broadcast %cst_15 : f32 to vector<8x256xf32>
    %17 = arith.maximumf %15, %16 : vector<8x256xf32>
    %cst_16 = arith.constant 0.000000e+00 : f32
    %18 = vector.broadcast %cst_16 : f32 to vector<56x256xf32>
    %c72 = arith.constant 72 : index
    %c0_17 = arith.constant 0 : index
    %19 = vector.load %arg26[%c72, %c0_17] : memref<128x256xf32, #tpu.memory_space<vmem>>, vector<56x256xf32>
    tpu.vector_store %arg26[%c72, %c0_17], %18 {strides = array<i32>} : memref<128x256xf32, #tpu.memory_space<vmem>>, vector<56x256xf32>,
    %c0_18 = arith.constant 0 : index
    %c0_19 = arith.constant 0 : index
    %20 = vector.load %arg26[%c0_18, %c0_19] : memref<128x256xf32, #tpu.memory_space<vmem>>, vector<64x256xf32>
    tpu.vector_store %arg26[%c0_18, %c0_19], %8 {strides = array<i32>} : memref<128x256xf32, #tpu.memory_space<vmem>>, vector<64x256xf32>,
    %c64 = arith.constant 64 : index
    %c0_20 = arith.constant 0 : index
    %21 = vector.load %arg26[%c64, %c0_20] : memref<128x256xf32, #tpu.memory_space<vmem>>, vector<8x256xf32>
    tpu.vector_store %arg26[%c64, %c0_20], %17 {strides = array<i32>} : memref<128x256xf32, #tpu.memory_space<vmem>>, vector<8x256xf32>,
    %c0_21 = arith.constant 0 : index
    %c0_22 = arith.constant 0 : index
    %22 = vector.load %arg8[%c0_21, %c0_22] : memref<1x256xf32, #tpu.memory_space<vmem>>, vector<1x256xf32>
    %c72_23 = arith.constant 72 : index
    %c0_24 = arith.constant 0 : index
    %23 = vector.load %arg26[%c72_23, %c0_24] : memref<128x256xf32, #tpu.memory_space<vmem>>, vector<1x256xf32>
    tpu.vector_store %arg26[%c72_23, %c0_24], %22 {strides = array<i32>} : memref<128x256xf32, #tpu.memory_space<vmem>>, vector<1x256xf32>,
    %c0_25 = arith.constant 0 : index
    %c0_26 = arith.constant 0 : index
    %24 = vector.load %arg26[%c0_25, %c0_26] : memref<128x256xf32, #tpu.memory_space<vmem>>, vector<128x256xf32>
    %c0_27 = arith.constant 0 : index
    %c0_28 = arith.constant 0 : index
    %25 = vector.load %arg3[%c0_27, %c0_28] : memref<128x256xf32, #tpu.memory_space<vmem>>, vector<128x256xf32>
    %c72_29 = arith.constant 72 : index
    %c0_30 = arith.constant 0 : index
    %26 = vector.load %arg26[%c72_29, %c0_30] : memref<128x256xf32, #tpu.memory_space<vmem>>, vector<8x256xf32>
    %c72_31 = arith.constant 72 : index
    %c0_32 = arith.constant 0 : index
    %27 = vector.load %arg3[%c72_31, %c0_32] : memref<128x256xf32, #tpu.memory_space<vmem>>, vector<8x256xf32>
    %28 = arith.addf %26, %27 : vector<8x256xf32>
    %29 = arith.truncf %28 : vector<8x256xf32> to vector<8x256xbf16>
    %30 = arith.addf %24, %25 : vector<128x256xf32>
    %31 = arith.truncf %30 : vector<128x256xf32> to vector<128x256xbf16>
    %32 = arith.truncf %24 : vector<128x256xf32> to vector<128x256xbf16>
    %c0_33 = arith.constant 0 : index
    %c0_34 = arith.constant 0 : index
    %33 = vector.load %arg9[%c0_33, %c0_34] : memref<256x256xbf16, #tpu.memory_space<vmem>>, vector<256x256xbf16>
    %cst_35 = arith.constant dense<0.000000e+00> : vector<8x256xf32>
    %34 = tpu.matmul %29, %33, %cst_35 {dimension_numbers = #tpu.dot_dimension_numbers<[1], [0], [0], [1], [0, 0, 1, 1], [], []>} : vector<8x256xbf16>, vector<256x256xbf16>, vector<8x256xf32> -> vector<8x256xf32>
    %c0_36 = arith.constant 0 : index
    %c0_37 = arith.constant 0 : index
    %35 = vector.load %arg10[%c0_36, %c0_37] : memref<1x256xf32, #tpu.memory_space<vmem>>, vector<1x256xf32>
    %36 = vector.broadcast %35 : vector<1x256xf32> to vector<8x256xf32>
    %37 = arith.addf %34, %36 : vector<8x256xf32>
    %38 = arith.truncf %37 : vector<8x256xf32> to vector<8x256xbf16>
    %c0_38 = arith.constant 0 : index
    %c0_39 = arith.constant 0 : index
    %39 = vector.load %arg11[%c0_38, %c0_39] : memref<256x256xbf16, #tpu.memory_space<vmem>>, vector<256x256xbf16>
    %cst_40 = arith.constant dense<0.000000e+00> : vector<128x256xf32>
    %40 = tpu.matmul %31, %39, %cst_40 {dimension_numbers = #tpu.dot_dimension_numbers<[1], [0], [0], [1], [0, 0, 1, 1], [], []>} : vector<128x256xbf16>, vector<256x256xbf16>, vector<128x256xf32> -> vector<128x256xf32>
    %c0_41 = arith.constant 0 : index
    %c0_42 = arith.constant 0 : index
    %41 = vector.load %arg12[%c0_41, %c0_42] : memref<1x256xf32, #tpu.memory_space<vmem>>, vector<1x256xf32>
    %42 = vector.broadcast %41 : vector<1x256xf32> to vector<128x256xf32>
    %43 = arith.addf %40, %42 : vector<128x256xf32>
    %44 = arith.truncf %43 : vector<128x256xf32> to vector<128x256xbf16>
    %c0_43 = arith.constant 0 : index
    %c0_44 = arith.constant 0 : index
    %45 = vector.load %arg13[%c0_43, %c0_44] : memref<256x256xbf16, #tpu.memory_space<vmem>>, vector<256x256xbf16>
    %cst_45 = arith.constant dense<0.000000e+00> : vector<128x256xf32>
    %46 = tpu.matmul %32, %45, %cst_45 {dimension_numbers = #tpu.dot_dimension_numbers<[1], [0], [0], [1], [0, 0, 1, 1], [], []>} : vector<128x256xbf16>, vector<256x256xbf16>, vector<128x256xf32> -> vector<128x256xf32>
    %c0_46 = arith.constant 0 : index
    %c0_47 = arith.constant 0 : index
    %47 = vector.load %arg14[%c0_46, %c0_47] : memref<1x256xf32, #tpu.memory_space<vmem>>, vector<1x256xf32>
    %48 = vector.broadcast %47 : vector<1x256xf32> to vector<128x256xf32>
    %49 = arith.addf %46, %48 : vector<128x256xf32>
    %50 = arith.truncf %49 : vector<128x256xf32> to vector<128x256xbf16>
    %51 = tpu.iota {dimensions = array<i32: 1>} : vector<1x128xi32>
    %c73_i32 = arith.constant 73 : i32
    %52 = vector.broadcast %c73_i32 : i32 to vector<1x128xi32>
    %53 = arith.cmpi slt, %51, %52 : vector<1x128xi32>
    %cst_48 = arith.constant 0.000000e+00 : f32
    %cst_49 = arith.constant -1.000000e+30 : f32
    %54 = vector.broadcast %cst_48 : f32 to vector<1x128xf32>
    %55 = vector.broadcast %cst_49 : f32 to vector<1x128xf32>
    %56 = arith.select %53, %54, %55 : vector<1x128xi1>, vector<1x128xf32>
    %57 = vector.extract_strided_slice %38 {offsets = [0, 0], sizes = [8, 32], strides = [1, 1]} : vector<8x256xbf16> to vector<8x32xbf16>
    %58 = vector.extract_strided_slice %44 {offsets = [0, 0], sizes = [128, 32], strides = [1, 1]} : vector<128x256xbf16> to vector<128x32xbf16>
    %cst_50 = arith.constant dense<0.000000e+00> : vector<8x128xf32>
    %59 = tpu.matmul %57, %58, %cst_50 {dimension_numbers = #tpu.dot_dimension_numbers<[1], [1], [0], [0], [0, 0, 1, 0], [], []>} : vector<8x32xbf16>, vector<128x32xbf16>, vector<8x128xf32> -> vector<8x128xf32>
    %60 = vector.broadcast %56 : vector<1x128xf32> to vector<8x128xf32>
    %61 = arith.addf %59, %60 : vector<8x128xf32>
    %cst_51 = arith.constant dense<0xFF800000> : vector<8xf32>
    %62 = vector.multi_reduction <maximumf>, %61, %cst_51 [1] : vector<8x128xf32> to vector<8xf32>
    %63 = vector.shape_cast %62 : vector<8xf32> to vector<8x1xf32>
    %64 = vector.broadcast %63 : vector<8x1xf32> to vector<8x128xf32>
    %65 = arith.subf %61, %64 : vector<8x128xf32>
    %66 = math.exp %65 : vector<8x128xf32>
    %cst_52 = arith.constant dense<0.000000e+00> : vector<8xf32>
    %67 = vector.multi_reduction <add>, %66, %cst_52 [1] : vector<8x128xf32> to vector<8xf32>
    %68 = vector.shape_cast %67 : vector<8xf32> to vector<8x1xf32>
    %69 = vector.broadcast %68 : vector<8x1xf32> to vector<8x128xf32>
    %70 = arith.divf %66, %69 : vector<8x128xf32>
    %71 = arith.truncf %70 : vector<8x128xf32> to vector<8x128xbf16>
    %72 = vector.extract_strided_slice %50 {offsets = [0, 0], sizes = [128, 32], strides = [1, 1]} : vector<128x256xbf16> to vector<128x32xbf16>
    %cst_53 = arith.constant dense<0.000000e+00> : vector<8x32xf32>
    %73 = tpu.matmul %71, %72, %cst_53 {dimension_numbers = #tpu.dot_dimension_numbers<[1], [0], [0], [1], [0, 0, 1, 1], [], []>} : vector<8x128xbf16>, vector<128x32xbf16>, vector<8x32xf32> -> vector<8x32xf32>
    %74 = vector.extract_strided_slice %38 {offsets = [0, 32], sizes = [8, 32], strides = [1, 1]} : vector<8x256xbf16> to vector<8x32xbf16>
    %75 = vector.extract_strided_slice %44 {offsets = [0, 32], sizes = [128, 32], strides = [1, 1]} : vector<128x256xbf16> to vector<128x32xbf16>
    %cst_54 = arith.constant dense<0.000000e+00> : vector<8x128xf32>
    %76 = tpu.matmul %74, %75, %cst_54 {dimension_numbers = #tpu.dot_dimension_numbers<[1], [1], [0], [0], [0, 0, 1, 0], [], []>} : vector<8x32xbf16>, vector<128x32xbf16>, vector<8x128xf32> -> vector<8x128xf32>
    %77 = vector.broadcast %56 : vector<1x128xf32> to vector<8x128xf32>
    %78 = arith.addf %76, %77 : vector<8x128xf32>
    %cst_55 = arith.constant dense<0xFF800000> : vector<8xf32>
    %79 = vector.multi_reduction <maximumf>, %78, %cst_55 [1] : vector<8x128xf32> to vector<8xf32>
    %80 = vector.shape_cast %79 : vector<8xf32> to vector<8x1xf32>
    %81 = vector.broadcast %80 : vector<8x1xf32> to vector<8x128xf32>
    %82 = arith.subf %78, %81 : vector<8x128xf32>
    %83 = math.exp %82 : vector<8x128xf32>
    %cst_56 = arith.constant dense<0.000000e+00> : vector<8xf32>
    %84 = vector.multi_reduction <add>, %83, %cst_56 [1] : vector<8x128xf32> to vector<8xf32>
    %85 = vector.shape_cast %84 : vector<8xf32> to vector<8x1xf32>
    %86 = vector.broadcast %85 : vector<8x1xf32> to vector<8x128xf32>
    %87 = arith.divf %83, %86 : vector<8x128xf32>
    %88 = arith.truncf %87 : vector<8x128xf32> to vector<8x128xbf16>
    %89 = vector.extract_strided_slice %50 {offsets = [0, 32], sizes = [128, 32], strides = [1, 1]} : vector<128x256xbf16> to vector<128x32xbf16>
    %cst_57 = arith.constant dense<0.000000e+00> : vector<8x32xf32>
    %90 = tpu.matmul %88, %89, %cst_57 {dimension_numbers = #tpu.dot_dimension_numbers<[1], [0], [0], [1], [0, 0, 1, 1], [], []>} : vector<8x128xbf16>, vector<128x32xbf16>, vector<8x32xf32> -> vector<8x32xf32>
    %91 = vector.extract_strided_slice %38 {offsets = [0, 64], sizes = [8, 32], strides = [1, 1]} : vector<8x256xbf16> to vector<8x32xbf16>
    %92 = vector.extract_strided_slice %44 {offsets = [0, 64], sizes = [128, 32], strides = [1, 1]} : vector<128x256xbf16> to vector<128x32xbf16>
    %cst_58 = arith.constant dense<0.000000e+00> : vector<8x128xf32>
    %93 = tpu.matmul %91, %92, %cst_58 {dimension_numbers = #tpu.dot_dimension_numbers<[1], [1], [0], [0], [0, 0, 1, 0], [], []>} : vector<8x32xbf16>, vector<128x32xbf16>, vector<8x128xf32> -> vector<8x128xf32>
    %94 = vector.broadcast %56 : vector<1x128xf32> to vector<8x128xf32>
    %95 = arith.addf %93, %94 : vector<8x128xf32>
    %cst_59 = arith.constant dense<0xFF800000> : vector<8xf32>
    %96 = vector.multi_reduction <maximumf>, %95, %cst_59 [1] : vector<8x128xf32> to vector<8xf32>
    %97 = vector.shape_cast %96 : vector<8xf32> to vector<8x1xf32>
    %98 = vector.broadcast %97 : vector<8x1xf32> to vector<8x128xf32>
    %99 = arith.subf %95, %98 : vector<8x128xf32>
    %100 = math.exp %99 : vector<8x128xf32>
    %cst_60 = arith.constant dense<0.000000e+00> : vector<8xf32>
    %101 = vector.multi_reduction <add>, %100, %cst_60 [1] : vector<8x128xf32> to vector<8xf32>
    %102 = vector.shape_cast %101 : vector<8xf32> to vector<8x1xf32>
    %103 = vector.broadcast %102 : vector<8x1xf32> to vector<8x128xf32>
    %104 = arith.divf %100, %103 : vector<8x128xf32>
    %105 = arith.truncf %104 : vector<8x128xf32> to vector<8x128xbf16>
    %106 = vector.extract_strided_slice %50 {offsets = [0, 64], sizes = [128, 32], strides = [1, 1]} : vector<128x256xbf16> to vector<128x32xbf16>
    %cst_61 = arith.constant dense<0.000000e+00> : vector<8x32xf32>
    %107 = tpu.matmul %105, %106, %cst_61 {dimension_numbers = #tpu.dot_dimension_numbers<[1], [0], [0], [1], [0, 0, 1, 1], [], []>} : vector<8x128xbf16>, vector<128x32xbf16>, vector<8x32xf32> -> vector<8x32xf32>
    %108 = vector.extract_strided_slice %38 {offsets = [0, 96], sizes = [8, 32], strides = [1, 1]} : vector<8x256xbf16> to vector<8x32xbf16>
    %109 = vector.extract_strided_slice %44 {offsets = [0, 96], sizes = [128, 32], strides = [1, 1]} : vector<128x256xbf16> to vector<128x32xbf16>
    %cst_62 = arith.constant dense<0.000000e+00> : vector<8x128xf32>
    %110 = tpu.matmul %108, %109, %cst_62 {dimension_numbers = #tpu.dot_dimension_numbers<[1], [1], [0], [0], [0, 0, 1, 0], [], []>} : vector<8x32xbf16>, vector<128x32xbf16>, vector<8x128xf32> -> vector<8x128xf32>
    %111 = vector.broadcast %56 : vector<1x128xf32> to vector<8x128xf32>
    %112 = arith.addf %110, %111 : vector<8x128xf32>
    %cst_63 = arith.constant dense<0xFF800000> : vector<8xf32>
    %113 = vector.multi_reduction <maximumf>, %112, %cst_63 [1] : vector<8x128xf32> to vector<8xf32>
    %114 = vector.shape_cast %113 : vector<8xf32> to vector<8x1xf32>
    %115 = vector.broadcast %114 : vector<8x1xf32> to vector<8x128xf32>
    %116 = arith.subf %112, %115 : vector<8x128xf32>
    %117 = math.exp %116 : vector<8x128xf32>
    %cst_64 = arith.constant dense<0.000000e+00> : vector<8xf32>
    %118 = vector.multi_reduction <add>, %117, %cst_64 [1] : vector<8x128xf32> to vector<8xf32>
    %119 = vector.shape_cast %118 : vector<8xf32> to vector<8x1xf32>
    %120 = vector.broadcast %119 : vector<8x1xf32> to vector<8x128xf32>
    %121 = arith.divf %117, %120 : vector<8x128xf32>
    %122 = arith.truncf %121 : vector<8x128xf32> to vector<8x128xbf16>
    %123 = vector.extract_strided_slice %50 {offsets = [0, 96], sizes = [128, 32], strides = [1, 1]} : vector<128x256xbf16> to vector<128x32xbf16>
    %cst_65 = arith.constant dense<0.000000e+00> : vector<8x32xf32>
    %124 = tpu.matmul %122, %123, %cst_65 {dimension_numbers = #tpu.dot_dimension_numbers<[1], [0], [0], [1], [0, 0, 1, 1], [], []>} : vector<8x128xbf16>, vector<128x32xbf16>, vector<8x32xf32> -> vector<8x32xf32>
    %125 = vector.extract_strided_slice %38 {offsets = [0, 128], sizes = [8, 32], strides = [1, 1]} : vector<8x256xbf16> to vector<8x32xbf16>
    %126 = vector.extract_strided_slice %44 {offsets = [0, 128], sizes = [128, 32], strides = [1, 1]} : vector<128x256xbf16> to vector<128x32xbf16>
    %cst_66 = arith.constant dense<0.000000e+00> : vector<8x128xf32>
    %127 = tpu.matmul %125, %126, %cst_66 {dimension_numbers = #tpu.dot_dimension_numbers<[1], [1], [0], [0], [0, 0, 1, 0], [], []>} : vector<8x32xbf16>, vector<128x32xbf16>, vector<8x128xf32> -> vector<8x128xf32>
    %128 = vector.broadcast %56 : vector<1x128xf32> to vector<8x128xf32>
    %129 = arith.addf %127, %128 : vector<8x128xf32>
    %cst_67 = arith.constant dense<0xFF800000> : vector<8xf32>
    %130 = vector.multi_reduction <maximumf>, %129, %cst_67 [1] : vector<8x128xf32> to vector<8xf32>
    %131 = vector.shape_cast %130 : vector<8xf32> to vector<8x1xf32>
    %132 = vector.broadcast %131 : vector<8x1xf32> to vector<8x128xf32>
    %133 = arith.subf %129, %132 : vector<8x128xf32>
    %134 = math.exp %133 : vector<8x128xf32>
    %cst_68 = arith.constant dense<0.000000e+00> : vector<8xf32>
    %135 = vector.multi_reduction <add>, %134, %cst_68 [1] : vector<8x128xf32> to vector<8xf32>
    %136 = vector.shape_cast %135 : vector<8xf32> to vector<8x1xf32>
    %137 = vector.broadcast %136 : vector<8x1xf32> to vector<8x128xf32>
    %138 = arith.divf %134, %137 : vector<8x128xf32>
    %139 = arith.truncf %138 : vector<8x128xf32> to vector<8x128xbf16>
    %140 = vector.extract_strided_slice %50 {offsets = [0, 128], sizes = [128, 32], strides = [1, 1]} : vector<128x256xbf16> to vector<128x32xbf16>
    %cst_69 = arith.constant dense<0.000000e+00> : vector<8x32xf32>
    %141 = tpu.matmul %139, %140, %cst_69 {dimension_numbers = #tpu.dot_dimension_numbers<[1], [0], [0], [1], [0, 0, 1, 1], [], []>} : vector<8x128xbf16>, vector<128x32xbf16>, vector<8x32xf32> -> vector<8x32xf32>
    %142 = vector.extract_strided_slice %38 {offsets = [0, 160], sizes = [8, 32], strides = [1, 1]} : vector<8x256xbf16> to vector<8x32xbf16>
    %143 = vector.extract_strided_slice %44 {offsets = [0, 160], sizes = [128, 32], strides = [1, 1]} : vector<128x256xbf16> to vector<128x32xbf16>
    %cst_70 = arith.constant dense<0.000000e+00> : vector<8x128xf32>
    %144 = tpu.matmul %142, %143, %cst_70 {dimension_numbers = #tpu.dot_dimension_numbers<[1], [1], [0], [0], [0, 0, 1, 0], [], []>} : vector<8x32xbf16>, vector<128x32xbf16>, vector<8x128xf32> -> vector<8x128xf32>
    %145 = vector.broadcast %56 : vector<1x128xf32> to vector<8x128xf32>
    %146 = arith.addf %144, %145 : vector<8x128xf32>
    %cst_71 = arith.constant dense<0xFF800000> : vector<8xf32>
    %147 = vector.multi_reduction <maximumf>, %146, %cst_71 [1] : vector<8x128xf32> to vector<8xf32>
    %148 = vector.shape_cast %147 : vector<8xf32> to vector<8x1xf32>
    %149 = vector.broadcast %148 : vector<8x1xf32> to vector<8x128xf32>
    %150 = arith.subf %146, %149 : vector<8x128xf32>
    %151 = math.exp %150 : vector<8x128xf32>
    %cst_72 = arith.constant dense<0.000000e+00> : vector<8xf32>
    %152 = vector.multi_reduction <add>, %151, %cst_72 [1] : vector<8x128xf32> to vector<8xf32>
    %153 = vector.shape_cast %152 : vector<8xf32> to vector<8x1xf32>
    %154 = vector.broadcast %153 : vector<8x1xf32> to vector<8x128xf32>
    %155 = arith.divf %151, %154 : vector<8x128xf32>
    %156 = arith.truncf %155 : vector<8x128xf32> to vector<8x128xbf16>
    %157 = vector.extract_strided_slice %50 {offsets = [0, 160], sizes = [128, 32], strides = [1, 1]} : vector<128x256xbf16> to vector<128x32xbf16>
    %cst_73 = arith.constant dense<0.000000e+00> : vector<8x32xf32>
    %158 = tpu.matmul %156, %157, %cst_73 {dimension_numbers = #tpu.dot_dimension_numbers<[1], [0], [0], [1], [0, 0, 1, 1], [], []>} : vector<8x128xbf16>, vector<128x32xbf16>, vector<8x32xf32> -> vector<8x32xf32>
    %159 = vector.extract_strided_slice %38 {offsets = [0, 192], sizes = [8, 32], strides = [1, 1]} : vector<8x256xbf16> to vector<8x32xbf16>
    %160 = vector.extract_strided_slice %44 {offsets = [0, 192], sizes = [128, 32], strides = [1, 1]} : vector<128x256xbf16> to vector<128x32xbf16>
    %cst_74 = arith.constant dense<0.000000e+00> : vector<8x128xf32>
    %161 = tpu.matmul %159, %160, %cst_74 {dimension_numbers = #tpu.dot_dimension_numbers<[1], [1], [0], [0], [0, 0, 1, 0], [], []>} : vector<8x32xbf16>, vector<128x32xbf16>, vector<8x128xf32> -> vector<8x128xf32>
    %162 = vector.broadcast %56 : vector<1x128xf32> to vector<8x128xf32>
    %163 = arith.addf %161, %162 : vector<8x128xf32>
    %cst_75 = arith.constant dense<0xFF800000> : vector<8xf32>
    %164 = vector.multi_reduction <maximumf>, %163, %cst_75 [1] : vector<8x128xf32> to vector<8xf32>
    %165 = vector.shape_cast %164 : vector<8xf32> to vector<8x1xf32>
    %166 = vector.broadcast %165 : vector<8x1xf32> to vector<8x128xf32>
    %167 = arith.subf %163, %166 : vector<8x128xf32>
    %168 = math.exp %167 : vector<8x128xf32>
    %cst_76 = arith.constant dense<0.000000e+00> : vector<8xf32>
    %169 = vector.multi_reduction <add>, %168, %cst_76 [1] : vector<8x128xf32> to vector<8xf32>
    %170 = vector.shape_cast %169 : vector<8xf32> to vector<8x1xf32>
    %171 = vector.broadcast %170 : vector<8x1xf32> to vector<8x128xf32>
    %172 = arith.divf %168, %171 : vector<8x128xf32>
    %173 = arith.truncf %172 : vector<8x128xf32> to vector<8x128xbf16>
    %174 = vector.extract_strided_slice %50 {offsets = [0, 192], sizes = [128, 32], strides = [1, 1]} : vector<128x256xbf16> to vector<128x32xbf16>
    %cst_77 = arith.constant dense<0.000000e+00> : vector<8x32xf32>
    %175 = tpu.matmul %173, %174, %cst_77 {dimension_numbers = #tpu.dot_dimension_numbers<[1], [0], [0], [1], [0, 0, 1, 1], [], []>} : vector<8x128xbf16>, vector<128x32xbf16>, vector<8x32xf32> -> vector<8x32xf32>
    %176 = vector.extract_strided_slice %38 {offsets = [0, 224], sizes = [8, 32], strides = [1, 1]} : vector<8x256xbf16> to vector<8x32xbf16>
    %177 = vector.extract_strided_slice %44 {offsets = [0, 224], sizes = [128, 32], strides = [1, 1]} : vector<128x256xbf16> to vector<128x32xbf16>
    %cst_78 = arith.constant dense<0.000000e+00> : vector<8x128xf32>
    %178 = tpu.matmul %176, %177, %cst_78 {dimension_numbers = #tpu.dot_dimension_numbers<[1], [1], [0], [0], [0, 0, 1, 0], [], []>} : vector<8x32xbf16>, vector<128x32xbf16>, vector<8x128xf32> -> vector<8x128xf32>
    %179 = vector.broadcast %56 : vector<1x128xf32> to vector<8x128xf32>
    %180 = arith.addf %178, %179 : vector<8x128xf32>
    %cst_79 = arith.constant dense<0xFF800000> : vector<8xf32>
    %181 = vector.multi_reduction <maximumf>, %180, %cst_79 [1] : vector<8x128xf32> to vector<8xf32>
    %182 = vector.shape_cast %181 : vector<8xf32> to vector<8x1xf32>
    %183 = vector.broadcast %182 : vector<8x1xf32> to vector<8x128xf32>
    %184 = arith.subf %180, %183 : vector<8x128xf32>
    %185 = math.exp %184 : vector<8x128xf32>
    %cst_80 = arith.constant dense<0.000000e+00> : vector<8xf32>
    %186 = vector.multi_reduction <add>, %185, %cst_80 [1] : vector<8x128xf32> to vector<8xf32>
    %187 = vector.shape_cast %186 : vector<8xf32> to vector<8x1xf32>
    %188 = vector.broadcast %187 : vector<8x1xf32> to vector<8x128xf32>
    %189 = arith.divf %185, %188 : vector<8x128xf32>
    %190 = arith.truncf %189 : vector<8x128xf32> to vector<8x128xbf16>
    %191 = vector.extract_strided_slice %50 {offsets = [0, 224], sizes = [128, 32], strides = [1, 1]} : vector<128x256xbf16> to vector<128x32xbf16>
    %cst_81 = arith.constant dense<0.000000e+00> : vector<8x32xf32>
    %192 = tpu.matmul %190, %191, %cst_81 {dimension_numbers = #tpu.dot_dimension_numbers<[1], [0], [0], [1], [0, 0, 1, 1], [], []>} : vector<8x128xbf16>, vector<128x32xbf16>, vector<8x32xf32> -> vector<8x32xf32>
    %193 = tpu.concatenate %73, %90, %107, %124, %141, %158, %175, %192 in 1 : vector<8x32xf32>, vector<8x32xf32>, vector<8x32xf32>, vector<8x32xf32>, vector<8x32xf32>, vector<8x32xf32>, vector<8x32xf32>, vector<8x32xf32> -> vector<8x256xf32>
    %194 = arith.truncf %193 : vector<8x256xf32> to vector<8x256xbf16>
    %c0_82 = arith.constant 0 : index
    %c0_83 = arith.constant 0 : index
    %195 = vector.load %arg15[%c0_82, %c0_83] : memref<256x256xbf16, #tpu.memory_space<vmem>>, vector<256x256xbf16>
    %cst_84 = arith.constant dense<0.000000e+00> : vector<8x256xf32>
    %196 = tpu.matmul %194, %195, %cst_84 {dimension_numbers = #tpu.dot_dimension_numbers<[1], [0], [0], [1], [0, 0, 1, 1], [], []>} : vector<8x256xbf16>, vector<256x256xbf16>, vector<8x256xf32> -> vector<8x256xf32>
    %c0_85 = arith.constant 0 : index
    %c0_86 = arith.constant 0 : index
    %197 = vector.load %arg16[%c0_85, %c0_86] : memref<1x256xf32, #tpu.memory_space<vmem>>, vector<1x256xf32>
    %198 = vector.broadcast %197 : vector<1x256xf32> to vector<8x256xf32>
    %199 = arith.addf %196, %198 : vector<8x256xf32>
    %200 = arith.addf %26, %199 : vector<8x256xf32>
    %c0_87 = arith.constant 0 : index
    %c0_88 = arith.constant 0 : index
    %201 = vector.load %arg17[%c0_87, %c0_88] : memref<1x256xf32, #tpu.memory_space<vmem>>, vector<1x256xf32>
    %c0_89 = arith.constant 0 : index
    %c0_90 = arith.constant 0 : index
    %202 = vector.load %arg18[%c0_89, %c0_90] : memref<1x256xf32, #tpu.memory_space<vmem>>, vector<1x256xf32>
    %cst_91 = arith.constant dense<0.000000e+00> : vector<8xf32>
    %203 = vector.multi_reduction <add>, %200, %cst_91 [1] : vector<8x256xf32> to vector<8xf32>
    %204 = vector.shape_cast %203 : vector<8xf32> to vector<8x1xf32>
    %cst_92 = arith.constant 2.560000e+02 : f32
    %205 = vector.broadcast %cst_92 : f32 to vector<8x1xf32>
    %206 = arith.divf %204, %205 : vector<8x1xf32>
    %207 = vector.broadcast %206 : vector<8x1xf32> to vector<8x256xf32>
    %208 = arith.subf %200, %207 : vector<8x256xf32>
    %209 = arith.mulf %208, %208 : vector<8x256xf32>
    %cst_93 = arith.constant dense<0.000000e+00> : vector<8xf32>
    %210 = vector.multi_reduction <add>, %209, %cst_93 [1] : vector<8x256xf32> to vector<8xf32>
    %211 = vector.shape_cast %210 : vector<8xf32> to vector<8x1xf32>
    %cst_94 = arith.constant 2.560000e+02 : f32
    %212 = vector.broadcast %cst_94 : f32 to vector<8x1xf32>
    %213 = arith.divf %211, %212 : vector<8x1xf32>
    %214 = vector.broadcast %206 : vector<8x1xf32> to vector<8x256xf32>
    %215 = arith.subf %200, %214 : vector<8x256xf32>
    %cst_95 = arith.constant 9.99999974E-6 : f32
    %216 = vector.broadcast %cst_95 : f32 to vector<8x1xf32>
    %217 = arith.addf %213, %216 : vector<8x1xf32>
    %218 = math.rsqrt %217 : vector<8x1xf32>
    %219 = vector.broadcast %218 : vector<8x1xf32> to vector<8x256xf32>
    %220 = arith.mulf %215, %219 : vector<8x256xf32>
    %221 = vector.broadcast %201 : vector<1x256xf32> to vector<8x256xf32>
    %222 = arith.mulf %220, %221 : vector<8x256xf32>
    %223 = vector.broadcast %202 : vector<1x256xf32> to vector<8x256xf32>
    %224 = arith.addf %222, %223 : vector<8x256xf32>
    %225 = arith.truncf %224 : vector<8x256xf32> to vector<8x256xbf16>
    %c0_96 = arith.constant 0 : index
    %c0_97 = arith.constant 0 : index
    %226 = vector.load %arg19[%c0_96, %c0_97] : memref<256x2048xbf16, #tpu.memory_space<vmem>>, vector<256x2048xbf16>
    %cst_98 = arith.constant dense<0.000000e+00> : vector<8x2048xf32>
    %227 = tpu.matmul %225, %226, %cst_98 {dimension_numbers = #tpu.dot_dimension_numbers<[1], [0], [0], [1], [0, 0, 1, 1], [], []>} : vector<8x256xbf16>, vector<256x2048xbf16>, vector<8x2048xf32> -> vector<8x2048xf32>
    %c0_99 = arith.constant 0 : index
    %c0_100 = arith.constant 0 : index
    %228 = vector.load %arg20[%c0_99, %c0_100] : memref<1x2048xf32, #tpu.memory_space<vmem>>, vector<1x2048xf32>
    %229 = vector.broadcast %228 : vector<1x2048xf32> to vector<8x2048xf32>
    %230 = arith.addf %227, %229 : vector<8x2048xf32>
    %cst_101 = arith.constant 0.000000e+00 : f32
    %231 = vector.broadcast %cst_101 : f32 to vector<8x2048xf32>
    %232 = arith.maximumf %230, %231 : vector<8x2048xf32>
    %233 = arith.truncf %232 : vector<8x2048xf32> to vector<8x2048xbf16>
    %c0_102 = arith.constant 0 : index
    %c0_103 = arith.constant 0 : index
    %234 = vector.load %arg21[%c0_102, %c0_103] : memref<2048x256xbf16, #tpu.memory_space<vmem>>, vector<2048x256xbf16>
    %cst_104 = arith.constant dense<0.000000e+00> : vector<8x256xf32>
    %235 = tpu.matmul %233, %234, %cst_104 {dimension_numbers = #tpu.dot_dimension_numbers<[1], [0], [0], [1], [0, 0, 1, 1], [], []>} : vector<8x2048xbf16>, vector<2048x256xbf16>, vector<8x256xf32> -> vector<8x256xf32>
    %c0_105 = arith.constant 0 : index
    %c0_106 = arith.constant 0 : index
    %236 = vector.load %arg22[%c0_105, %c0_106] : memref<1x256xf32, #tpu.memory_space<vmem>>, vector<1x256xf32>
    %237 = vector.broadcast %236 : vector<1x256xf32> to vector<8x256xf32>
    %238 = arith.addf %235, %237 : vector<8x256xf32>
    %239 = arith.addf %224, %238 : vector<8x256xf32>
    %c0_107 = arith.constant 0 : index
    %c0_108 = arith.constant 0 : index
    %240 = vector.load %arg23[%c0_107, %c0_108] : memref<1x256xf32, #tpu.memory_space<vmem>>, vector<1x256xf32>
    %c0_109 = arith.constant 0 : index
    %c0_110 = arith.constant 0 : index
    %241 = vector.load %arg24[%c0_109, %c0_110] : memref<1x256xf32, #tpu.memory_space<vmem>>, vector<1x256xf32>
    %cst_111 = arith.constant dense<0.000000e+00> : vector<8xf32>
    %242 = vector.multi_reduction <add>, %239, %cst_111 [1] : vector<8x256xf32> to vector<8xf32>
    %243 = vector.shape_cast %242 : vector<8xf32> to vector<8x1xf32>
    %cst_112 = arith.constant 2.560000e+02 : f32
    %244 = vector.broadcast %cst_112 : f32 to vector<8x1xf32>
    %245 = arith.divf %243, %244 : vector<8x1xf32>
    %246 = vector.broadcast %245 : vector<8x1xf32> to vector<8x256xf32>
    %247 = arith.subf %239, %246 : vector<8x256xf32>
    %248 = arith.mulf %247, %247 : vector<8x256xf32>
    %cst_113 = arith.constant dense<0.000000e+00> : vector<8xf32>
    %249 = vector.multi_reduction <add>, %248, %cst_113 [1] : vector<8x256xf32> to vector<8xf32>
    %250 = vector.shape_cast %249 : vector<8xf32> to vector<8x1xf32>
    %cst_114 = arith.constant 2.560000e+02 : f32
    %251 = vector.broadcast %cst_114 : f32 to vector<8x1xf32>
    %252 = arith.divf %250, %251 : vector<8x1xf32>
    %253 = vector.broadcast %245 : vector<8x1xf32> to vector<8x256xf32>
    %254 = arith.subf %239, %253 : vector<8x256xf32>
    %cst_115 = arith.constant 9.99999974E-6 : f32
    %255 = vector.broadcast %cst_115 : f32 to vector<8x1xf32>
    %256 = arith.addf %252, %255 : vector<8x1xf32>
    %257 = math.rsqrt %256 : vector<8x1xf32>
    %258 = vector.broadcast %257 : vector<8x1xf32> to vector<8x256xf32>
    %259 = arith.mulf %254, %258 : vector<8x256xf32>
    %260 = vector.broadcast %240 : vector<1x256xf32> to vector<8x256xf32>
    %261 = arith.mulf %259, %260 : vector<8x256xf32>
    %262 = vector.broadcast %241 : vector<1x256xf32> to vector<8x256xf32>
    %263 = arith.addf %261, %262 : vector<8x256xf32>
    %264 = vector.extract_strided_slice %263 {offsets = [0, 0], sizes = [1, 256], strides = [1, 1]} : vector<8x256xf32> to vector<1x256xf32>
    %c0_116 = arith.constant 0 : index
    %c0_117 = arith.constant 0 : index
    %c0_118 = arith.constant 0 : index
    %265 = vector.load %arg25[%c0_116, %c0_117, %c0_118] : memref<1x1x256xf32, #tpu.memory_space<vmem>>, vector<1x1x256xf32>
    %266 = vector.shape_cast %265 : vector<1x1x256xf32> to vector<1x256xf32>
    %267 = vector.shape_cast %264 : vector<1x256xf32> to vector<1x1x256xf32>
    tpu.vector_store %arg25[%c0_116, %c0_117, %c0_118], %267 {strides = array<i32>} : memref<1x1x256xf32, #tpu.memory_space<vmem>>, vector<1x1x256xf32>,
    return
  }
  func.func @transform_0(%arg0: i32) -> (i32, i32, i32) {
    %c0_i32 = arith.constant 0 : i32
    %c0_i32_0 = arith.constant 0 : i32
    %c0_i32_1 = arith.constant 0 : i32
    return %arg0, %c0_i32, %c0_i32_0 : i32, i32, i32
  }
  func.func @transform_1(%arg0: i32) -> (i32, i32, i32) {
    %c0_i32 = arith.constant 0 : i32
    %c0_i32_0 = arith.constant 0 : i32
    %c0_i32_1 = arith.constant 0 : i32
    return %arg0, %c0_i32, %c0_i32_0 : i32, i32, i32
  }
  func.func @transform_2(%arg0: i32) -> (i32, i32) {
    %c0_i32 = arith.constant 0 : i32
    %c0_i32_0 = arith.constant 0 : i32
    %c0_i32_1 = arith.constant 0 : i32
    return %c0_i32, %c0_i32_0 : i32, i32
  }
  func.func @transform_3(%arg0: i32) -> (i32, i32) {
    %c0_i32 = arith.constant 0 : i32
    %c0_i32_0 = arith.constant 0 : i32
    %c0_i32_1 = arith.constant 0 : i32
    return %c0_i32, %c0_i32_0 : i32, i32
  }
  func.func @transform_4(%arg0: i32) -> (i32, i32) {
    %c0_i32 = arith.constant 0 : i32
    %c0_i32_0 = arith.constant 0 : i32
    %c0_i32_1 = arith.constant 0 : i32
    return %c0_i32, %c0_i32_0 : i32, i32
  }
  func.func @transform_5(%arg0: i32) -> (i32, i32) {
    %c0_i32 = arith.constant 0 : i32
    %c0_i32_0 = arith.constant 0 : i32
    %c0_i32_1 = arith.constant 0 : i32
    return %c0_i32, %c0_i32_0 : i32, i32
  }
  func.func @transform_6(%arg0: i32) -> (i32, i32) {
    %c0_i32 = arith.constant 0 : i32
    %c0_i32_0 = arith.constant 0 : i32
    %c0_i32_1 = arith.constant 0 : i32
    return %c0_i32, %c0_i32_0 : i32, i32
  }
  func.func @transform_7(%arg0: i32) -> (i32, i32) {
    %c0_i32 = arith.constant 0 : i32
    %c0_i32_0 = arith.constant 0 : i32
    %c0_i32_1 = arith.constant 0 : i32
    return %c0_i32, %c0_i32_0 : i32, i32
  }
  func.func @transform_8(%arg0: i32) -> (i32, i32) {
    %c0_i32 = arith.constant 0 : i32
    %c0_i32_0 = arith.constant 0 : i32
    %c0_i32_1 = arith.constant 0 : i32
    return %c0_i32, %c0_i32_0 : i32, i32
  }
  func.func @transform_9(%arg0: i32) -> (i32, i32) {
    %c0_i32 = arith.constant 0 : i32
    %c0_i32_0 = arith.constant 0 : i32
    %c0_i32_1 = arith.constant 0 : i32
    return %c0_i32, %c0_i32_0 : i32, i32
  }
  func.func @transform_10(%arg0: i32) -> (i32, i32) {
    %c0_i32 = arith.constant 0 : i32
    %c0_i32_0 = arith.constant 0 : i32
    %c0_i32_1 = arith.constant 0 : i32
    return %c0_i32, %c0_i32_0 : i32, i32
  }
  func.func @transform_11(%arg0: i32) -> (i32, i32) {
    %c0_i32 = arith.constant 0 : i32
    %c0_i32_0 = arith.constant 0 : i32
    %c0_i32_1 = arith.constant 0 : i32
    return %c0_i32, %c0_i32_0 : i32, i32
  }
  func.func @transform_12(%arg0: i32) -> (i32, i32) {
    %c0_i32 = arith.constant 0 : i32
    %c0_i32_0 = arith.constant 0 : i32
    %c0_i32_1 = arith.constant 0 : i32
    return %c0_i32, %c0_i32_0 : i32, i32
  }
  func.func @transform_13(%arg0: i32) -> (i32, i32) {
    %c0_i32 = arith.constant 0 : i32
    %c0_i32_0 = arith.constant 0 : i32
    %c0_i32_1 = arith.constant 0 : i32
    return %c0_i32, %c0_i32_0 : i32, i32
  }
  func.func @transform_14(%arg0: i32) -> (i32, i32) {
    %c0_i32 = arith.constant 0 : i32
    %c0_i32_0 = arith.constant 0 : i32
    %c0_i32_1 = arith.constant 0 : i32
    return %c0_i32, %c0_i32_0 : i32, i32
  }
  func.func @transform_15(%arg0: i32) -> (i32, i32) {
    %c0_i32 = arith.constant 0 : i32
    %c0_i32_0 = arith.constant 0 : i32
    %c0_i32_1 = arith.constant 0 : i32
    return %c0_i32, %c0_i32_0 : i32, i32
  }
  func.func @transform_16(%arg0: i32) -> (i32, i32) {
    %c0_i32 = arith.constant 0 : i32
    %c0_i32_0 = arith.constant 0 : i32
    %c0_i32_1 = arith.constant 0 : i32
    return %c0_i32, %c0_i32_0 : i32, i32
  }
  func.func @transform_17(%arg0: i32) -> (i32, i32) {
    %c0_i32 = arith.constant 0 : i32
    %c0_i32_0 = arith.constant 0 : i32
    %c0_i32_1 = arith.constant 0 : i32
    return %c0_i32, %c0_i32_0 : i32, i32
  }
  func.func @transform_18(%arg0: i32) -> (i32, i32) {
    %c0_i32 = arith.constant 0 : i32
    %c0_i32_0 = arith.constant 0 : i32
    %c0_i32_1 = arith.constant 0 : i32
    return %c0_i32, %c0_i32_0 : i32, i32
  }
  func.func @transform_19(%arg0: i32) -> (i32, i32) {
    %c0_i32 = arith.constant 0 : i32
    %c0_i32_0 = arith.constant 0 : i32
    %c0_i32_1 = arith.constant 0 : i32
    return %c0_i32, %c0_i32_0 : i32, i32
  }
  func.func @transform_20(%arg0: i32) -> (i32, i32) {
    %c0_i32 = arith.constant 0 : i32
    %c0_i32_0 = arith.constant 0 : i32
    %c0_i32_1 = arith.constant 0 : i32
    return %c0_i32, %c0_i32_0 : i32, i32
  }
  func.func @transform_21(%arg0: i32) -> (i32, i32) {
    %c0_i32 = arith.constant 0 : i32
    %c0_i32_0 = arith.constant 0 : i32
    %c0_i32_1 = arith.constant 0 : i32
    return %c0_i32, %c0_i32_0 : i32, i32
  }
  func.func @transform_22(%arg0: i32) -> (i32, i32) {
    %c0_i32 = arith.constant 0 : i32
    %c0_i32_0 = arith.constant 0 : i32
    %c0_i32_1 = arith.constant 0 : i32
    return %c0_i32, %c0_i32_0 : i32, i32
  }
  func.func @transform_23(%arg0: i32) -> (i32, i32) {
    %c0_i32 = arith.constant 0 : i32
    %c0_i32_0 = arith.constant 0 : i32
    %c0_i32_1 = arith.constant 0 : i32
    return %c0_i32, %c0_i32_0 : i32, i32
  }
  func.func @transform_24(%arg0: i32) -> (i32, i32, i32) {
    %c0_i32 = arith.constant 0 : i32
    %c0_i32_0 = arith.constant 0 : i32
    %c0_i32_1 = arith.constant 0 : i32
    return %arg0, %c0_i32, %c0_i32_0 : i32, i32, i32
  }
}

</mosaic_0001>

<bundles_post_ra>
// kernel: vlfusion_forward.1
= control target key start
LH: loop header
LB: loop body
LE: loop exit
PB: predicated region body
PF: predicated region fallthrough
CT: control target
= control target key end

     0   :  { %s13780_s0 = inlined_call_operand.vmem [shape: bf16[2,64,256], index: 0, kind: input, shape index: {}]   ;;  %s13781_s1 = inlined_call_operand.vmem [shape: bf16[2,8,768], index: 1, kind: input, shape index: {}]   ;;  %s13782_s2 = inlined_call_operand.vmem [shape: f32[128,256], index: 2, kind: input, shape index: {}]   ;;  %s13783_s3 = inlined_call_operand.vmem [shape: bf16[256,256], index: 3, kind: input, shape index: {}]   ;;  %s13784_s4 = inlined_call_operand.vmem [shape: f32[1,256], index: 4, kind: input, shape index: {}]   ;;  %s13785_s5 = inlined_call_operand.vmem [shape: bf16[768,256], index: 5, kind: input, shape index: {}]   ;;  %s13786_s6 = inlined_call_operand.vmem [shape: f32[1,256], index: 6, kind: input, shape index: {}]   ;;  %s13787_s7 = inlined_call_operand.hbm [shape: f32[1,256], index: 7, kind: input, shape index: {}]   ;;  %s13788_s8 = inlined_call_operand.vmem [shape: bf16[256,256], index: 8, kind: input, shape index: {}]   ;;  %s13789_s9 = inlined_call_operand.hbm [shape: f32[1,256], index: 9, kind: input, shape index: {}]   ;;  %s13790_s10 = inlined_call_operand.hbm [shape: bf16[256,256], index: 10, kind: input, shape index: {}]   ;;  %s13791_s11 = inlined_call_operand.hbm [shape: f32[1,256], index: 11, kind: input, shape index: {}]   ;;  %s13792_s12 = inlined_call_operand.hbm [shape: bf16[256,256], index: 12, kind: input, shape index: {}]   ;;  %s13793_s13 = inlined_call_operand.hbm [shape: f32[1,256], index: 13, kind: input, shape index: {}]   ;;  %s13794_s14 = inlined_call_operand.hbm [shape: bf16[256,256], index: 14, kind: input, shape index: {}]   ;;  %s13795_s15 = inlined_call_operand.hbm [shape: f32[1,256], index: 15, kind: input, shape index: {}]   ;;  %s13796_s16 = inlined_call_operand.hbm [shape: f32[1,256], index: 16, kind: input, shape index: {}]   ;;  %s13797_s17 = inlined_call_operand.hbm [shape: f32[1,256], index: 17, kind: input, shape index: {}]   ;;  %s13798_s18 = inlined_call_operand.hbm [shape: bf16[256,2048], index: 18, kind: input, shape index: {}]   ;;  %s13799_s19 = inlined_call_operand.hbm [shape: f32[1,2048], index: 19, kind: input, shape index: {}]   ;;  %s13800_s20 = inlined_call_operand.hbm [shape: bf16[2048,256], index: 20, kind: input, shape index: {}]   ;;  %s13801_s21 = inlined_call_operand.hbm [shape: f32[1,256], index: 21, kind: input, shape index: {}]   ;;  %s13802_s22 = inlined_call_operand.hbm [shape: f32[1,256], index: 22, kind: input, shape index: {}]   ;;  %s13803_s23 = inlined_call_operand.hbm [shape: f32[1,256], index: 23, kind: input, shape index: {}]   ;;  %s13804_s24 = inlined_call_operand.vmem [shape: f32[2,1,256], index: 24, kind: output, shape index: {}]  }
   0x1   :  { %13817 = sst [smem:[#allocation39_spill]] %s13780_s0 }
   0x2   :  { %13818 = sst [smem:[#allocation40_spill]] %s13781_s1 }
   0x3   :  { %13819 = sst [smem:[#allocation41_spill]] %s13782_s2 }
   0x4   :  { %13820 = sst [smem:[#allocation42_spill]] %s13783_s3 }
   0x5   :  { %13821 = sst [smem:[#allocation43_spill]] %s13784_s4 }
   0x6   :  { %13822 = sst [smem:[#allocation44_spill]] %s13785_s5 }
   0x7   :  { %13823 = sst [smem:[#allocation45_spill]] %s13786_s6 }
   0x8   :  { %13824 = sst [smem:[#allocation46_spill]] %s13787_s7 }
   0x9   :  { %13825 = sst [smem:[#allocation47_spill]] %s13788_s8 }
   0xa   :  { %13826 = sst [smem:[#allocation48_spill]] %s13789_s9 }
   0xb   :  { %13827 = sst [smem:[#allocation49_spill]] %s13791_s11 }
   0xc   :  { %13828 = sst [smem:[#allocation50_spill]] %s13804_s24 }
   0xd   :  { %29 = vsyncpa [#allocation4], 0 }
   0xe   :  { %30 = vsyncpa [#allocation6], 0 }
   0xf   :  { %31 = vsyncpa [#allocation9], 0 }
  0x10   :  { %32 = vsyncpa [#allocation12], 0 }
  0x11   :  { %33 = vsyncpa [#allocation15], 0 }
  0x12   :  { %34 = vsyncpa [#allocation18], 0 }
  0x13   :  { %35 = vsyncpa [#allocation21], 0 }
  0x14   :  { %36 = vsyncpa [#allocation24], 0 }
  0x15   :  { %37 = vsyncpa [#allocation27], 0  ;;  %s11808_s5 = smov 0  }
  0x16 LB: > { %13829 = sst [smem:[#allocation37_spill]] %s11654_s5  ;;  %s11656_s26 = smov [#allocation5]   ;;  %s11654_s5 = sphi %s11808_s5, %s43_s5  }
  0x17   : > { %s630_s27 = sshll.u32 %s11656_s26, 4  ;;  %s11814_s28 = sadd.s32 4294967295, %s11654_s5   ;;  %s11819_s27 = int_to_ptr.vmem [resolvable:$true] %s630_s27 }
  0x18   : > { %13830 = sst [smem:[#allocation38_spill]] %s11814_s28  ;;  %p8833_p0 = scmp.ge.s32.totalorder %s11654_s5, 1 }
  0x19   : > { %p588_p1 = scmp.lt.s32.totalorder %s11654_s5, 3  ;;  %p13813_p2 = scmp.eq.s32.totalorder %s11814_s28, 0 }
  0x1a   : > { %s11657_s2 = smov [#allocation8]   ;;  %s11658_s0 = smov [#allocation11]  }
  0x1b   : > { %p11821_p3 = pnand %p8833_p0, %p588_p1  ;;  %s654_s29 = sshll.u32 %s11657_s2, 4  ;;  %s11827_s29 = int_to_ptr.vmem [resolvable:$true] %s654_s29 }
  0x1c   : > { %s678_s7 = sshll.u32 %s11658_s0, 4  ;;  %s11659_s3 = smov [#allocation14]   ;;  %s11835_s7 = int_to_ptr.vmem [resolvable:$true] %s678_s7 }
  0x1d   : > { %s13831_s6 = scalar_select %p11821_p3, 1, 0 }
  0x1e   : > { %p10204_p4 = pneg %p11821_p3  ;;  %s702_s25 = sshll.u32 %s11659_s3, 4  ;;  %s11837_s25 = int_to_ptr.vmem [resolvable:$true] %s702_s25 }
  0x1f   : > { %s13833_s9 = sld [smem:[#allocation48_spill]] }
  0x20   : > { %p11831_p5 = pnand %p13813_p2, %p10204_p4 }
  0x22   : > { %p11847_p7 = pneg %p11831_p5 }
  0x25   : > { %s11164_s1 = scalar_lea.hbm %s13833_s9, 32 }
  0x26   : > { %p11165_p6 = scmp.ne.s32.totalorder %s13833_s9, %s11164_s1  ;;  %p11171_p10 = scmp.lt.u32.totalorder %s11164_s1, %s13833_s9 }
  0x28   : > { %p11167_p8 = pnand %p11847_p7, %p11165_p6 }
  0x2a   : > { %p11168_p9 = pneg %p11167_p8 }
  0x2c   : > { %p11173_p11 = pnand %p11171_p10, %p11168_p9 }
  0x2e   : > { %11176 = shalt.err (!%p11173_p11)
}
  0x2f   : > { %s11177_s8 = scalar_lea.vmem %s11819_s27, 32  ;;  %p11185_p1 = scmp.lt.s32.totalorder %s11819_s27, %s11819_s27 }
  0x30   : > { %p11178_p12 = scmp.ne.s32.totalorder %s11819_s27, %s11177_s8  ;;  %p11186_p4 = scmp.lt.s32.totalorder %s11177_s8, %s11177_s8 }
  0x32   : > { %p11180_p13 = pnand %p11178_p12, %p11847_p7  ;;  %p11187_p6 = por %p11186_p4, %p11185_p1 }
  0x34   : > { %p11181_p0 = pneg %p11180_p13 }
  0x36   : > { %p11188_p8 = pnand %p11187_p6, %p11181_p0 }
  0x38   : > { %11191 = shalt.err (!%p11188_p8)
}
  0x39   : > { %10210 = dma.hbm_to_vmem [thread:$0]  (!%p11831_p5), %s13833_s9, 32, %s11819_s27, [#allocation6]  }
  0x3a   : > { %s13835_s11 = sld [smem:[#allocation49_spill]] }
  0x40   : > { %s11192_s2 = scalar_lea.hbm %s13835_s11, 32 }
  0x41   : > { %p11193_p9 = scmp.ne.s32.totalorder %s13835_s11, %s11192_s2  ;;  %p11199_p12 = scmp.lt.u32.totalorder %s11192_s2, %s13835_s11 }
  0x43   : > { %p11195_p10 = pnand %p11193_p9, %p11847_p7 }
  0x45   : > { %p11196_p11 = pneg %p11195_p10 }
  0x47   : > { %p11201_p13 = pnand %p11199_p12, %p11196_p11 }
  0x49   : > { %11204 = shalt.err (!%p11201_p13)
}
  0x4a   : > { %s11205_s27 = scalar_lea.vmem %s11827_s29, 32  ;;  %p11213_p6 = scmp.lt.s32.totalorder %s11827_s29, %s11827_s29 }
  0x4b   : > { %p11206_p0 = scmp.ne.s32.totalorder %s11827_s29, %s11205_s27  ;;  %p11214_p8 = scmp.lt.s32.totalorder %s11205_s27, %s11205_s27 }
  0x4d   : > { %p11208_p1 = pnand %p11206_p0, %p11847_p7  ;;  %p11215_p9 = por %p11214_p8, %p11213_p6 }
  0x4f   : > { %p11209_p4 = pneg %p11208_p1 }
  0x51   : > { %p11216_p10 = pnand %p11215_p9, %p11209_p4 }
  0x53   : > { %11219 = shalt.err (!%p11216_p10)
}
  0x54   : > { %10216 = dma.hbm_to_vmem [thread:$0]  (!%p11831_p5), %s13835_s11, 32, %s11827_s29, [#allocation9]  }
  0x55   : > { %s11220_s1 = scalar_lea.hbm %s13793_s13, 32 }
  0x56   : > { %p11221_p11 = scmp.ne.s32.totalorder %s13793_s13, %s11220_s1  ;;  %p11227_p0 = scmp.lt.u32.totalorder %s11220_s1, %s13793_s13 }
  0x58   : > { %p11223_p12 = pnand %p11221_p11, %p11847_p7 }
  0x5a   : > { %p11224_p13 = pneg %p11223_p12 }
  0x5c   : > { %p11229_p1 = pnand %p11227_p0, %p11224_p13 }
  0x5e   : > { %11232 = shalt.err (!%p11229_p1)
}
  0x5f   : > { %s11233_s29 = scalar_lea.vmem %s11835_s7, 32  ;;  %p11241_p9 = scmp.lt.s32.totalorder %s11835_s7, %s11835_s7 }
  0x60   : > { %p11234_p4 = scmp.ne.s32.totalorder %s11835_s7, %s11233_s29  ;;  %p11242_p10 = scmp.lt.s32.totalorder %s11233_s29, %s11233_s29 }
  0x62   : > { %p11236_p6 = pnand %p11234_p4, %p11847_p7  ;;  %p11243_p11 = por %p11242_p10, %p11241_p9 }
  0x64   : > { %p11237_p8 = pneg %p11236_p6 }
  0x66   : > { %p11244_p12 = pnand %p11243_p11, %p11237_p8 }
  0x68   : > { %11247 = shalt.err (!%p11244_p12)
}
  0x69   : > { %10222 = dma.hbm_to_vmem [thread:$0]  (!%p11831_p5), %s13793_s13, 32, %s11835_s7, [#allocation12]  }
  0x6a   : > { %s11248_s4 = scalar_lea.hbm %s13795_s15, 32 }
  0x6b   : > { %p11249_p13 = scmp.ne.s32.totalorder %s13795_s15, %s11248_s4  ;;  %p11255_p4 = scmp.lt.u32.totalorder %s11248_s4, %s13795_s15 }
  0x6d   : > { %p11251_p0 = pnand %p11249_p13, %p11847_p7 }
  0x6f   : > { %p11252_p1 = pneg %p11251_p0 }
  0x71   : > { %p11257_p6 = pnand %p11255_p4, %p11252_p1 }
  0x73   : > { %11260 = shalt.err (!%p11257_p6)
}
  0x74   : > { %s11261_s7 = scalar_lea.vmem %s11837_s25, 32  ;;  %p11269_p11 = scmp.lt.s32.totalorder %s11837_s25, %s11837_s25 }
  0x75   : > { %p11262_p8 = scmp.ne.s32.totalorder %s11837_s25, %s11261_s7  ;;  %p11270_p12 = scmp.lt.s32.totalorder %s11261_s7, %s11261_s7 }
  0x77   : > { %p11264_p9 = pnand %p11262_p8, %p11847_p7  ;;  %p11271_p13 = por %p11270_p12, %p11269_p11 }
  0x79   : > { %p11265_p10 = pneg %p11264_p9 }
  0x7b   : > { %p11272_p0 = pnand %p11271_p13, %p11265_p10 }
  0x7d   : > { %11275 = shalt.err (!%p11272_p0)
}
  0x7e   : > { %10228 = dma.hbm_to_vmem [thread:$0]  (!%p11831_p5), %s13795_s15, 32, %s11837_s25, [#allocation15]  }
  0x7f   : > { %s11660_s27 = smov [#allocation17]   ;;  %s11661_s28 = smov [#allocation20]  }
  0x80   : > { %s724_s24 = sshll.u32 %s11660_s27, 4  ;;  %s748_s5 = sshll.u32 %s11661_s28, 4  ;;  %s725_s24 = int_to_ptr.vmem [resolvable:$true] %s724_s24  ;;  %s749_s5 = int_to_ptr.vmem [resolvable:$true] %s748_s5 }
  0x81   : > { %s11276_s26 = scalar_lea.hbm %s13797_s17, 32 }
  0x82   : > { %p11277_p1 = scmp.ne.s32.totalorder %s13797_s17, %s11276_s26  ;;  %p11283_p8 = scmp.lt.u32.totalorder %s11276_s26, %s13797_s17 }
  0x84   : > { %p11279_p4 = pnand %p11277_p1, %p11847_p7 }
  0x86   : > { %p11280_p6 = pneg %p11279_p4 }
  0x88   : > { %p11285_p9 = pnand %p11283_p8, %p11280_p6 }
  0x8a   : > { %11288 = shalt.err (!%p11285_p9)
}
  0x8b   : > { %s11289_s25 = scalar_lea.vmem %s725_s24, 32  ;;  %p11297_p13 = scmp.lt.s32.totalorder %s725_s24, %s725_s24 }
  0x8c   : > { %p11290_p10 = scmp.ne.s32.totalorder %s725_s24, %s11289_s25  ;;  %p11298_p0 = scmp.lt.s32.totalorder %s11289_s25, %s11289_s25 }
  0x8e   : > { %p11292_p11 = pnand %p11290_p10, %p11847_p7  ;;  %p11299_p2 = por %p11298_p0, %p11297_p13 }
  0x90   : > { %p11293_p12 = pneg %p11292_p11 }
  0x92   : > { %p11300_p3 = pnand %p11299_p2, %p11293_p12 }
  0x94   : > { %11303 = shalt.err (!%p11300_p3)
}
  0x95   : > { %10234 = dma.hbm_to_vmem [thread:$0]  (!%p11831_p5), %s13797_s17, 32, %s725_s24, [#allocation18]  }
  0x96   : > { %s11304_s1 = scalar_lea.hbm %s13799_s19, 256 }
  0x97   : > { %p11305_p1 = scmp.ne.s32.totalorder %s13799_s19, %s11304_s1  ;;  %p11311_p3 = scmp.lt.u32.totalorder %s11304_s1, %s13799_s19 }
  0x99   : > { %p11307_p4 = pnand %p11305_p1, %p11847_p7 }
  0x9b   : > { %p11308_p2 = pneg %p11307_p4 }
  0x9d   : > { %p11313_p6 = pnand %p11311_p3, %p11308_p2 }
  0x9f   : > { %11316 = shalt.err (!%p11313_p6)
}
  0xa0   : > { %s11317_s8 = scalar_lea.vmem %s749_s5, 256  ;;  %p11325_p11 = scmp.lt.s32.totalorder %s749_s5, %s749_s5 }
  0xa1   : > { %p11318_p8 = scmp.ne.s32.totalorder %s749_s5, %s11317_s8  ;;  %p11326_p12 = scmp.lt.s32.totalorder %s11317_s8, %s11317_s8 }
  0xa3   : > { %p11320_p9 = pnand %p11318_p8, %p11847_p7  ;;  %p11327_p13 = por %p11326_p12, %p11325_p11 }
  0xa5   : > { %p11321_p10 = pneg %p11320_p9 }
  0xa7   : > { %p11328_p0 = pnand %p11327_p13, %p11321_p10 }
  0xa9   : > { %11331 = shalt.err (!%p11328_p0)
}
  0xaa   : > { %10240 = dma.hbm_to_vmem [thread:$0]  (!%p11831_p5), %s13799_s19, 256, %s749_s5, [#allocation21]  }
  0xab   : > { %s11662_s29 = smov [#allocation23]   ;;  %s11663_s28 = smov [#allocation3]  }
  0xac   : > { %s772_s27 = sshll.u32 %s11662_s29, 4  ;;  %s616_s4 = sshll.u32 %s11663_s28, 4  ;;  %s773_s27 = int_to_ptr.vmem [resolvable:$true] %s772_s27  ;;  %s617_s4 = int_to_ptr.vmem [resolvable:$true] %s616_s4 }
  0xad   : > { %s11332_s2 = scalar_lea.hbm %s13801_s21, 32 }
  0xae   : > { %p11333_p1 = scmp.ne.s32.totalorder %s13801_s21, %s11332_s2  ;;  %p11339_p3 = scmp.lt.u32.totalorder %s11332_s2, %s13801_s21 }
  0xb0   : > { %p11335_p4 = pnand %p11333_p1, %p11847_p7 }
  0xb2   : > { %p11336_p2 = pneg %p11335_p4 }
  0xb4   : > { %p11341_p6 = pnand %p11339_p3, %p11336_p2 }
  0xb6   : > { %11344 = shalt.err (!%p11341_p6)
}
  0xb7   : > { %s11345_s5 = scalar_lea.vmem %s773_s27, 32  ;;  %p11353_p11 = scmp.lt.s32.totalorder %s773_s27, %s773_s27 }
  0xb8   : > { %p11346_p8 = scmp.ne.s32.totalorder %s773_s27, %s11345_s5  ;;  %p11354_p12 = scmp.lt.s32.totalorder %s11345_s5, %s11345_s5 }
  0xba   : > { %p11348_p9 = pnand %p11346_p8, %p11847_p7  ;;  %p11355_p13 = por %p11354_p12, %p11353_p11 }
  0xbc   : > { %p11349_p10 = pneg %p11348_p9 }
  0xbe   : > { %p11356_p0 = pnand %p11355_p13, %p11349_p10 }
  0xc0   : > { %11359 = shalt.err (!%p11356_p0)
}
  0xc1   : > { %10246 = dma.hbm_to_vmem [thread:$0]  (!%p11831_p5), %s13801_s21, 32, %s773_s27, [#allocation24]  }
  0xc2   : > { %s13836_s26 = sld [smem:[#allocation46_spill]] }
  0xc8   : > { %s11360_s2 = scalar_lea.hbm %s13836_s26, 32 }
  0xc9   : > { %p11361_p1 = scmp.ne.s32.totalorder %s13836_s26, %s11360_s2  ;;  %p11367_p3 = scmp.lt.u32.totalorder %s11360_s2, %s13836_s26 }
  0xcb   : > { %p11363_p4 = pnand %p11361_p1, %p11847_p7 }
  0xcd   : > { %p11364_p2 = pneg %p11363_p4 }
  0xcf   : > { %p11369_p6 = pnand %p11367_p3, %p11364_p2 }
  0xd1   : > { %11372 = shalt.err (!%p11369_p6)
}
  0xd2   : > { %s11373_s5 = scalar_lea.vmem %s617_s4, 32  ;;  %p11381_p11 = scmp.lt.s32.totalorder %s617_s4, %s617_s4 }
  0xd3   : > { %p11374_p8 = scmp.ne.s32.totalorder %s617_s4, %s11373_s5  ;;  %p11382_p12 = scmp.lt.s32.totalorder %s11373_s5, %s11373_s5 }
  0xd5   : > { %p11376_p9 = pnand %p11374_p8, %p11847_p7  ;;  %p11383_p13 = por %p11382_p12, %p11381_p11 }
  0xd7   : > { %p11377_p10 = pneg %p11376_p9 }
  0xd9   : > { %p11384_p0 = pnand %p11383_p13, %p11377_p10 }
  0xdb   : > { %11387 = shalt.err (!%p11384_p0)
}
  0xdc   : > { %10207 = dma.hbm_to_vmem [thread:$0]  (!%p11831_p5), %s13836_s26, 32, %s617_s4, [#allocation4]  }
  0xdd   : > { %s11664_s29 = smov [#allocation7]   ;;  %s11388_s3 = scalar_lea.hbm %s13790_s10, 4096 }
  0xde   : > { %s640_s28 = sshll.u32 %s11664_s29, 4  ;;  %p11389_p1 = scmp.ne.s32.totalorder %s13790_s10, %s11388_s3  ;;  %s641_s28 = int_to_ptr.vmem [resolvable:$true] %s640_s28 }
  0xdf   : > { %p11395_p3 = scmp.lt.u32.totalorder %s11388_s3, %s13790_s10 }
  0xe0   : > { %p11391_p4 = pnand %p11389_p1, %p11847_p7 }
  0xe2   : > { %p11392_p2 = pneg %p11391_p4 }
  0xe4   : > { %p11397_p6 = pnand %p11395_p3, %p11392_p2 }
  0xe6   : > { %11400 = shalt.err (!%p11397_p6)
}
  0xe7   : > { %s11401_s4 = scalar_lea.vmem %s641_s28, 4096  ;;  %p11409_p11 = scmp.lt.s32.totalorder %s641_s28, %s641_s28 }
  0xe8   : > { %p11402_p8 = scmp.ne.s32.totalorder %s641_s28, %s11401_s4  ;;  %p11410_p12 = scmp.lt.s32.totalorder %s11401_s4, %s11401_s4 }
  0xea   : > { %p11404_p9 = pnand %p11402_p8, %p11847_p7  ;;  %p11411_p13 = por %p11410_p12, %p11409_p11 }
  0xec   : > { %p11405_p10 = pneg %p11404_p9 }
  0xee   : > { %p11412_p0 = pnand %p11411_p13, %p11405_p10 }
  0xf0   : > { %11415 = shalt.err (!%p11412_p0)
}
  0xf1   : > { %s13815_s27 = smov 128   ;;  %s13816_s25 = smov 8  }
  0xf2   : > { %10213 = dma.hbm_to_vmem [thread:$0]  (!%p11831_p5), %s13790_s10, 4096, %s641_s28, [#allocation6], %s13815_s27, %s13815_s27, %s13816_s25  }
  0xf3   : > { %s11667_s2 = smov [#allocation10]   ;;  %s11668_s7 = smov [#allocation13]  }
  0xf4   : > { %s664_s3 = sshll.u32 %s11667_s2, 4  ;;  %s688_s8 = sshll.u32 %s11668_s7, 4  ;;  %s665_s3 = int_to_ptr.vmem [resolvable:$true] %s664_s3  ;;  %s12030_s8 = int_to_ptr.vmem [resolvable:$true] %s688_s8 }
  0xf5   : > { %s11416_s4 = scalar_lea.hbm %s13792_s12, 4096 }
  0xf6   : > { %p11417_p1 = scmp.ne.s32.totalorder %s13792_s12, %s11416_s4  ;;  %p11423_p3 = scmp.lt.u32.totalorder %s11416_s4, %s13792_s12 }
  0xf8   : > { %p11419_p4 = pnand %p11417_p1, %p11847_p7 }
  0xfa   : > { %p11420_p2 = pneg %p11419_p4 }
  0xfc   : > { %p11425_p6 = pnand %p11423_p3, %p11420_p2 }
  0xfe   : > { %11428 = shalt.err (!%p11425_p6)
}
  0xff   : > { %s11429_s1 = scalar_lea.vmem %s665_s3, 4096  ;;  %p11437_p11 = scmp.lt.s32.totalorder %s665_s3, %s665_s3 }
 0x100   : > { %p11430_p8 = scmp.ne.s32.totalorder %s665_s3, %s11429_s1  ;;  %p11438_p12 = scmp.lt.s32.totalorder %s11429_s1, %s11429_s1 }
 0x102   : > { %p11432_p9 = pnand %p11430_p8, %p11847_p7  ;;  %p11439_p13 = por %p11438_p12, %p11437_p11 }
 0x104   : > { %p11433_p10 = pneg %p11432_p9 }
 0x106   : > { %p11440_p0 = pnand %p11439_p13, %p11433_p10 }
 0x108   : > { %11443 = shalt.err (!%p11440_p0)
}
 0x109   : > { %10219 = dma.hbm_to_vmem [thread:$0]  (!%p11831_p5), %s13792_s12, 4096, %s665_s3, [#allocation9], %s13815_s27, %s13815_s27, %s13816_s25  }
 0x10a   : > { %s11444_s24 = scalar_lea.hbm %s13794_s14, 4096 }
 0x10b   : > { %p11445_p1 = scmp.ne.s32.totalorder %s13794_s14, %s11444_s24  ;;  %p11451_p3 = scmp.lt.u32.totalorder %s11444_s24, %s13794_s14 }
 0x10d   : > { %p11447_p4 = pnand %p11445_p1, %p11847_p7 }
 0x10f   : > { %p11448_p2 = pneg %p11447_p4 }
 0x111   : > { %p11453_p6 = pnand %p11451_p3, %p11448_p2 }
 0x113   : > { %11456 = shalt.err (!%p11453_p6)
}
 0x114   : > { %s11457_s3 = scalar_lea.vmem %s12030_s8, 4096  ;;  %p11465_p11 = scmp.lt.s32.totalorder %s12030_s8, %s12030_s8 }
 0x115   : > { %p11458_p8 = scmp.ne.s32.totalorder %s12030_s8, %s11457_s3  ;;  %p11466_p12 = scmp.lt.s32.totalorder %s11457_s3, %s11457_s3 }
 0x117   : > { %p11460_p9 = pnand %p11458_p8, %p11847_p7  ;;  %p11467_p13 = por %p11466_p12, %p11465_p11 }
 0x119   : > { %p11461_p10 = pneg %p11460_p9 }
 0x11b   : > { %p11468_p0 = pnand %p11467_p13, %p11461_p10 }
 0x11d   : > { %11471 = shalt.err (!%p11468_p0)
}
 0x11e   : > { %10225 = dma.hbm_to_vmem [thread:$0]  (!%p11831_p5), %s13794_s14, 4096, %s12030_s8, [#allocation12], %s13815_s27, %s13815_s27, %s13816_s25  }
 0x11f   : > { %s11669_s11 = smov [#allocation16]   ;;  %s11670_s7 = smov [#allocation19]  }
 0x120   : > { %s713_s2 = sshll.u32 %s11669_s11, 4  ;;  %s734_s24 = sshll.u32 %s11670_s7, 4  ;;  %s714_s2 = int_to_ptr.vmem [resolvable:$true] %s713_s2  ;;  %s12079_s24 = int_to_ptr.vmem [resolvable:$true] %s734_s24 }
 0x121   : > { %s11472_s29 = scalar_lea.hbm %s13796_s16, 32 }
 0x122   : > { %p11473_p1 = scmp.ne.s32.totalorder %s13796_s16, %s11472_s29  ;;  %p11479_p3 = scmp.lt.u32.totalorder %s11472_s29, %s13796_s16 }
 0x124   : > { %p11475_p4 = pnand %p11473_p1, %p11847_p7 }
 0x126   : > { %p11476_p2 = pneg %p11475_p4 }
 0x128   : > { %p11481_p6 = pnand %p11479_p3, %p11476_p2 }
 0x12a   : > { %11484 = shalt.err (!%p11481_p6)
}
 0x12b   : > { %s11485_s9 = scalar_lea.vmem %s714_s2, 32  ;;  %p11493_p11 = scmp.lt.s32.totalorder %s714_s2, %s714_s2 }
 0x12c   : > { %p11486_p8 = scmp.ne.s32.totalorder %s714_s2, %s11485_s9  ;;  %p11494_p12 = scmp.lt.s32.totalorder %s11485_s9, %s11485_s9 }
 0x12e   : > { %p11488_p9 = pnand %p11486_p8, %p11847_p7  ;;  %p11495_p13 = por %p11494_p12, %p11493_p11 }
 0x130   : > { %p11489_p10 = pneg %p11488_p9 }
 0x132   : > { %p11496_p0 = pnand %p11495_p13, %p11489_p10 }
 0x134   : > { %11499 = shalt.err (!%p11496_p0)
}
 0x135   : > { %10231 = dma.hbm_to_vmem [thread:$0]  (!%p11831_p5), %s13796_s16, 32, %s714_s2, [#allocation15]  }
 0x136   : > { %s11500_s29 = scalar_lea.hbm %s13798_s18, 32768 }
 0x137   : > { %p11501_p1 = scmp.ne.s32.totalorder %s13798_s18, %s11500_s29  ;;  %p11507_p3 = scmp.lt.u32.totalorder %s11500_s29, %s13798_s18 }
 0x139   : > { %p11503_p4 = pnand %p11501_p1, %p11847_p7 }
 0x13b   : > { %p11504_p2 = pneg %p11503_p4 }
 0x13d   : > { %p11509_p6 = pnand %p11507_p3, %p11504_p2 }
 0x13f   : > { %11512 = shalt.err (!%p11509_p6)
}
 0x140   : > { %s11513_s2 = scalar_lea.vmem %s12079_s24, 32768  ;;  %p11521_p11 = scmp.lt.s32.totalorder %s12079_s24, %s12079_s24 }
 0x141   : > { %p11514_p8 = scmp.ne.s32.totalorder %s12079_s24, %s11513_s2  ;;  %p11522_p12 = scmp.lt.s32.totalorder %s11513_s2, %s11513_s2 }
 0x143   : > { %p11516_p9 = pnand %p11514_p8, %p11847_p7  ;;  %p11523_p13 = por %p11522_p12, %p11521_p11 }
 0x145   : > { %p11517_p10 = pneg %p11516_p9 }
 0x147   : > { %p11524_p0 = pnand %p11523_p13, %p11517_p10 }
 0x149   : > { %11527 = shalt.err (!%p11524_p0)
}
 0x14a   : > { %s11671_s9 = smov 1024   ;;  %s11672_s11 = smov 64  }
 0x14b   : > { %10237 = dma.hbm_to_vmem [thread:$0]  (!%p11831_p5), %s13798_s18, 32768, %s12079_s24, [#allocation18], %s11671_s9, %s11671_s9, %s11672_s11  }
 0x14c   : > { %s11673_s4 = smov [#allocation22]   ;;  %s11674_s28 = smov [#allocation25]  }
 0x14d   : > { %s758_s29 = sshll.u32 %s11673_s4, 4  ;;  %s783_s3 = sshll.u32 %s11674_s28, 4  ;;  %s759_s29 = int_to_ptr.vmem [resolvable:$true] %s758_s29  ;;  %s12122_s3 = int_to_ptr.vmem [resolvable:$true] %s783_s3 }
 0x14e   : > { %s11528_s2 = scalar_lea.hbm %s13800_s20, 32768 }
 0x14f   : > { %p11529_p1 = scmp.ne.s32.totalorder %s13800_s20, %s11528_s2  ;;  %p11535_p3 = scmp.lt.u32.totalorder %s11528_s2, %s13800_s20 }
 0x151   : > { %p11531_p4 = pnand %p11529_p1, %p11847_p7 }
 0x153   : > { %p11532_p2 = pneg %p11531_p4 }
 0x155   : > { %p11537_p6 = pnand %p11535_p3, %p11532_p2 }
 0x157   : > { %11540 = shalt.err (!%p11537_p6)
}
 0x158   : > { %s11541_s9 = scalar_lea.vmem %s759_s29, 32768  ;;  %p11549_p11 = scmp.lt.s32.totalorder %s759_s29, %s759_s29 }
 0x159   : > { %p11542_p8 = scmp.ne.s32.totalorder %s759_s29, %s11541_s9  ;;  %p11550_p12 = scmp.lt.s32.totalorder %s11541_s9, %s11541_s9 }
 0x15b   : > { %p11544_p9 = pnand %p11542_p8, %p11847_p7  ;;  %p11551_p13 = por %p11550_p12, %p11549_p11 }
 0x15d   : > { %p11545_p10 = pneg %p11544_p9 }
 0x15f   : > { %p11552_p0 = pnand %p11551_p13, %p11545_p10 }
 0x161   : > { %11555 = shalt.err (!%p11552_p0)
}
 0x162   : > { %s13837_s27 = smov 8   ;;  %s13838_s25 = smov 128  }
 0x163   : > { %10243 = dma.hbm_to_vmem [thread:$0]  (!%p11831_p5), %s13800_s20, 32768, %s759_s29, [#allocation21], %s13838_s25, %s13838_s25, %s13837_s27  }
 0x164   : > { %s11556_s1 = scalar_lea.hbm %s13802_s22, 32 }
 0x165   : > { %p11557_p1 = scmp.ne.s32.totalorder %s13802_s22, %s11556_s1  ;;  %p11563_p3 = scmp.lt.u32.totalorder %s11556_s1, %s13802_s22 }
 0x167   : > { %p11559_p4 = pnand %p11557_p1, %p11847_p7 }
 0x169   : > { %p11560_p2 = pneg %p11559_p4 }
 0x16b   : > { %p11565_p6 = pnand %p11563_p3, %p11560_p2 }
 0x16d   : > { %11568 = shalt.err (!%p11565_p6)
}
 0x16e   : > { %s11569_s29 = scalar_lea.vmem %s12122_s3, 32  ;;  %p11577_p11 = scmp.lt.s32.totalorder %s12122_s3, %s12122_s3 }
 0x16f   : > { %p11570_p8 = scmp.ne.s32.totalorder %s12122_s3, %s11569_s29  ;;  %p11578_p12 = scmp.lt.s32.totalorder %s11569_s29, %s11569_s29 }
 0x171   : > { %p11572_p9 = pnand %p11570_p8, %p11847_p7  ;;  %p11579_p13 = por %p11578_p12, %p11577_p11 }
 0x173   : > { %p11573_p10 = pneg %p11572_p9 }
 0x175   : > { %p11580_p0 = pnand %p11579_p13, %p11573_p10 }
 0x177   : > { %11583 = shalt.err (!%p11580_p0)
}
 0x178   : > { %10249 = dma.hbm_to_vmem [thread:$0]  (!%p11831_p5), %s13802_s22, 32, %s12122_s3, [#allocation24]  }
 0x179   : > { %s11675_s25 = smov [#allocation26]   ;;  %s11584_s28 = scalar_lea.hbm %s13803_s23, 32 }
 0x17a   : > { %s794_s11 = sshll.u32 %s11675_s25, 4  ;;  %p11585_p1 = scmp.ne.s32.totalorder %s13803_s23, %s11584_s28  ;;  %s795_s11 = int_to_ptr.vmem [resolvable:$true] %s794_s11 }
 0x17b   : > { %p11591_p3 = scmp.lt.u32.totalorder %s11584_s28, %s13803_s23 }
 0x17c   : > { %p11587_p4 = pnand %p11585_p1, %p11847_p7 }
 0x17e   : > { %p11588_p2 = pneg %p11587_p4 }
 0x180   : > { %p11593_p6 = pnand %p11591_p3, %p11588_p2 }
 0x182   : > { %11596 = shalt.err (!%p11593_p6)
}
 0x183   : > { %s11597_s3 = scalar_lea.vmem %s795_s11, 32  ;;  %p11605_p11 = scmp.lt.s32.totalorder %s795_s11, %s795_s11 }
 0x184   : > { %p11598_p8 = scmp.ne.s32.totalorder %s795_s11, %s11597_s3  ;;  %p11606_p12 = scmp.lt.s32.totalorder %s11597_s3, %s11597_s3 }
 0x186   : > { %p11600_p9 = pnand %p11598_p8, %p11847_p7  ;;  %p11607_p13 = por %p11606_p12, %p11605_p11 }
 0x188   : > { %p11601_p10 = pneg %p11600_p9 }
 0x18a   : > { %p11608_p0 = pnand %p11607_p13, %p11601_p10 }
 0x18c   : > { %11611 = shalt.err (!%p11608_p0)
}
 0x18d   : > { %10252 = dma.hbm_to_vmem [thread:$0]  (!%p11831_p5), %s13803_s23, 32, %s795_s11, [#allocation27]  }
 0x18e   : > { %p13839_p1 = scmp.ne.s32.totalorder %s13831_s6, 0 }
 0x18f   : > { %s13840_s9 = sld [smem:[#allocation38_spill]] (!%p13839_p1) }
 0x190   : > { %823 = sbr.rel (%p13839_p1) target bundleno = 6090 (0x17ca), region = 116 }
 0x195   : > { %p13841_p4 = scmp.eq.s32.totalorder (!%p13839_p1), %s13840_s9, 0 }
 0x197   : > { %11617 = dma.done.wait (%p13841_p4), [#allocation4], 32   ;;  %p13842_p7 = pmov %p13841_p4 }
 0x198   : > { %p13843_p2 = pmov %p13841_p4 }
 0x199   : > { %11619 = vsyncadd (%p13842_p7), [#allocation4], 4294967264 }
 0x19a   : > { %11621 = dma.done.wait (%p13843_p2), [#allocation6], 4128   ;;  %p13844_p3 = pmov %p13843_p2 }
 0x19b   : > { %p13845_p6 = pmov %p13843_p2 }
 0x19c   : > { %11623 = vsyncadd (%p13844_p3), [#allocation6], 4294963168 }
 0x19d   : > { %11625 = dma.done.wait (%p13845_p6), [#allocation9], 4128   ;;  %p13846_p5 = pmov %p13843_p2 }
 0x19e   : > { %p13847_p8 = pmov %p13843_p2 }
 0x19f   : > { %11627 = vsyncadd (%p13846_p5), [#allocation9], 4294963168 }
 0x1a0   : > { %11629 = dma.done.wait (%p13847_p8), [#allocation12], 4128   ;;  %p13848_p9 = pmov %p13843_p2 }
 0x1a1   : > { %p13849_p10 = pmov %p13843_p2 }
 0x1a2   : > { %11631 = vsyncadd (%p13848_p9), [#allocation12], 4294963168 }
 0x1a3   : > { %11633 = dma.done.wait (%p13849_p10), [#allocation15], 64   ;;  %p13850_p11 = pmov %p13843_p2 }
 0x1a4   : > { %p13851_p12 = pmov %p13843_p2 }
 0x1a5   : > { %11635 = vsyncadd (%p13850_p11), [#allocation15], 4294967232 }
 0x1a6   : > { %11637 = dma.done.wait (%p13851_p12), [#allocation18], 32800   ;;  %p13852_p13 = pmov %p13843_p2 }
 0x1a7   : > { %p13853_p0 = pmov %p13843_p2 }
 0x1a8   : > { %11639 = vsyncadd (%p13852_p13), [#allocation18], 4294934496 }
 0x1a9   : > { %11641 = dma.done.wait (%p13853_p0), [#allocation21], 33024   ;;  %p13854_p1 = pmov %p13853_p0 }
 0x1aa   : > { %p13855_p4 = pmov %p13853_p0 }
 0x1ab   : > { %11643 = vsyncadd (%p13854_p1), [#allocation21], 4294934272 }
 0x1ac   : > { %11645 = dma.done.wait (%p13855_p4), [#allocation24], 64   ;;  %p13856_p7 = pmov %p13853_p0 }
 0x1ad   : > { %p13857_p2 = pmov %p13853_p0 }
 0x1ae   : > { %11647 = vsyncadd (%p13856_p7), [#allocation24], 4294967232 }
 0x1af   : > { %11649 = dma.done.wait (%p13857_p2), [#allocation27], 32   ;;  %p13858_p3 = pmov %p13853_p0 }
 0x1b0   : > { %s13859_s0 = sld [smem:[#allocation44_spill]]  ;;  %p953_p6 = scmp.lt.s32.totalorder %s13840_s9, 1  ;;  %v11676_v62 = vmov 0.0   ;;  %vm3139_vm1 = vcmask 261120   ;;  %vm11677_vm2 = vmmov 0   ;;  %vm4387_vm4 = vcmask 523264  }
 0x1b1   : > { %11651 = vsyncadd (%p13858_p3), [#allocation27], 4294967264  ;;  %s13860_s2 = sld [smem:[#allocation40_spill]]  ;;  %s13861_s3 = sld [smem:[#allocation42_spill]]  ;;  %2046 = vst [vmem:[#allocation2 + $0x90] sm:$0xff] %v11676_v62  ;;  %vm4389_vm5 = vcmask 785408  }
 0x1b2   : > { %s13872_s9 = smov (!%p953_p6, %s13840_s9), 1  ;;  %2047 = vst [vmem:[#allocation2 + $0x98] sm:$0xff] %v11676_v62  ;;  %2048 = vst [vmem:[#allocation2 + $0xa0] sm:$0xff] %v11676_v62  ;;  %s13862_s5 = sld [smem:[#allocation39_spill]] }
 0x1b3   : > { %s10139_s25 = smul.u32 24, %s13872_s9  ;;  %s9664_s8 = sshll.u32 %s13872_s9, 6 }
 0x1b4   : > { %s13863_s11 = sld [smem:[#allocation47_spill]]  ;;  %s13866_s28 = sld [smem:[#allocation41_spill]] }
 0x1b5   : > { %s11679_s24 = smov 64   ;;  %s11681_s29 = smov 32  }
 0x1b6   : > { %v10335_v0 = vld [vmem:[%s13859_s0 + $0x4] ss:$8 sps:$4 sm:$0xff]   ;;  %v10337_v1 = vld [vmem:[%s13859_s0] ss:$8 sps:$4 sm:$0xff]   ;;  %v10338_v2 = vld [vmem:[%s13859_s0 + $0x14] ss:$8 sps:$4 sm:$0xff]  }
 0x1b7   : > { %1921 = vmatprep.subr.bf16.mxu1 %v10335_v0  ;;  %v10340_v3 = vld [vmem:[%s13859_s0 + $0x10] ss:$8 sps:$4 sm:$0xff]   ;;  %v10341_v4 = vld [vmem:[%s13859_s0 + $0x24] ss:$8 sps:$4 sm:$0xff]   ;;  %v10343_v5 = vld [vmem:[%s13859_s0 + $0x20] ss:$8 sps:$4 sm:$0xff]   ;;  %s12265_s7 = scalar_lea.vmem %s13860_s2, %s10139_s25 }
 0x1b8   : > { %1922 = vmatpush1.bf16.msra.mxu1 %v10337_v1  ;;  %v10344_v6 = vld [vmem:[%s13859_s0 + $0x34] ss:$8 sps:$4 sm:$0xff]   ;;  %v10346_v7 = vld [vmem:[%s13859_s0 + $0x30] ss:$8 sps:$4 sm:$0xff]   ;;  %v10347_v8 = vld [vmem:[%s13859_s0 + $0x44] ss:$8 sps:$4 sm:$0xff]   ;;  %s12427_s4 = scalar_lea.vmem %s13862_s5, %s9664_s8 }
 0x1b9   : > { %1923 = vmatprep.subr.bf16.mxu1 %v10338_v2  ;;  %v10349_v9 = vld [vmem:[%s13859_s0 + $0x40] ss:$8 sps:$4 sm:$0xff]   ;;  %v10350_v10 = vld [vmem:[%s13859_s0 + $0x54] ss:$8 sps:$4 sm:$0xff]   ;;  %v10352_v11 = vld [vmem:[%s13859_s0 + $0x50] ss:$8 sps:$4 sm:$0xff]  }
 0x1ba   : > { %v10353_v12 = vld [vmem:[%s13859_s0 + $0x64] ss:$8 sps:$4 sm:$0xff]   ;;  %v10355_v15 = vld [vmem:[%s13859_s0 + $0x60] ss:$8 sps:$4 sm:$0xff]   ;;  %v10356_v16 = vld [vmem:[%s13859_s0 + $0x74] ss:$8 sps:$4 sm:$0xff]  }
 0x1bb   : > { %v12274_v13 = vld [vmem:[%s12265_s7] sm:$0xff]  ;;  %v10358_v17 = vld [vmem:[%s13859_s0 + $0x70] ss:$8 sps:$4 sm:$0xff]   ;;  %v10362_v22 = vld [vmem:[%s13859_s0 + $0x94] ss:$8 sps:$4 sm:$0xff]   ;;  %s13867_s5 = sld [smem:[#allocation43_spill]] }
 0x1bc   : > { %1924 = vmatpush1.bf16.msra.mxu1 %v10340_v3  ;;  %v8913_v14 = vcombine.high %v12274_v13, %v12274_v13  ;;  %v10359_v18 = vld [vmem:[%s13859_s0 + $0x84] ss:$8 sps:$4 sm:$0xff]   ;;  %v10405_v20 = vld [vmem:[%s13861_s3] ss:$8 sps:$4 sm:$0xff]   ;;  %v10409_v23 = vld [vmem:[%s13861_s3 + $0x14] ss:$8 sps:$4 sm:$0xff]   ;;  %v8912_v54 = vcombine.low %v12274_v13, %v12274_v13 }
 0x1bd   : > { %1925 = vmatprep.subr.bf16.mxu1 %v10341_v4  ;;  %v10403_v19 = vld [vmem:[%s13861_s3 + $0x4] ss:$8 sps:$4 sm:$0xff]   ;;  %v10361_v21 = vld [vmem:[%s13859_s0 + $0x80] ss:$8 sps:$4 sm:$0xff]   ;;  %v10411_v24 = vld [vmem:[%s13861_s3 + $0x10] ss:$8 sps:$4 sm:$0xff]  }
 0x1be   : > { %1953 = vmatprep.mubr.bf16.mxu1 %v8913_v14  ;;  %1220 = vmatprep.subr.bf16.mxu0 %v10403_v19  ;;  %v10364_v25 = vld [vmem:[%s13859_s0 + $0x90] ss:$8 sps:$4 sm:$0xff]   ;;  %v10415_v26 = vld [vmem:[%s13861_s3 + $0x24] ss:$8 sps:$4 sm:$0xff]   ;;  %v10417_v28 = vld [vmem:[%s13861_s3 + $0x20] ss:$8 sps:$4 sm:$0xff]  }
 0x1bf   : > { %1221 = vmatpush1.bf16.msra.mxu0 %v10405_v20  ;;  %v10365_v27 = vld [vmem:[%s13859_s0 + $0xa4] ss:$8 sps:$4 sm:$0xff]   ;;  %v10421_v29 = vld [vmem:[%s13861_s3 + $0x34] ss:$8 sps:$4 sm:$0xff]   ;;  %v10367_v30 = vld [vmem:[%s13859_s0 + $0xa0] ss:$8 sps:$4 sm:$0xff]  }
 0x1c0   : > { %1926 = vmatpush1.bf16.msra.mxu1 %v10343_v5  ;;  %1222 = vmatprep.subr.bf16.mxu0 %v10409_v23  ;;  %v10368_v31 = vld [vmem:[%s13859_s0 + $0xb4] ss:$8 sps:$4 sm:$0xff]   ;;  %v10423_v32 = vld [vmem:[%s13861_s3 + $0x30] ss:$8 sps:$4 sm:$0xff]   ;;  %v10427_v33 = vld [vmem:[%s13861_s3 + $0x44] ss:$8 sps:$4 sm:$0xff]  }
 0x1c1   : > { %1927 = vmatprep.subr.bf16.mxu1 %v10344_v6  ;;  %v10370_v34 = vld [vmem:[%s13859_s0 + $0xb0] ss:$8 sps:$4 sm:$0xff]   ;;  %v10371_v35 = vld [vmem:[%s13859_s0 + $0xc4] ss:$8 sps:$4 sm:$0xff]   ;;  %v10429_v36 = vld [vmem:[%s13861_s3 + $0x40] ss:$8 sps:$4 sm:$0xff]  }
 0x1c2   : > { %v10433_v37 = vld [vmem:[%s13861_s3 + $0x54] ss:$8 sps:$4 sm:$0xff]   ;;  %v10373_v38 = vld [vmem:[%s13859_s0 + $0xc0] ss:$8 sps:$4 sm:$0xff]   ;;  %v10435_v40 = vld [vmem:[%s13861_s3 + $0x50] ss:$8 sps:$4 sm:$0xff]  }
 0x1c3   : > { %1223 = vmatpush1.bf16.msra.mxu0 %v10411_v24  ;;  %v10374_v39 = vld [vmem:[%s13859_s0 + $0xd4] ss:$8 sps:$4 sm:$0xff]   ;;  %v10439_v41 = vld [vmem:[%s13861_s3 + $0x64] ss:$8 sps:$4 sm:$0xff]   ;;  %v10376_v42 = vld [vmem:[%s13859_s0 + $0xd0] ss:$8 sps:$4 sm:$0xff]  }
 0x1c4   : > { %1928 = vmatpush1.bf16.msra.mxu1 %v10346_v7  ;;  %1224 = vmatprep.subr.bf16.mxu0 %v10415_v26  ;;  %v10377_v43 = vld [vmem:[%s13859_s0 + $0xe4] ss:$8 sps:$4 sm:$0xff]   ;;  %v10441_v44 = vld [vmem:[%s13861_s3 + $0x60] ss:$8 sps:$4 sm:$0xff]   ;;  %v10445_v45 = vld [vmem:[%s13861_s3 + $0x74] ss:$8 sps:$4 sm:$0xff]  }
 0x1c5   : > { %1929 = vmatprep.subr.bf16.mxu1 %v10347_v8  ;;  %v10379_v46 = vld [vmem:[%s13859_s0 + $0xe0] ss:$8 sps:$4 sm:$0xff]   ;;  %v10380_v47 = vld [vmem:[%s13859_s0 + $0xf4] ss:$8 sps:$4 sm:$0xff]   ;;  %v10447_v48 = vld [vmem:[%s13861_s3 + $0x70] ss:$8 sps:$4 sm:$0xff]  }
 0x1c6   : > { %v10451_v49 = vld [vmem:[%s13861_s3 + $0x84] ss:$8 sps:$4 sm:$0xff]   ;;  %v10382_v50 = vld [vmem:[%s13859_s0 + $0xf0] ss:$8 sps:$4 sm:$0xff]   ;;  %v10453_v53 = vld [vmem:[%s13861_s3 + $0x80] ss:$8 sps:$4 sm:$0xff]  }
 0x1c7   : > { %1225 = vmatpush1.bf16.msra.mxu0 %v10417_v28  ;;  %v10387_v51 = vld [vmem:[%s13859_s0 + $0x104] ss:$8 sps:$4 sm:$0xff]   ;;  %v10457_v55 = vld [vmem:[%s13861_s3 + $0x94] ss:$8 sps:$4 sm:$0xff]   ;;  %v10385_v56 = vld [vmem:[%s13859_s0 + $0x100] ss:$8 sps:$4 sm:$0xff]  }
 0x1c8   : > { %1930 = vmatpush1.bf16.msra.mxu1 %v10349_v9  ;;  %1226 = vmatprep.subr.bf16.mxu0 %v10421_v29  ;;  %v12390_v52 = vld [vmem:[%s12265_s7 + $0x8] sm:$0xff]  ;;  %v10390_v58 = vld [vmem:[%s13859_s0 + $0x114] ss:$8 sps:$4 sm:$0xff]   ;;  %v10459_v59 = vld [vmem:[%s13861_s3 + $0x90] ss:$8 sps:$4 sm:$0xff]   ;;  %s13868_s25 = sld [smem:[#allocation45_spill]] }
 0x1c9   : > { %1931 = vmatprep.subr.bf16.mxu1 %v10350_v10  ;;  %v8915_v57 = vcombine.high %v12390_v52, %v12390_v52  ;;  %v10463_v60 = vld [vmem:[%s13861_s3 + $0xa4] ss:$8 sps:$4 sm:$0xff]   ;;  %v10388_v61 = vld [vmem:[%s13859_s0 + $0x110] ss:$8 sps:$4 sm:$0xff]   ;;  %v10465_v0 = vld [vmem:[%s13861_s3 + $0xa0] ss:$8 sps:$4 sm:$0xff]  }
 0x1ca   : > { %v10393_v63 = vld [vmem:[%s13859_s0 + $0x124] ss:$8 sps:$4 sm:$0xff]   ;;  %v10471_v1 = vld [vmem:[%s13861_s3 + $0xb4] ss:$8 sps:$4 sm:$0xff]   ;;  %v10391_v2 = vld [vmem:[%s13859_s0 + $0x120] ss:$8 sps:$4 sm:$0xff]  }
 0x1cb   : > { %1227 = vmatpush1.bf16.msra.mxu0 %v10423_v32  ;;  %v10396_v3 = vld [vmem:[%s13859_s0 + $0x134] ss:$8 sps:$4 sm:$0xff]   ;;  %v10473_v4 = vld [vmem:[%s13861_s3 + $0xb0] ss:$8 sps:$4 sm:$0xff]   ;;  %v10503_v5 = vld [vmem:[%s12427_s4 + $0x4] ss:$8 sps:$4 sm:$0xff]  }
 0x1cc   : > { %1932 = vmatpush1.bf16.msra.mxu1 %v10352_v11  ;;  %1228 = vmatprep.subr.bf16.mxu0 %v10427_v33  ;;  %v10477_v6 = vld [vmem:[%s13861_s3 + $0xc4] ss:$8 sps:$4 sm:$0xff]   ;;  %v10394_v7 = vld [vmem:[%s13859_s0 + $0x130] ss:$8 sps:$4 sm:$0xff]   ;;  %v10479_v9 = vld [vmem:[%s13861_s3 + $0xc0] ss:$8 sps:$4 sm:$0xff]  }
 0x1cd   : > { %1933 = vmatprep.subr.bf16.mxu1 %v10353_v12  ;;  %1252 = vmatprep.mubr.bf16.mxu0 %v10503_v5  ;;  %v10399_v8 = vld [vmem:[%s13859_s0 + $0x144] ss:$8 sps:$4 sm:$0xff]   ;;  %v10483_v10 = vld [vmem:[%s13861_s3 + $0xd4] ss:$8 sps:$4 sm:$0xff]   ;;  %v10397_v11 = vld [vmem:[%s13859_s0 + $0x140] ss:$8 sps:$4 sm:$0xff]  }
 0x1ce   : > { %v10402_v12 = vld [vmem:[%s13859_s0 + $0x154] ss:$8 sps:$4 sm:$0xff]   ;;  %v10485_v13 = vld [vmem:[%s13861_s3 + $0xd0] ss:$8 sps:$4 sm:$0xff]   ;;  %v10489_v14 = vld [vmem:[%s13861_s3 + $0xe4] ss:$8 sps:$4 sm:$0xff]  }
 0x1cf   : > { %1229 = vmatpush1.bf16.msra.mxu0 %v10429_v36  ;;  %v10406_v19 = vld [vmem:[%s13859_s0 + $0x160] ss:$8 sps:$4 sm:$0xff]   ;;  %v10414_v20 = vld [vmem:[%s13859_s0 + $0x174] ss:$8 sps:$4 sm:$0xff]   ;;  %v10420_v23 = vld [vmem:[%s13859_s0 + $0x184] ss:$8 sps:$4 sm:$0xff]  }
 0x1d0   : > { %1934 = vmatpush1.bf16.msra.mxu1 %v10355_v15  ;;  %1230 = vmatprep.subr.bf16.mxu0 %v10433_v37  ;;  %v10400_v15 = vld [vmem:[%s13859_s0 + $0x150] ss:$8 sps:$4 sm:$0xff]   ;;  %v10501_v24 = vld [vmem:[%s12427_s4] ss:$8 sps:$4 sm:$0xff]   ;;  %v10547_v26 = vld [vmem:[%s13863_s11 + $0x4] ss:$8 sps:$4 sm:$0xff]  }
 0x1d1   : > { %1935 = vmatprep.subr.bf16.mxu1 %v10356_v16  ;;  %v10408_v16 = vld [vmem:[%s13859_s0 + $0x164] ss:$8 sps:$4 sm:$0xff]   ;;  %v10550_v28 = vld [vmem:[%s13863_s11 + $0x14] ss:$8 sps:$4 sm:$0xff]   ;;  %v10418_v29 = vld [vmem:[%s13859_s0 + $0x180] ss:$8 sps:$4 sm:$0xff]  }
 0x1d2   : > { %v10553_v32 = vld [vmem:[%s13863_s11 + $0x24] ss:$8 sps:$4 sm:$0xff]   ;;  %v10424_v33 = vld [vmem:[%s13859_s0 + $0x190] ss:$8 sps:$4 sm:$0xff]   ;;  %v10551_v37 = vld [vmem:[%s13863_s11 + $0x20] ss:$8 sps:$4 sm:$0xff]  }
 0x1d3   : > { %1231 = vmatpush1.bf16.msra.mxu0 %v10435_v40  ;;  %v10519_v36 = vld [vmem:[%s12427_s4 + $0x24] ss:$8 sps:$4 sm:$0xff]   ;;  %v10438_v40 = vld [vmem:[%s13859_s0 + $0x1b4] ss:$8 sps:$4 sm:$0xff]   ;;  %v10460_v5 = vld [vmem:[%s13859_s0 + $0x1f0] ss:$8 sps:$4 sm:$0xff]  }
 0x1d4   : > { %1936 = vmatpush1.bf16.msra.mxu1 %v10358_v17  ;;  %1232 = vmatprep.subr.bf16.mxu0 %v10439_v41  ;;  %v10491_v17 = vld [vmem:[%s13861_s3 + $0xe0] ss:$8 sps:$4 sm:$0xff]   ;;  %v10554_v41 = vld [vmem:[%s13863_s11 + $0x30] ss:$8 sps:$4 sm:$0xff]   ;;  %v10568_v62 = vld [vmem:[%s13863_s11 + $0x74] ss:$8 sps:$4 sm:$0xff]  }
 0x1d5   : > { %1937 = vmatprep.subr.bf16.mxu1 %v10359_v18  ;;  %v10495_v18 = vld [vmem:[%s13861_s3 + $0xf4] ss:$8 sps:$4 sm:$0xff]   ;;  %s8871_s6 = sshll.u32 %s13872_s9, 1  ;;  %s13869_s27 = sld [smem:[#allocation50_spill]] }
 0x1d7   : > { %1233 = vmatpush1.bf16.msra.mxu0 %v10441_v44  ;;  %v10444_v44 = vld [vmem:[%s13859_s0 + $0x1c4] ss:$8 sps:$4 sm:$0xff]  }
 0x1d8   : > { %1938 = vmatpush1.bf16.msra.mxu1 %v10361_v21  ;;  %1234 = vmatprep.subr.bf16.mxu0 %v10445_v45  ;;  %v10497_v21 = vld [vmem:[%s13861_s3 + $0xf0] ss:$8 sps:$4 sm:$0xff]   ;;  %v1010_v45 = vlaneseq }
 0x1d9   : > { %1939 = vmatprep.subr.bf16.mxu1 %v10362_v22  ;;  %v10412_v22 = vld [vmem:[%s13859_s0 + $0x170] ss:$8 sps:$4 sm:$0xff]  }
 0x1da   : > { %vm12563_vm0 = vcmp.lt.s32.totalorder %v1010_v45, 256 }
 0x1db   : > { %1235 = vmatpush1.bf16.msra.mxu0 %v10447_v48  ;;  %v10557_v48 = vld [vmem:[%s13863_s11 + $0x40] ss:$8 sps:$4 sm:$0xff]  }
 0x1dc   : > { %1940 = vmatpush1.bf16.msra.mxu1 %v10364_v25  ;;  %1236 = vmatprep.subr.bf16.mxu0 %v10451_v49  ;;  %v10510_v25 = vld [vmem:[%s12427_s4 + $0x14] ss:$8 sps:$4 sm:$0xff]  }
 0x1dd   : > { %1941 = vmatprep.subr.bf16.mxu1 %v10365_v27  ;;  %v10545_v27 = vld [vmem:[%s13863_s11] ss:$8 sps:$4 sm:$0xff]   ;;  %v10562_v49 = vld [vmem:[%s13863_s11 + $0x54] ss:$8 sps:$4 sm:$0xff]  }
 0x1df   : > { %1237 = vmatpush1.bf16.msra.mxu0 %v10453_v53  ;;  %v10450_v53 = vld [vmem:[%s13859_s0 + $0x1d4] ss:$8 sps:$4 sm:$0xff]  }
 0x1e0   : > { %1942 = vmatpush1.bf16.msra.mxu1 %v10367_v30  ;;  %1238 = vmatprep.subr.bf16.mxu0 %v10457_v55  ;;  %v10426_v30 = vld [vmem:[%s13859_s0 + $0x194] ss:$8 sps:$4 sm:$0xff]   ;;  %v2078_v55 = vld [vmem:[#allocation3] sm:$0x3] }
 0x1e1   : > { %1943 = vmatprep.subr.bf16.mxu1 %v10368_v31  ;;  %v10548_v31 = vld [vmem:[%s13863_s11 + $0x10] ss:$8 sps:$4 sm:$0xff]   ;;  %2084 = vst.msk [vmem:[#allocation2 + $0x90] ss:$8 sm:$0x3] %vm12563_vm0, %v2078_v55 }
 0x1e2   : > { %v10516_v55 = vld [vmem:[%s13859_s0 + $0x290] ss:$8 sps:$4 sm:$0xff]  }
 0x1e3   : > { %1239 = vmatpush1.bf16.msra.mxu0 %v10459_v59  ;;  %v10530_v59 = vld [vmem:[%s12427_s4 + $0x30] ss:$8 sps:$4 sm:$0xff]  }
 0x1e4   : > { %1944 = vmatpush1.bf16.msra.mxu1 %v10370_v34  ;;  %1240 = vmatprep.subr.bf16.mxu0 %v10463_v60  ;;  %v10432_v34 = vld [vmem:[%s13859_s0 + $0x1a4] ss:$8 sps:$4 sm:$0xff]   ;;  %v10454_v60 = vld [vmem:[%s13859_s0 + $0x1e0] ss:$8 sps:$4 sm:$0xff]  }
 0x1e5   : > { %1945 = vmatprep.subr.bf16.mxu1 %v10371_v35  ;;  %v10512_v35 = vld [vmem:[%s12427_s4 + $0x10] ss:$8 sps:$4 sm:$0xff]  }
 0x1e7   : > { %1241 = vmatpush1.bf16.msra.mxu0 %v10465_v0  ;;  %v10462_v0 = vld [vmem:[%s13859_s0 + $0x1f4] ss:$8 sps:$4 sm:$0xff]  }
 0x1e8   : > { %1946 = vmatpush1.bf16.msra.mxu1 %v10373_v38  ;;  %1242 = vmatprep.subr.bf16.mxu0 %v10471_v1  ;;  %v10556_v38 = vld [vmem:[%s13863_s11 + $0x34] ss:$8 sps:$4 sm:$0xff]   ;;  %v10566_v1 = vld [vmem:[%s13863_s11 + $0x70] ss:$8 sps:$4 sm:$0xff]  }
 0x1e9   : > { %1947 = vmatprep.subr.bf16.mxu1 %v10374_v39  ;;  %v10430_v39 = vld [vmem:[%s13859_s0 + $0x1a0] ss:$8 sps:$4 sm:$0xff]  }
 0x1eb   : > { %1243 = vmatpush1.bf16.msra.mxu0 %v10473_v4 }
 0x1ec   : > { %1948 = vmatpush1.bf16.msra.mxu1 %v10376_v42  ;;  %1244 = vmatprep.subr.bf16.mxu0 %v10477_v6  ;;  %v10559_v42 = vld [vmem:[%s13863_s11 + $0x44] ss:$8 sps:$4 sm:$0xff]  }
 0x1ed   : > { %1949 = vmatprep.subr.bf16.mxu1 %v10377_v43  ;;  %v10436_v43 = vld [vmem:[%s13859_s0 + $0x1b0] ss:$8 sps:$4 sm:$0xff]   ;;  %v10470_v6 = vld [vmem:[%s13859_s0 + $0x204] ss:$8 sps:$4 sm:$0xff]  }
 0x1ef   : > { %1245 = vmatpush1.bf16.msra.mxu0 %v10479_v9  ;;  %v10569_v9 = vld [vmem:[%s13863_s11 + $0x80] ss:$8 sps:$4 sm:$0xff]  }
 0x1f0   : > { %1950 = vmatpush1.bf16.msra.mxu1 %v10379_v46  ;;  %1246 = vmatprep.subr.bf16.mxu0 %v10483_v10  ;;  %v10521_v46 = vld [vmem:[%s12427_s4 + $0x20] ss:$8 sps:$4 sm:$0xff]   ;;  %v8914_v10 = vcombine.low %v12390_v52, %v12390_v52  ;;  %v10474_v52 = vld [vmem:[%s13859_s0 + $0x210] ss:$8 sps:$4 sm:$0xff]  }
 0x1f1   : > { %1951 = vmatprep.subr.bf16.mxu1 %v10380_v47  ;;  %v10528_v47 = vld [vmem:[%s12427_s4 + $0x34] ss:$8 sps:$4 sm:$0xff]  }
 0x1f3   : > { %1247 = vmatpush1.bf16.msra.mxu0 %v10485_v13 }
 0x1f4   : > { %1952 = vmatpush1.bf16.msra.mxu1 %v10382_v50  ;;  %1248 = vmatprep.subr.bf16.mxu0 %v10489_v14  ;;  %v10442_v50 = vld [vmem:[%s13859_s0 + $0x1c0] ss:$8 sps:$4 sm:$0xff]   ;;  %v10476_v14 = vld [vmem:[%s13859_s0 + $0x214] ss:$8 sps:$4 sm:$0xff]  }
 0x1f5   : > { %1962 = vmatprep.subr.bf16.mxu1 %v10387_v51 }
 0x1f7   : > { %1954 = vmatmul.mubr.bf16.vlgmr.msra.gmra.mrb[0].mxu1 %v8912_v54  ;;  %1249 = vmatpush1.bf16.msra.mxu0 %v10491_v17  ;;  %v10560_v54 = vld [vmem:[%s13863_s11 + $0x50] ss:$8 sps:$4 sm:$0xff]   ;;  %v10482_v17 = vld [vmem:[%s13859_s0 + $0x224] ss:$8 sps:$4 sm:$0xff]  }
 0x1f8   : > { %1963 = vmatpush1.bf16.msra.mxu1 %v10385_v56  ;;  %1994 = vmatprep.mubr.bf16.mxu1 %v8915_v57  ;;  %v10565_v56 = vld [vmem:[%s13863_s11 + $0x64] ss:$8 sps:$4 sm:$0xff]   ;;  %v10448_v57 = vld [vmem:[%s13859_s0 + $0x1d0] ss:$8 sps:$4 sm:$0xff]  }
 0x1f9   : > { %1964 = vmatprep.subr.bf16.mxu1 %v10390_v58  ;;  %1250 = vmatprep.subr.bf16.mxu0 %v10495_v18  ;;  %v10456_v58 = vld [vmem:[%s13859_s0 + $0x1e4] ss:$8 sps:$4 sm:$0xff]   ;;  %v10575_v18 = vld [vmem:[%s13863_s11 + $0xa0] ss:$8 sps:$4 sm:$0xff]  }
 0x1fb   : > { %1251 = vmatpush1.bf16.msra.mxu0 %v10497_v21  ;;  %v10488_v21 = vld [vmem:[%s13859_s0 + $0x234] ss:$8 sps:$4 sm:$0xff]  }
 0x1fc   : > { %1965 = vmatpush1.bf16.msra.mxu1 %v10388_v61  ;;  %2426 = vmatprep.subr.bf16.mxu0 %v10547_v26  ;;  %v10563_v61 = vld [vmem:[%s13863_s11 + $0x60] ss:$8 sps:$4 sm:$0xff]  }
 0x1fd   : > { %1966 = vmatprep.subr.bf16.mxu1 %v10393_v63  ;;  %v2153_v63 = vld [vmem:[%s13866_s28 + $0x98] sm:$0xff]  ;;  %v10581_v26 = vld [vmem:[%s13863_s11 + $0xc0] ss:$8 sps:$4 sm:$0xff]  }
 0x1fe   : > { %1253 = vmatmul.mubr.bf16.vlgmr.msra.gmra.mrb[0].mxu0 %v10501_v24  ;;  %v10486_v24 = vld [vmem:[%s13859_s0 + $0x230] ss:$8 sps:$4 sm:$0xff]  }
 0x1ff   : > { %1262 = vmatprep.mubr.bf16.mxu0 %v10510_v25  ;;  %2427 = vmatpush1.bf16.msra.mxu0 %v10545_v27  ;;  %v10494_v25 = vld [vmem:[%s13859_s0 + $0x244] ss:$8 sps:$4 sm:$0xff]   ;;  %v10586_v27 = vld [vmem:[%s13863_s11 + $0xd4] ss:$8 sps:$4 sm:$0xff]  }
 0x200   : > { %1967 = vmatpush1.bf16.msra.mxu1 %v10391_v2  ;;  %2428 = vmatprep.subr.bf16.mxu0 %v10550_v28  ;;  %v2151_v2 = vld [vmem:[#allocation2 + $0x98] sm:$0xff]  ;;  %v10492_v28 = vld [vmem:[%s13859_s0 + $0x240] ss:$8 sps:$4 sm:$0xff]  }
 0x201   : > { %1968 = vmatprep.subr.bf16.mxu1 %v10396_v3  ;;  %v10571_v3 = vld [vmem:[%s13863_s11 + $0x84] ss:$8 sps:$4 sm:$0xff]   ;;  %v12606_v4 = vadd.f32 %v2153_v63, %v2151_v2  ;;  %v10525_v63 = vld [vmem:[%s13859_s0 + $0x2b0] ss:$8 sps:$4 sm:$0xff]  }
 0x202   : > { %v10610_v2 = vld [vmem:[#allocation7 + $0x54] ss:$8 sps:$4 sm:$0xff]  }
 0x203   : > { %2429 = vmatpush1.bf16.msra.mxu0 %v10548_v31  ;;  %v10589_v31 = vld [vmem:[%s13863_s11 + $0xe4] ss:$8 sps:$4 sm:$0xff]  }
 0x204   : > { %1969 = vmatpush1.bf16.msra.mxu1 %v10394_v7  ;;  %2430 = vmatprep.subr.bf16.mxu0 %v10553_v32  ;;  %v12615_v7 = vld [vmem:[%s12265_s7 + $0x10] sm:$0xff]  ;;  %s11678_s7 = smov 96  }
 0x205   : > { %1970 = vmatprep.subr.bf16.mxu1 %v10399_v8  ;;  %v2157_v8 = vpack.c.bf16 %v12606_v4, %v12606_v4  ;;  %v8917_v13 = vcombine.high %v12615_v7, %v12615_v7  ;;  %v10498_v32 = vld [vmem:[%s13859_s0 + $0x250] ss:$8 sps:$4 sm:$0xff]  }
 0x206   : > { %1263 = vmatmul.mubr.bf16.gmra.mrb[4].mxu0 %v10512_v35  ;;  %v2150_v35 = vld [vmem:[#allocation2 + $0x90] sm:$0xff] }
 0x207   : > { %1272 = vmatprep.mubr.bf16.mxu0 %v10519_v36  ;;  %2431 = vmatpush1.bf16.msra.mxu0 %v10551_v37  ;;  %v2152_v36 = vld [vmem:[%s13866_s28 + $0x90] sm:$0xff] }
 0x208   : > { %1971 = vmatpush1.bf16.msra.mxu1 %v10397_v11  ;;  %2432 = vmatprep.subr.bf16.mxu0 %v10556_v38  ;;  %v10574_v11 = vld [vmem:[%s13863_s11 + $0x94] ss:$8 sps:$4 sm:$0xff]   ;;  %v10504_v38 = vld [vmem:[%s13859_s0 + $0x260] ss:$8 sps:$4 sm:$0xff]  }
 0x209   : > { %1972 = vmatprep.subr.bf16.mxu1 %v10402_v12  ;;  %v10468_v12 = vld [vmem:[%s13859_s0 + $0x200] ss:$8 sps:$4 sm:$0xff]   ;;  %v10592_v37 = vld [vmem:[%s13863_s11 + $0xf4] ss:$8 sps:$4 sm:$0xff]  }
 0x20b   : > { %2433 = vmatpush1.bf16.msra.mxu0 %v10554_v41  ;;  %v10595_v41 = vld [vmem:[#allocation7 + $0x4] ss:$8 sps:$4 sm:$0xff]  }
 0x20c   : > { %1973 = vmatpush1.bf16.msra.mxu1 %v10400_v15  ;;  %2434 = vmatprep.subr.bf16.mxu0 %v10559_v42  ;;  %v10572_v15 = vld [vmem:[%s13863_s11 + $0x90] ss:$8 sps:$4 sm:$0xff]   ;;  %v12713_v42 = vadd.f32 %v2152_v36, %v2150_v35 }
 0x20d   : > { %1974 = vmatprep.subr.bf16.mxu1 %v10408_v16  ;;  %v10577_v16 = vld [vmem:[%s13863_s11 + $0xa4] ss:$8 sps:$4 sm:$0xff]  }
 0x20e   : > { %1273 = vmatmul.mubr.bf16.gmra.mrb[8].mxu0 %v10521_v46  ;;  %v10593_v46 = vld [vmem:[#allocation7] ss:$8 sps:$4 sm:$0xff]  }
 0x20f   : > { %1282 = vmatprep.mubr.bf16.mxu0 %v10528_v47  ;;  %2435 = vmatpush1.bf16.msra.mxu0 %v10557_v48  ;;  %v2156_v47 = vpack.c.bf16 %v12713_v42, %v12713_v42  ;;  %v10598_v48 = vld [vmem:[#allocation7 + $0x14] ss:$8 sps:$4 sm:$0xff]  }
 0x210   : > { %1975 = vmatpush1.bf16.msra.mxu1 %v10406_v19  ;;  %2436 = vmatprep.subr.bf16.mxu0 %v10562_v49  ;;  %v10580_v19 = vld [vmem:[%s13863_s11 + $0xb4] ss:$8 sps:$4 sm:$0xff]   ;;  %v10513_v49 = vld [vmem:[%s13859_s0 + $0x280] ss:$8 sps:$4 sm:$0xff]  }
 0x211   : > { %1976 = vmatprep.subr.bf16.mxu1 %v10414_v20  ;;  %v10480_v20 = vld [vmem:[%s13859_s0 + $0x220] ss:$8 sps:$4 sm:$0xff]  }
 0x213   : > { %2437 = vmatpush1.bf16.msra.mxu0 %v10560_v54  ;;  %v10601_v54 = vld [vmem:[#allocation7 + $0x24] ss:$8 sps:$4 sm:$0xff]  }
 0x214   : > { %1977 = vmatpush1.bf16.msra.mxu1 %v10412_v22  ;;  %2438 = vmatprep.subr.bf16.mxu0 %v10565_v56  ;;  %v10578_v22 = vld [vmem:[%s13863_s11 + $0xb0] ss:$8 sps:$4 sm:$0xff]   ;;  %v10524_v56 = vld [vmem:[%s13859_s0 + $0x2a4] ss:$8 sps:$4 sm:$0xff]  }
 0x215   : > { %1978 = vmatprep.subr.bf16.mxu1 %v10420_v23  ;;  %v10583_v23 = vld [vmem:[%s13863_s11 + $0xc4] ss:$8 sps:$4 sm:$0xff]  }
 0x216   : > { %1283 = vmatmul.mubr.bf16.gmra.mrb[12].mxu0 %v10530_v59  ;;  %v10522_v59 = vld [vmem:[%s13859_s0 + $0x2a0] ss:$8 sps:$4 sm:$0xff]  }
 0x217   : > { %2439 = vmatpush1.bf16.msra.mxu0 %v10563_v61  ;;  %2458 = vmatprep.mubr.bf16.mxu0 %v2157_v8  ;;  %v10602_v61 = vld [vmem:[#allocation7 + $0x30] ss:$8 sps:$4 sm:$0xff]   ;;  %v10613_v8 = vld [vmem:[#allocation7 + $0x64] ss:$8 sps:$4 sm:$0xff]  }
 0x218   : > { %1979 = vmatpush1.bf16.msra.mxu1 %v10418_v29  ;;  %2440 = vmatprep.subr.bf16.mxu0 %v10568_v62  ;;  %v10500_v29 = vld [vmem:[%s13859_s0 + $0x254] ss:$8 sps:$4 sm:$0xff]   ;;  %v10607_v62 = vld [vmem:[#allocation7 + $0x44] ss:$8 sps:$4 sm:$0xff]  }
 0x219   : > { %1980 = vmatprep.subr.bf16.mxu1 %v10426_v30  ;;  %v10584_v30 = vld [vmem:[%s13863_s11 + $0xd0] ss:$8 sps:$4 sm:$0xff]  }
 0x21b   : > { %2441 = vmatpush1.bf16.msra.mxu0 %v10566_v1  ;;  %v10605_v1 = vld [vmem:[#allocation7 + $0x40] ss:$8 sps:$4 sm:$0xff]  }
 0x21c   : > { %1981 = vmatpush1.bf16.msra.mxu1 %v10424_v33  ;;  %2442 = vmatprep.subr.bf16.mxu0 %v10571_v3  ;;  %v10506_v33 = vld [vmem:[%s13859_s0 + $0x264] ss:$8 sps:$4 sm:$0xff]   ;;  %v10531_v3 = vld [vmem:[%s13859_s0 + $0x2c0] ss:$8 sps:$4 sm:$0xff]  }
 0x21d   : > { %1982 = vmatprep.subr.bf16.mxu1 %v10432_v34  ;;  %v10587_v34 = vld [vmem:[%s13863_s11 + $0xe0] ss:$8 sps:$4 sm:$0xff]  }
 0x21f   : > { %2443 = vmatpush1.bf16.msra.mxu0 %v10569_v9  ;;  %v10534_v9 = vld [vmem:[%s13859_s0 + $0x2d0] ss:$8 sps:$4 sm:$0xff]  }
 0x220   : > { %1983 = vmatpush1.bf16.msra.mxu1 %v10430_v39  ;;  %2444 = vmatprep.subr.bf16.mxu0 %v10574_v11  ;;  %v10509_v39 = vld [vmem:[%s13859_s0 + $0x274] ss:$8 sps:$4 sm:$0xff]   ;;  %v10611_v11 = vld [vmem:[#allocation7 + $0x60] ss:$8 sps:$4 sm:$0xff]  }
 0x221   : > { %1984 = vmatprep.subr.bf16.mxu1 %v10438_v40  ;;  %v10590_v40 = vld [vmem:[%s13863_s11 + $0xf0] ss:$8 sps:$4 sm:$0xff]  }
 0x223   : > { %2445 = vmatpush1.bf16.msra.mxu0 %v10572_v15  ;;  %v10619_v15 = vld [vmem:[#allocation7 + $0x84] ss:$8 sps:$4 sm:$0xff]  }
 0x224   : > { %1985 = vmatpush1.bf16.msra.mxu1 %v10436_v43  ;;  %2446 = vmatprep.subr.bf16.mxu0 %v10577_v16  ;;  %v10507_v43 = vld [vmem:[%s13859_s0 + $0x270] ss:$8 sps:$4 sm:$0xff]  }
 0x225   : > { %1986 = vmatprep.subr.bf16.mxu1 %v10444_v44  ;;  %v10515_v44 = vld [vmem:[%s13859_s0 + $0x284] ss:$8 sps:$4 sm:$0xff]   ;;  %v10540_v16 = vld [vmem:[%s13859_s0 + $0x2f0] ss:$8 sps:$4 sm:$0xff]  }
 0x227   : > { %2447 = vmatpush1.bf16.msra.mxu0 %v10575_v18  ;;  %v10622_v18 = vld [vmem:[#allocation7 + $0x94] ss:$8 sps:$4 sm:$0xff]  }
 0x228   : > { %1987 = vmatpush1.bf16.msra.mxu1 %v10442_v50  ;;  %2448 = vmatprep.subr.bf16.mxu0 %v10580_v19  ;;  %v10518_v50 = vld [vmem:[%s13859_s0 + $0x294] ss:$8 sps:$4 sm:$0xff]   ;;  %v8916_v19 = vcombine.low %v12615_v7, %v12615_v7  ;;  %v10629_v7 = vld [vmem:[#allocation7 + $0xc0] ss:$8 sps:$4 sm:$0xff]  }
 0x229   : > { %1988 = vmatprep.subr.bf16.mxu1 %v10450_v53  ;;  %v10596_v53 = vld [vmem:[#allocation7 + $0x10] ss:$8 sps:$4 sm:$0xff]  }
 0x22b   : > { %2449 = vmatpush1.bf16.msra.mxu0 %v10578_v22  ;;  %v10625_v22 = vld [vmem:[#allocation7 + $0xa4] ss:$8 sps:$4 sm:$0xff]  }
 0x22c   : > { %1989 = vmatpush1.bf16.msra.mxu1 %v10448_v57  ;;  %2450 = vmatprep.subr.bf16.mxu0 %v10583_v23  ;;  %v10599_v57 = vld [vmem:[#allocation7 + $0x20] ss:$8 sps:$4 sm:$0xff]  }
 0x22d   : > { %1990 = vmatprep.subr.bf16.mxu1 %v10456_v58  ;;  %v10604_v58 = vld [vmem:[#allocation7 + $0x34] ss:$8 sps:$4 sm:$0xff]   ;;  %v10623_v23 = vld [vmem:[#allocation7 + $0xa0] ss:$8 sps:$4 sm:$0xff]  }
 0x22f   : > { %2451 = vmatpush1.bf16.msra.mxu0 %v10581_v26  ;;  %v10631_v26 = vld [vmem:[#allocation7 + $0xc4] ss:$8 sps:$4 sm:$0xff]  }
 0x230   : > { %1991 = vmatpush1.bf16.msra.mxu1 %v10454_v60  ;;  %2452 = vmatprep.subr.bf16.mxu0 %v10586_v27  ;;  %v10527_v60 = vld [vmem:[%s13859_s0 + $0x2b4] ss:$8 sps:$4 sm:$0xff]   ;;  %v10634_v27 = vld [vmem:[#allocation7 + $0xd4] ss:$8 sps:$4 sm:$0xff]  }
 0x231   : > { %1992 = vmatprep.subr.bf16.mxu1 %v10462_v0  ;;  %v10533_v0 = vld [vmem:[%s13859_s0 + $0x2c4] ss:$8 sps:$4 sm:$0xff]  }
 0x233   : > { %2453 = vmatpush1.bf16.msra.mxu0 %v10584_v30  ;;  %v10635_v30 = vld [vmem:[#allocation7 + $0xe0] ss:$8 sps:$4 sm:$0xff]  }
 0x234   : > { %1993 = vmatpush1.bf16.msra.mxu1 %v10460_v5  ;;  %2454 = vmatprep.subr.bf16.mxu0 %v10589_v31  ;;  %v10536_v5 = vld [vmem:[%s13859_s0 + $0x2d4] ss:$8 sps:$4 sm:$0xff]   ;;  %v10640_v31 = vld [vmem:[#allocation7 + $0xf4] ss:$8 sps:$4 sm:$0xff]  }
 0x235   : > { %2003 = vmatprep.subr.bf16.mxu1 %v10470_v6  ;;  %v10608_v6 = vld [vmem:[#allocation7 + $0x50] ss:$8 sps:$4 sm:$0xff]  }
 0x237   : > { %1995 = vmatmul.mubr.bf16.vlgmr.msra.gmra.mrb[0].mxu1 %v8914_v10  ;;  %2455 = vmatpush1.bf16.msra.mxu0 %v10587_v34  ;;  %v10539_v10 = vld [vmem:[%s13859_s0 + $0x2e4] ss:$8 sps:$4 sm:$0xff]   ;;  %v12774_v34 = vshrl.u32 %v1010_v45, 7 }
 0x238   : > { %2004 = vmatpush1.bf16.msra.mxu1 %v10468_v12  ;;  %2035 = vmatprep.mubr.bf16.mxu1 %v8917_v13  ;;  %v10616_v12 = vld [vmem:[#allocation7 + $0x74] ss:$8 sps:$4 sm:$0xff]  }
 0x239   : > { %2005 = vmatprep.subr.bf16.mxu1 %v10476_v14  ;;  %2456 = vmatprep.subr.bf16.mxu0 %v10592_v37  ;;  %v10537_v13 = vld [vmem:[%s13859_s0 + $0x2e0] ss:$8 sps:$4 sm:$0xff]   ;;  %v10542_v14 = vld [vmem:[%s13859_s0 + $0x2f4] ss:$8 sps:$4 sm:$0xff]   ;;  %v12777_v35 = vsub.s32 0, %v12774_v34  ;;  %v12780_v36 = vsub.s32 1, %v12774_v34 }
 0x23a   : > { %v1008_v37 = vld [vmem:[%s13867_s5] sm:$0x3] }
 0x23b   : > { %2457 = vmatpush1.bf16.msra.mxu0 %v10590_v40 }
 0x23c   : > { %2006 = vmatpush1.bf16.msra.mxu1 %v10474_v52  ;;  %2673 = vmatprep.subr.bf16.mxu0 %v10595_v41  ;;  %v10614_v52 = vld [vmem:[#allocation7 + $0x70] ss:$8 sps:$4 sm:$0xff]  }
 0x23d   : > { %2007 = vmatprep.subr.bf16.mxu1 %v10482_v17  ;;  %v10617_v17 = vld [vmem:[#allocation7 + $0x80] ss:$8 sps:$4 sm:$0xff]  }
 0x23e   : > { %2459 = vmatmul.mubr.bf16.vlgmr.msra.gmra.mrb[16].mxu0 %v2156_v47  ;;  %v2118_v47 = vld [vmem:[%s13866_s28] sm:$0xff] }
 0x23f   : > { %2674 = vmatpush1.bf16.msra.mxu0 %v10593_v46 }
 0x240   : > { %2008 = vmatpush1.bf16.msra.mxu1 %v10480_v20  ;;  %2675 = vmatprep.subr.bf16.mxu0 %v10598_v48  ;;  %v12770_v20 = vld [vmem:[#allocation2 + $0xa0] sm:$0xff] }
 0x241   : > { %2009 = vmatprep.subr.bf16.mxu1 %v10488_v21  ;;  %v10620_v21 = vld [vmem:[#allocation7 + $0x90] ss:$8 sps:$4 sm:$0xff]  }
 0x243   : > { %2676 = vmatpush1.bf16.msra.mxu0 %v10596_v53  ;;  %v2119_v53 = vld [vmem:[%s13866_s28 + $0x8] sm:$0xff] }
 0x244   : > { %2010 = vmatpush1.bf16.msra.mxu1 %v10486_v24  ;;  %2677 = vmatprep.subr.bf16.mxu0 %v10601_v54  ;;  %v10628_v24 = vld [vmem:[#allocation7 + $0xb4] ss:$8 sps:$4 sm:$0xff]  }
 0x245   : > { %2011 = vmatprep.subr.bf16.mxu1 %v10494_v25  ;;  %v10626_v25 = vld [vmem:[#allocation7 + $0xb0] ss:$8 sps:$4 sm:$0xff]  }
 0x247   : > { %2678 = vmatpush1.bf16.msra.mxu0 %v10599_v57 }
 0x248   : > { %2012 = vmatpush1.bf16.msra.mxu1 %v10492_v28  ;;  %2679 = vmatprep.subr.bf16.mxu0 %v10604_v58  ;;  %v10632_v28 = vld [vmem:[#allocation7 + $0xd0] ss:$8 sps:$4 sm:$0xff]  }
 0x249   : > { %2013 = vmatprep.subr.bf16.mxu1 %v10500_v29  ;;  %v10637_v29 = vld [vmem:[#allocation7 + $0xe4] ss:$8 sps:$4 sm:$0xff]   ;;  %v2121_v58 = vld [vmem:[%s13866_s28 + $0x18] sm:$0xff] }
 0x24b   : > { %2680 = vmatpush1.bf16.msra.mxu0 %v10602_v61 }
 0x24c   : > { %2014 = vmatpush1.bf16.msra.mxu1 %v10498_v32  ;;  %2681 = vmatprep.subr.bf16.mxu0 %v10607_v62  ;;  %v10638_v32 = vld [vmem:[#allocation7 + $0xf0] ss:$8 sps:$4 sm:$0xff]  }
 0x24d   : > { %2015 = vmatprep.subr.bf16.mxu1 %v10506_v33  ;;  %v10643_v33 = vld [vmem:[#allocation10 + $0x4] ss:$8 sps:$4 sm:$0xff]  }
 0x24f   : > { %2682 = vmatpush1.bf16.msra.mxu0 %v10605_v1 }
 0x250   : > { %2016 = vmatpush1.bf16.msra.mxu1 %v10504_v38  ;;  %2683 = vmatprep.subr.bf16.mxu0 %v10610_v2  ;;  %v12786_v38 = vrot.slane %v1008_v37, %v12777_v35 }
 0x251   : > { %2017 = vmatprep.subr.bf16.mxu1 %v10509_v39  ;;  %v12789_v39 = vrot.slane %v1008_v37, %v12780_v36 }
 0x253   : > { %2684 = vmatpush1.bf16.msra.mxu0 %v10608_v6 }
 0x254   : > { %2018 = vmatpush1.bf16.msra.mxu1 %v10507_v43  ;;  %2685 = vmatprep.subr.bf16.mxu0 %v10613_v8 }
 0x255   : > { %2019 = vmatprep.subr.bf16.mxu1 %v10515_v44 }
 0x257   : > { %2686 = vmatpush1.bf16.msra.mxu0 %v10611_v11  ;;  %v10641_v11 = vld [vmem:[#allocation10] ss:$8 sps:$4 sm:$0xff]  }
 0x258   : > { %2020 = vmatpush1.bf16.msra.mxu1 %v10513_v49  ;;  %2687 = vmatprep.subr.bf16.mxu0 %v10616_v12  ;;  %v2122_v12 = vld [vmem:[%s13866_s28 + $0x20] sm:$0xff] }
 0x259   : > { %2021 = vmatprep.subr.bf16.mxu1 %v10518_v50 }
 0x25b   : > { %2688 = vmatpush1.bf16.msra.mxu0 %v10614_v52 }
 0x25c   : > { %2022 = vmatpush1.bf16.msra.mxu1 %v10516_v55  ;;  %2689 = vmatprep.subr.bf16.mxu0 %v10619_v15  ;;  %v2123_v15 = vld [vmem:[%s13866_s28 + $0x28] sm:$0xff] }
 0x25d   : > { %2023 = vmatprep.subr.bf16.mxu1 %v10524_v56  ;;  %v2120_v56 = vld [vmem:[%s13866_s28 + $0x10] sm:$0xff] }
 0x25f   : > { %2690 = vmatpush1.bf16.msra.mxu0 %v10617_v17 }
 0x260   : > { %2024 = vmatpush1.bf16.msra.mxu1 %v10522_v59  ;;  %2691 = vmatprep.subr.bf16.mxu0 %v10622_v18 }
 0x261   : > { %2025 = vmatprep.subr.bf16.mxu1 %v10527_v60 }
 0x263   : > { %2692 = vmatpush1.bf16.msra.mxu0 %v10620_v21 }
 0x264   : > { %2026 = vmatpush1.bf16.msra.mxu1 %v10525_v63  ;;  %2693 = vmatprep.subr.bf16.mxu0 %v10625_v22  ;;  %v2125_v22 = vld [vmem:[%s13866_s28 + $0x38] sm:$0xff] }
 0x265   : > { %2027 = vmatprep.subr.bf16.mxu1 %v10533_v0 }
 0x267   : > { %2694 = vmatpush1.bf16.msra.mxu0 %v10623_v23 }
 0x268   : > { %2028 = vmatpush1.bf16.msra.mxu1 %v10531_v3  ;;  %2695 = vmatprep.subr.bf16.mxu0 %v10628_v24 }
 0x269   : > { %2029 = vmatprep.subr.bf16.mxu1 %v10536_v5 }
 0x26b   : > { %2696 = vmatpush1.bf16.msra.mxu0 %v10626_v25 }
 0x26c   : > { %2030 = vmatpush1.bf16.msra.mxu1 %v10534_v9  ;;  %2697 = vmatprep.subr.bf16.mxu0 %v10631_v26  ;;  %v10644_v26 = vld [vmem:[#allocation10 + $0x10] ss:$8 sps:$4 sm:$0xff]  }
 0x26d   : > { %2031 = vmatprep.subr.bf16.mxu1 %v10539_v10 }
 0x26f   : > { %2698 = vmatpush1.bf16.msra.mxu0 %v10629_v7 }
 0x270   : > { %2032 = vmatpush1.bf16.msra.mxu1 %v10537_v13  ;;  %2699 = vmatprep.subr.bf16.mxu0 %v10634_v27  ;;  %v10649_v27 = vld [vmem:[#allocation10 + $0x24] ss:$8 sps:$4 sm:$0xff]  }
 0x271   : > { %2033 = vmatprep.subr.bf16.mxu1 %v10542_v14 }
 0x273   : > { %2700 = vmatpush1.bf16.msra.mxu0 %v10632_v28 }
 0x274   : > { %2034 = vmatpush1.bf16.msra.mxu1 %v10540_v16  ;;  %2701 = vmatprep.subr.bf16.mxu0 %v10637_v29  ;;  %v10646_v16 = vld [vmem:[#allocation10 + $0x14] ss:$8 sps:$4 sm:$0xff]  }
 0x275   : > { %9809 = vmatprep.subr.bf16.mxu1 %v12770_v20 }
 0x277   : > { %2036 = vmatmul.mubr.bf16.vlgmr.msra.gmra.mrb[0].mxu1 %v8916_v19  ;;  %2702 = vmatpush1.bf16.msra.mxu0 %v10635_v30  ;;  %v2124_v19 = vld [vmem:[%s13866_s28 + $0x30] sm:$0xff] }
 0x278   : > { %2703 = vmatprep.subr.bf16.mxu0 %v10640_v31  ;;  %9825 = vmatprep.mubr.msk.bf16.mxu1 %vm11677_vm2, %v12770_v20 }
 0x27b   : > { %2704 = vmatpush1.bf16.msra.mxu0 %v10638_v32 }
 0x27c   : > { %3006 = vmatprep.subr.bf16.mxu0 %v10643_v33 }
 0x2d1   : > { %v1254_v40 = vpop.f32.mrb[0].mxu0 }
 0x2d2   : > { %v1255_v41 = vadd.f32 %v1254_v40, %v12786_v38  ;;  %v1256_v43 = vpop.f32.mrb[1].mxu0 }
 0x2d3   : > { %v1257_v44 = vadd.f32 %v1256_v43, %v12789_v39  ;;  %v1258_v46 = vpop.f32.mrb[2].mxu0 }
 0x2d4   : > { %v1293_v48 = vmax.f32 %v1255_v41, 0.0  ;;  %v1259_v49 = vadd.f32 %v1258_v46, %v12786_v38  ;;  %v1260_v50 = vpop.f32.mrb[3].mxu0  ;;  %v2126_v46 = vld [vmem:[%s13866_s28 + $0x40] sm:$0xff] }
 0x2d5   : > { %v1294_v54 = vmax.f32 %v1257_v44, 0.0  ;;  %v1261_v55 = vadd.f32 %v1260_v50, %v12789_v39  ;;  %v10647_v44 = vld [vmem:[#allocation10 + $0x20] ss:$8 sps:$4 sm:$0xff]  }
 0x2d6   : > { %v1295_v57 = vmax.f32 %v1259_v49, 0.0  ;;  %v2158_v59 = vadd.f32 %v2118_v47, %v1293_v48  ;;  %v2127_v50 = vld [vmem:[%s13866_s28 + $0x48] sm:$0xff] }
 0x2d7   : > { %v1296_v60 = vmax.f32 %v1261_v55, 0.0  ;;  %v2159_v61 = vadd.f32 %v2119_v53, %v1294_v54  ;;  %v10652_v53 = vld [vmem:[#allocation10 + $0x34] ss:$8 sps:$4 sm:$0xff]  }
 0x2d8   : > { %v2160_v62 = vadd.f32 %v2120_v56, %v1295_v57  ;;  %v12807_v63 = vpack.c.bf16 %v1295_v57, %v1293_v48  ;;  %v2128_v56 = vld [vmem:[%s13866_s28 + $0x50] sm:$0xff] }
 0x2d9   : > { %v1264_v0 = vpop.f32.mrb[4].mxu0  ;;  %v2161_v1 = vadd.f32 %v2121_v58, %v1296_v60  ;;  %v12809_v2 = vpack.c.bf16 %v1296_v60, %v1294_v54  ;;  %v2129_v58 = vld [vmem:[%s13866_s28 + $0x58] sm:$0xff] }
 0x2da   : > { %v1265_v3 = vadd.f32 %v1264_v0, %v12786_v38  ;;  %v1266_v5 = vpop.f32.mrb[5].mxu0  ;;  %v2190_v6 = vpack.c.bf16 %v2160_v62, %v2158_v59  ;;  %v10650_v62 = vld [vmem:[#allocation10 + $0x30] ss:$8 sps:$4 sm:$0xff]  }
 0x2db   : > { %v1267_v8 = vadd.f32 %v1266_v5, %v12789_v39  ;;  %v1268_v9 = vpop.f32.mrb[6].mxu0  ;;  %v2191_v10 = vpack.c.bf16 %v2161_v1, %v2159_v61  ;;  %v10655_v1 = vld [vmem:[#allocation10 + $0x44] ss:$8 sps:$4 sm:$0xff]  }
 0x2dc   : > { %v1297_v13 = vmax.f32 %v1265_v3, 0.0  ;;  %v1269_v14 = vadd.f32 %v1268_v9, %v12786_v38  ;;  %v1270_v52 = vpop.f32.mrb[7].mxu0 }
 0x2dd   : > { %v1298_v17 = vmax.f32 %v1267_v8, 0.0  ;;  %v1271_v18 = vadd.f32 %v1270_v52, %v12789_v39  ;;  %2705 = vmatprep.mubr.bf16.mxu0 %v2191_v10  ;;  %v10653_v52 = vld [vmem:[#allocation10 + $0x40] ss:$8 sps:$4 sm:$0xff]  }
 0x2de   : > { %v1299_v21 = vmax.f32 %v1269_v14, 0.0  ;;  %2706 = vmatmul.mubr.bf16.vlgmr.msra.gmra.mrb[20].mxu0 %v2190_v6  ;;  %v2162_v23 = vadd.f32 %v2122_v12, %v1297_v13 }
 0x2df   : > { %v1300_v24 = vmax.f32 %v1271_v18, 0.0  ;;  %v2163_v25 = vadd.f32 %v2123_v15, %v1298_v17  ;;  %3007 = vmatpush1.bf16.msra.mxu0 %v10641_v11  ;;  %v2130_v15 = vld [vmem:[%s13866_s28 + $0x60] sm:$0xff] }
 0x2e0   : > { %v2164_v7 = vadd.f32 %v2124_v19, %v1299_v21  ;;  %3008 = vmatprep.subr.bf16.mxu0 %v10646_v16  ;;  %v12827_v28 = vpack.c.bf16 %v1299_v21, %v1297_v13  ;;  %v2131_v19 = vld [vmem:[%s13866_s28 + $0x68] sm:$0xff]  ;;  %v10658_v21 = vld [vmem:[#allocation10 + $0x54] ss:$8 sps:$4 sm:$0xff]  }
 0x2e1   : > { %v1274_v29 = vpop.f32.mrb[8].mxu0  ;;  %v2165_v30 = vadd.f32 %v2125_v22, %v1300_v24  ;;  %v12829_v31 = vpack.c.bf16 %v1300_v24, %v1298_v17  ;;  %v2132_v24 = vld [vmem:[%s13866_s28 + $0x70] sm:$0xff] }
 0x2e2   : > { %v1275_v32 = vadd.f32 %v1274_v29, %v12786_v38  ;;  %v1276_v33 = vpop.f32.mrb[9].mxu0  ;;  %v2192_v37 = vpack.c.bf16 %v2164_v7, %v2162_v23  ;;  %v10656_v29 = vld [vmem:[#allocation10 + $0x50] ss:$8 sps:$4 sm:$0xff]  }
 0x2e3   : > { %v1277_v40 = vadd.f32 %v1276_v33, %v12789_v39  ;;  %v1278_v41 = vpop.f32.mrb[10].mxu0  ;;  %v2193_v43 = vpack.c.bf16 %v2165_v30, %v2163_v25  ;;  %3009 = vmatpush1.bf16.msra.mxu0 %v10644_v26 }
 0x2e4   : > { %v1301_v47 = vmax.f32 %v1275_v32, 0.0  ;;  %v1279_v48 = vadd.f32 %v1278_v41, %v12786_v38  ;;  %v1280_v49 = vpop.f32.mrb[11].mxu0  ;;  %3010 = vmatprep.subr.bf16.mxu0 %v10649_v27  ;;  %v10661_v32 = vld [vmem:[#allocation10 + $0x64] ss:$8 sps:$4 sm:$0xff]  }
 0x2e5   : > { %v1302_v54 = vmax.f32 %v1277_v40, 0.0  ;;  %v1281_v55 = vadd.f32 %v1280_v49, %v12789_v39  ;;  %2715 = vmatprep.mubr.bf16.mxu0 %v2193_v43  ;;  %v10659_v43 = vld [vmem:[#allocation10 + $0x60] ss:$8 sps:$4 sm:$0xff]   ;;  %v10670_v49 = vld [vmem:[#allocation10 + $0x94] ss:$8 sps:$4 sm:$0xff]  }
 0x2e6   : > { %v1303_v57 = vmax.f32 %v1279_v48, 0.0  ;;  %2716 = vmatmul.mubr.bf16.gmra.mrb[24].mxu0 %v2192_v37  ;;  %v2166_v59 = vadd.f32 %v2126_v46, %v1301_v47  ;;  %v10662_v46 = vld [vmem:[#allocation10 + $0x70] ss:$8 sps:$4 sm:$0xff]   ;;  %v10665_v48 = vld [vmem:[#allocation10 + $0x80] ss:$8 sps:$4 sm:$0xff]  }
 0x2e7   : > { %v1304_v60 = vmax.f32 %v1281_v55, 0.0  ;;  %v2167_v61 = vadd.f32 %v2127_v50, %v1302_v54  ;;  %3011 = vmatpush1.bf16.msra.mxu0 %v10647_v44  ;;  %v10664_v44 = vld [vmem:[#allocation10 + $0x74] ss:$8 sps:$4 sm:$0xff]   ;;  %v10668_v50 = vld [vmem:[#allocation10 + $0x90] ss:$8 sps:$4 sm:$0xff]  }
 0x2e8   : > { %v2168_v0 = vadd.f32 %v2128_v56, %v1303_v57  ;;  %3012 = vmatprep.subr.bf16.mxu0 %v10652_v53  ;;  %v12847_v3 = vpack.c.bf16 %v1303_v57, %v1301_v47  ;;  %v10667_v47 = vld [vmem:[#allocation10 + $0x84] ss:$8 sps:$4 sm:$0xff]   ;;  %v10676_v55 = vld [vmem:[#allocation10 + $0xb4] ss:$8 sps:$4 sm:$0xff]   ;;  %v10674_v56 = vld [vmem:[#allocation10 + $0xb0] ss:$8 sps:$4 sm:$0xff]  }
 0x2e9   : > { %v1284_v5 = vpop.f32.mrb[12].mxu0  ;;  %v2169_v6 = vadd.f32 %v2129_v58, %v1304_v60  ;;  %v12849_v8 = vpack.c.bf16 %v1304_v60, %v1302_v54  ;;  %v10673_v53 = vld [vmem:[#allocation10 + $0xa4] ss:$8 sps:$4 sm:$0xff]   ;;  %v10671_v54 = vld [vmem:[#allocation10 + $0xa0] ss:$8 sps:$4 sm:$0xff]  }
 0x2ea   : > { %v1285_v9 = vadd.f32 %v1284_v5, %v12786_v38  ;;  %v1286_v10 = vpop.f32.mrb[13].mxu0  ;;  %v2194_v11 = vpack.c.bf16 %v2168_v0, %v2166_v59  ;;  %v10679_v57 = vld [vmem:[#allocation10 + $0xc4] ss:$8 sps:$4 sm:$0xff]   ;;  %v10677_v58 = vld [vmem:[#allocation10 + $0xc0] ss:$8 sps:$4 sm:$0xff]  }
 0x2eb   : > { %v1287_v12 = vadd.f32 %v1286_v10, %v12789_v39  ;;  %v1288_v13 = vpop.f32.mrb[14].mxu0  ;;  %v2195_v14 = vpack.c.bf16 %v2169_v6, %v2167_v61  ;;  %3013 = vmatpush1.bf16.msra.mxu0 %v10650_v62  ;;  %v10682_v59 = vld [vmem:[#allocation10 + $0xd4] ss:$8 sps:$4 sm:$0xff]   ;;  %v10680_v61 = vld [vmem:[#allocation10 + $0xd0] ss:$8 sps:$4 sm:$0xff]  }
 0x2ec   : > { %v1305_v16 = vmax.f32 %v1285_v9, 0.0  ;;  %v1289_v17 = vadd.f32 %v1288_v13, %v12786_v38  ;;  %v1290_v18 = vpop.f32.mrb[15].mxu0  ;;  %3014 = vmatprep.subr.bf16.mxu0 %v10655_v1  ;;  %v2133_v38 = vld [vmem:[%s13866_s28 + $0x78] sm:$0xff]  ;;  %v12871_v60 = vld [vmem:[#allocation5] sm:$0x3] }
 0x2ed   : > { %v1306_v22 = vmax.f32 %v1287_v12, 0.0  ;;  %v1291_v23 = vadd.f32 %v1290_v18, %v12789_v39  ;;  %2725 = vmatprep.mubr.bf16.mxu0 %v2195_v14  ;;  %v2263_v62 = vrot.slane %v12871_v60, %v12780_v36  ;;  %v10685_v0 = vld [vmem:[#allocation10 + $0xe4] ss:$8 sps:$4 sm:$0xff]   ;;  %v10683_v6 = vld [vmem:[#allocation10 + $0xe0] ss:$8 sps:$4 sm:$0xff]  }
 0x2ee   : > { %v1307_v25 = vmax.f32 %v1289_v17, 0.0  ;;  %2726 = vmatmul.mubr.bf16.gmra.mrb[28].mxu0 %v2194_v11  ;;  %v2170_v26 = vadd.f32 %v2130_v15, %v1305_v16  ;;  %v10688_v11 = vld [vmem:[#allocation10 + $0xf4] ss:$8 sps:$4 sm:$0xff]   ;;  %v10686_v13 = vld [vmem:[#allocation10 + $0xf0] ss:$8 sps:$4 sm:$0xff]  }
 0x2ef   : > { %v1308_v7 = vmax.f32 %v1291_v23, 0.0  ;;  %v2171_v27 = vadd.f32 %v2131_v19, %v1306_v22  ;;  %3015 = vmatpush1.bf16.msra.mxu0 %v10653_v52  ;;  %v1408_v14 = vld [vmem:[%s13868_s25] sm:$0x3]  ;;  %v2139_v19 = vld [vmem:[%s13866_s28 + $0xa8] sm:$0xff]  ;;  %s966_s25 = scalar_lea.vmem %s13869_s27, %s8871_s6 }
 0x2f0   : > { %v2172_v30 = vadd.f32 %v2132_v24, %v1307_v25  ;;  %3016 = vmatprep.subr.bf16.mxu0 %v10658_v21  ;;  %v12867_v39 = vpack.c.bf16 %v1307_v25, %v1305_v16  ;;  %v1413_v52 = vrot.slane %v1408_v14, %v12777_v35  ;;  %v1417_v15 = vrot.slane %v1408_v14, %v12780_v36  ;;  %v2141_v21 = vld [vmem:[%s13866_s28 + $0xb8] sm:$0xff]  ;;  %v2134_v24 = vld [vmem:[%s13866_s28 + $0x80] sm:$0xff] }
 0x2f1   : > { %v2173_v33 = vadd.f32 %v2133_v38, %v1308_v7  ;;  %v12869_v37 = vpack.c.bf16 %v1308_v7, %v1306_v22  ;;  %v11158_v14 = vld [vmem:[#allocation2 + $0x98] sm:$0xff] }
 0x2f2   : > { %v2196_v40 = vpack.c.bf16 %v2172_v30, %v2170_v26  ;;  %v2135_v26 = vld [vmem:[%s13866_s28 + $0x88] sm:$0xff] }
 0x2f3   : > { %v2197_v41 = vpack.c.bf16 %v2173_v33, %v2171_v27  ;;  %3017 = vmatpush1.bf16.msra.mxu0 %v10656_v29  ;;  %v2179_v27 = vadd.f32 %v12770_v20, %v2139_v19  ;;  %v2181_v29 = vadd.f32 %v12770_v20, %v2141_v21 }
 0x2f4   : > { %3018 = vmatprep.subr.bf16.mxu0 %v10661_v32 }
 0x2f5   : > { %2735 = vmatprep.mubr.bf16.mxu0 %v2197_v41  ;;  %v2138_v41 = vld [vmem:[%s13866_s28 + $0xa0] sm:$0xff] }
 0x2f6   : > { %2736 = vmatmul.mubr.bf16.gmra.mrb[32].mxu0 %v2196_v40  ;;  %v2201_v40 = vpack.c.bf16 %v2181_v29, %v2179_v27 }
 0x2f7   : > { %3019 = vmatpush1.bf16.msra.mxu0 %v10659_v43  ;;  %v2140_v43 = vld [vmem:[%s13866_s28 + $0xb0] sm:$0xff] }
 0x2f8   : > { %3020 = vmatprep.subr.bf16.mxu0 %v10664_v44 }
 0x2fb   : > { %3021 = vmatpush1.bf16.msra.mxu0 %v10662_v46  ;;  %v2143_v46 = vld [vmem:[%s13866_s28 + $0xc8] sm:$0xff] }
 0x2fc   : > { %3022 = vmatprep.subr.bf16.mxu0 %v10667_v47  ;;  %v2145_v47 = vld [vmem:[%s13866_s28 + $0xd8] sm:$0xff] }
 0x2ff   : > { %3023 = vmatpush1.bf16.msra.mxu0 %v10665_v48  ;;  %v2180_v48 = vadd.f32 %v12770_v20, %v2140_v43 }
 0x300   : > { %3024 = vmatprep.subr.bf16.mxu0 %v10670_v49  ;;  %v2183_v49 = vadd.f32 %v12770_v20, %v2143_v46 }
 0x303   : > { %3025 = vmatpush1.bf16.msra.mxu0 %v10668_v50  ;;  %v2185_v50 = vadd.f32 %v12770_v20, %v2145_v47 }
 0x304   : > { %3026 = vmatprep.subr.bf16.mxu0 %v10673_v53 }
 0x305   : > { %v2203_v53 = vpack.c.bf16 %v2185_v50, %v2183_v49 }
 0x307   : > { %3027 = vmatpush1.bf16.msra.mxu0 %v10671_v54  ;;  %v2142_v54 = vld [vmem:[%s13866_s28 + $0xc0] sm:$0xff] }
 0x308   : > { %3028 = vmatprep.subr.bf16.mxu0 %v10676_v55  ;;  %v2144_v55 = vld [vmem:[%s13866_s28 + $0xd0] sm:$0xff] }
 0x30b   : > { %3029 = vmatpush1.bf16.msra.mxu0 %v10674_v56  ;;  %v2147_v56 = vld [vmem:[%s13866_s28 + $0xe8] sm:$0xff] }
 0x30c   : > { %3030 = vmatprep.subr.bf16.mxu0 %v10679_v57  ;;  %v2149_v57 = vld [vmem:[%s13866_s28 + $0xf8] sm:$0xff] }
 0x30f   : > { %3031 = vmatpush1.bf16.msra.mxu0 %v10677_v58  ;;  %v2182_v58 = vadd.f32 %v12770_v20, %v2142_v54 }
 0x310   : > { %3032 = vmatprep.subr.bf16.mxu0 %v10682_v59  ;;  %v2184_v59 = vadd.f32 %v12770_v20, %v2144_v55 }
 0x311   : > { %v12875_v1 = vpop.f32.mrb[16].mxu0 }
 0x312   : > { %v2462_v5 = vpop.f32.mrb[17].mxu0 }
 0x313   : > { %3033 = vmatpush1.bf16.msra.mxu0 %v10680_v61  ;;  %v12877_v9 = vadd.f32 %v2462_v5, %v2263_v62  ;;  %v2464_v10 = vpop.f32.mrb[18].mxu0  ;;  %v2187_v61 = vadd.f32 %v12770_v20, %v2147_v56  ;;  %v2189_v62 = vadd.f32 %v12770_v20, %v2149_v57 }
 0x314   : > { %3034 = vmatprep.subr.bf16.mxu0 %v10685_v0  ;;  %v2465_v12 = vpop.f32.mrb[19].mxu0  ;;  %v2202_v0 = vpack.c.bf16 %v2184_v59, %v2182_v58  ;;  %v2148_v10 = vld [vmem:[%s13866_s28 + $0xf0] sm:$0xff] }
 0x315   : > { %v2205_v5 = vpack.c.bf16 %v2189_v62, %v2187_v61  ;;  %v2188_v12 = vadd.f32 %v12770_v20, %v2148_v10  ;;  %v2217_v10 = vpack.c.bf16 %v12770_v20, %v12770_v20 }
 0x317   : > { %3035 = vmatpush1.bf16.msra.mxu0 %v10683_v6  ;;  %v2146_v6 = vld [vmem:[%s13866_s28 + $0xe0] sm:$0xff] }
 0x318   : > { %3036 = vmatprep.subr.bf16.mxu0 %v10688_v11  ;;  %v2186_v11 = vadd.f32 %v12770_v20, %v2146_v6 }
 0x31b   : > { %3037 = vmatpush1.bf16.msra.mxu0 %v10686_v13  ;;  %v2204_v13 = vpack.c.bf16 %v2188_v12, %v2186_v11 }
 0x31c   : > { %9849 = vmatprep.subr.bf16.mxu0 %v12770_v20 }
 0x34a   : > { %v2037_v16 = vpop.f32.mrb[0].mxu1 }
 0x34b   : > { %v12885_v17 = vadd.f32 %v2037_v16, %v1413_v52  ;;  %v2039_v18 = vpop.f32.mrb[1].mxu1 }
 0x34c   : > { %v10130_v22 = vadd.f32 %v2039_v18, %v1417_v15  ;;  %v2041_v23 = vpop.f32.mrb[2].mxu1  ;;  %v11159_v15 = vld [vmem:[#allocation2 + $0x90] sm:$0xff] }
 0x34d   : > { %v2044_v25 = vmax.f32 %v12885_v17, 0.0  ;;  %v2042_v38 = vpop.f32.mrb[3].mxu1 }
 0x34e   : > { %v2045_v7 = vmax.f32 %v10130_v22, 0.0 }
 0x34f   : > { %v2174_v30 = vadd.f32 %v2134_v24, %v2044_v25  ;;  %v2214_v16 = vpack.c.bf16 %v11159_v15, %v2044_v25 }
 0x350   : > { %v2175_v32 = vadd.f32 %v2135_v26, %v2045_v7  ;;  %v2215_v52 = vpack.c.bf16 %v11158_v14, %v2045_v7 }
 0x351   : > { %v2198_v44 = vpack.c.bf16 %v12713_v42, %v2174_v30 }
 0x352   : > { %v2199_v33 = vpack.c.bf16 %v12606_v4, %v2175_v32  ;;  %v2178_v4 = vadd.f32 %v12770_v20, %v2138_v41 }
 0x354   : > { %2745 = vmatprep.mubr.bf16.mxu0 %v2199_v33  ;;  %v2200_v42 = vpack.c.bf16 %v2180_v48, %v2178_v4 }
 0x355   : > { %2746 = vmatmul.mubr.bf16.gmra.mrb[36].mxu0 %v2198_v44 }
 0x356   : > { %2755 = vmatprep.mubr.bf16.mxu0 %v2201_v40 }
 0x35d   : > { %2756 = vmatmul.mubr.bf16.gmra.mrb[40].mxu0 %v2200_v42 }
 0x35e   : > { %2765 = vmatprep.mubr.bf16.mxu0 %v2203_v53 }
 0x365   : > { %2766 = vmatmul.mubr.bf16.gmra.mrb[44].mxu0 %v2202_v0 }
 0x366   : > { %2775 = vmatprep.mubr.bf16.mxu0 %v2205_v5 }
 0x36d   : > { %2776 = vmatmul.mubr.bf16.gmra.mrb[48].mxu0 %v2204_v13 }
 0x36e   : > { %3038 = vmatprep.mubr.bf16.mxu0 %v12809_v2  ;;  %v2501_v2 = vld [vmem:[#allocation8] sm:$0x3] }
 0x375   : > { %3039 = vmatmul.mubr.bf16.vlgmr.msra.gmra.mrb[52].mxu0 %v12807_v63  ;;  %v12953_v63 = vrot.slane %v2501_v2, %v12777_v35 }
 0x376   : > { %3048 = vmatprep.mubr.bf16.mxu0 %v12829_v31 }
 0x37d   : > { %3049 = vmatmul.mubr.bf16.gmra.mrb[56].mxu0 %v12827_v28  ;;  %v12956_v28 = vrot.slane %v2501_v2, %v12780_v36 }
 0x37e   : > { %3058 = vmatprep.mubr.bf16.mxu0 %v12849_v8 }
 0x385   : > { %3059 = vmatmul.mubr.bf16.gmra.mrb[60].mxu0 %v12847_v3 }
 0x386   : > { %3068 = vmatprep.mubr.bf16.mxu0 %v12869_v37 }
 0x38d   : > { %3069 = vmatmul.mubr.bf16.gmra.mrb[64].mxu0 %v12867_v39 }
 0x38e   : > { %3078 = vmatprep.mubr.bf16.mxu0 %v2215_v52 }
 0x395   : > { %3079 = vmatmul.mubr.bf16.gmra.mrb[68].mxu0 %v2214_v16 }
 0x396   : > { %3088 = vmatprep.mubr.bf16.mxu0 %v2217_v10 }
 0x39d   : > { %3089 = vmatmul.mubr.bf16.gmra.mrb[72].mxu0 %v2217_v10 }
 0x39e   : > { %3098 = vmatprep.mubr.bf16.mxu0 %v2217_v10 }
 0x3a5   : > { %3099 = vmatmul.mubr.bf16.gmra.mrb[76].mxu0 %v2217_v10 }
 0x3a6   : > { %3108 = vmatprep.mubr.bf16.mxu0 %v2217_v10 }
 0x3ad   : > { %3109 = vmatmul.mubr.bf16.gmra.mrb[80].mxu0 %v2217_v10 }
 0x3b1   : > { %v2707_v31 = vpop.f32.mrb[20].mxu0 }
 0x3b2   : > { %v2708_v3 = vadd.f32 %v2707_v31, %v12953_v63  ;;  %v2709_v8 = vpop.f32.mrb[21].mxu0 }
 0x3b3   : > { %v2710_v37 = vadd.f32 %v2709_v8, %v12956_v28  ;;  %v2711_v17 = vpop.f32.mrb[22].mxu0 }
 0x3b4   : > { %v2712_v39 = vadd.f32 %v2711_v17, %v12953_v63  ;;  %v2713_v18 = vpop.f32.mrb[23].mxu0  ;;  %v13026_v17 = vld [vmem:[#allocation2 + $0xa0] sm:$0xff] }
 0x3b5   : > { %v2714_v19 = vadd.f32 %v2713_v18, %v12956_v28  ;;  %9865 = vmatprep.mubr.msk.bf16.mxu0 %vm11677_vm2, %v13026_v17 }
 0x3b6   : > { %v12962_v21 = vpack.c.bf16 %v2712_v39, %v2708_v3 }
 0x3b7   : > { %v12964_v22 = vpack.c.bf16 %v2714_v19, %v2710_v37 }
 0x3b8   : > { %3268 = vrot.lane.b32.xlu0 %v12962_v21, %s11678_s7  ;;  %v3144_v23 = vsel %vm3139_vm1, %v12962_v21, 0 }
 0x3b9   : > { %v2717_v24 = vpop.f32.mrb[24].mxu0  ;;  %9810 = vmatpush3.bf16.xpose.msra.mxu1 %v3144_v23 }
 0x3ba   : > { %v2718_v25 = vadd.f32 %v2717_v24, %v12953_v63  ;;  %v2719_v38 = vpop.f32.mrb[25].mxu0  ;;  %9811 = vmatprep.subr.bf16.mxu1 %v12770_v20 }
 0x3bb   : > { %v2720_v26 = vadd.f32 %v2719_v38, %v12956_v28  ;;  %v2721_v7 = vpop.f32.mrb[26].mxu0 }
 0x3bc   : > { %v2722_v27 = vadd.f32 %v2721_v7, %v12953_v63  ;;  %v2723_v29 = vpop.f32.mrb[27].mxu0 }
 0x3bd   : > { %v2724_v30 = vadd.f32 %v2723_v29, %v12956_v28 }
 0x3be   : > { %v12977_v32 = vpack.c.bf16 %v2722_v27, %v2718_v25 }
 0x3bf   : > { %v12979_v33 = vpack.c.bf16 %v2724_v30, %v2720_v26 }
 0x3c0   : > { %3270 = vrot.lane.b32.xlu0 %v12977_v32, %s11678_s7  ;;  %v3147_v40 = vsel %vm3139_vm1, %v12977_v32, 0 }
 0x3c1   : > { %v2727_v41 = vpop.f32.mrb[28].mxu0  ;;  %9812 = vmatpush3.bf16.xpose.msra.mxu1 %v3147_v40 }
 0x3c2   : > { %v2728_v43 = vadd.f32 %v2727_v41, %v12953_v63  ;;  %v2729_v44 = vpop.f32.mrb[29].mxu0  ;;  %9813 = vmatprep.subr.bf16.mxu1 %v12770_v20 }
 0x3c3   : > { %v2730_v46 = vadd.f32 %v2729_v44, %v12956_v28  ;;  %v2731_v47 = vpop.f32.mrb[30].mxu0 }
 0x3c4   : > { %v2732_v4 = vadd.f32 %v2731_v47, %v12953_v63  ;;  %v2733_v48 = vpop.f32.mrb[31].mxu0 }
 0x3c5   : > { %v2734_v49 = vadd.f32 %v2733_v48, %v12956_v28 }
 0x3c6   : > { %v12990_v50 = vpack.c.bf16 %v2732_v4, %v2728_v43 }
 0x3c7   : > { %v12992_v42 = vpack.c.bf16 %v2734_v49, %v2730_v46 }
 0x3c8   : > { %3272 = vrot.lane.b32.xlu1 %v12990_v50, %s11678_s7  ;;  %v3150_v53 = vsel %vm3139_vm1, %v12990_v50, 0 }
 0x3c9   : > { %v2737_v54 = vpop.f32.mrb[32].mxu0  ;;  %9814 = vmatpush3.bf16.xpose.msra.mxu1 %v3150_v53  ;;  %v2259_v53 = vrot.slane %v12871_v60, %v12777_v35 }
 0x3ca   : > { %v2738_v55 = vadd.f32 %v2737_v54, %v12953_v63  ;;  %v2739_v56 = vpop.f32.mrb[33].mxu0  ;;  %9815 = vmatprep.subr.bf16.mxu1 %v12770_v20 }
 0x3cb   : > { %v2740_v57 = vadd.f32 %v2739_v56, %v12956_v28  ;;  %v2741_v58 = vpop.f32.mrb[34].mxu0  ;;  %v2461_v10 = vadd.f32 %v12875_v1, %v2259_v53 }
 0x3cc   : > { %v2742_v59 = vadd.f32 %v2741_v58, %v12953_v63  ;;  %v2743_v61 = vpop.f32.mrb[35].mxu0 }
 0x3cd   : > { %v2744_v62 = vadd.f32 %v2743_v61, %v12956_v28 }
 0x3ce   : > { %v13003_v0 = vpack.c.bf16 %v2742_v59, %v2738_v55 }
 0x3cf   : > { %v13005_v5 = vpack.c.bf16 %v2744_v62, %v2740_v57 }
 0x3d0   : > { %3274 = vrot.lane.b32.xlu1 %v13003_v0, %s11678_s7  ;;  %v3153_v6 = vsel %vm3139_vm1, %v13003_v0, 0 }
 0x3d1   : > { %9816 = vmatpush3.bf16.xpose.msra.mxu1 %v3153_v6  ;;  %v2834_v6 = vld [vmem:[#allocation11] sm:$0x3] }
 0x3d2   : > { %9817 = vmatprep.subr.bf16.mxu1 %v12770_v20  ;;  %v13082_v1 = vrot.slane %v2834_v6, %v12780_v36 }
 0x428   : > { %v2747_v11 = vpop.f32.mrb[36].mxu0 }
 0x429   : > { %v2749_v12 = vpop.f32.mrb[37].mxu0  ;;  %v2748_v52 = vadd.f32 %v2747_v11, %v12953_v63 }
 0x42a   : > { %v2750_v13 = vadd.f32 %v2749_v12, %v12956_v28  ;;  %v2751_v14 = vpop.f32.mrb[38].mxu0  ;;  %v3269_v55 = vpop.permute.xlu0 %3268 }
 0x42b   : > { %v2752_v15 = vadd.f32 %v2751_v14, %v12953_v63  ;;  %v2753_v16 = vpop.f32.mrb[39].mxu0  ;;  %v3288_v58 = vsel %vm3139_vm1, %v3269_v55, 0  ;;  %v13084_v14 = vpack.c.bf16 %v2461_v10, %v2461_v10 }
 0x42c   : > { %v2754_v2 = vadd.f32 %v2753_v16, %v12956_v28  ;;  %9850 = vmatpush3.bf16.xpose.msra.mxu0 %v3288_v58 }
 0x42d   : > { %v13018_v31 = vpack.c.bf16 %v2752_v15, %v2748_v52  ;;  %9851 = vmatprep.subr.bf16.mxu0 %v13026_v17 }
 0x42e   : > { %v13020_v3 = vpack.c.bf16 %v2754_v2, %v2750_v13 }
 0x42f   : > { %3276 = vrot.lane.b32.xlu0 %v13018_v31, %s11678_s7  ;;  %v3156_v20 = vsel %vm3139_vm1, %v13018_v31, 0 }
 0x430   : > { %v2757_v8 = vpop.f32.mrb[40].mxu0  ;;  %9818 = vmatpush3.bf16.xpose.msra.mxu1 %v3156_v20 }
 0x431   : > { %v2759_v37 = vpop.f32.mrb[41].mxu0  ;;  %9819 = vmatprep.subr.bf16.mxu1 %v13026_v17  ;;  %v2758_v19 = vadd.f32 %v2757_v8, %v12953_v63 }
 0x432   : > { %v2760_v39 = vadd.f32 %v2759_v37, %v12956_v28  ;;  %v2761_v18 = vpop.f32.mrb[42].mxu0  ;;  %v3271_v15 = vpop.permute.xlu0 %3270 }
 0x433   : > { %v2762_v23 = vadd.f32 %v2761_v18, %v12953_v63  ;;  %v2763_v24 = vpop.f32.mrb[43].mxu0  ;;  %v3291_v2 = vsel %vm3139_vm1, %v3271_v15, 0 }
 0x434   : > { %v2764_v25 = vadd.f32 %v2763_v24, %v12956_v28  ;;  %9852 = vmatpush3.bf16.xpose.msra.mxu0 %v3291_v2 }
 0x435   : > { %v13033_v38 = vpack.c.bf16 %v2762_v23, %v2758_v19  ;;  %9853 = vmatprep.subr.bf16.mxu0 %v13026_v17 }
 0x436   : > { %v13035_v26 = vpack.c.bf16 %v2764_v25, %v2760_v39 }
 0x437   : > { %3278 = vrot.lane.b32.xlu1 %v13033_v38, %s11678_s7  ;;  %v3159_v7 = vsel %vm3139_vm1, %v13033_v38, 0 }
 0x438   : > { %v2767_v27 = vpop.f32.mrb[44].mxu0  ;;  %9820 = vmatpush3.bf16.xpose.msra.mxu1 %v3159_v7 }
 0x439   : > { %v2769_v29 = vpop.f32.mrb[45].mxu0  ;;  %9821 = vmatprep.subr.bf16.mxu1 %v13026_v17  ;;  %v2768_v41 = vadd.f32 %v2767_v27, %v12953_v63 }
 0x43a   : > { %v2770_v30 = vadd.f32 %v2769_v29, %v12956_v28  ;;  %v2771_v40 = vpop.f32.mrb[46].mxu0  ;;  %v3273_v7 = vpop.permute.xlu1 %3272 }
 0x43b   : > { %v2772_v43 = vadd.f32 %v2771_v40, %v12953_v63  ;;  %v2773_v44 = vpop.f32.mrb[47].mxu0  ;;  %v3294_v29 = vsel %vm3139_vm1, %v3273_v7, 0 }
 0x43c   : > { %v2774_v46 = vadd.f32 %v2773_v44, %v12956_v28  ;;  %9854 = vmatpush3.bf16.xpose.msra.mxu0 %v3294_v29 }
 0x43d   : > { %v13048_v47 = vpack.c.bf16 %v2772_v43, %v2768_v41  ;;  %9855 = vmatprep.subr.bf16.mxu0 %v13026_v17 }
 0x43e   : > { %v13050_v4 = vpack.c.bf16 %v2774_v46, %v2770_v30 }
 0x43f   : > { %3280 = vrot.lane.b32.xlu0 %v13048_v47, %s11678_s7  ;;  %v3162_v48 = vsel %vm3139_vm1, %v13048_v47, 0 }
 0x440   : > { %v2777_v49 = vpop.f32.mrb[48].mxu0  ;;  %9822 = vmatpush3.bf16.xpose.msra.mxu1 %v3162_v48 }
 0x441   : > { %v2779_v54 = vpop.f32.mrb[49].mxu0  ;;  %9823 = vmatprep.subr.bf16.mxu1 %v13026_v17  ;;  %v2778_v59 = vadd.f32 %v2777_v49, %v12953_v63 }
 0x442   : > { %v2780_v56 = vadd.f32 %v2779_v54, %v12956_v28  ;;  %v2781_v57 = vpop.f32.mrb[50].mxu0  ;;  %v3275_v54 = vpop.permute.xlu1 %3274 }
 0x443   : > { %v2782_v61 = vadd.f32 %v2781_v57, %v12953_v63  ;;  %v2783_v62 = vpop.f32.mrb[51].mxu0  ;;  %3435 = vrot.lane.b32.xlu0 %v12962_v21, %s11679_s24  ;;  %v13077_v63 = vrot.slane %v2834_v6, %v12777_v35 }
 0x444   : > { %v2784_v60 = vadd.f32 %v2783_v62, %v12956_v28 }
 0x445   : > { %v13068_v11 = vpack.c.bf16 %v2782_v61, %v2778_v59 }
 0x446   : > { %v13070_v12 = vpack.c.bf16 %v2784_v60, %v2780_v56  ;;  %v3297_v56 = vsel %vm3139_vm1, %v3275_v54, 0 }
 0x447   : > { %3282 = vrot.lane.b32.xlu1 %v13068_v11, %s11678_s7  ;;  %3437 = vrot.lane.b32.xlu0 %v12977_v32, %s11679_s24  ;;  %v3165_v28 = vsel %vm3139_vm1, %v13068_v11, 0 }
 0x448   : > { %v3040_v13 = vpop.f32.mrb[52].mxu0  ;;  %9824 = vmatpush3.bf16.xpose.msra.mxu1 %v3165_v28  ;;  %9856 = vmatpush3.bf16.xpose.msra.mxu0 %v3297_v56 }
 0x449   : > { %v3042_v52 = vpop.f32.mrb[53].mxu0  ;;  %9829 = vmatprep.subr.bf16.mxu1 %v13026_v17  ;;  %v3041_v20 = vadd.f32 %v3040_v13, %v13077_v63  ;;  %9857 = vmatprep.subr.bf16.mxu0 %v13026_v17 }
 0x44a   : > { %v3044_v16 = vpop.f32.mrb[54].mxu0  ;;  %v3043_v39 = vadd.f32 %v3042_v52, %v13082_v1 }
 0x44b   : > { %v3045_v8 = vadd.f32 %v3044_v16, %v13077_v63  ;;  %v3046_v37 = vpop.f32.mrb[55].mxu0  ;;  %3258 = vrot.lane.b32.xlu1 %v13084_v14, %s11678_s7  ;;  %3441 = vrot.lane.b32.xlu0 %v13003_v0, %s11679_s24 }
 0x44c   : > { %v3047_v18 = vadd.f32 %v3046_v37, %v13082_v1 }
 0x44d   : > { %v13096_v19 = vpack.c.bf16 %v3045_v8, %v3041_v20 }
 0x44e   : > { %v13099_v23 = vpack.c.bf16 %v3047_v18, %v3043_v39 }
 0x44f   : > { %3439 = vrot.lane.b32.xlu1 %v12990_v50, %s11679_s24  ;;  %3445 = vrot.lane.b32.xlu0 %v13033_v38, %s11679_s24 }
 0x450   : > { %9826 = vmatmul.mubr.msk.bf16.vlgmr.msra.gmra.mrb[4].mxu1 %vm3139_vm1, %v13084_v14  ;;  %v3050_v24 = vpop.f32.mrb[56].mxu0 }
 0x451   : > { %9830 = vmatpush3.bf16.msra.mxu1 %v13096_v19  ;;  %v3052_v25 = vpop.f32.mrb[57].mxu0  ;;  %9845 = vmatprep.mubr.msk.bf16.mxu1 %vm11677_vm2, %v13026_v17  ;;  %v3051_v30 = vadd.f32 %v3050_v24, %v13077_v63 }
 0x452   : > { %v3054_v27 = vpop.f32.mrb[58].mxu0  ;;  %9831 = vmatprep.subr.bf16.mxu1 %v13026_v17  ;;  %v3053_v43 = vadd.f32 %v3052_v25, %v13082_v1 }
 0x453   : > { %v3055_v40 = vadd.f32 %v3054_v27, %v13077_v63  ;;  %v3056_v41 = vpop.f32.mrb[59].mxu0  ;;  %3443 = vrot.lane.b32.xlu1 %v13018_v31, %s11679_s24  ;;  %3449 = vrot.lane.b32.xlu0 %v13068_v11, %s11679_s24 }
 0x454   : > { %v3057_v44 = vadd.f32 %v3056_v41, %v13082_v1 }
 0x455   : > { %v13120_v46 = vpack.c.bf16 %v3055_v40, %v3051_v30 }
 0x456   : > { %v13123_v48 = vpack.c.bf16 %v3057_v44, %v3053_v43 }
 0x457   : > { %3447 = vrot.lane.b32.xlu1 %v13048_v47, %s11679_s24  ;;  %9832 = vmatpush3.bf16.msra.mxu1 %v13120_v46 }
 0x458   : > { %v3060_v49 = vpop.f32.mrb[60].mxu0  ;;  %9833 = vmatprep.subr.bf16.mxu1 %v13026_v17 }
 0x459   : > { %v3062_v53 = vpop.f32.mrb[61].mxu0  ;;  %v3061_v57 = vadd.f32 %v3060_v49, %v13077_v63 }
 0x45a   : > { %v3064_v55 = vpop.f32.mrb[62].mxu0  ;;  %v3063_v61 = vadd.f32 %v3062_v53, %v13082_v1 }
 0x45b   : > { %v3065_v58 = vadd.f32 %v3064_v55, %v13077_v63  ;;  %v3066_v59 = vpop.f32.mrb[63].mxu0  ;;  %3433 = vrot.lane.b32.xlu1 %v13084_v14, %s11679_s24 }
 0x45c   : > { %v3067_v62 = vadd.f32 %v3066_v59, %v13082_v1 }
 0x45d   : > { %v13136_v60 = vpack.c.bf16 %v3065_v58, %v3061_v57 }
 0x45e   : > { %v13139_v6 = vpack.c.bf16 %v3067_v62, %v3063_v61 }
 0x45f   : > { %9834 = vmatpush3.bf16.msra.mxu1 %v13136_v60 }
 0x460   : > { %v3070_v10 = vpop.f32.mrb[64].mxu0  ;;  %9835 = vmatprep.subr.bf16.mxu1 %v13026_v17 }
 0x461   : > { %v3072_v28 = vpop.f32.mrb[65].mxu0  ;;  %v3071_v52 = vadd.f32 %v3070_v10, %v13077_v63 }
 0x462   : > { %v3074_v13 = vpop.f32.mrb[66].mxu0  ;;  %v3073_v2 = vadd.f32 %v3072_v28, %v13082_v1 }
 0x463   : > { %v3075_v15 = vadd.f32 %v3074_v13, %v13077_v63  ;;  %v3076_v16 = vpop.f32.mrb[67].mxu0 }
 0x464   : > { %v3077_v20 = vadd.f32 %v3076_v16, %v13082_v1 }
 0x465   : > { %v13147_v8 = vpack.c.bf16 %v3075_v15, %v3071_v52 }
 0x466   : > { %v13149_v37 = vpack.c.bf16 %v3077_v20, %v3073_v2 }
 0x467   : > { %9836 = vmatpush3.bf16.msra.mxu1 %v13147_v8 }
 0x468   : > { %v3080_v39 = vpop.f32.mrb[68].mxu0  ;;  %9837 = vmatprep.subr.bf16.mxu1 %v13026_v17 }
 0x469   : > { %v3082_v18 = vpop.f32.mrb[69].mxu0  ;;  %v3081_v25 = vadd.f32 %v3080_v39, %v13077_v63 }
 0x46a   : > { %v3084_v24 = vpop.f32.mrb[70].mxu0  ;;  %v3083_v29 = vadd.f32 %v3082_v18, %v13082_v1 }
 0x46b   : > { %v3085_v7 = vadd.f32 %v3084_v24, %v13077_v63  ;;  %v3086_v27 = vpop.f32.mrb[71].mxu0 }
 0x46c   : > { %v3087_v30 = vadd.f32 %v3086_v27, %v13082_v1 }
 0x46d   : > { %v13157_v40 = vpack.c.bf16 %v3085_v7, %v3081_v25 }
 0x46e   : > { %v13159_v41 = vpack.c.bf16 %v3087_v30, %v3083_v29 }
 0x46f   : > { %9838 = vmatpush3.bf16.msra.mxu1 %v13157_v40 }
 0x470   : > { %9839 = vmatprep.subr.bf16.mxu1 %v13026_v17  ;;  %v3090_v7 = vpop.f32.mrb[72].mxu0 }
 0x471   : > { %v3091_v29 = vadd.f32 %v3090_v7, %v13077_v63  ;;  %v3092_v30 = vpop.f32.mrb[73].mxu0 }
 0x4a1   : > { %v3277_v43 = vpop.permute.xlu0 %3276 }
 0x4a2   : > { %v3300_v44 = vsel %vm3139_vm1, %v3277_v43, 0  ;;  %v3093_v43 = vadd.f32 %v3092_v30, %v13082_v1 }
 0x4a3   : > { %9858 = vmatpush3.bf16.xpose.msra.mxu0 %v3300_v44  ;;  %v3094_v44 = vpop.f32.mrb[74].mxu0 }
 0x4a4   : > { %9859 = vmatprep.subr.bf16.mxu0 %v13026_v17 }
 0x4a9   : > { %v3279_v49 = vpop.permute.xlu1 %3278 }
 0x4aa   : > { %v3303_v53 = vsel %vm3139_vm1, %v3279_v49, 0  ;;  %v3095_v49 = vadd.f32 %v3094_v44, %v13077_v63 }
 0x4ab   : > { %9860 = vmatpush3.bf16.xpose.msra.mxu0 %v3303_v53  ;;  %v3096_v53 = vpop.f32.mrb[75].mxu0 }
 0x4ac   : > { %9861 = vmatprep.subr.bf16.mxu0 %v13026_v17 }
 0x4b1   : > { %v3281_v54 = vpop.permute.xlu0 %3280 }
 0x4b2   : > { %v3306_v55 = vsel %vm3139_vm1, %v3281_v54, 0  ;;  %v3097_v54 = vadd.f32 %v3096_v53, %v13082_v1  ;;  %v3136_v53 = vand.u32 127, %v1010_v45 }
 0x4b3   : > { %9862 = vmatpush3.bf16.xpose.msra.mxu0 %v3306_v55  ;;  %v13194_v55 = vpack.c.bf16 %v3095_v49, %v3091_v29  ;;  %v3761_v49 = vsel %vm3139_vm1, %v12992_v42, 0 }
 0x4b4   : > { %9863 = vmatprep.subr.bf16.mxu0 %v13026_v17  ;;  %vm3137_vm3 = vcmp.lt.s32.totalorder %v3136_v53, 73 }
 0x4b5   : > { %v3436_v58 = vpop.permute.xlu0 %3435  ;;  %9840 = vmatpush3.bf16.msra.mxu1 %v13194_v55 }
 0x4b6   : > { %v3455_v61 = vsel %vm3139_vm1, %v3436_v58, 0  ;;  %v3100_v58 = vpop.f32.mrb[76].mxu0  ;;  %9841 = vmatprep.subr.bf16.mxu1 %v13026_v17 }
 0x4b9   : > { %v3283_v56 = vpop.permute.xlu1 %3282  ;;  %v3438_v62 = vpop.permute.xlu0 %3437 }
 0x4ba   : > { %v3309_v57 = vsel %vm3139_vm1, %v3283_v56, 0  ;;  %v3458_v10 = vsel %vm3139_vm1, %v3438_v62, 0  ;;  %v13196_v56 = vpack.c.bf16 %v3097_v54, %v3093_v43  ;;  %v3102_v62 = vpop.f32.mrb[77].mxu0 }
 0x4bb   : > { %9864 = vmatpush3.bf16.xpose.msra.mxu0 %v3309_v57 }
 0x4bc   : > { %9889 = vmatprep.subr.bf16.mxu0 %v13026_v17 }
 0x4bd   : > { %v3259_v59 = vpop.permute.xlu1 %3258  ;;  %v3442_v52 = vpop.permute.xlu0 %3441 }
 0x4be   : > { %v3464_v15 = vsel %vm3139_vm1, %v3442_v52, 0 }
 0x4c1   : > { %v3440_v28 = vpop.permute.xlu1 %3439  ;;  %v3446_v20 = vpop.permute.xlu0 %3445 }
 0x4c2   : > { %9866 = vmatmul.mubr.msk.bf16.vlgmr.msra.gmra.mrb[84].mxu0 %vm3139_vm1, %v3259_v59  ;;  %v3461_v13 = vsel %vm3139_vm1, %v3440_v28, 0  ;;  %v3470_v39 = vsel %vm3139_vm1, %v3446_v20, 0  ;;  %v3755_v59 = vsel %vm3139_vm1, %v12964_v22, 0  ;;  %v3104_v28 = vpop.f32.mrb[78].mxu0 }
 0x4c3   : > { %9890 = vmatpush3.bf16.xpose.msra.mxu0 %v3455_v61  ;;  %9905 = vmatprep.mubr.msk.bf16.mxu0 %vm11677_vm2, %v13026_v17  ;;  %v3101_v61 = vadd.f32 %v3100_v58, %v13077_v63  ;;  %v3106_v52 = vpop.f32.mrb[79].mxu0 }
 0x4c4   : > { %9891 = vmatprep.subr.bf16.mxu0 %v13026_v17  ;;  %v3110_v20 = vpop.f32.mrb[80].mxu0 }
 0x4c5   : > { %v3444_v16 = vpop.permute.xlu1 %3443  ;;  %v3450_v25 = vpop.permute.xlu0 %3449 }
 0x4c6   : > { %v3467_v2 = vsel %vm3139_vm1, %v3444_v16, 0  ;;  %v3476_v27 = vsel %vm3139_vm1, %v3450_v25, 0 }
 0x4c9   : > { %v3448_v18 = vpop.permute.xlu1 %3447 }
 0x4ca   : > { %v3473_v24 = vsel %vm3139_vm1, %v3448_v18, 0  ;;  %v3111_v18 = vadd.f32 %v3110_v20, %v13077_v63 }
 0x4cb   : > { %9892 = vmatpush3.bf16.xpose.msra.mxu0 %v3458_v10  ;;  %v3103_v10 = vadd.f32 %v3102_v62, %v13082_v1 }
 0x4cc   : > { %9893 = vmatprep.subr.bf16.mxu0 %v13026_v17 }
 0x4cd   : > { %v3434_v57 = vpop.permute.xlu1 %3433 }
 0x4d3   : > { %9894 = vmatpush3.bf16.xpose.msra.mxu0 %v3461_v13  ;;  %v3105_v13 = vadd.f32 %v3104_v28, %v13077_v63  ;;  %v3773_v28 = vsel %vm3139_vm1, %v13050_v4, 0 }
 0x4d4   : > { %9895 = vmatprep.subr.bf16.mxu0 %v13026_v17 }
 0x4d5   : > { %v13210_v16 = vpack.c.bf16 %v3105_v13, %v3101_v61  ;;  %v3776_v13 = vsel %vm3139_vm1, %v13070_v12, 0 }
 0x4d7   : > { %9842 = vmatpush3.bf16.msra.mxu1 %v13210_v16 }
 0x4d8   : > { %9843 = vmatprep.subr.bf16.mxu1 %v13026_v17 }
 0x4db   : > { %9896 = vmatpush3.bf16.xpose.msra.mxu0 %v3464_v15  ;;  %v3107_v15 = vadd.f32 %v3106_v52, %v13082_v1  ;;  %v13255_v52 = vpack.c.bf16 %v12877_v9, %v12877_v9 }
 0x4dc   : > { %9897 = vmatprep.subr.bf16.mxu0 %v13026_v17 }
 0x4e3   : > { %9898 = vmatpush3.bf16.xpose.msra.mxu0 %v3467_v2  ;;  %v13212_v2 = vpack.c.bf16 %v3107_v15, %v3103_v10  ;;  %v3770_v10 = vsel %vm3139_vm1, %v13035_v26, 0 }
 0x4e4   : > { %9899 = vmatprep.subr.bf16.mxu0 %v13026_v17 }
 0x4eb   : > { %9900 = vmatpush3.bf16.xpose.msra.mxu0 %v3470_v39  ;;  %v3758_v39 = vsel %vm3139_vm1, %v12979_v33, 0 }
 0x4ec   : > { %9901 = vmatprep.subr.bf16.mxu0 %v13026_v17 }
 0x4f3   : > { %9902 = vmatpush3.bf16.xpose.msra.mxu0 %v3473_v24  ;;  %v3112_v24 = vpop.f32.mrb[81].mxu0 }
 0x4f4   : > { %9903 = vmatprep.subr.bf16.mxu0 %v13026_v17  ;;  %v3113_v25 = vadd.f32 %v3112_v24, %v13082_v1  ;;  %v3114_v7 = vpop.f32.mrb[82].mxu0 }
 0x4f5   : > { %v3116_v29 = vpop.f32.mrb[83].mxu0 }
 0x4f6   : > { %v3117_v30 = vadd.f32 %v3116_v29, %v13082_v1  ;;  %v11680_v1 = vmov -1e+30  }
 0x4f7   : > { %v13236_v54 = vsel %vm3137_vm3, 0.0, %v11680_v1 }
 0x4f8   : > { %v13225_v44 = vpack.c.bf16 %v3117_v30, %v3113_v25 }
 0x4fb   : > { %9904 = vmatpush3.bf16.xpose.msra.mxu0 %v3476_v27  ;;  %v3115_v27 = vadd.f32 %v3114_v7, %v13077_v63  ;;  %v3764_v63 = vsel %vm3139_vm1, %v13005_v5, 0 }
 0x4fc   : > { %9969 = vmatprep.subr.bf16.mxu0 %v13026_v17 }
 0x4fd   : > { %v13223_v43 = vpack.c.bf16 %v3115_v27, %v3111_v18 }
 0x4ff   : > { %9844 = vmatpush3.bf16.msra.mxu1 %v13223_v43 }
 0x500   : > { %9869 = vmatprep.subr.bf16.mxu1 %v13026_v17 }
 0x502   : > { %9906 = vmatmul.mubr.msk.bf16.vlgmr.msra.gmra.mrb[88].mxu0 %vm3139_vm1, %v3434_v57  ;;  %v3767_v57 = vsel %vm3139_vm1, %v13020_v3, 0 }
 0x503   : > { %9970 = vmatpush3.bf16.xpose.msra.mxu0 %v3755_v59  ;;  %9985 = vmatprep.mubr.msk.bf16.mxu0 %vm11677_vm2, %v13026_v17 }
 0x504   : > { %9971 = vmatprep.subr.bf16.mxu0 %v13026_v17 }
 0x50b   : > { %9972 = vmatpush3.bf16.xpose.msra.mxu0 %v3758_v39 }
 0x50c   : > { %9973 = vmatprep.subr.bf16.mxu0 %v13026_v17 }
 0x513   : > { %9974 = vmatpush3.bf16.xpose.msra.mxu0 %v3761_v49 }
 0x514   : > { %9975 = vmatprep.subr.bf16.mxu0 %v13026_v17 }
 0x51b   : > { %9976 = vmatpush3.bf16.xpose.msra.mxu0 %v3764_v63 }
 0x51c   : > { %9977 = vmatprep.subr.bf16.mxu0 %v13026_v17 }
 0x523   : > { %v3201_v58 = vpop.f32.mrb[4].mxu1  ;;  %9978 = vmatpush3.bf16.xpose.msra.mxu0 %v3767_v57 }
 0x524   : > { %v3202_v59 = vadd.f32 %v3201_v58, %v13236_v54  ;;  %v9827_v61 = vpop.f32.mrb[5].mxu1  ;;  %9979 = vmatprep.subr.bf16.mxu0 %v13026_v17 }
 0x525   : > { %v3204_v62 = vpop.f32.mrb[6].mxu1 }
 0x526   : > { %3207 = vmax.xlane.f32.xlu0 %v3202_v59  ;;  %v9828_v45 = vpop.f32.mrb[7].mxu1 }
 0x52b   : > { %9980 = vmatpush3.bf16.xpose.msra.mxu0 %v3770_v10 }
 0x52c   : > { %9981 = vmatprep.subr.bf16.mxu0 %v13026_v17 }
 0x533   : > { %9982 = vmatpush3.bf16.xpose.msra.mxu0 %v3773_v28 }
 0x534   : > { %9983 = vmatprep.subr.bf16.mxu0 %v13026_v17 }
 0x53b   : > { %9984 = vmatpush3.bf16.xpose.msra.mxu0 %v3776_v13 }
 0x53c   : > { %3371 = vrot.lane.b32.xlu0 %v13120_v46, %s11678_s7  ;;  %10029 = vmatprep.subr.bf16.mxu0 %v13026_v17 }
 0x542   : > { %9986 = vmatmul.mubr.msk.bf16.vlgmr.msra.gmra.mrb[92].mxu0 %vm3139_vm1, %v13255_v52 }
 0x543   : > { %10045 = vmatprep.mubr.msk.bf16.mxu0 %vm11677_vm2, %v13026_v17 }
 0x595   : > { %v3345_v15 = vpop.f32.mrb[84].mxu0 }
 0x596   : > { %v3346_v20 = vadd.f32 %v3345_v15, %v13236_v54  ;;  %v9867_v39 = vpop.f32.mrb[85].mxu0 }
 0x597   : > { %v3348_v18 = vpop.f32.mrb[86].mxu0 }
 0x598   : > { %3351 = vmax.xlane.f32.xlu1 %v3346_v20  ;;  %v9868_v24 = vpop.f32.mrb[87].mxu0 }
 0x5a9   : > { %3369 = vrot.lane.b32.xlu1 %v13096_v19, %s11678_s7 }
 0x5ad   : > { %3373 = vrot.lane.b32.xlu1 %v13136_v60, %s11678_s7 }
 0x5b1   : > { %3375 = vrot.lane.b32.xlu1 %v13147_v8, %s11678_s7 }
 0x5b3   : > { %v3208_v9 = vpop.xlane.xlu0 %3207 }
 0x5b4   : > { %v3209_v25 = vsub.f32 %v3202_v59, %v3208_v9 }
 0x5b5   : > { %3377 = vrot.lane.b32.xlu1 %v13157_v40, %s11678_s7 }
 0x5b6   : > { %v3210_v7 = vmul.f32 1.442695, %v3209_v25 }
 0x5b7   : > { %v3372_v28 = vpop.permute.xlu0 %3371 }
 0x5b8   : > { %11121 = vpow2.f32 %v3210_v7 }
 0x5b9   : > { %3381 = vrot.lane.b32.xlu1 %v13210_v16, %s11678_s7 }
 0x5bd   : > { %3528 = vrot.lane.b32.xlu1 %v13096_v19, %s11679_s24 }
 0x5c2   : > { %v11122_v27 = vpop.eup %11121 }
 0x5c3   : > { %3212 = vadd.xlane.f32.xlu0 %v11122_v27 }
 0x5d5   : > { %v3512_v29 = vpop.f32.mrb[88].mxu0 }
 0x5d6   : > { %v3513_v30 = vadd.f32 %v3512_v29, %v13236_v54  ;;  %v9907_v49 = vpop.f32.mrb[89].mxu0 }
 0x5d7   : > { %v3515_v63 = vpop.f32.mrb[90].mxu0 }
 0x5d8   : > { %v9908_v53 = vpop.f32.mrb[91].mxu0  ;;  %3518 = vmax.xlane.f32.xlu0 %v3513_v30 }
 0x5ee   : > { %3379 = vrot.lane.b32.xlu0 %v13194_v55, %s11678_s7 }
 0x615   : > { %v3812_v1 = vpop.f32.mrb[92].mxu0 }
 0x616   : > { %v9987_v57 = vpop.f32.mrb[93].mxu0 }
 0x617   : > { %v3815_v58 = vpop.f32.mrb[94].mxu0 }
 0x618   : > { %v9988_v59 = vpop.f32.mrb[95].mxu0 }
 0x625   : > { %v3352_v61 = vpop.xlane.xlu1 %3351 }
 0x626   : > { %v3353_v62 = vsub.f32 %v3346_v20, %v3352_v61 }
 0x628   : > { %v3354_v45 = vmul.f32 1.442695, %v3353_v62 }
 0x629   : > { %v3370_v39 = vpop.permute.xlu1 %3369 }
 0x62a   : > { %11123 = vpow2.f32 %v3354_v45 }
 0x62d   : > { %v3374_v24 = vpop.permute.xlu1 %3373 }
 0x634   : > { %v13277_v10 = vpop.eup %11123 }
 0x635   : > { %3356 = vadd.xlane.f32.xlu0 %v13277_v10 }
 0x64b   : > { %3383 = vrot.lane.b32.xlu0 %v13223_v43, %s11678_s7 }
 0x64f   : > { %3530 = vrot.lane.b32.xlu0 %v13120_v46, %s11679_s24 }
 0x650   : > { %v3213_v13 = vpop.xlane.xlu0 %3212 }
 0x651   : > { %11125 = vrcp.f32 %v3213_v13 }
 0x653   : > { %3532 = vrot.lane.b32.xlu0 %v13136_v60, %s11679_s24 }
 0x657   : > { %3534 = vrot.lane.b32.xlu0 %v13147_v8, %s11679_s24 }
 0x65b   : > { %v11126_v15 = vpop.eup %11125  ;;  %3536 = vrot.lane.b32.xlu0 %v13157_v40, %s11679_s24 }
 0x65c   : > { %v3215_v20 = vmul.f32 %v11126_v15, %v11122_v27  ;;  %v3376_v27 = vpop.permute.xlu1 %3375 }
 0x65e   : > { %v3216_v18 = vpack.c.bf16 %v3215_v20, %v3215_v20 }
 0x65f   : > { %3538 = vrot.lane.b32.xlu0 %v13194_v55, %s11679_s24 }
 0x660   : > { %9846 = vmatmul.mubr.bf16.vlgmr.msra.gmra.mrb[8].mxu1 %v3216_v18  ;;  %v3378_v29 = vpop.permute.xlu1 %3377 }
 0x661   : > { %9870 = vmatpush3.bf16.msra.mxu1 %v3370_v39  ;;  %9885 = vmatprep.mubr.msk.bf16.mxu1 %vm11677_vm2, %v13026_v17 }
 0x662   : > { %9871 = vmatprep.subr.bf16.mxu1 %v13026_v17 }
 0x663   : > { %3540 = vrot.lane.b32.xlu0 %v13210_v16, %s11679_s24 }
 0x665   : > { %9872 = vmatpush3.bf16.msra.mxu1 %v3372_v28  ;;  %v3519_v9 = vpop.xlane.xlu0 %3518 }
 0x666   : > { %v3520_v25 = vsub.f32 %v3513_v30, %v3519_v9  ;;  %9873 = vmatprep.subr.bf16.mxu1 %v13026_v17 }
 0x667   : > { %3542 = vrot.lane.b32.xlu0 %v13223_v43, %s11679_s24 }
 0x668   : > { %v3521_v7 = vmul.f32 1.442695, %v3520_v25 }
 0x669   : > { %9874 = vmatpush3.bf16.msra.mxu1 %v3374_v24  ;;  %v3380_v49 = vpop.permute.xlu0 %3379 }
 0x66a   : > { %11127 = vpow2.f32 %v3521_v7  ;;  %9875 = vmatprep.subr.bf16.mxu1 %v13026_v17 }
 0x66b   : > { %3594 = vrot.lane.b32.xlu0 %v12962_v21, %s11681_s29  ;;  %v3382_v21 = vpop.permute.xlu1 %3381 }
 0x66d   : > { %9876 = vmatpush3.bf16.msra.mxu1 %v3376_v27 }
 0x66e   : > { %9877 = vmatprep.subr.bf16.mxu1 %v13026_v17 }
 0x66f   : > { %3596 = vrot.lane.b32.xlu0 %v12977_v32, %s11681_s29  ;;  %v13324_v32 = vadd.f32 %v3812_v1, %v13236_v54  ;;  %v3529_v63 = vpop.permute.xlu1 %3528 }
 0x671   : > { %9878 = vmatpush3.bf16.msra.mxu1 %v3378_v29 }
 0x672   : > { %9879 = vmatprep.subr.bf16.mxu1 %v13026_v17 }
 0x673   : > { %3598 = vrot.lane.b32.xlu0 %v12990_v50, %s11681_s29 }
 0x674   : > { %v11128_v30 = vpop.eup %11127 }
 0x675   : > { %9880 = vmatpush3.bf16.msra.mxu1 %v3380_v49  ;;  %3523 = vadd.xlane.f32.xlu1 %v11128_v30 }
 0x676   : > { %9881 = vmatprep.subr.bf16.mxu1 %v13026_v17 }
 0x677   : > { %3602 = vrot.lane.b32.xlu0 %v13018_v31, %s11681_s29 }
 0x679   : > { %9882 = vmatpush3.bf16.msra.mxu1 %v3382_v21 }
 0x67a   : > { %9883 = vmatprep.subr.bf16.mxu1 %v13026_v17 }
 0x67b   : > { %3604 = vrot.lane.b32.xlu0 %v13033_v38, %s11681_s29 }
 0x67f   : > { %3606 = vrot.lane.b32.xlu0 %v13048_v47, %s11681_s29 }
 0x683   : > { %3608 = vrot.lane.b32.xlu0 %v13068_v11, %s11681_s29 }
 0x686   : > { %3600 = vrot.lane.b32.xlu1 %v13003_v0, %s11681_s29 }
 0x68a   : > { %3592 = vrot.lane.b32.xlu1 %v13084_v14, %s11681_s29 }
 0x6ae   : > { %3818 = vmax.xlane.f32.xlu1 %v13324_v32 }
 0x6bf   : > { %3689 = vrot.lane.b32.xlu1 %v13120_v46, %s11681_s29 }
 0x6c2   : > { %v3357_v50 = vpop.xlane.xlu0 %3356 }
 0x6c3   : > { %11129 = vrcp.f32 %v3357_v50  ;;  %3695 = vrot.lane.b32.xlu1 %v13157_v40, %s11681_s29 }
 0x6c6   : > { %v3384_v31 = vpop.permute.xlu0 %3383 }
 0x6c7   : > { %9884 = vmatpush3.bf16.msra.mxu1 %v3384_v31 }
 0x6c8   : > { %9909 = vmatprep.subr.bf16.mxu1 %v13026_v17 }
 0x6ca   : > { %v3531_v0 = vpop.permute.xlu0 %3530 }
 0x6cd   : > { %v11130_v38 = vpop.eup %11129 }
 0x6ce   : > { %v3359_v47 = vmul.f32 %v11130_v38, %v13277_v10  ;;  %v3533_v11 = vpop.permute.xlu0 %3532 }
 0x6d0   : > { %v3360_v14 = vpack.c.bf16 %v3359_v47, %v3359_v47 }
 0x6d2   : > { %9886 = vmatmul.mubr.bf16.vlgmr.msra.gmra.mrb[12].mxu1 %v3360_v14  ;;  %v3535_v46 = vpop.permute.xlu0 %3534 }
 0x6d3   : > { %9910 = vmatpush3.bf16.msra.mxu1 %v3529_v63  ;;  %9925 = vmatprep.mubr.msk.bf16.mxu1 %vm11677_vm2, %v13026_v17 }
 0x6d4   : > { %9911 = vmatprep.subr.bf16.mxu1 %v13026_v17 }
 0x6d6   : > { %v3537_v40 = vpop.permute.xlu0 %3536 }
 0x6d7   : > { %9912 = vmatpush3.bf16.msra.mxu1 %v3531_v0 }
 0x6d8   : > { %9913 = vmatprep.subr.bf16.mxu1 %v13026_v17 }
 0x6da   : > { %v3539_v53 = vpop.permute.xlu0 %3538 }
 0x6db   : > { %9914 = vmatpush3.bf16.msra.mxu1 %v3533_v11 }
 0x6dc   : > { %9915 = vmatprep.subr.bf16.mxu1 %v13026_v17 }
 0x6de   : > { %v3541_v1 = vpop.permute.xlu0 %3540 }
 0x6df   : > { %9916 = vmatpush3.bf16.msra.mxu1 %v3535_v46 }
 0x6e0   : > { %9917 = vmatprep.subr.bf16.mxu1 %v13026_v17 }
 0x6e2   : > { %v3543_v57 = vpop.permute.xlu0 %3542 }
 0x6e3   : > { %9918 = vmatpush3.bf16.msra.mxu1 %v3537_v40 }
 0x6e4   : > { %9919 = vmatprep.subr.bf16.mxu1 %v13026_v17 }
 0x6e6   : > { %v3595_v62 = vpop.permute.xlu0 %3594 }
 0x6e7   : > { %9920 = vmatpush3.bf16.msra.mxu1 %v3539_v53  ;;  %v3614_v10 = vsel %vm3139_vm1, %v3595_v62, 0 }
 0x6e8   : > { %9921 = vmatprep.subr.bf16.mxu1 %v13026_v17 }
 0x6ea   : > { %v3597_v28 = vpop.permute.xlu0 %3596 }
 0x6eb   : > { %9922 = vmatpush3.bf16.msra.mxu1 %v3541_v1  ;;  %v3617_v13 = vsel %vm3139_vm1, %v3597_v28, 0 }
 0x6ec   : > { %9923 = vmatprep.subr.bf16.mxu1 %v13026_v17 }
 0x6ee   : > { %v3599_v15 = vpop.permute.xlu0 %3598 }
 0x6ef   : > { %9924 = vmatpush3.bf16.msra.mxu1 %v3543_v57  ;;  %v3620_v20 = vsel %vm3139_vm1, %v3599_v15, 0 }
 0x6f0   : > { %9929 = vmatprep.subr.bf16.mxu1 %v13026_v17 }
 0x6f2   : > { %v3603_v24 = vpop.permute.xlu0 %3602 }
 0x6f3   : > { %v3626_v9 = vsel %vm3139_vm1, %v3603_v24, 0 }
 0x702   : > { %v3524_v58 = vpop.xlane.xlu1 %3523 }
 0x703   : > { %11131 = vrcp.f32 %v3524_v58 }
 0x706   : > { %v3601_v39 = vpop.permute.xlu1 %3600 }
 0x707   : > { %v3623_v18 = vsel %vm3139_vm1, %v3601_v39, 0 }
 0x70a   : > { %v3593_v38 = vpop.permute.xlu1 %3592 }
 0x70d   : > { %v11132_v59 = vpop.eup %11131 }
 0x70e   : > { %v3526_v61 = vmul.f32 %v11132_v59, %v11128_v30  ;;  %v3605_v30 = vpop.permute.xlu0 %3604 }
 0x70f   : > { %v3629_v49 = vsel %vm3139_vm1, %v3605_v30, 0 }
 0x710   : > { %v3527_v45 = vpack.c.bf16 %v3526_v61, %v3526_v61 }
 0x712   : > { %9926 = vmatmul.mubr.bf16.vlgmr.msra.gmra.mrb[16].mxu1 %v3527_v45  ;;  %v3607_v21 = vpop.permute.xlu0 %3606 }
 0x713   : > { %9930 = vmatpush3.bf16.xpose.msra.mxu1 %v3614_v10  ;;  %9945 = vmatprep.mubr.msk.bf16.mxu1 %vm11677_vm2, %v13026_v17  ;;  %v3632_v50 = vsel %vm3139_vm1, %v3607_v21, 0 }
 0x714   : > { %9931 = vmatprep.subr.bf16.mxu1 %v13026_v17 }
 0x716   : > { %v3609_v31 = vpop.permute.xlu0 %3608 }
 0x717   : > { %v3635_v0 = vsel %vm3139_vm1, %v3609_v31, 0 }
 0x71b   : > { %9932 = vmatpush3.bf16.xpose.msra.mxu1 %v3617_v13 }
 0x71c   : > { %9933 = vmatprep.subr.bf16.mxu1 %v13026_v17 }
 0x723   : > { %9934 = vmatpush3.bf16.xpose.msra.mxu1 %v3620_v20 }
 0x724   : > { %9935 = vmatprep.subr.bf16.mxu1 %v13026_v17 }
 0x72b   : > { %9936 = vmatpush3.bf16.xpose.msra.mxu1 %v3623_v18 }
 0x72c   : > { %9937 = vmatprep.subr.bf16.mxu1 %v13026_v17 }
 0x733   : > { %v13354_v25 = vpop.f32.mrb[8].mxu1  ;;  %9938 = vmatpush3.bf16.xpose.msra.mxu1 %v3626_v9 }
 0x734   : > { %v9847_v7 = vpop.f32.mrb[9].mxu1  ;;  %9939 = vmatprep.subr.bf16.mxu1 %v13026_v17 }
 0x735   : > { %v3254_v27 = vpop.f32.mrb[10].mxu1 }
 0x736   : > { %v9848_v29 = vpop.f32.mrb[11].mxu1 }
 0x73b   : > { %9940 = vmatpush3.bf16.xpose.msra.mxu1 %v3629_v49 }
 0x73c   : > { %9941 = vmatprep.subr.bf16.mxu1 %v13026_v17 }
 0x743   : > { %9942 = vmatpush3.bf16.xpose.msra.mxu1 %v3632_v50 }
 0x744   : > { %9943 = vmatprep.subr.bf16.mxu1 %v13026_v17 }
 0x74b   : > { %9944 = vmatpush3.bf16.xpose.msra.mxu1 %v3635_v0 }
 0x74c   : > { %9949 = vmatprep.subr.bf16.mxu1 %v13026_v17 }
 0x752   : > { %9946 = vmatmul.mubr.msk.bf16.vlgmr.msra.gmra.mrb[20].mxu1 %vm3139_vm1, %v3593_v38 }
 0x753   : > { %9965 = vmatprep.mubr.msk.bf16.mxu1 %vm11677_vm2, %v13026_v17 }
 0x7a5   : > { %v13366_v47 = vpop.f32.mrb[12].mxu1 }
 0x7a6   : > { %v9887_v11 = vpop.f32.mrb[13].mxu1 }
 0x7a7   : > { %v3430_v14 = vpop.f32.mrb[14].mxu1 }
 0x7a8   : > { %v9888_v63 = vpop.f32.mrb[15].mxu1  ;;  %v13419_v14 = vld [vmem:[#allocation2 + $0xa0] sm:$0xff] }
 0x7e5   : > { %v13368_v46 = vpop.f32.mrb[16].mxu1 }
 0x7e6   : > { %v9927_v40 = vpop.f32.mrb[17].mxu1 }
 0x7e7   : > { %v3589_v53 = vpop.f32.mrb[18].mxu1 }
 0x7e8   : > { %v9928_v1 = vpop.f32.mrb[19].mxu1 }
 0x825   : > { %v3671_v57 = vpop.f32.mrb[20].mxu1 }
 0x826   : > { %v3672_v58 = vadd.f32 %v3671_v57, %v13236_v54  ;;  %v9947_v59 = vpop.f32.mrb[21].mxu1 }
 0x827   : > { %v3674_v61 = vpop.f32.mrb[22].mxu1 }
 0x828   : > { %3677 = vmax.xlane.f32.xlu0 %v3672_v58  ;;  %v9948_v62 = vpop.f32.mrb[23].mxu1 }
 0x83e   : > { %3687 = vrot.lane.b32.xlu0 %v13096_v19, %s11681_s29 }
 0x842   : > { %3691 = vrot.lane.b32.xlu0 %v13136_v60, %s11681_s29 }
 0x846   : > { %3693 = vrot.lane.b32.xlu0 %v13147_v8, %s11681_s29  ;;  %v3819_v8 = vpop.xlane.xlu1 %3818 }
 0x847   : > { %v3820_v49 = vsub.f32 %v13324_v32, %v3819_v8 }
 0x849   : > { %v3821_v50 = vmul.f32 1.442695, %v3820_v49 }
 0x84a   : > { %3697 = vrot.lane.b32.xlu0 %v13194_v55, %s11681_s29  ;;  %v3690_v45 = vpop.permute.xlu1 %3689 }
 0x84e   : > { %3701 = vrot.lane.b32.xlu0 %v13223_v43, %s11681_s29  ;;  %v3696_v20 = vpop.permute.xlu1 %3695 }
 0x852   : > { %3879 = vrot.lane.b32.xlu0 %v12964_v22, %s11678_s7 }
 0x856   : > { %3881 = vrot.lane.b32.xlu0 %v12979_v33, %s11678_s7 }
 0x85a   : > { %3883 = vrot.lane.b32.xlu0 %v12992_v42, %s11678_s7 }
 0x85e   : > { %3885 = vrot.lane.b32.xlu0 %v13005_v5, %s11678_s7 }
 0x862   : > { %3887 = vrot.lane.b32.xlu0 %v13020_v3, %s11678_s7 }
 0x866   : > { %3889 = vrot.lane.b32.xlu0 %v13035_v26, %s11678_s7 }
 0x86a   : > { %3891 = vrot.lane.b32.xlu0 %v13050_v4, %s11678_s7 }
 0x86e   : > { %3893 = vrot.lane.b32.xlu0 %v13070_v12, %s11678_s7 }
 0x872   : > { %3869 = vrot.lane.b32.xlu0 %v13255_v52, %s11678_s7 }
 0x876   : > { %3980 = vrot.lane.b32.xlu0 %v13099_v23, %s11678_s7 }
 0x8b5   : > { %v3678_v19 = vpop.xlane.xlu0 %3677 }
 0x8b6   : > { %v3679_v60 = vsub.f32 %v3672_v58, %v3678_v19 }
 0x8b8   : > { %v3680_v55 = vmul.f32 1.442695, %v3679_v60 }
 0x8b9   : > { %v3688_v43 = vpop.permute.xlu0 %3687 }
 0x8ba   : > { %11133 = vpow2.f32 %v3680_v55  ;;  %9950 = vmatpush3.bf16.msra.mxu1 %v3688_v43 }
 0x8bb   : > { %9951 = vmatprep.subr.bf16.mxu1 %v13026_v17  ;;  %11135 = vpow2.f32 %v3821_v50 }
 0x8bd   : > { %v3692_v10 = vpop.permute.xlu0 %3691 }
 0x8be   : > { %9952 = vmatpush3.bf16.msra.mxu1 %v3690_v45 }
 0x8bf   : > { %9953 = vmatprep.subr.bf16.mxu1 %v13026_v17 }
 0x8c1   : > { %v3694_v28 = vpop.permute.xlu0 %3693 }
 0x8c2   : > { %9954 = vmatpush3.bf16.msra.mxu1 %v3692_v10 }
 0x8c3   : > { %9955 = vmatprep.subr.bf16.mxu1 %v13026_v17 }
 0x8c4   : > { %v11134_v13 = vpop.eup %11133 }
 0x8c5   : > { %3682 = vadd.xlane.f32.xlu1 %v11134_v13  ;;  %v3698_v15 = vpop.permute.xlu0 %3697  ;;  %v11136_v38 = vpop.eup %11135 }
 0x8c6   : > { %9956 = vmatpush3.bf16.msra.mxu1 %v3694_v28 }
 0x8c7   : > { %9957 = vmatprep.subr.bf16.mxu1 %v13026_v17 }
 0x8c9   : > { %v3702_v39 = vpop.permute.xlu0 %3701 }
 0x8ca   : > { %9958 = vmatpush3.bf16.msra.mxu1 %v3696_v20 }
 0x8cb   : > { %9959 = vmatprep.subr.bf16.mxu1 %v13026_v17 }
 0x8cd   : > { %v3880_v18 = vpop.permute.xlu0 %3879 }
 0x8ce   : > { %9960 = vmatpush3.bf16.msra.mxu1 %v3698_v15  ;;  %v3899_v58 = vsel %vm3139_vm1, %v3880_v18, 0 }
 0x8cf   : > { %9961 = vmatprep.subr.bf16.mxu1 %v13026_v17 }
 0x8d1   : > { %v3882_v24 = vpop.permute.xlu0 %3881 }
 0x8d2   : > { %v3902_v59 = vsel %vm3139_vm1, %v3882_v24, 0 }
 0x8d5   : > { %v3884_v9 = vpop.permute.xlu0 %3883 }
 0x8d6   : > { %3699 = vrot.lane.b32.xlu1 %v13210_v16, %s11681_s29  ;;  %v3905_v61 = vsel %vm3139_vm1, %v3884_v9, 0 }
 0x8d9   : > { %v3886_v7 = vpop.permute.xlu0 %3885 }
 0x8da   : > { %v3908_v62 = vsel %vm3139_vm1, %v3886_v7, 0 }
 0x8dd   : > { %v3888_v27 = vpop.permute.xlu0 %3887 }
 0x8de   : > { %v3911_v19 = vsel %vm3139_vm1, %v3888_v27, 0 }
 0x8e1   : > { %v13409_v29 = vpop.permute.xlu0 %3889 }
 0x8e2   : > { %v3914_v60 = vsel %vm3139_vm1, %v13409_v29, 0 }
 0x8e5   : > { %v13411_v30 = vpop.permute.xlu0 %3891 }
 0x8e6   : > { %v3917_v8 = vsel %vm3139_vm1, %v13411_v30, 0 }
 0x8e9   : > { %v13414_v21 = vpop.permute.xlu0 %3893 }
 0x8ea   : > { %v3920_v55 = vsel %vm3139_vm1, %v13414_v21, 0 }
 0x8ed   : > { %v13416_v31 = vpop.permute.xlu0 %3869 }
 0x8f1   : > { %v3981_v0 = vpop.permute.xlu0 %3980 }
 0x8f2   : > { %10030 = vmatpush3.bf16.msra.mxu0 %v3981_v0 }
 0x8f3   : > { %10031 = vmatprep.subr.bf16.mxu0 %v13026_v17 }
 0x8fa   : > { %3823 = vadd.xlane.f32.xlu1 %v11136_v38 }
 0x952   : > { %v3683_v16 = vpop.xlane.xlu1 %3682 }
 0x953   : > { %11137 = vrcp.f32 %v3683_v16 }
 0x956   : > { %v3700_v11 = vpop.permute.xlu1 %3699 }
 0x957   : > { %9962 = vmatpush3.bf16.msra.mxu1 %v3700_v11 }
 0x958   : > { %9963 = vmatprep.subr.bf16.mxu1 %v13419_v14 }
 0x95b   : > { %9964 = vmatpush3.bf16.msra.mxu1 %v3702_v39 }
 0x95c   : > { %9989 = vmatprep.subr.bf16.mxu1 %v13419_v14 }
 0x95d   : > { %v11138_v32 = vpop.eup %11137 }
 0x95e   : > { %v3685_v63 = vmul.f32 %v11138_v32, %v11134_v13 }
 0x960   : > { %v3686_v40 = vpack.c.bf16 %v3685_v63, %v3685_v63 }
 0x962   : > { %9966 = vmatmul.mubr.bf16.vlgmr.msra.gmra.mrb[24].mxu1 %v3686_v40 }
 0x963   : > { %9990 = vmatpush3.bf16.msra.mxu1 %v13099_v23  ;;  %10005 = vmatprep.mubr.msk.bf16.mxu1 %vm11677_vm2, %v13419_v14 }
 0x964   : > { %9991 = vmatprep.subr.bf16.mxu1 %v13419_v14 }
 0x967   : > { %9992 = vmatpush3.bf16.msra.mxu1 %v13123_v48 }
 0x968   : > { %9993 = vmatprep.subr.bf16.mxu1 %v13419_v14 }
 0x96b   : > { %9994 = vmatpush3.bf16.msra.mxu1 %v13139_v6 }
 0x96c   : > { %9995 = vmatprep.subr.bf16.mxu1 %v13419_v14 }
 0x96f   : > { %9996 = vmatpush3.bf16.msra.mxu1 %v13149_v37 }
 0x970   : > { %9997 = vmatprep.subr.bf16.mxu1 %v13419_v14 }
 0x973   : > { %9998 = vmatpush3.bf16.msra.mxu1 %v13159_v41 }
 0x974   : > { %9999 = vmatprep.subr.bf16.mxu1 %v13419_v14 }
 0x977   : > { %10000 = vmatpush3.bf16.msra.mxu1 %v13196_v56 }
 0x978   : > { %10001 = vmatprep.subr.bf16.mxu1 %v13419_v14 }
 0x97b   : > { %10002 = vmatpush3.bf16.msra.mxu1 %v13212_v2 }
 0x97c   : > { %10003 = vmatprep.subr.bf16.mxu1 %v13419_v14 }
 0x97f   : > { %10004 = vmatpush3.bf16.msra.mxu1 %v13225_v44 }
 0x980   : > { %10009 = vmatprep.subr.bf16.mxu1 %v13419_v14 }
 0x987   : > { %v3824_v17 = vpop.xlane.xlu1 %3823 }
 0x988   : > { %11139 = vrcp.f32 %v3824_v17 }
 0x992   : > { %v11140_v53 = vpop.eup %11139 }
 0x993   : > { %v3826_v1 = vmul.f32 %v11140_v53, %v11136_v38 }
 0x995   : > { %v3827_v57 = vpack.c.bf16 %v3826_v1, %v3826_v1 }
 0x997   : > { %10006 = vmatmul.mubr.bf16.vlgmr.msra.gmra.mrb[28].mxu1 %v3827_v57 }
 0x998   : > { %10010 = vmatpush3.bf16.xpose.msra.mxu1 %v3899_v58  ;;  %10025 = vmatprep.mubr.msk.bf16.mxu1 %vm11677_vm2, %v13419_v14 }
 0x999   : > { %10011 = vmatprep.subr.bf16.mxu1 %v13419_v14 }
 0x9a0   : > { %10012 = vmatpush3.bf16.xpose.msra.mxu1 %v3902_v59 }
 0x9a1   : > { %10013 = vmatprep.subr.bf16.mxu1 %v13419_v14 }
 0x9a8   : > { %10014 = vmatpush3.bf16.xpose.msra.mxu1 %v3905_v61 }
 0x9a9   : > { %10015 = vmatprep.subr.bf16.mxu1 %v13419_v14 }
 0x9b0   : > { %10016 = vmatpush3.bf16.xpose.msra.mxu1 %v3908_v62 }
 0x9b1   : > { %10017 = vmatprep.subr.bf16.mxu1 %v13419_v14 }
 0x9b8   : > { %10018 = vmatpush3.bf16.xpose.msra.mxu1 %v3911_v19 }
 0x9b9   : > { %10019 = vmatprep.subr.bf16.mxu1 %v13419_v14 }
 0x9c0   : > { %10020 = vmatpush3.bf16.xpose.msra.mxu1 %v3914_v60 }
 0x9c1   : > { %10021 = vmatprep.subr.bf16.mxu1 %v13419_v14 }
 0x9c8   : > { %10022 = vmatpush3.bf16.xpose.msra.mxu1 %v3917_v8 }
 0x9c9   : > { %10023 = vmatprep.subr.bf16.mxu1 %v13419_v14 }
 0x9d0   : > { %10024 = vmatpush3.bf16.xpose.msra.mxu1 %v3920_v55 }
 0x9d1   : > { %10069 = vmatprep.subr.bf16.mxu1 %v13419_v14 }
 0x9d7   : > { %10026 = vmatmul.mubr.msk.bf16.vlgmr.msra.gmra.mrb[32].mxu1 %vm3139_vm1, %v13416_v31 }
 0x9d8   : > { %10085 = vmatprep.mubr.msk.bf16.mxu1 %vm11677_vm2, %v13419_v14 }
 0xa35   : > { %v13466_v43 = vpop.f32.mrb[24].mxu1 }
 0xa36   : > { %v9967_v45 = vpop.f32.mrb[25].mxu1 }
 0xa37   : > { %v3748_v10 = vpop.f32.mrb[26].mxu1 }
 0xa38   : > { %v9968_v28 = vpop.f32.mrb[27].mxu1 }
 0xa6a   : > { %v13468_v13 = vpop.f32.mrb[28].mxu1 }
 0xa6b   : > { %v10007_v15 = vpop.f32.mrb[29].mxu1 }
 0xa6c   : > { %v3865_v20 = vpop.f32.mrb[30].mxu1 }
 0xa6d   : > { %v10008_v39 = vpop.f32.mrb[31].mxu1 }
 0xaaa   : > { %v3956_v18 = vpop.f32.mrb[32].mxu1 }
 0xaab   : > { %v3957_v24 = vadd.f32 %v3956_v18, %v13236_v54  ;;  %v10027_v9 = vpop.f32.mrb[33].mxu1 }
 0xaac   : > { %v3959_v7 = vpop.f32.mrb[34].mxu1 }
 0xaad   : > { %3962 = vmax.xlane.f32.xlu1 %v3957_v24  ;;  %v10028_v27 = vpop.f32.mrb[35].mxu1 }
 0xabe   : > { %3982 = vrot.lane.b32.xlu1 %v13123_v48, %s11678_s7 }
 0xac2   : > { %3984 = vrot.lane.b32.xlu1 %v13139_v6, %s11678_s7 }
 0xac6   : > { %3986 = vrot.lane.b32.xlu1 %v13149_v37, %s11678_s7 }
 0xaca   : > { %3988 = vrot.lane.b32.xlu1 %v13159_v41, %s11678_s7 }
 0xace   : > { %3990 = vrot.lane.b32.xlu1 %v13196_v56, %s11678_s7 }
 0xad2   : > { %3992 = vrot.lane.b32.xlu1 %v13212_v2, %s11678_s7 }
 0xad6   : > { %4046 = vrot.lane.b32.xlu1 %v12964_v22, %s11679_s24 }
 0xada   : > { %4048 = vrot.lane.b32.xlu1 %v12979_v33, %s11679_s24 }
 0xade   : > { %4050 = vrot.lane.b32.xlu1 %v12992_v42, %s11679_s24 }
 0xae2   : > { %4052 = vrot.lane.b32.xlu1 %v13005_v5, %s11679_s24 }
 0xae6   : > { %4054 = vrot.lane.b32.xlu1 %v13020_v3, %s11679_s24 }
 0xaea   : > { %4058 = vrot.lane.b32.xlu1 %v13050_v4, %s11679_s24 }
 0xaee   : > { %4044 = vrot.lane.b32.xlu1 %v13255_v52, %s11679_s24 }
 0xaf2   : > { %4139 = vrot.lane.b32.xlu1 %v13099_v23, %s11679_s24 }
 0xaf6   : > { %4141 = vrot.lane.b32.xlu1 %v13123_v48, %s11679_s24 }
 0xafa   : > { %4145 = vrot.lane.b32.xlu1 %v13149_v37, %s11679_s24 }
 0xafe   : > { %4153 = vrot.lane.b32.xlu1 %v13225_v44, %s11679_s24 }
 0xb3a   : > { %v3963_v29 = vpop.xlane.xlu1 %3962 }
 0xb3b   : > { %v3964_v30 = vsub.f32 %v3957_v24, %v3963_v29 }
 0xb3d   : > { %v3965_v49 = vmul.f32 1.442695, %v3964_v30 }
 0xb3e   : > { %v3983_v21 = vpop.permute.xlu1 %3982 }
 0xb3f   : > { %11141 = vpow2.f32 %v3965_v49  ;;  %10032 = vmatpush3.bf16.msra.mxu0 %v3983_v21 }
 0xb40   : > { %10033 = vmatprep.subr.bf16.mxu0 %v13419_v14 }
 0xb42   : > { %v3985_v50 = vpop.permute.xlu1 %3984 }
 0xb43   : > { %10034 = vmatpush3.bf16.msra.mxu0 %v3985_v50 }
 0xb44   : > { %10035 = vmatprep.subr.bf16.mxu0 %v13419_v14 }
 0xb46   : > { %v3987_v31 = vpop.permute.xlu1 %3986 }
 0xb47   : > { %10036 = vmatpush3.bf16.msra.mxu0 %v3987_v31 }
 0xb48   : > { %10037 = vmatprep.subr.bf16.mxu0 %v13419_v14 }
 0xb49   : > { %v11142_v0 = vpop.eup %11141 }
 0xb4a   : > { %3967 = vadd.xlane.f32.xlu0 %v11142_v0  ;;  %v3989_v38 = vpop.permute.xlu1 %3988 }
 0xb4b   : > { %10038 = vmatpush3.bf16.msra.mxu0 %v3989_v38 }
 0xb4c   : > { %10039 = vmatprep.subr.bf16.mxu0 %v13419_v14 }
 0xb4e   : > { %v3991_v16 = vpop.permute.xlu1 %3990 }
 0xb4f   : > { %10040 = vmatpush3.bf16.msra.mxu0 %v3991_v16 }
 0xb50   : > { %10041 = vmatprep.subr.bf16.mxu0 %v13419_v14 }
 0xb52   : > { %v3993_v11 = vpop.permute.xlu1 %3992 }
 0xb53   : > { %10042 = vmatpush3.bf16.msra.mxu0 %v3993_v11 }
 0xb54   : > { %10043 = vmatprep.subr.bf16.mxu0 %v13419_v14 }
 0xb56   : > { %v4047_v32 = vpop.permute.xlu1 %4046 }
 0xb57   : > { %v4066_v55 = vsel %vm3139_vm1, %v4047_v32, 0 }
 0xb5a   : > { %v4049_v63 = vpop.permute.xlu1 %4048 }
 0xb5b   : > { %v4069_v45 = vsel %vm3139_vm1, %v4049_v63, 0 }
 0xb5e   : > { %v4051_v40 = vpop.permute.xlu1 %4050 }
 0xb5f   : > { %v4072_v10 = vsel %vm3139_vm1, %v4051_v40, 0 }
 0xb60   : > { %3994 = vrot.lane.b32.xlu0 %v13225_v44, %s11678_s7 }
 0xb62   : > { %v4053_v17 = vpop.permute.xlu1 %4052 }
 0xb63   : > { %v4075_v28 = vsel %vm3139_vm1, %v4053_v17, 0 }
 0xb64   : > { %4056 = vrot.lane.b32.xlu0 %v13035_v26, %s11679_s24 }
 0xb66   : > { %v4055_v53 = vpop.permute.xlu1 %4054 }
 0xb67   : > { %v4078_v15 = vsel %vm3139_vm1, %v4055_v53, 0 }
 0xb68   : > { %4060 = vrot.lane.b32.xlu0 %v13070_v12, %s11679_s24 }
 0xb6a   : > { %v4059_v1 = vpop.permute.xlu1 %4058 }
 0xb6b   : > { %v4084_v18 = vsel %vm3139_vm1, %v4059_v1, 0 }
 0xb6e   : > { %v4045_v57 = vpop.permute.xlu1 %4044 }
 0xb72   : > { %v4140_v58 = vpop.permute.xlu1 %4139 }
 0xb73   : > { %10070 = vmatpush3.bf16.msra.mxu1 %v4140_v58 }
 0xb74   : > { %10071 = vmatprep.subr.bf16.mxu1 %v13419_v14 }
 0xb76   : > { %v4142_v59 = vpop.permute.xlu1 %4141 }
 0xb77   : > { %10072 = vmatpush3.bf16.msra.mxu1 %v4142_v59 }
 0xb78   : > { %10073 = vmatprep.subr.bf16.mxu1 %v13419_v14 }
 0xbd7   : > { %v3968_v61 = vpop.xlane.xlu0 %3967 }
 0xbd8   : > { %11143 = vrcp.f32 %v3968_v61 }
 0xbdb   : > { %v3995_v62 = vpop.permute.xlu0 %3994 }
 0xbdc   : > { %10044 = vmatpush3.bf16.msra.mxu0 %v3995_v62 }
 0xbdd   : > { %10049 = vmatprep.subr.bf16.mxu0 %v13419_v14 }
 0xbdf   : > { %v4057_v20 = vpop.permute.xlu0 %4056 }
 0xbe0   : > { %v4081_v39 = vsel %vm3139_vm1, %v4057_v20, 0 }
 0xbe2   : > { %v11144_v19 = vpop.eup %11143 }
 0xbe3   : > { %v3970_v60 = vmul.f32 %v11144_v19, %v11142_v0  ;;  %v4061_v24 = vpop.permute.xlu0 %4060 }
 0xbe4   : > { %v4087_v9 = vsel %vm3139_vm1, %v4061_v24, 0 }
 0xbe5   : > { %v3971_v8 = vpack.c.bf16 %v3970_v60, %v3970_v60 }
 0xbe7   : > { %10046 = vmatmul.mubr.bf16.vlgmr.msra.gmra.mrb[96].mxu0 %v3971_v8 }
 0xbe8   : > { %10050 = vmatpush3.bf16.xpose.msra.mxu0 %v4066_v55  ;;  %10065 = vmatprep.mubr.msk.bf16.mxu0 %vm11677_vm2, %v13419_v14 }
 0xbe9   : > { %10051 = vmatprep.subr.bf16.mxu0 %v13419_v14 }
 0xbf0   : > { %10052 = vmatpush3.bf16.xpose.msra.mxu0 %v4069_v45 }
 0xbf1   : > { %10053 = vmatprep.subr.bf16.mxu0 %v13419_v14 }
 0xbf8   : > { %10054 = vmatpush3.bf16.xpose.msra.mxu0 %v4072_v10 }
 0xbf9   : > { %10055 = vmatprep.subr.bf16.mxu0 %v13419_v14 }
 0xc00   : > { %10056 = vmatpush3.bf16.xpose.msra.mxu0 %v4075_v28 }
 0xc01   : > { %10057 = vmatprep.subr.bf16.mxu0 %v13419_v14 }
 0xc08   : > { %10058 = vmatpush3.bf16.xpose.msra.mxu0 %v4078_v15 }
 0xc09   : > { %10059 = vmatprep.subr.bf16.mxu0 %v13419_v14 }
 0xc10   : > { %10060 = vmatpush3.bf16.xpose.msra.mxu0 %v4081_v39 }
 0xc11   : > { %10061 = vmatprep.subr.bf16.mxu0 %v13419_v14 }
 0xc18   : > { %10062 = vmatpush3.bf16.xpose.msra.mxu0 %v4084_v18 }
 0xc19   : > { %10063 = vmatprep.subr.bf16.mxu0 %v13419_v14 }
 0xc20   : > { %10064 = vmatpush3.bf16.xpose.msra.mxu0 %v4087_v9 }
 0xc21   : > { %10109 = vmatprep.subr.bf16.mxu0 %v13419_v14 }
 0xc27   : > { %10066 = vmatmul.mubr.msk.bf16.vlgmr.msra.gmra.mrb[100].mxu0 %vm3139_vm1, %v4045_v57 }
 0xc28   : > { %10125 = vmatprep.mubr.msk.bf16.mxu0 %vm11677_vm2, %v13419_v14 }
 0xcba   : > { %v13541_v7 = vpop.f32.mrb[96].mxu0 }
 0xcbb   : > { %v10320_v27 = vpack.i.bf16 %v13366_v47, %v13541_v7  ;;  %v10047_v29 = vpop.f32.mrb[97].mxu0 }
 0xcbc   : > { %v4041_v30 = vpop.f32.mrb[98].mxu0 }
 0xcbd   : > { %v10048_v49 = vpop.f32.mrb[99].mxu0 }
 0xcfa   : > { %v4123_v21 = vpop.f32.mrb[100].mxu0 }
 0xcfb   : > { %v4124_v50 = vadd.f32 %v4123_v21, %v13236_v54  ;;  %v10067_v31 = vpop.f32.mrb[101].mxu0 }
 0xcfc   : > { %v4126_v0 = vpop.f32.mrb[102].mxu0 }
 0xcfd   : > { %4129 = vmax.xlane.f32.xlu0 %v4124_v50  ;;  %v10068_v38 = vpop.f32.mrb[103].mxu0 }
 0xd13   : > { %4143 = vrot.lane.b32.xlu0 %v13139_v6, %s11679_s24 }
 0xd17   : > { %4147 = vrot.lane.b32.xlu0 %v13159_v41, %s11679_s24 }
 0xd1b   : > { %4149 = vrot.lane.b32.xlu0 %v13196_v56, %s11679_s24 }
 0xd1f   : > { %4151 = vrot.lane.b32.xlu0 %v13212_v2, %s11679_s24 }
 0xd23   : > { %4205 = vrot.lane.b32.xlu0 %v12964_v22, %s11681_s29 }
 0xd27   : > { %4209 = vrot.lane.b32.xlu0 %v12992_v42, %s11681_s29 }
 0xd2b   : > { %4213 = vrot.lane.b32.xlu0 %v13020_v3, %s11681_s29  ;;  %v4146_v3 = vpop.permute.xlu1 %4145 }
 0xd2f   : > { %4217 = vrot.lane.b32.xlu0 %v13050_v4, %s11681_s29  ;;  %v4154_v32 = vpop.permute.xlu1 %4153 }
 0xd33   : > { %4203 = vrot.lane.b32.xlu0 %v13255_v52, %s11681_s29 }
 0xd37   : > { %4298 = vrot.lane.b32.xlu0 %v13099_v23, %s11681_s29 }
 0xd3b   : > { %4302 = vrot.lane.b32.xlu0 %v13139_v6, %s11681_s29 }
 0xd3f   : > { %4308 = vrot.lane.b32.xlu0 %v13196_v56, %s11681_s29 }
 0xd8a   : > { %v4130_v22 = vpop.xlane.xlu0 %4129 }
 0xd8b   : > { %v4131_v42 = vsub.f32 %v4124_v50, %v4130_v22 }
 0xd8d   : > { %v4132_v16 = vmul.f32 1.442695, %v4131_v42 }
 0xd8e   : > { %v4144_v11 = vpop.permute.xlu0 %4143 }
 0xd8f   : > { %11145 = vpow2.f32 %v4132_v16  ;;  %10074 = vmatpush3.bf16.msra.mxu1 %v4144_v11  ;;  %v10689_v16 = vld [vmem:[#allocation13] ss:$8 sps:$4 sm:$0xff]   ;;  %v10691_v11 = vld [vmem:[#allocation13 + $0x4] ss:$8 sps:$4 sm:$0xff]  }
 0xd90   : > { %10075 = vmatprep.subr.bf16.mxu1 %v13419_v14 }
 0xd92   : > { %v4148_v4 = vpop.permute.xlu0 %4147 }
 0xd93   : > { %10076 = vmatpush3.bf16.msra.mxu1 %v4146_v3  ;;  %v10694_v3 = vld [vmem:[#allocation13 + $0x14] ss:$8 sps:$4 sm:$0xff]  }
 0xd94   : > { %10077 = vmatprep.subr.bf16.mxu1 %v13419_v14 }
 0xd96   : > { %v4150_v23 = vpop.permute.xlu0 %4149 }
 0xd97   : > { %10078 = vmatpush3.bf16.msra.mxu1 %v4148_v4  ;;  %v10692_v4 = vld [vmem:[#allocation13 + $0x10] ss:$8 sps:$4 sm:$0xff]  }
 0xd98   : > { %10079 = vmatprep.subr.bf16.mxu1 %v13419_v14 }
 0xd99   : > { %v11146_v6 = vpop.eup %11145 }
 0xd9a   : > { %4134 = vadd.xlane.f32.xlu1 %v11146_v6  ;;  %v4152_v56 = vpop.permute.xlu0 %4151 }
 0xd9b   : > { %10080 = vmatpush3.bf16.msra.mxu1 %v4150_v23  ;;  %v10700_v23 = vld [vmem:[#allocation13 + $0x34] ss:$8 sps:$4 sm:$0xff]  }
 0xd9c   : > { %10081 = vmatprep.subr.bf16.mxu1 %v13419_v14 }
 0xd9e   : > { %v4206_v52 = vpop.permute.xlu0 %4205 }
 0xd9f   : > { %10082 = vmatpush3.bf16.msra.mxu1 %v4152_v56  ;;  %v10703_v56 = vld [vmem:[#allocation13 + $0x44] ss:$8 sps:$4 sm:$0xff]  }
 0xda0   : > { %10083 = vmatprep.subr.bf16.mxu1 %v13419_v14 }
 0xda2   : > { %v4210_v63 = vpop.permute.xlu0 %4209 }
 0xda3   : > { %10084 = vmatpush3.bf16.msra.mxu1 %v4154_v32  ;;  %v10706_v32 = vld [vmem:[#allocation13 + $0x54] ss:$8 sps:$4 sm:$0xff]  }
 0xda4   : > { %10089 = vmatprep.subr.bf16.mxu1 %v13419_v14 }
 0xda6   : > { %v4214_v40 = vpop.permute.xlu0 %4213 }
 0xda7   : > { %v4237_v60 = vsel %vm3139_vm1, %v4214_v40, 0  ;;  %v10709_v40 = vld [vmem:[#allocation13 + $0x64] ss:$8 sps:$4 sm:$0xff]  }
 0xdaa   : > { %v4218_v17 = vpop.permute.xlu0 %4217 }
 0xdab   : > { %4207 = vrot.lane.b32.xlu1 %v12979_v33, %s11681_s29  ;;  %v4225_v33 = vsel %vm3139_vm1, %v4206_v52, 0  ;;  %v4243_v45 = vsel %vm3139_vm1, %v4218_v17, 0  ;;  %v10701_v52 = vld [vmem:[#allocation13 + $0x40] ss:$8 sps:$4 sm:$0xff]  }
 0xdac   : > { %v10707_v17 = vld [vmem:[#allocation13 + $0x60] ss:$8 sps:$4 sm:$0xff]  }
 0xdae   : > { %v4204_v53 = vpop.permute.xlu0 %4203 }
 0xdaf   : > { %4211 = vrot.lane.b32.xlu1 %v13005_v5, %s11681_s29 }
 0xdb2   : > { %v4299_v1 = vpop.permute.xlu0 %4298 }
 0xdb3   : > { %4215 = vrot.lane.b32.xlu1 %v13035_v26, %s11681_s29  ;;  %10110 = vmatpush3.bf16.msra.mxu0 %v4299_v1  ;;  %v10710_v1 = vld [vmem:[#allocation13 + $0x70] ss:$8 sps:$4 sm:$0xff]  }
 0xdb4   : > { %10111 = vmatprep.subr.bf16.mxu0 %v13419_v14 }
 0xdb7   : > { %4219 = vrot.lane.b32.xlu1 %v13070_v12, %s11681_s29  ;;  %v4231_v12 = vsel %vm3139_vm1, %v4210_v63, 0  ;;  %v10704_v63 = vld [vmem:[#allocation13 + $0x50] ss:$8 sps:$4 sm:$0xff]  }
 0xe27   : > { %v4135_v57 = vpop.xlane.xlu1 %4134 }
 0xe28   : > { %11147 = vrcp.f32 %v4135_v57  ;;  %v10715_v57 = vld [vmem:[#allocation13 + $0x84] ss:$8 sps:$4 sm:$0xff]  }
 0xe2b   : > { %v4208_v5 = vpop.permute.xlu1 %4207 }
 0xe2c   : > { %v4228_v26 = vsel %vm3139_vm1, %v4208_v5, 0  ;;  %v10719_v5 = vld [vmem:[#allocation13 + $0xa0] ss:$8 sps:$4 sm:$0xff]  }
 0xe2f   : > { %v4212_v62 = vpop.permute.xlu1 %4211 }
 0xe30   : > { %v4234_v19 = vsel %vm3139_vm1, %v4212_v62, 0  ;;  %v10727_v62 = vld [vmem:[#allocation13 + $0xc4] ss:$8 sps:$4 sm:$0xff]  }
 0xe32   : > { %v11148_v58 = vpop.eup %11147 }
 0xe33   : > { %v4137_v59 = vmul.f32 %v11148_v58, %v11146_v6  ;;  %v4216_v8 = vpop.permute.xlu1 %4215  ;;  %v10698_v6 = vld [vmem:[#allocation13 + $0x30] ss:$8 sps:$4 sm:$0xff]   ;;  %v10713_v58 = vld [vmem:[#allocation13 + $0x80] ss:$8 sps:$4 sm:$0xff]  }
 0xe34   : > { %v4240_v55 = vsel %vm3139_vm1, %v4216_v8, 0  ;;  %v10728_v8 = vld [vmem:[#allocation13 + $0xd0] ss:$8 sps:$4 sm:$0xff]  }
 0xe35   : > { %v4138_v61 = vpack.c.bf16 %v4137_v59, %v4137_v59  ;;  %v10718_v59 = vld [vmem:[#allocation13 + $0x94] ss:$8 sps:$4 sm:$0xff]  }
 0xe37   : > { %10086 = vmatmul.mubr.bf16.vlgmr.msra.gmra.mrb[36].mxu1 %v4138_v61  ;;  %v4220_v10 = vpop.permute.xlu1 %4219  ;;  %v10716_v61 = vld [vmem:[#allocation13 + $0x90] ss:$8 sps:$4 sm:$0xff]  }
 0xe38   : > { %10090 = vmatpush3.bf16.xpose.msra.mxu1 %v4225_v33  ;;  %10105 = vmatprep.mubr.msk.bf16.mxu1 %vm11677_vm2, %v13419_v14  ;;  %v4246_v28 = vsel %vm3139_vm1, %v4220_v10, 0  ;;  %v10721_v33 = vld [vmem:[#allocation13 + $0xa4] ss:$8 sps:$4 sm:$0xff]   ;;  %v10736_v10 = vld [vmem:[#allocation13 + $0xf4] ss:$8 sps:$4 sm:$0xff]  }
 0xe39   : > { %10091 = vmatprep.subr.bf16.mxu1 %v13419_v14 }
 0xe40   : > { %10092 = vmatpush3.bf16.xpose.msra.mxu1 %v4228_v26  ;;  %v10724_v26 = vld [vmem:[#allocation13 + $0xb4] ss:$8 sps:$4 sm:$0xff]  }
 0xe41   : > { %10093 = vmatprep.subr.bf16.mxu1 %v13419_v14 }
 0xe48   : > { %10094 = vmatpush3.bf16.xpose.msra.mxu1 %v4231_v12  ;;  %v10722_v12 = vld [vmem:[#allocation13 + $0xb0] ss:$8 sps:$4 sm:$0xff]  }
 0xe49   : > { %10095 = vmatprep.subr.bf16.mxu1 %v13419_v14 }
 0xe50   : > { %10096 = vmatpush3.bf16.xpose.msra.mxu1 %v4234_v19  ;;  %v10725_v19 = vld [vmem:[#allocation13 + $0xc0] ss:$8 sps:$4 sm:$0xff]  }
 0xe51   : > { %10097 = vmatprep.subr.bf16.mxu1 %v13419_v14 }
 0xe58   : > { %10098 = vmatpush3.bf16.xpose.msra.mxu1 %v4237_v60  ;;  %v10730_v60 = vld [vmem:[#allocation13 + $0xd4] ss:$8 sps:$4 sm:$0xff]  }
 0xe59   : > { %10099 = vmatprep.subr.bf16.mxu1 %v13419_v14 }
 0xe60   : > { %10100 = vmatpush3.bf16.xpose.msra.mxu1 %v4240_v55  ;;  %v10733_v55 = vld [vmem:[#allocation13 + $0xe4] ss:$8 sps:$4 sm:$0xff]  }
 0xe61   : > { %10101 = vmatprep.subr.bf16.mxu1 %v13419_v14 }
 0xe68   : > { %10102 = vmatpush3.bf16.xpose.msra.mxu1 %v4243_v45  ;;  %v10731_v45 = vld [vmem:[#allocation13 + $0xe0] ss:$8 sps:$4 sm:$0xff]  }
 0xe69   : > { %10103 = vmatprep.subr.bf16.mxu1 %v13419_v14 }
 0xe70   : > { %10104 = vmatpush3.bf16.xpose.msra.mxu1 %v4246_v28  ;;  %v10734_v28 = vld [vmem:[#allocation13 + $0xf0] ss:$8 sps:$4 sm:$0xff]  }
 0xe77   : > { %10106 = vmatmul.mubr.msk.bf16.vlgmr.msra.gmra.mrb[40].mxu1 %vm3139_vm1, %v4204_v53  ;;  %v10712_v53 = vld [vmem:[#allocation13 + $0x74] ss:$8 sps:$4 sm:$0xff]  }
 0xf0a   : > { %v4197_v15 = vpop.f32.mrb[36].mxu1 }
 0xf0b   : > { %v10325_v20 = vpack.i.bf16 %v13368_v46, %v4197_v15  ;;  %v10087_v39 = vpop.f32.mrb[37].mxu1 }
 0xf0c   : > { %v4200_v18 = vpop.f32.mrb[38].mxu1 }
 0xf0d   : > { %v10088_v24 = vpop.f32.mrb[39].mxu1 }
 0xf4a   : > { %v4282_v9 = vpop.f32.mrb[40].mxu1 }
 0xf4b   : > { %v4283_v29 = vadd.f32 %v4282_v9, %v13236_v54  ;;  %v10107_v30 = vpop.f32.mrb[41].mxu1 }
 0xf4c   : > { %v4285_v49 = vpop.f32.mrb[42].mxu1 }
 0xf4d   : > { %4288 = vmax.xlane.f32.xlu1 %v4283_v29  ;;  %v10108_v21 = vpop.f32.mrb[43].mxu1 }
 0xf5e   : > { %4300 = vrot.lane.b32.xlu1 %v13123_v48, %s11681_s29  ;;  %v4303_v48 = vpop.permute.xlu0 %4302 }
 0xf62   : > { %4304 = vrot.lane.b32.xlu1 %v13149_v37, %s11681_s29  ;;  %v4309_v47 = vpop.permute.xlu0 %4308 }
 0xf66   : > { %4306 = vrot.lane.b32.xlu1 %v13159_v41, %s11681_s29 }
 0xf6a   : > { %4310 = vrot.lane.b32.xlu1 %v13212_v2, %s11681_s29 }
 0xf6e   : > { %10321 = vrot.lane.b32.xlu1 %v10320_v27, %s11681_s29 }
 0xfda   : > { %v4289_v54 = vpop.xlane.xlu1 %4288 }
 0xfdb   : > { %v4290_v46 = vsub.f32 %v4283_v29, %v4289_v54 }
 0xfdd   : > { %v4291_v50 = vmul.f32 1.442695, %v4290_v46 }
 0xfde   : > { %v4301_v31 = vpop.permute.xlu1 %4300 }
 0xfdf   : > { %11149 = vpow2.f32 %v4291_v50  ;;  %10112 = vmatpush3.bf16.msra.mxu0 %v4301_v31 }
 0xfe0   : > { %10113 = vmatprep.subr.bf16.mxu0 %v13419_v14 }
 0xfe2   : > { %v4305_v37 = vpop.permute.xlu1 %4304 }
 0xfe3   : > { %10114 = vmatpush3.bf16.msra.mxu0 %v4303_v48 }
 0xfe4   : > { %10115 = vmatprep.subr.bf16.mxu0 %v13419_v14 }
 0xfe6   : > { %v4307_v2 = vpop.permute.xlu1 %4306 }
 0xfe7   : > { %10116 = vmatpush3.bf16.msra.mxu0 %v4305_v37 }
 0xfe8   : > { %10117 = vmatprep.subr.bf16.mxu0 %v13419_v14 }
 0xfe9   : > { %v11150_v41 = vpop.eup %11149 }
 0xfea   : > { %4293 = vadd.xlane.f32.xlu0 %v11150_v41  ;;  %v4311_v7 = vpop.permute.xlu1 %4310 }
 0xfeb   : > { %10118 = vmatpush3.bf16.msra.mxu0 %v4307_v2 }
 0xfec   : > { %10119 = vmatprep.subr.bf16.mxu0 %v13419_v14 }
 0xfee   : > { %v10322_v9 = vpop.permute.xlu1 %10321 }
 0xfef   : > { %10120 = vmatpush3.bf16.msra.mxu0 %v4309_v47  ;;  %v10324_v30 = vunpack.i.h.bf16 %v10322_v9  ;;  %v10323_v49 = vunpack.i.l.bf16 %v10322_v9 }
 0xff0   : > { %10121 = vmatprep.subr.bf16.mxu0 %v13419_v14 }
 0xff1   : > { %v4386_v50 = vsel %vm3139_vm1, %v13354_v25, %v10324_v30  ;;  %v4762_v30 = vld [vmem:[#allocation19 + $0x240] sm:$0xff] }
 0xff3   : > { %10122 = vmatpush3.bf16.msra.mxu0 %v4311_v7 }
 0xff4   : > { %10123 = vmatprep.subr.bf16.mxu0 %v13419_v14  ;;  %v10697_v14 = vld [vmem:[#allocation13 + $0x24] ss:$8 sps:$4 sm:$0xff]  }
0x1000   : > { %4312 = vrot.lane.b32.xlu0 %v13225_v44, %s11681_s29  ;;  %v10695_v44 = vld [vmem:[#allocation13 + $0x20] ss:$8 sps:$4 sm:$0xff]  }
0x1004   : > { %10326 = vrot.lane.b32.xlu0 %v10325_v20, %s11679_s24 }
0x1077   : > { %v4294_v27 = vpop.xlane.xlu0 %4293 }
0x1078   : > { %11151 = vrcp.f32 %v4294_v27 }
0x107b   : > { %v4313_v0 = vpop.permute.xlu0 %4312 }
0x107c   : > { %10124 = vmatpush3.bf16.msra.mxu0 %v4313_v0  ;;  %v4428_v0 = vld [vmem:[#allocation14] sm:$0x3] }
0x107d   : > { %4600 = vmatprep.subr.bf16.mxu0 %v10691_v11 }
0x107f   : > { %v10327_v29 = vpop.permute.xlu0 %10326 }
0x1080   : > { %v10329_v21 = vunpack.i.h.bf16 %v10327_v29  ;;  %v10328_v54 = vunpack.i.l.bf16 %v10327_v29  ;;  %v4754_v29 = vld [vmem:[#allocation19 + $0x200] sm:$0xff] }
0x1082   : > { %v11152_v38 = vpop.eup %11151  ;;  %v4388_v37 = vsel %vm4387_vm4, %v4386_v50, %v10329_v21  ;;  %v4763_v21 = vld [vmem:[#allocation19 + $0x248] sm:$0xff]  ;;  %v9215_v50 = vcombine.high %v4754_v29, %v4762_v30 }
0x1083   : > { %v4296_v22 = vmul.f32 %v11152_v38, %v11150_v41  ;;  %v4433_v38 = vrot.slane %v4428_v0, %v12777_v35 }
0x1085   : > { %v4297_v42 = vpack.c.bf16 %v4296_v22, %v4296_v22  ;;  %v4437_v22 = vrot.slane %v4428_v0, %v12780_v36  ;;  %v4786_v0 = vld [vmem:[#allocation19 + $0x300] sm:$0xff] }
0x1087   : > { %10126 = vmatmul.mubr.bf16.vlgmr.msra.gmra.mrb[104].mxu0 %v4297_v42 }
0x1088   : > { %4601 = vmatpush1.bf16.msra.mxu0 %v10689_v16 }
0x1089   : > { %4602 = vmatprep.subr.bf16.mxu0 %v10694_v3  ;;  %v11162_v3 = vld [vmem:[#allocation2 + $0x90] sm:$0xff] }
0x108c   : > { %4603 = vmatpush1.bf16.msra.mxu0 %v10692_v4 }
0x108d   : > { %4604 = vmatprep.subr.bf16.mxu0 %v10697_v14 }
0x1090   : > { %4605 = vmatpush1.bf16.msra.mxu0 %v10695_v44  ;;  %v11163_v44 = vld [vmem:[#allocation2 + $0x98] sm:$0xff] }
0x1091   : > { %4606 = vmatprep.subr.bf16.mxu0 %v10700_v23 }
0x1094   : > { %4607 = vmatpush1.bf16.msra.mxu0 %v10698_v6 }
0x1095   : > { %4608 = vmatprep.subr.bf16.mxu0 %v10703_v56  ;;  %v4690_v56 = vld [vmem:[#allocation19] sm:$0xff] }
0x1098   : > { %4609 = vmatpush1.bf16.msra.mxu0 %v10701_v52  ;;  %v4698_v52 = vld [vmem:[#allocation19 + $0x40] sm:$0xff] }
0x1099   : > { %4610 = vmatprep.subr.bf16.mxu0 %v10706_v32  ;;  %v4691_v32 = vld [vmem:[#allocation19 + $0x8] sm:$0xff] }
0x109c   : > { %4611 = vmatpush1.bf16.msra.mxu0 %v10704_v63  ;;  %v9150_v63 = vcombine.low %v4690_v56, %v4698_v52 }
0x109d   : > { %4612 = vmatprep.subr.bf16.mxu0 %v10709_v40  ;;  %v9151_v40 = vcombine.high %v4690_v56, %v4698_v52 }
0x109f   : > { %6310 = vmatprep.subr.bf16.mxu1 %v9151_v40  ;;  %v4818_v40 = vld [vmem:[#allocation19 + $0x400] sm:$0xff] }
0x10a0   : > { %4613 = vmatpush1.bf16.msra.mxu0 %v10707_v17  ;;  %v4699_v17 = vld [vmem:[#allocation19 + $0x48] sm:$0xff]  ;;  %6311 = vmatpush1.bf16.msra.mxu1 %v9150_v63 }
0x10a1   : > { %4614 = vmatprep.subr.bf16.mxu0 %v10712_v53  ;;  %v4706_v53 = vld [vmem:[#allocation19 + $0x80] sm:$0xff] }
0x10a4   : > { %4615 = vmatpush1.bf16.msra.mxu0 %v10710_v1  ;;  %v4714_v1 = vld [vmem:[#allocation19 + $0xc0] sm:$0xff] }
0x10a5   : > { %4616 = vmatprep.subr.bf16.mxu0 %v10715_v57  ;;  %v9152_v57 = vcombine.low %v4691_v32, %v4699_v17 }
0x10a8   : > { %4617 = vmatpush1.bf16.msra.mxu0 %v10713_v58  ;;  %v9153_v58 = vcombine.high %v4691_v32, %v4699_v17  ;;  %v4826_v17 = vld [vmem:[#allocation19 + $0x440] sm:$0xff] }
0x10a9   : > { %4618 = vmatprep.subr.bf16.mxu0 %v10718_v59  ;;  %v9167_v59 = vcombine.high %v4706_v53, %v4714_v1 }
0x10ab   : > { %6312 = vmatprep.subr.bf16.mxu1 %v9167_v59  ;;  %v9279_v59 = vcombine.high %v4818_v40, %v4826_v17 }
0x10ac   : > { %4619 = vmatpush1.bf16.msra.mxu0 %v10716_v61  ;;  %v4707_v61 = vld [vmem:[#allocation19 + $0x88] sm:$0xff] }
0x10ad   : > { %4620 = vmatprep.subr.bf16.mxu0 %v10721_v33  ;;  %v4715_v33 = vld [vmem:[#allocation19 + $0xc8] sm:$0xff] }
0x10b0   : > { %4621 = vmatpush1.bf16.msra.mxu0 %v10719_v5  ;;  %v4722_v5 = vld [vmem:[#allocation19 + $0x100] sm:$0xff] }
0x10b1   : > { %4622 = vmatprep.subr.bf16.mxu0 %v10724_v26  ;;  %v9169_v26 = vcombine.high %v4707_v61, %v4715_v33 }
0x10b4   : > { %4623 = vmatpush1.bf16.msra.mxu0 %v10722_v12  ;;  %v4730_v12 = vld [vmem:[#allocation19 + $0x140] sm:$0xff] }
0x10b5   : > { %4624 = vmatprep.subr.bf16.mxu0 %v10727_v62  ;;  %v4723_v62 = vld [vmem:[#allocation19 + $0x108] sm:$0xff] }
0x10b8   : > { %4625 = vmatpush1.bf16.msra.mxu0 %v10725_v19  ;;  %v4731_v19 = vld [vmem:[#allocation19 + $0x148] sm:$0xff] }
0x10b9   : > { %4626 = vmatprep.subr.bf16.mxu0 %v10730_v60  ;;  %v9166_v60 = vcombine.low %v4706_v53, %v4714_v1  ;;  %v4819_v53 = vld [vmem:[#allocation19 + $0x408] sm:$0xff] }
0x10ba   : > { %v4827_v1 = vld [vmem:[#allocation19 + $0x448] sm:$0xff] }
0x10bb   : > { %6313 = vmatpush1.bf16.msra.mxu1 %v9166_v60 }
0x10bc   : > { %4627 = vmatpush1.bf16.msra.mxu0 %v10728_v8  ;;  %v9168_v8 = vcombine.low %v4707_v61, %v4715_v33  ;;  %v9281_v61 = vcombine.high %v4819_v53, %v4827_v1  ;;  %v4834_v33 = vld [vmem:[#allocation19 + $0x480] sm:$0xff] }
0x10bd   : > { %4628 = vmatprep.subr.bf16.mxu0 %v10733_v55  ;;  %v9183_v55 = vcombine.high %v4722_v5, %v4730_v12 }
0x10bf   : > { %6314 = vmatprep.subr.bf16.mxu1 %v9183_v55  ;;  %v4850_v55 = vld [vmem:[#allocation19 + $0x500] sm:$0xff] }
0x10c0   : > { %4629 = vmatpush1.bf16.msra.mxu0 %v10731_v45  ;;  %v9185_v45 = vcombine.high %v4723_v62, %v4731_v19 }
0x10c1   : > { %4630 = vmatprep.subr.bf16.mxu0 %v10736_v10  ;;  %v4738_v10 = vld [vmem:[#allocation19 + $0x180] sm:$0xff] }
0x10c4   : > { %4631 = vmatpush1.bf16.msra.mxu0 %v10734_v28  ;;  %v4746_v28 = vld [vmem:[#allocation19 + $0x1c0] sm:$0xff] }
0x10c5   : > { %6351 = vmatprep.subr.bf16.mxu0 %v9153_v58 }
0x115a   : > { %v4356_v15 = vpop.f32.mrb[104].mxu0 }
0x115b   : > { %v10330_v20 = vpack.i.bf16 %v13466_v43, %v4356_v15  ;;  %v10127_v39 = vpop.f32.mrb[105].mxu0  ;;  %v4391_v43 = vsel %vm3139_vm1, %v13468_v13, %v10323_v49  ;;  %v4739_v15 = vld [vmem:[#allocation19 + $0x188] sm:$0xff] }
0x115c   : > { %v4359_v18 = vpop.f32.mrb[106].mxu0  ;;  %v4392_v41 = vsel %vm4387_vm4, %v4391_v43, %v10328_v54  ;;  %v9182_v39 = vcombine.low %v4722_v5, %v4730_v12  ;;  %v4755_v49 = vld [vmem:[#allocation19 + $0x208] sm:$0xff]  ;;  %v9198_v54 = vcombine.low %v4738_v10, %v4746_v28  ;;  %v4842_v5 = vld [vmem:[#allocation19 + $0x4c0] sm:$0xff] }
0x115d   : > { %10331 = vrot.lane.b32.xlu1 %v10330_v20, %s11678_s7  ;;  %v10128_v24 = vpop.f32.mrb[107].mxu0  ;;  %v4747_v20 = vld [vmem:[#allocation19 + $0x1c8] sm:$0xff]  ;;  %v9184_v18 = vcombine.low %v4723_v62, %v4731_v19  ;;  %v9217_v43 = vcombine.high %v4755_v49, %v4763_v21  ;;  %v9278_v62 = vcombine.low %v4818_v40, %v4826_v17  ;;  %v9280_v19 = vcombine.low %v4819_v53, %v4827_v1 }
0x115e   : > { %v9199_v24 = vcombine.high %v4738_v10, %v4746_v28  ;;  %v9201_v9 = vcombine.high %v4739_v15, %v4747_v20  ;;  %6315 = vmatpush1.bf16.msra.mxu1 %v9182_v39  ;;  %v4843_v12 = vld [vmem:[#allocation19 + $0x4c8] sm:$0xff]  ;;  %v9295_v60 = vcombine.high %v4834_v33, %v4842_v5 }
0x115f   : > { %v4851_v10 = vld [vmem:[#allocation19 + $0x508] sm:$0xff] }
0x1160   : > { %6316 = vmatprep.subr.bf16.mxu1 %v9199_v24  ;;  %v4859_v28 = vld [vmem:[#allocation19 + $0x548] sm:$0xff] }
0x1161   : > { %v4923_v17 = vld [vmem:[#allocation19 + $0x748] sm:$0xff] }
0x1162   : > { %6317 = vmatpush1.bf16.msra.mxu1 %v9198_v54 }
0x1163   : > { %6318 = vmatprep.subr.bf16.mxu1 %v9215_v50 }
0x11cf   : > { %v10332_v46 = vpop.permute.xlu1 %10331 }
0x11d0   : > { %v10334_v31 = vunpack.i.h.bf16 %v10332_v46  ;;  %v10333_v48 = vunpack.i.l.bf16 %v10332_v46  ;;  %v9200_v46 = vcombine.low %v4739_v15, %v4747_v20  ;;  %v9294_v15 = vcombine.low %v4834_v33, %v4842_v5  ;;  %v4939_v5 = vld [vmem:[#allocation19 + $0x7c8] sm:$0xff] }
0x11d2   : > { %v4390_v2 = vsel %vm4389_vm5, %v4388_v37, %v10334_v31  ;;  %v4393_v47 = vsel %vm4389_vm5, %v4392_v41, %v10333_v48  ;;  %v4770_v31 = vld [vmem:[#allocation19 + $0x280] sm:$0xff]  ;;  %v4771_v37 = vld [vmem:[#allocation19 + $0x288] sm:$0xff] }
0x11d3   : > { %v4394_v7 = vpack.c.bf16 %v4390_v2, %v4390_v2  ;;  %v4395_v27 = vpack.c.bf16 %v4393_v47, %v4393_v47  ;;  %v4778_v48 = vld [vmem:[#allocation19 + $0x2c0] sm:$0xff]  ;;  %v4779_v41 = vld [vmem:[#allocation19 + $0x2c8] sm:$0xff]  ;;  %v9214_v2 = vcombine.low %v4754_v29, %v4762_v30  ;;  %v9216_v47 = vcombine.low %v4755_v49, %v4763_v21 }
0x11d5   : > { %4632 = vmatprep.mubr.bf16.mxu0 %v4395_v27  ;;  %v9233_v27 = vcombine.high %v4771_v37, %v4779_v41  ;;  %6319 = vmatpush1.bf16.msra.mxu1 %v9214_v2 }
0x11d6   : > { %4633 = vmatmul.mubr.bf16.vlgmr.msra.gmra.mrb[108].mxu0 %v4394_v7  ;;  %v9231_v7 = vcombine.high %v4770_v31, %v4778_v48 }
0x11d7   : > { %6352 = vmatpush1.bf16.msra.mxu0 %v9152_v57 }
0x11d8   : > { %6353 = vmatprep.subr.bf16.mxu0 %v9169_v26  ;;  %6320 = vmatprep.subr.bf16.mxu1 %v9231_v7  ;;  %v4835_v26 = vld [vmem:[#allocation19 + $0x488] sm:$0xff]  ;;  %v4890_v7 = vld [vmem:[#allocation19 + $0x640] sm:$0xff] }
0x11d9   : > { %v9296_v20 = vcombine.low %v4835_v26, %v4843_v12 }
0x11db   : > { %6354 = vmatpush1.bf16.msra.mxu0 %v9168_v8  ;;  %v9297_v8 = vcombine.high %v4835_v26, %v4843_v12 }
0x11dc   : > { %6355 = vmatprep.subr.bf16.mxu0 %v9185_v45  ;;  %v4858_v45 = vld [vmem:[#allocation19 + $0x540] sm:$0xff] }
0x11dd   : > { %v9311_v39 = vcombine.high %v4850_v55, %v4858_v45  ;;  %v9310_v24 = vcombine.low %v4850_v55, %v4858_v45  ;;  %v4701_v45 = vld [vmem:[#allocation19 + $0x58] sm:$0xff] }
0x11df   : > { %6356 = vmatpush1.bf16.msra.mxu0 %v9184_v18  ;;  %v9313_v18 = vcombine.high %v4851_v10, %v4859_v28 }
0x11e0   : > { %6357 = vmatprep.subr.bf16.mxu0 %v9201_v9  ;;  %v9312_v9 = vcombine.low %v4851_v10, %v4859_v28 }
0x11e3   : > { %6358 = vmatpush1.bf16.msra.mxu0 %v9200_v46 }
0x11e4   : > { %6359 = vmatprep.subr.bf16.mxu0 %v9217_v43  ;;  %v4866_v43 = vld [vmem:[#allocation19 + $0x580] sm:$0xff] }
0x11e7   : > { %6360 = vmatpush1.bf16.msra.mxu0 %v9216_v47 }
0x11e8   : > { %6361 = vmatprep.subr.bf16.mxu0 %v9233_v27  ;;  %v4883_v27 = vld [vmem:[#allocation19 + $0x608] sm:$0xff] }
0x12a9   : > { %v4634_v42 = vpop.f32.mrb[108].mxu0 }
0x12aa   : > { %v4635_v25 = vadd.f32 %v4634_v42, %v4433_v38  ;;  %v4636_v16 = vpop.f32.mrb[109].mxu0  ;;  %v4794_v38 = vld [vmem:[#allocation19 + $0x340] sm:$0xff]  ;;  %v4795_v42 = vld [vmem:[#allocation19 + $0x348] sm:$0xff] }
0x12ab   : > { %v4637_v11 = vadd.f32 %v4636_v16, %v4437_v22  ;;  %v4638_v13 = vpop.f32.mrb[110].mxu0  ;;  %v4787_v22 = vld [vmem:[#allocation19 + $0x308] sm:$0xff]  ;;  %v9232_v16 = vcombine.low %v4771_v37, %v4779_v41  ;;  %v9246_v56 = vcombine.low %v4786_v0, %v4794_v38 }
0x12ac   : > { %v13634_v4 = vadd.f32 %v11162_v3, %v4635_v25  ;;  %v4639_v14 = vpop.f32.mrb[111].mxu0  ;;  %v9230_v25 = vcombine.low %v4770_v31, %v4778_v48  ;;  %v9249_v13 = vcombine.high %v4787_v22, %v4795_v42  ;;  %v4802_v3 = vld [vmem:[#allocation19 + $0x380] sm:$0xff]  ;;  %v9248_v52 = vcombine.low %v4787_v22, %v4795_v42  ;;  %v4867_v48 = vld [vmem:[#allocation19 + $0x588] sm:$0xff] }
0x12ad   : > { %v13636_v23 = vadd.f32 %v11163_v44, %v4637_v11  ;;  %v9247_v11 = vcombine.high %v4786_v0, %v4794_v38  ;;  %v4810_v14 = vld [vmem:[#allocation19 + $0x3c0] sm:$0xff]  ;;  %v4803_v44 = vld [vmem:[#allocation19 + $0x388] sm:$0xff]  ;;  %6362 = vmatpush1.bf16.msra.mxu0 %v9232_v16 }
0x12ae   : > { %6321 = vmatpush1.bf16.msra.mxu1 %v9230_v25  ;;  %v9263_v32 = vcombine.high %v4802_v3, %v4810_v14  ;;  %6363 = vmatprep.subr.bf16.mxu0 %v9249_v13  ;;  %v9262_v57 = vcombine.low %v4802_v3, %v4810_v14  ;;  %v4874_v31 = vld [vmem:[#allocation19 + $0x5c0] sm:$0xff]  ;;  %v4875_v41 = vld [vmem:[#allocation19 + $0x5c8] sm:$0xff] }
0x12af   : > { %v4645_v6 = vadd.f32 %v13636_v23, %v13634_v4  ;;  %6322 = vmatprep.subr.bf16.mxu1 %v9247_v11  ;;  %v9327_v37 = vcombine.high %v4866_v43, %v4874_v31  ;;  %v9326_v2 = vcombine.low %v4866_v43, %v4874_v31  ;;  %v9328_v47 = vcombine.low %v4867_v48, %v4875_v41  ;;  %v4891_v38 = vld [vmem:[#allocation19 + $0x648] sm:$0xff]  ;;  %v4898_v16 = vld [vmem:[#allocation19 + $0x680] sm:$0xff] }
0x12b0   : > { %v9344_v42 = vcombine.low %v4883_v27, %v4891_v38  ;;  %v9345_v25 = vcombine.high %v4883_v27, %v4891_v38  ;;  %v4906_v11 = vld [vmem:[#allocation19 + $0x6c0] sm:$0xff]  ;;  %v4899_v13 = vld [vmem:[#allocation19 + $0x688] sm:$0xff] }
0x12b1   : > { %4646 = vadd.xlane.f32.xlu0 %v4645_v6  ;;  %v4811_v6 = vld [vmem:[#allocation19 + $0x3c8] sm:$0xff]  ;;  %6364 = vmatpush1.bf16.msra.mxu0 %v9248_v52  ;;  %v9359_v3 = vcombine.high %v4898_v16, %v4906_v11  ;;  %v4914_v52 = vld [vmem:[#allocation19 + $0x700] sm:$0xff] }
0x12b2   : > { %v9265_v63 = vcombine.high %v4803_v44, %v4811_v6  ;;  %6323 = vmatpush1.bf16.msra.mxu1 %v9246_v56  ;;  %v9264_v58 = vcombine.low %v4803_v44, %v4811_v6  ;;  %v4907_v14 = vld [vmem:[#allocation19 + $0x6c8] sm:$0xff]  ;;  %v9358_v44 = vcombine.low %v4898_v16, %v4906_v11 }
0x12b3   : > { %6324 = vmatprep.subr.bf16.mxu1 %v9263_v32  ;;  %v9360_v6 = vcombine.low %v4899_v13, %v4907_v14  ;;  %v9361_v56 = vcombine.high %v4899_v13, %v4907_v14  ;;  %v4922_v32 = vld [vmem:[#allocation19 + $0x740] sm:$0xff]  ;;  %v4740_v14 = vld [vmem:[#allocation19 + $0x190] sm:$0xff] }
0x12b4   : > { %6365 = vmatprep.subr.bf16.mxu0 %v9265_v63  ;;  %v4915_v63 = vld [vmem:[#allocation19 + $0x708] sm:$0xff]  ;;  %v9375_v40 = vcombine.high %v4914_v52, %v4922_v32  ;;  %v9374_v53 = vcombine.low %v4914_v52, %v4922_v32 }
0x12b5   : > { %6366 = vmatpush1.bf16.msra.mxu0 %v9264_v58  ;;  %v9376_v1 = vcombine.low %v4915_v63, %v4923_v17  ;;  %v4930_v58 = vld [vmem:[#allocation19 + $0x780] sm:$0xff] }
0x12b6   : > { %6325 = vmatpush1.bf16.msra.mxu1 %v9262_v57  ;;  %6367 = vmatprep.subr.bf16.mxu0 %v9281_v61  ;;  %v9377_v57 = vcombine.high %v4915_v63, %v4923_v17  ;;  %v4931_v61 = vld [vmem:[#allocation19 + $0x788] sm:$0xff]  ;;  %v4756_v17 = vld [vmem:[#allocation19 + $0x210] sm:$0xff] }
0x12b7   : > { %6326 = vmatprep.subr.bf16.mxu1 %v9279_v59  ;;  %v4938_v59 = vld [vmem:[#allocation19 + $0x7c0] sm:$0xff]  ;;  %v9392_v12 = vcombine.low %v4931_v61, %v4939_v5 }
0x12b8   : > { %v9391_v33 = vcombine.high %v4930_v58, %v4938_v59  ;;  %v9390_v26 = vcombine.low %v4930_v58, %v4938_v59 }
0x12b9   : > { %6368 = vmatpush1.bf16.msra.mxu0 %v9280_v19  ;;  %v4692_v19 = vld [vmem:[#allocation19 + $0x10] sm:$0xff] }
0x12ba   : > { %6327 = vmatpush1.bf16.msra.mxu1 %v9278_v62  ;;  %6369 = vmatprep.subr.bf16.mxu0 %v9297_v8  ;;  %v9393_v62 = vcombine.high %v4931_v61, %v4939_v5  ;;  %v4693_v8 = vld [vmem:[#allocation19 + $0x18] sm:$0xff]  ;;  %v4772_v5 = vld [vmem:[#allocation19 + $0x290] sm:$0xff] }
0x12bb   : > { %6328 = vmatprep.subr.bf16.mxu1 %v9295_v60  ;;  %v4700_v60 = vld [vmem:[#allocation19 + $0x50] sm:$0xff]  ;;  %v9156_v28 = vcombine.low %v4693_v8, %v4701_v45 }
0x12bc   : > { %v9155_v55 = vcombine.high %v4692_v19, %v4700_v60  ;;  %v9154_v10 = vcombine.low %v4692_v19, %v4700_v60 }
0x12bd   : > { %6370 = vmatpush1.bf16.msra.mxu0 %v9296_v20 }
0x12be   : > { %6329 = vmatpush1.bf16.msra.mxu1 %v9294_v15  ;;  %6371 = vmatprep.subr.bf16.mxu0 %v9313_v18  ;;  %v9157_v15 = vcombine.high %v4693_v8, %v4701_v45  ;;  %v4788_v45 = vld [vmem:[#allocation19 + $0x310] sm:$0xff] }
0x12bf   : > { %6330 = vmatprep.subr.bf16.mxu1 %v9311_v39 }
0x12c1   : > { %6372 = vmatpush1.bf16.msra.mxu0 %v9312_v9  ;;  %v4644_v9 = vld [vmem:[#allocation17] sm:$0x3] }
0x12c2   : > { %6331 = vmatpush1.bf16.msra.mxu1 %v9310_v24  ;;  %v4643_v24 = vld [vmem:[#allocation16] sm:$0x3] }
0x12c3   : > { %6332 = vmatprep.subr.bf16.mxu1 %v9327_v37 }
0x12c6   : > { %6333 = vmatpush1.bf16.msra.mxu1 %v9326_v2 }
0x133e   : > { %v4647_v29 = vpop.xlane.xlu0 %4646 }
0x133f   : > { %v4649_v30 = vmul.f32 0.00390625, %v4647_v29  ;;  %v4666_v29 = vrot.slane %v4643_v24, %v12777_v35 }
0x1341   : > { %v13641_v49 = vsub.f32 %v13634_v4, %v4649_v30  ;;  %v13644_v21 = vsub.f32 %v13636_v23, %v4649_v30  ;;  %v9329_v4 = vcombine.high %v4867_v48, %v4875_v41  ;;  %v4882_v23 = vld [vmem:[#allocation19 + $0x600] sm:$0xff]  ;;  %v4670_v30 = vrot.slane %v4643_v24, %v12780_v36 }
0x1342   : > { %v9343_v0 = vcombine.high %v4882_v23, %v4890_v7  ;;  %v9342_v22 = vcombine.low %v4882_v23, %v4890_v7  ;;  %v4709_v23 = vld [vmem:[#allocation19 + $0x98] sm:$0xff] }
0x1343   : > { %v4652_v54 = vmul.f32 %v13641_v49, %v13641_v49  ;;  %v4653_v46 = vmul.f32 %v13644_v21, %v13644_v21  ;;  %6373 = vmatprep.subr.bf16.mxu0 %v9329_v4  ;;  %v4716_v4 = vld [vmem:[#allocation19 + $0xd0] sm:$0xff]  ;;  %v4717_v7 = vld [vmem:[#allocation19 + $0xd8] sm:$0xff] }
0x1344   : > { %6374 = vmatpush1.bf16.msra.mxu0 %v9328_v47  ;;  %6334 = vmatprep.subr.bf16.mxu1 %v9343_v0  ;;  %v4708_v47 = vld [vmem:[#allocation19 + $0x90] sm:$0xff]  ;;  %v9173_v38 = vcombine.high %v4709_v23, %v4717_v7  ;;  %v9172_v11 = vcombine.low %v4709_v23, %v4717_v7 }
0x1345   : > { %v4654_v50 = vadd.f32 %v4653_v46, %v4652_v54  ;;  %6375 = vmatprep.subr.bf16.mxu0 %v9345_v25  ;;  %6335 = vmatpush1.bf16.msra.mxu1 %v9342_v22  ;;  %v4679_v46 = vrot.slane %v4644_v9, %v12777_v35  ;;  %v4732_v22 = vld [vmem:[#allocation19 + $0x150] sm:$0xff]  ;;  %v4733_v25 = vld [vmem:[#allocation19 + $0x158] sm:$0xff]  ;;  %v9170_v16 = vcombine.low %v4708_v47, %v4716_v4 }
0x1346   : > { %6336 = vmatprep.subr.bf16.mxu1 %v9359_v3 }
0x1347   : > { %4655 = vadd.xlane.f32.xlu1 %v4654_v50  ;;  %v4683_v50 = vrot.slane %v4644_v9, %v12780_v36  ;;  %v4804_v9 = vld [vmem:[#allocation19 + $0x390] sm:$0xff] }
0x1348   : > { %6376 = vmatpush1.bf16.msra.mxu0 %v9344_v42  ;;  %v4725_v42 = vld [vmem:[#allocation19 + $0x118] sm:$0xff] }
0x1349   : > { %6377 = vmatprep.subr.bf16.mxu0 %v9361_v56  ;;  %6337 = vmatpush1.bf16.msra.mxu1 %v9358_v44  ;;  %v9189_v3 = vcombine.high %v4725_v42, %v4733_v25  ;;  %v4748_v44 = vld [vmem:[#allocation19 + $0x1d0] sm:$0xff]  ;;  %v4749_v56 = vld [vmem:[#allocation19 + $0x1d8] sm:$0xff]  ;;  %v9188_v32 = vcombine.low %v4725_v42, %v4733_v25 }
0x134a   : > { %6338 = vmatprep.subr.bf16.mxu1 %v9375_v40  ;;  %v9203_v63 = vcombine.high %v4740_v14, %v4748_v44  ;;  %v9202_v58 = vcombine.low %v4740_v14, %v4748_v44  ;;  %v4837_v42 = vld [vmem:[#allocation19 + $0x498] sm:$0xff]  ;;  %v4852_v14 = vld [vmem:[#allocation19 + $0x510] sm:$0xff] }
0x134b   : > { %v4845_v25 = vld [vmem:[#allocation19 + $0x4d8] sm:$0xff]  ;;  %v4860_v44 = vld [vmem:[#allocation19 + $0x550] sm:$0xff] }
0x134c   : > { %6378 = vmatpush1.bf16.msra.mxu0 %v9360_v6  ;;  %v4741_v6 = vld [vmem:[#allocation19 + $0x198] sm:$0xff] }
0x134d   : > { %6379 = vmatprep.subr.bf16.mxu0 %v9377_v57  ;;  %6339 = vmatpush1.bf16.msra.mxu1 %v9374_v53  ;;  %v9205_v40 = vcombine.high %v4741_v6, %v4749_v56  ;;  %v4764_v53 = vld [vmem:[#allocation19 + $0x250] sm:$0xff]  ;;  %v4765_v57 = vld [vmem:[#allocation19 + $0x258] sm:$0xff]  ;;  %v9204_v59 = vcombine.low %v4741_v6, %v4749_v56 }
0x134e   : > { %6340 = vmatprep.subr.bf16.mxu1 %v9391_v33  ;;  %v9219_v61 = vcombine.high %v4756_v17, %v4764_v53  ;;  %v9218_v19 = vcombine.low %v4756_v17, %v4764_v53  ;;  %v4853_v6 = vld [vmem:[#allocation19 + $0x518] sm:$0xff]  ;;  %v4868_v17 = vld [vmem:[#allocation19 + $0x590] sm:$0xff] }
0x134f   : > { %v4861_v56 = vld [vmem:[#allocation19 + $0x558] sm:$0xff]  ;;  %v4876_v53 = vld [vmem:[#allocation19 + $0x5d0] sm:$0xff] }
0x1350   : > { %6380 = vmatpush1.bf16.msra.mxu0 %v9376_v1  ;;  %v4757_v1 = vld [vmem:[#allocation19 + $0x218] sm:$0xff] }
0x1351   : > { %6381 = vmatprep.subr.bf16.mxu0 %v9393_v62  ;;  %6341 = vmatpush1.bf16.msra.mxu1 %v9390_v26  ;;  %v9221_v33 = vcombine.high %v4757_v1, %v4765_v57  ;;  %v4780_v26 = vld [vmem:[#allocation19 + $0x2d0] sm:$0xff]  ;;  %v4781_v62 = vld [vmem:[#allocation19 + $0x2d8] sm:$0xff]  ;;  %v9220_v60 = vcombine.low %v4757_v1, %v4765_v57 }
0x1352   : > { %6392 = vmatprep.subr.bf16.mxu1 %v9155_v55  ;;  %v9235_v8 = vcombine.high %v4772_v5, %v4780_v26  ;;  %v4869_v1 = vld [vmem:[#allocation19 + $0x598] sm:$0xff] }
0x1353   : > { %v4877_v57 = vld [vmem:[#allocation19 + $0x5d8] sm:$0xff] }
0x1354   : > { %6382 = vmatpush1.bf16.msra.mxu0 %v9392_v12  ;;  %v4773_v12 = vld [vmem:[#allocation19 + $0x298] sm:$0xff] }
0x1355   : > { %6433 = vmatprep.subr.bf16.mxu0 %v9157_v15  ;;  %v9237_v55 = vcombine.high %v4773_v12, %v4781_v62  ;;  %v4797_v15 = vld [vmem:[#allocation19 + $0x358] sm:$0xff] }
0x13d4   : > { %v4656_v20 = vpop.xlane.xlu1 %4655 }
0x13d5   : > { %v4657_v39 = vmul.f32 0.00390625, %v4656_v20  ;;  %v9234_v20 = vcombine.low %v4772_v5, %v4780_v26  ;;  %v4884_v5 = vld [vmem:[#allocation19 + $0x610] sm:$0xff] }
0x13d6   : > { %v4892_v26 = vld [vmem:[#allocation19 + $0x650] sm:$0xff] }
0x13d7   : > { %v4658_v18 = vadd.f32 1e-05, %v4657_v39  ;;  %v9236_v39 = vcombine.low %v4773_v12, %v4781_v62  ;;  %v4885_v12 = vld [vmem:[#allocation19 + $0x618] sm:$0xff] }
0x13d8   : > { %v4893_v62 = vld [vmem:[#allocation19 + $0x658] sm:$0xff] }
0x13d9   : > { %11153 = vrsqrt.f32 %v4658_v18 }
0x13e3   : > { %v11154_v54 = vpop.eup %11153 }
0x13e4   : > { %v4660_v43 = vmul.f32 %v11154_v54, %v13641_v49  ;;  %v4661_v31 = vmul.f32 %v11154_v54, %v13644_v21  ;;  %v4724_v49 = vld [vmem:[#allocation19 + $0x110] sm:$0xff]  ;;  %v9171_v21 = vcombine.high %v4708_v47, %v4716_v4  ;;  %v4813_v54 = vld [vmem:[#allocation19 + $0x3d8] sm:$0xff] }
0x13e5   : > { %v9187_v13 = vcombine.high %v4724_v49, %v4732_v22  ;;  %v9186_v52 = vcombine.low %v4724_v49, %v4732_v22  ;;  %v4821_v47 = vld [vmem:[#allocation19 + $0x418] sm:$0xff]  ;;  %v4844_v22 = vld [vmem:[#allocation19 + $0x4d0] sm:$0xff] }
0x13e6   : > { %v4673_v48 = vmul.f32 %v4666_v29, %v4660_v43  ;;  %v4674_v37 = vmul.f32 %v4670_v30, %v4661_v31  ;;  %v4812_v29 = vld [vmem:[#allocation19 + $0x3d0] sm:$0xff]  ;;  %v4805_v30 = vld [vmem:[#allocation19 + $0x398] sm:$0xff] }
0x13e7   : > { %v9267_v43 = vcombine.high %v4804_v9, %v4812_v29  ;;  %v9269_v31 = vcombine.high %v4805_v30, %v4813_v54  ;;  %v4829_v4 = vld [vmem:[#allocation19 + $0x458] sm:$0xff]  ;;  %v9266_v23 = vcombine.low %v4804_v9, %v4812_v29  ;;  %v9268_v7 = vcombine.low %v4805_v30, %v4813_v54  ;;  %v4916_v9 = vld [vmem:[#allocation19 + $0x710] sm:$0xff] }
0x13e8   : > { %v13656_v41 = vadd.f32 %v4679_v46, %v4673_v48  ;;  %v13658_v2 = vadd.f32 %v4683_v50, %v4674_v37  ;;  %v4820_v48 = vld [vmem:[#allocation19 + $0x410] sm:$0xff]  ;;  %v4917_v30 = vld [vmem:[#allocation19 + $0x718] sm:$0xff] }
0x13e9   : > { %v4828_v37 = vld [vmem:[#allocation19 + $0x450] sm:$0xff]  ;;  %v4925_v54 = vld [vmem:[#allocation19 + $0x758] sm:$0xff] }
0x13ea   : > { %v13662_v27 = vpack.c.bf16 %v13656_v41, %v13656_v41  ;;  %v13666_v0 = vpack.c.bf16 %v13658_v2, %v13658_v2  ;;  %v9283_v49 = vcombine.high %v4820_v48, %v4828_v37  ;;  %v4924_v29 = vld [vmem:[#allocation19 + $0x750] sm:$0xff] }
0x13ec   : > { %6342 = vmatprep.mubr.bf16.mxu1 %v13666_v0  ;;  %6383 = vmatprep.mubr.bf16.mxu0 %v13666_v0 }
0x13ed   : > { %6343 = vmatmul.mubr.bf16.vlgmr.msra.gmra.mrb[44].mxu1 %v13662_v27  ;;  %6384 = vmatmul.mubr.bf16.vlgmr.msra.gmra.mrb[112].mxu0 %v13662_v27 }
0x13ee   : > { %6393 = vmatpush1.bf16.msra.mxu1 %v9154_v10  ;;  %6434 = vmatpush1.bf16.msra.mxu0 %v9156_v28  ;;  %v4796_v10 = vld [vmem:[#allocation19 + $0x350] sm:$0xff]  ;;  %v4789_v28 = vld [vmem:[#allocation19 + $0x318] sm:$0xff] }
0x13ef   : > { %6424 = vmatprep.mubr.bf16.mxu1 %v13666_v0  ;;  %6465 = vmatprep.mubr.bf16.mxu0 %v13666_v0  ;;  %v9251_v18 = vcombine.high %v4788_v45, %v4796_v10  ;;  %v9253_v24 = vcombine.high %v4789_v28, %v4797_v15  ;;  %v9250_v46 = vcombine.low %v4788_v45, %v4796_v10  ;;  %v4900_v45 = vld [vmem:[#allocation19 + $0x690] sm:$0xff] }
0x13f0   : > { %6394 = vmatprep.subr.bf16.mxu1 %v9171_v21  ;;  %6435 = vmatprep.subr.bf16.mxu0 %v9173_v38  ;;  %v9252_v50 = vcombine.low %v4789_v28, %v4797_v15  ;;  %v9285_v21 = vcombine.high %v4821_v47, %v4829_v4  ;;  %v4836_v38 = vld [vmem:[#allocation19 + $0x490] sm:$0xff]  ;;  %v4901_v28 = vld [vmem:[#allocation19 + $0x698] sm:$0xff] }
0x13f1   : > { %v4908_v10 = vld [vmem:[#allocation19 + $0x6d0] sm:$0xff]  ;;  %v4909_v15 = vld [vmem:[#allocation19 + $0x6d8] sm:$0xff] }
0x13f2   : > { %6395 = vmatpush1.bf16.msra.mxu1 %v9170_v16  ;;  %6436 = vmatpush1.bf16.msra.mxu0 %v9172_v11  ;;  %v9282_v16 = vcombine.low %v4820_v48, %v4828_v37  ;;  %v9284_v11 = vcombine.low %v4821_v47, %v4829_v4  ;;  %v4932_v48 = vld [vmem:[#allocation19 + $0x790] sm:$0xff]  ;;  %v4933_v47 = vld [vmem:[#allocation19 + $0x798] sm:$0xff] }
0x13f3   : > { %6396 = vmatprep.subr.bf16.mxu1 %v9187_v13  ;;  %6437 = vmatprep.subr.bf16.mxu0 %v9189_v3  ;;  %v9299_v13 = vcombine.high %v4836_v38, %v4844_v22  ;;  %v9301_v3 = vcombine.high %v4837_v42, %v4845_v25  ;;  %v4940_v37 = vld [vmem:[#allocation19 + $0x7d0] sm:$0xff]  ;;  %v4941_v4 = vld [vmem:[#allocation19 + $0x7d8] sm:$0xff] }
0x13f6   : > { %6397 = vmatpush1.bf16.msra.mxu1 %v9186_v52  ;;  %6438 = vmatpush1.bf16.msra.mxu0 %v9188_v32  ;;  %v9298_v52 = vcombine.low %v4836_v38, %v4844_v22  ;;  %v9300_v32 = vcombine.low %v4837_v42, %v4845_v25  ;;  %v4694_v38 = vld [vmem:[#allocation19 + $0x20] sm:$0xff]  ;;  %v4695_v42 = vld [vmem:[#allocation19 + $0x28] sm:$0xff] }
0x13f7   : > { %6398 = vmatprep.subr.bf16.mxu1 %v9203_v63  ;;  %6439 = vmatprep.subr.bf16.mxu0 %v9205_v40  ;;  %v9315_v63 = vcombine.high %v4852_v14, %v4860_v44  ;;  %v9317_v40 = vcombine.high %v4853_v6, %v4861_v56  ;;  %v4702_v22 = vld [vmem:[#allocation19 + $0x60] sm:$0xff]  ;;  %v4703_v25 = vld [vmem:[#allocation19 + $0x68] sm:$0xff] }
0x13fa   : > { %6399 = vmatpush1.bf16.msra.mxu1 %v9202_v58  ;;  %6440 = vmatpush1.bf16.msra.mxu0 %v9204_v59  ;;  %v9314_v58 = vcombine.low %v4852_v14, %v4860_v44  ;;  %v9316_v59 = vcombine.low %v4853_v6, %v4861_v56  ;;  %v4710_v14 = vld [vmem:[#allocation19 + $0xa0] sm:$0xff]  ;;  %v4711_v6 = vld [vmem:[#allocation19 + $0xa8] sm:$0xff] }
0x13fb   : > { %6400 = vmatprep.subr.bf16.mxu1 %v9219_v61  ;;  %6441 = vmatprep.subr.bf16.mxu0 %v9221_v33  ;;  %v9331_v61 = vcombine.high %v4868_v17, %v4876_v53  ;;  %v9333_v33 = vcombine.high %v4869_v1, %v4877_v57  ;;  %v4718_v44 = vld [vmem:[#allocation19 + $0xe0] sm:$0xff]  ;;  %v4719_v56 = vld [vmem:[#allocation19 + $0xe8] sm:$0xff] }
0x13fe   : > { %6401 = vmatpush1.bf16.msra.mxu1 %v9218_v19  ;;  %6442 = vmatpush1.bf16.msra.mxu0 %v9220_v60  ;;  %v9330_v19 = vcombine.low %v4868_v17, %v4876_v53  ;;  %v9332_v60 = vcombine.low %v4869_v1, %v4877_v57  ;;  %v4726_v17 = vld [vmem:[#allocation19 + $0x120] sm:$0xff]  ;;  %v4727_v1 = vld [vmem:[#allocation19 + $0x128] sm:$0xff] }
0x13ff   : > { %6402 = vmatprep.subr.bf16.mxu1 %v9235_v8  ;;  %6443 = vmatprep.subr.bf16.mxu0 %v9237_v55  ;;  %v9347_v8 = vcombine.high %v4884_v5, %v4892_v26  ;;  %v9349_v55 = vcombine.high %v4885_v12, %v4893_v62  ;;  %v4734_v53 = vld [vmem:[#allocation19 + $0x160] sm:$0xff]  ;;  %v4735_v57 = vld [vmem:[#allocation19 + $0x168] sm:$0xff] }
0x1402   : > { %6403 = vmatpush1.bf16.msra.mxu1 %v9234_v20  ;;  %6444 = vmatpush1.bf16.msra.mxu0 %v9236_v39  ;;  %v9346_v20 = vcombine.low %v4884_v5, %v4892_v26  ;;  %v9348_v39 = vcombine.low %v4885_v12, %v4893_v62  ;;  %v4742_v5 = vld [vmem:[#allocation19 + $0x1a0] sm:$0xff]  ;;  %v4743_v12 = vld [vmem:[#allocation19 + $0x1a8] sm:$0xff] }
0x1403   : > { %6404 = vmatprep.subr.bf16.mxu1 %v9251_v18  ;;  %6445 = vmatprep.subr.bf16.mxu0 %v9253_v24  ;;  %v9363_v18 = vcombine.high %v4900_v45, %v4908_v10  ;;  %v9365_v24 = vcombine.high %v4901_v28, %v4909_v15  ;;  %v4750_v26 = vld [vmem:[#allocation19 + $0x1e0] sm:$0xff]  ;;  %v4751_v62 = vld [vmem:[#allocation19 + $0x1e8] sm:$0xff] }
0x1406   : > { %6405 = vmatpush1.bf16.msra.mxu1 %v9250_v46  ;;  %6446 = vmatpush1.bf16.msra.mxu0 %v9252_v50  ;;  %v9362_v46 = vcombine.low %v4900_v45, %v4908_v10  ;;  %v9364_v50 = vcombine.low %v4901_v28, %v4909_v15  ;;  %v4758_v45 = vld [vmem:[#allocation19 + $0x220] sm:$0xff]  ;;  %v4759_v28 = vld [vmem:[#allocation19 + $0x228] sm:$0xff] }
0x1407   : > { %6406 = vmatprep.subr.bf16.mxu1 %v9267_v43  ;;  %6447 = vmatprep.subr.bf16.mxu0 %v9269_v31  ;;  %v9379_v43 = vcombine.high %v4916_v9, %v4924_v29  ;;  %v9381_v31 = vcombine.high %v4917_v30, %v4925_v54  ;;  %v4766_v10 = vld [vmem:[#allocation19 + $0x260] sm:$0xff]  ;;  %v4767_v15 = vld [vmem:[#allocation19 + $0x268] sm:$0xff] }
0x140a   : > { %6407 = vmatpush1.bf16.msra.mxu1 %v9266_v23  ;;  %6448 = vmatpush1.bf16.msra.mxu0 %v9268_v7  ;;  %v9378_v23 = vcombine.low %v4916_v9, %v4924_v29  ;;  %v9380_v7 = vcombine.low %v4917_v30, %v4925_v54  ;;  %v4774_v9 = vld [vmem:[#allocation19 + $0x2a0] sm:$0xff]  ;;  %v4775_v30 = vld [vmem:[#allocation19 + $0x2a8] sm:$0xff] }
0x140b   : > { %6408 = vmatprep.subr.bf16.mxu1 %v9283_v49  ;;  %6449 = vmatprep.subr.bf16.mxu0 %v9285_v21  ;;  %v9395_v49 = vcombine.high %v4932_v48, %v4940_v37  ;;  %v9397_v21 = vcombine.high %v4933_v47, %v4941_v4  ;;  %v4782_v29 = vld [vmem:[#allocation19 + $0x2e0] sm:$0xff]  ;;  %v4783_v54 = vld [vmem:[#allocation19 + $0x2e8] sm:$0xff] }
0x140e   : > { %6409 = vmatpush1.bf16.msra.mxu1 %v9282_v16  ;;  %6450 = vmatpush1.bf16.msra.mxu0 %v9284_v11  ;;  %v9394_v16 = vcombine.low %v4932_v48, %v4940_v37  ;;  %v9396_v11 = vcombine.low %v4933_v47, %v4941_v4  ;;  %v4790_v48 = vld [vmem:[#allocation19 + $0x320] sm:$0xff]  ;;  %v4791_v47 = vld [vmem:[#allocation19 + $0x328] sm:$0xff] }
0x140f   : > { %6410 = vmatprep.subr.bf16.mxu1 %v9299_v13  ;;  %6451 = vmatprep.subr.bf16.mxu0 %v9301_v3  ;;  %v9159_v13 = vcombine.high %v4694_v38, %v4702_v22  ;;  %v9161_v3 = vcombine.high %v4695_v42, %v4703_v25  ;;  %v4798_v37 = vld [vmem:[#allocation19 + $0x360] sm:$0xff]  ;;  %v4799_v4 = vld [vmem:[#allocation19 + $0x368] sm:$0xff] }
0x1412   : > { %6411 = vmatpush1.bf16.msra.mxu1 %v9298_v52  ;;  %6452 = vmatpush1.bf16.msra.mxu0 %v9300_v32  ;;  %v9158_v52 = vcombine.low %v4694_v38, %v4702_v22  ;;  %v9160_v32 = vcombine.low %v4695_v42, %v4703_v25  ;;  %v4806_v38 = vld [vmem:[#allocation19 + $0x3a0] sm:$0xff]  ;;  %v4807_v42 = vld [vmem:[#allocation19 + $0x3a8] sm:$0xff] }
0x1413   : > { %6412 = vmatprep.subr.bf16.mxu1 %v9315_v63  ;;  %6453 = vmatprep.subr.bf16.mxu0 %v9317_v40  ;;  %v9175_v63 = vcombine.high %v4710_v14, %v4718_v44  ;;  %v9177_v40 = vcombine.high %v4711_v6, %v4719_v56  ;;  %v4814_v22 = vld [vmem:[#allocation19 + $0x3e0] sm:$0xff]  ;;  %v4815_v25 = vld [vmem:[#allocation19 + $0x3e8] sm:$0xff] }
0x1416   : > { %6413 = vmatpush1.bf16.msra.mxu1 %v9314_v58  ;;  %6454 = vmatpush1.bf16.msra.mxu0 %v9316_v59  ;;  %v9174_v58 = vcombine.low %v4710_v14, %v4718_v44  ;;  %v9176_v59 = vcombine.low %v4711_v6, %v4719_v56  ;;  %v4822_v14 = vld [vmem:[#allocation19 + $0x420] sm:$0xff]  ;;  %v4823_v6 = vld [vmem:[#allocation19 + $0x428] sm:$0xff] }
0x1417   : > { %6414 = vmatprep.subr.bf16.mxu1 %v9331_v61  ;;  %6455 = vmatprep.subr.bf16.mxu0 %v9333_v33  ;;  %v9191_v61 = vcombine.high %v4726_v17, %v4734_v53  ;;  %v9193_v33 = vcombine.high %v4727_v1, %v4735_v57  ;;  %v4830_v44 = vld [vmem:[#allocation19 + $0x460] sm:$0xff]  ;;  %v4831_v56 = vld [vmem:[#allocation19 + $0x468] sm:$0xff] }
0x141a   : > { %6415 = vmatpush1.bf16.msra.mxu1 %v9330_v19  ;;  %6456 = vmatpush1.bf16.msra.mxu0 %v9332_v60  ;;  %v9190_v19 = vcombine.low %v4726_v17, %v4734_v53  ;;  %v9192_v60 = vcombine.low %v4727_v1, %v4735_v57  ;;  %v4838_v17 = vld [vmem:[#allocation19 + $0x4a0] sm:$0xff]  ;;  %v4839_v1 = vld [vmem:[#allocation19 + $0x4a8] sm:$0xff] }
0x141b   : > { %6416 = vmatprep.subr.bf16.mxu1 %v9347_v8  ;;  %6457 = vmatprep.subr.bf16.mxu0 %v9349_v55  ;;  %v9207_v8 = vcombine.high %v4742_v5, %v4750_v26  ;;  %v9209_v55 = vcombine.high %v4743_v12, %v4751_v62  ;;  %v4846_v53 = vld [vmem:[#allocation19 + $0x4e0] sm:$0xff]  ;;  %v4847_v57 = vld [vmem:[#allocation19 + $0x4e8] sm:$0xff] }
0x141e   : > { %6417 = vmatpush1.bf16.msra.mxu1 %v9346_v20  ;;  %6458 = vmatpush1.bf16.msra.mxu0 %v9348_v39  ;;  %v9206_v20 = vcombine.low %v4742_v5, %v4750_v26  ;;  %v9208_v39 = vcombine.low %v4743_v12, %v4751_v62  ;;  %v4854_v5 = vld [vmem:[#allocation19 + $0x520] sm:$0xff]  ;;  %v4855_v12 = vld [vmem:[#allocation19 + $0x528] sm:$0xff] }
0x141f   : > { %6418 = vmatprep.subr.bf16.mxu1 %v9363_v18  ;;  %6459 = vmatprep.subr.bf16.mxu0 %v9365_v24  ;;  %v9223_v18 = vcombine.high %v4758_v45, %v4766_v10  ;;  %v9225_v24 = vcombine.high %v4759_v28, %v4767_v15  ;;  %v4862_v26 = vld [vmem:[#allocation19 + $0x560] sm:$0xff]  ;;  %v4863_v62 = vld [vmem:[#allocation19 + $0x568] sm:$0xff] }
0x1422   : > { %6419 = vmatpush1.bf16.msra.mxu1 %v9362_v46  ;;  %6460 = vmatpush1.bf16.msra.mxu0 %v9364_v50  ;;  %v9222_v46 = vcombine.low %v4758_v45, %v4766_v10  ;;  %v9224_v50 = vcombine.low %v4759_v28, %v4767_v15  ;;  %v4870_v45 = vld [vmem:[#allocation19 + $0x5a0] sm:$0xff]  ;;  %v4871_v28 = vld [vmem:[#allocation19 + $0x5a8] sm:$0xff] }
0x1423   : > { %6420 = vmatprep.subr.bf16.mxu1 %v9379_v43  ;;  %6461 = vmatprep.subr.bf16.mxu0 %v9381_v31  ;;  %v9239_v43 = vcombine.high %v4774_v9, %v4782_v29  ;;  %v9241_v31 = vcombine.high %v4775_v30, %v4783_v54  ;;  %v4878_v10 = vld [vmem:[#allocation19 + $0x5e0] sm:$0xff]  ;;  %v4879_v15 = vld [vmem:[#allocation19 + $0x5e8] sm:$0xff] }
0x1426   : > { %6421 = vmatpush1.bf16.msra.mxu1 %v9378_v23  ;;  %6462 = vmatpush1.bf16.msra.mxu0 %v9380_v7  ;;  %v9238_v23 = vcombine.low %v4774_v9, %v4782_v29  ;;  %v9240_v7 = vcombine.low %v4775_v30, %v4783_v54  ;;  %v4886_v9 = vld [vmem:[#allocation19 + $0x620] sm:$0xff]  ;;  %v4887_v30 = vld [vmem:[#allocation19 + $0x628] sm:$0xff] }
0x1427   : > { %6422 = vmatprep.subr.bf16.mxu1 %v9395_v49  ;;  %6463 = vmatprep.subr.bf16.mxu0 %v9397_v21  ;;  %v9255_v49 = vcombine.high %v4790_v48, %v4798_v37  ;;  %v9257_v21 = vcombine.high %v4791_v47, %v4799_v4  ;;  %v4894_v29 = vld [vmem:[#allocation19 + $0x660] sm:$0xff]  ;;  %v4895_v54 = vld [vmem:[#allocation19 + $0x668] sm:$0xff] }
0x142a   : > { %6423 = vmatpush1.bf16.msra.mxu1 %v9394_v16  ;;  %6464 = vmatpush1.bf16.msra.mxu0 %v9396_v11  ;;  %v9254_v16 = vcombine.low %v4790_v48, %v4798_v37  ;;  %v9256_v11 = vcombine.low %v4791_v47, %v4799_v4  ;;  %v4902_v48 = vld [vmem:[#allocation19 + $0x6a0] sm:$0xff]  ;;  %v4903_v47 = vld [vmem:[#allocation19 + $0x6a8] sm:$0xff] }
0x142b   : > { %6474 = vmatprep.subr.bf16.mxu1 %v9159_v13  ;;  %6515 = vmatprep.subr.bf16.mxu0 %v9161_v3  ;;  %v9271_v13 = vcombine.high %v4806_v38, %v4814_v22  ;;  %v9273_v3 = vcombine.high %v4807_v42, %v4815_v25  ;;  %v4910_v37 = vld [vmem:[#allocation19 + $0x6e0] sm:$0xff]  ;;  %v4911_v4 = vld [vmem:[#allocation19 + $0x6e8] sm:$0xff] }
0x142d   : > { %6425 = vmatmul.mubr.bf16.vlgmr.msra.gmra.mrb[48].mxu1 %v13662_v27  ;;  %6466 = vmatmul.mubr.bf16.vlgmr.msra.gmra.mrb[116].mxu0 %v13662_v27 }
0x142e   : > { %6475 = vmatpush1.bf16.msra.mxu1 %v9158_v52  ;;  %6506 = vmatprep.mubr.bf16.mxu1 %v13666_v0  ;;  %v9270_v52 = vcombine.low %v4806_v38, %v4814_v22  ;;  %v4918_v38 = vld [vmem:[#allocation19 + $0x720] sm:$0xff] }
0x142f   : > { %6516 = vmatpush1.bf16.msra.mxu0 %v9160_v32  ;;  %6547 = vmatprep.mubr.bf16.mxu0 %v13666_v0  ;;  %v9272_v32 = vcombine.low %v4807_v42, %v4815_v25  ;;  %v4926_v22 = vld [vmem:[#allocation19 + $0x760] sm:$0xff]  ;;  %v4919_v42 = vld [vmem:[#allocation19 + $0x728] sm:$0xff] }
0x1430   : > { %6476 = vmatprep.subr.bf16.mxu1 %v9175_v63  ;;  %6517 = vmatprep.subr.bf16.mxu0 %v9177_v40  ;;  %v9287_v63 = vcombine.high %v4822_v14, %v4830_v44  ;;  %v9289_v40 = vcombine.high %v4823_v6, %v4831_v56  ;;  %v4927_v25 = vld [vmem:[#allocation19 + $0x768] sm:$0xff] }
0x1432   : > { %6477 = vmatpush1.bf16.msra.mxu1 %v9174_v58  ;;  %v9286_v58 = vcombine.low %v4822_v14, %v4830_v44  ;;  %v4934_v14 = vld [vmem:[#allocation19 + $0x7a0] sm:$0xff] }
0x1433   : > { %6518 = vmatpush1.bf16.msra.mxu0 %v9176_v59  ;;  %6478 = vmatprep.subr.bf16.mxu1 %v9191_v61  ;;  %v9288_v59 = vcombine.low %v4823_v6, %v4831_v56  ;;  %v9303_v61 = vcombine.high %v4838_v17, %v4846_v53  ;;  %v4942_v44 = vld [vmem:[#allocation19 + $0x7e0] sm:$0xff]  ;;  %v4935_v6 = vld [vmem:[#allocation19 + $0x7a8] sm:$0xff] }
0x1434   : > { %6519 = vmatprep.subr.bf16.mxu0 %v9193_v33  ;;  %v9305_v33 = vcombine.high %v4839_v1, %v4847_v57  ;;  %v4943_v56 = vld [vmem:[#allocation19 + $0x7e8] sm:$0xff] }
0x1436   : > { %6479 = vmatpush1.bf16.msra.mxu1 %v9190_v19  ;;  %v9302_v19 = vcombine.low %v4838_v17, %v4846_v53  ;;  %v4696_v17 = vld [vmem:[#allocation19 + $0x30] sm:$0xff] }
0x1437   : > { %6520 = vmatpush1.bf16.msra.mxu0 %v9192_v60  ;;  %6480 = vmatprep.subr.bf16.mxu1 %v9207_v8  ;;  %v9304_v60 = vcombine.low %v4839_v1, %v4847_v57  ;;  %v9319_v8 = vcombine.high %v4854_v5, %v4862_v26  ;;  %v4704_v53 = vld [vmem:[#allocation19 + $0x70] sm:$0xff]  ;;  %v4697_v1 = vld [vmem:[#allocation19 + $0x38] sm:$0xff] }
0x1438   : > { %6521 = vmatprep.subr.bf16.mxu0 %v9209_v55  ;;  %v9321_v55 = vcombine.high %v4855_v12, %v4863_v62  ;;  %v4705_v57 = vld [vmem:[#allocation19 + $0x78] sm:$0xff] }
0x143a   : > { %6481 = vmatpush1.bf16.msra.mxu1 %v9206_v20  ;;  %v9318_v20 = vcombine.low %v4854_v5, %v4862_v26  ;;  %v4712_v5 = vld [vmem:[#allocation19 + $0xb0] sm:$0xff] }
0x143b   : > { %6522 = vmatpush1.bf16.msra.mxu0 %v9208_v39  ;;  %6482 = vmatprep.subr.bf16.mxu1 %v9223_v18  ;;  %v9320_v39 = vcombine.low %v4855_v12, %v4863_v62  ;;  %v9335_v18 = vcombine.high %v4870_v45, %v4878_v10  ;;  %v4720_v26 = vld [vmem:[#allocation19 + $0xf0] sm:$0xff]  ;;  %v9162_v12 = vcombine.low %v4696_v17, %v4704_v53  ;;  %v4713_v62 = vld [vmem:[#allocation19 + $0xb8] sm:$0xff] }
0x143c   : > { %6523 = vmatprep.subr.bf16.mxu0 %v9225_v24  ;;  %v9337_v24 = vcombine.high %v4871_v28, %v4879_v15 }
0x143e   : > { %6483 = vmatpush1.bf16.msra.mxu1 %v9222_v46  ;;  %v9334_v46 = vcombine.low %v4870_v45, %v4878_v10  ;;  %v4736_v45 = vld [vmem:[#allocation19 + $0x170] sm:$0xff] }
0x143f   : > { %6524 = vmatpush1.bf16.msra.mxu0 %v9224_v50  ;;  %6484 = vmatprep.subr.bf16.mxu1 %v9239_v43  ;;  %v9336_v50 = vcombine.low %v4871_v28, %v4879_v15  ;;  %v9351_v43 = vcombine.high %v4886_v9, %v4894_v29  ;;  %v4729_v28 = vld [vmem:[#allocation19 + $0x138] sm:$0xff] }
0x1440   : > { %6525 = vmatprep.subr.bf16.mxu0 %v9241_v31  ;;  %v9353_v31 = vcombine.high %v4887_v30, %v4895_v54  ;;  %v4737_v15 = vld [vmem:[#allocation19 + $0x178] sm:$0xff] }
0x1442   : > { %6485 = vmatpush1.bf16.msra.mxu1 %v9238_v23  ;;  %v9350_v23 = vcombine.low %v4886_v9, %v4894_v29  ;;  %v4744_v9 = vld [vmem:[#allocation19 + $0x1b0] sm:$0xff] }
0x1443   : > { %6526 = vmatpush1.bf16.msra.mxu0 %v9240_v7  ;;  %6486 = vmatprep.subr.bf16.mxu1 %v9255_v49  ;;  %v9352_v7 = vcombine.low %v4887_v30, %v4895_v54  ;;  %v9367_v49 = vcombine.high %v4902_v48, %v4910_v37  ;;  %v4752_v29 = vld [vmem:[#allocation19 + $0x1f0] sm:$0xff]  ;;  %v4745_v30 = vld [vmem:[#allocation19 + $0x1b8] sm:$0xff] }
0x1444   : > { %6527 = vmatprep.subr.bf16.mxu0 %v9257_v21  ;;  %v9369_v21 = vcombine.high %v4903_v47, %v4911_v4  ;;  %v4753_v54 = vld [vmem:[#allocation19 + $0x1f8] sm:$0xff] }
0x1446   : > { %6487 = vmatpush1.bf16.msra.mxu1 %v9254_v16  ;;  %v9366_v16 = vcombine.low %v4902_v48, %v4910_v37  ;;  %v4760_v48 = vld [vmem:[#allocation19 + $0x230] sm:$0xff] }
0x1447   : > { %6528 = vmatpush1.bf16.msra.mxu0 %v9256_v11  ;;  %6488 = vmatprep.subr.bf16.mxu1 %v9271_v13  ;;  %v9368_v11 = vcombine.low %v4903_v47, %v4911_v4  ;;  %v9383_v13 = vcombine.high %v4918_v38, %v4926_v22  ;;  %v4768_v37 = vld [vmem:[#allocation19 + $0x270] sm:$0xff]  ;;  %v4761_v47 = vld [vmem:[#allocation19 + $0x238] sm:$0xff] }
0x1448   : > { %6529 = vmatprep.subr.bf16.mxu0 %v9273_v3  ;;  %v9385_v3 = vcombine.high %v4919_v42, %v4927_v25  ;;  %v4769_v4 = vld [vmem:[#allocation19 + $0x278] sm:$0xff] }
0x144a   : > { %6489 = vmatpush1.bf16.msra.mxu1 %v9270_v52  ;;  %v9382_v52 = vcombine.low %v4918_v38, %v4926_v22  ;;  %v4784_v38 = vld [vmem:[#allocation19 + $0x2f0] sm:$0xff]  ;;  %v4777_v22 = vld [vmem:[#allocation19 + $0x2b8] sm:$0xff] }
0x144b   : > { %6530 = vmatpush1.bf16.msra.mxu0 %v9272_v32  ;;  %6490 = vmatprep.subr.bf16.mxu1 %v9287_v63  ;;  %v9384_v32 = vcombine.low %v4919_v42, %v4927_v25  ;;  %v9399_v63 = vcombine.high %v4934_v14, %v4942_v44  ;;  %v4785_v42 = vld [vmem:[#allocation19 + $0x2f8] sm:$0xff]  ;;  %v9226_v25 = vcombine.low %v4760_v48, %v4768_v37 }
0x144c   : > { %6531 = vmatprep.subr.bf16.mxu0 %v9289_v40  ;;  %v9401_v40 = vcombine.high %v4935_v6, %v4943_v56 }
0x144e   : > { %6491 = vmatpush1.bf16.msra.mxu1 %v9286_v58  ;;  %v9398_v58 = vcombine.low %v4934_v14, %v4942_v44  ;;  %v4800_v14 = vld [vmem:[#allocation19 + $0x370] sm:$0xff]  ;;  %v4793_v44 = vld [vmem:[#allocation19 + $0x338] sm:$0xff] }
0x144f   : > { %6532 = vmatpush1.bf16.msra.mxu0 %v9288_v59  ;;  %6492 = vmatprep.subr.bf16.mxu1 %v9303_v61  ;;  %v9400_v59 = vcombine.low %v4935_v6, %v4943_v56  ;;  %v9163_v61 = vcombine.high %v4696_v17, %v4704_v53  ;;  %v4801_v6 = vld [vmem:[#allocation19 + $0x378] sm:$0xff]  ;;  %v4816_v17 = vld [vmem:[#allocation19 + $0x3f0] sm:$0xff] }
0x1450   : > { %6533 = vmatprep.subr.bf16.mxu0 %v9305_v33  ;;  %v9165_v33 = vcombine.high %v4697_v1, %v4705_v57  ;;  %v4809_v53 = vld [vmem:[#allocation19 + $0x3b8] sm:$0xff] }
0x1452   : > { %6493 = vmatpush1.bf16.msra.mxu1 %v9302_v19  ;;  %v4721_v19 = vld [vmem:[#allocation19 + $0xf8] sm:$0xff] }
0x1453   : > { %6534 = vmatpush1.bf16.msra.mxu0 %v9304_v60  ;;  %6494 = vmatprep.subr.bf16.mxu1 %v9319_v8  ;;  %v9164_v60 = vcombine.low %v4697_v1, %v4705_v57  ;;  %v9179_v8 = vcombine.high %v4712_v5, %v4720_v26  ;;  %v9181_v10 = vcombine.high %v4713_v62, %v4721_v19  ;;  %v4817_v1 = vld [vmem:[#allocation19 + $0x3f8] sm:$0xff] }
0x1454   : > { %6535 = vmatprep.subr.bf16.mxu0 %v9321_v55  ;;  %v4728_v55 = vld [vmem:[#allocation19 + $0x130] sm:$0xff] }
0x1456   : > { %6495 = vmatpush1.bf16.msra.mxu1 %v9318_v20  ;;  %v9178_v20 = vcombine.low %v4712_v5, %v4720_v26  ;;  %v4832_v5 = vld [vmem:[#allocation19 + $0x470] sm:$0xff]  ;;  %v4825_v26 = vld [vmem:[#allocation19 + $0x438] sm:$0xff] }
0x1457   : > { %6536 = vmatpush1.bf16.msra.mxu0 %v9320_v39  ;;  %6496 = vmatprep.subr.bf16.mxu1 %v9335_v18  ;;  %v9180_v39 = vcombine.low %v4713_v62, %v4721_v19  ;;  %v9195_v18 = vcombine.high %v4728_v55, %v4736_v45  ;;  %v9276_v19 = vcombine.low %v4809_v53, %v4817_v1 }
0x1458   : > { %6537 = vmatprep.subr.bf16.mxu0 %v9337_v24  ;;  %v9197_v24 = vcombine.high %v4729_v28, %v4737_v15 }
0x145a   : > { %6497 = vmatpush1.bf16.msra.mxu1 %v9334_v46  ;;  %v9194_v46 = vcombine.low %v4728_v55, %v4736_v45  ;;  %v4840_v55 = vld [vmem:[#allocation19 + $0x4b0] sm:$0xff] }
0x145b   : > { %6538 = vmatpush1.bf16.msra.mxu0 %v9336_v50  ;;  %6498 = vmatprep.subr.bf16.mxu1 %v9351_v43  ;;  %v9196_v50 = vcombine.low %v4729_v28, %v4737_v15  ;;  %v9211_v43 = vcombine.high %v4744_v9, %v4752_v29  ;;  %v4848_v45 = vld [vmem:[#allocation19 + $0x4f0] sm:$0xff]  ;;  %v4849_v28 = vld [vmem:[#allocation19 + $0x4f8] sm:$0xff] }
0x145c   : > { %6539 = vmatprep.subr.bf16.mxu0 %v9353_v31  ;;  %v9213_v31 = vcombine.high %v4745_v30, %v4753_v54 }
0x145e   : > { %6499 = vmatpush1.bf16.msra.mxu1 %v9350_v23  ;;  %v9212_v23 = vcombine.low %v4745_v30, %v4753_v54  ;;  %v4865_v30 = vld [vmem:[#allocation19 + $0x578] sm:$0xff]  ;;  %v9306_v54 = vcombine.low %v4840_v55, %v4848_v45 }
0x145f   : > { %6540 = vmatpush1.bf16.msra.mxu0 %v9352_v7  ;;  %6500 = vmatprep.subr.bf16.mxu1 %v9367_v49  ;;  %v9227_v7 = vcombine.high %v4760_v48, %v4768_v37  ;;  %v9229_v49 = vcombine.high %v4761_v47, %v4769_v4  ;;  %v4880_v48 = vld [vmem:[#allocation19 + $0x5f0] sm:$0xff]  ;;  %v4873_v37 = vld [vmem:[#allocation19 + $0x5b8] sm:$0xff] }
0x1460   : > { %6541 = vmatprep.subr.bf16.mxu0 %v9369_v21  ;;  %v4776_v21 = vld [vmem:[#allocation19 + $0x2b0] sm:$0xff] }
0x1461   : > { %v9242_v56 = vcombine.low %v4776_v21, %v4784_v38 }
0x1462   : > { %6501 = vmatpush1.bf16.msra.mxu1 %v9366_v16  ;;  %v9228_v16 = vcombine.low %v4761_v47, %v4769_v4  ;;  %v4881_v47 = vld [vmem:[#allocation19 + $0x5f8] sm:$0xff] }
0x1463   : > { %6542 = vmatpush1.bf16.msra.mxu0 %v9368_v11  ;;  %6502 = vmatprep.subr.bf16.mxu1 %v9383_v13  ;;  %v9243_v11 = vcombine.high %v4776_v21, %v4784_v38  ;;  %v9245_v13 = vcombine.high %v4777_v22, %v4785_v42  ;;  %v4896_v21 = vld [vmem:[#allocation19 + $0x670] sm:$0xff]  ;;  %v4889_v38 = vld [vmem:[#allocation19 + $0x638] sm:$0xff] }
0x1464   : > { %6543 = vmatprep.subr.bf16.mxu0 %v9385_v3  ;;  %v4792_v3 = vld [vmem:[#allocation19 + $0x330] sm:$0xff] }
0x1465   : > { %v9258_v57 = vcombine.low %v4792_v3, %v4800_v14 }
0x1466   : > { %6503 = vmatpush1.bf16.msra.mxu1 %v9382_v52  ;;  %v9244_v52 = vcombine.low %v4777_v22, %v4785_v42  ;;  %v4897_v22 = vld [vmem:[#allocation19 + $0x678] sm:$0xff] }
0x1467   : > { %6544 = vmatpush1.bf16.msra.mxu0 %v9384_v32  ;;  %6504 = vmatprep.subr.bf16.mxu1 %v9399_v63  ;;  %v9259_v32 = vcombine.high %v4792_v3, %v4800_v14  ;;  %v9261_v63 = vcombine.high %v4793_v44, %v4801_v6  ;;  %v4912_v3 = vld [vmem:[#allocation19 + $0x6f0] sm:$0xff]  ;;  %v4905_v14 = vld [vmem:[#allocation19 + $0x6b8] sm:$0xff] }
0x1468   : > { %6545 = vmatprep.subr.bf16.mxu0 %v9401_v40  ;;  %v4808_v40 = vld [vmem:[#allocation19 + $0x3b0] sm:$0xff] }
0x1469   : > { %v9274_v62 = vcombine.low %v4808_v40, %v4816_v17 }
0x146a   : > { %6505 = vmatpush1.bf16.msra.mxu1 %v9398_v58  ;;  %v9260_v58 = vcombine.low %v4793_v44, %v4801_v6  ;;  %v4913_v44 = vld [vmem:[#allocation19 + $0x6f8] sm:$0xff] }
0x146b   : > { %6546 = vmatpush1.bf16.msra.mxu0 %v9400_v59  ;;  %6556 = vmatprep.subr.bf16.mxu1 %v9163_v61  ;;  %v9275_v59 = vcombine.high %v4808_v40, %v4816_v17  ;;  %v9277_v61 = vcombine.high %v4809_v53, %v4817_v1  ;;  %v4928_v40 = vld [vmem:[#allocation19 + $0x770] sm:$0xff]  ;;  %v4921_v17 = vld [vmem:[#allocation19 + $0x738] sm:$0xff] }
0x146c   : > { %6597 = vmatprep.subr.bf16.mxu0 %v9165_v33  ;;  %v4824_v33 = vld [vmem:[#allocation19 + $0x430] sm:$0xff]  ;;  %v4929_v53 = vld [vmem:[#allocation19 + $0x778] sm:$0xff] }
0x146d   : > { %6507 = vmatmul.mubr.bf16.vlgmr.msra.gmra.mrb[52].mxu1 %v13662_v27  ;;  %v9290_v15 = vcombine.low %v4824_v33, %v4832_v5 }
0x146e   : > { %6548 = vmatmul.mubr.bf16.vlgmr.msra.gmra.mrb[120].mxu0 %v13662_v27  ;;  %6557 = vmatpush1.bf16.msra.mxu1 %v9162_v12  ;;  %v4833_v12 = vld [vmem:[#allocation19 + $0x478] sm:$0xff] }
0x146f   : > { %6588 = vmatprep.mubr.bf16.mxu1 %v13666_v0  ;;  %6598 = vmatpush1.bf16.msra.mxu0 %v9164_v60  ;;  %v9291_v60 = vcombine.high %v4824_v33, %v4832_v5  ;;  %v4944_v33 = vld [vmem:[#allocation19 + $0x7f0] sm:$0xff]  ;;  %v4937_v5 = vld [vmem:[#allocation19 + $0x7b8] sm:$0xff] }
0x1470   : > { %6629 = vmatprep.mubr.bf16.mxu0 %v13666_v0  ;;  %6558 = vmatprep.subr.bf16.mxu1 %v9179_v8  ;;  %v9210_v0 = vcombine.low %v4744_v9, %v4752_v29  ;;  %v9293_v8 = vcombine.high %v4825_v26, %v4833_v12  ;;  %v4864_v9 = vld [vmem:[#allocation19 + $0x570] sm:$0xff]  ;;  %v4857_v29 = vld [vmem:[#allocation19 + $0x538] sm:$0xff] }
0x1471   : > { %6599 = vmatprep.subr.bf16.mxu0 %v9181_v10  ;;  %v4841_v10 = vld [vmem:[#allocation19 + $0x4b8] sm:$0xff] }
0x1472   : > { %6559 = vmatpush1.bf16.msra.mxu1 %v9178_v20  ;;  %v9292_v20 = vcombine.low %v4825_v26, %v4833_v12  ;;  %v4945_v26 = vld [vmem:[#allocation19 + $0x7f8] sm:$0xff] }
0x1473   : > { %6600 = vmatpush1.bf16.msra.mxu0 %v9180_v39  ;;  %6560 = vmatprep.subr.bf16.mxu1 %v9195_v18  ;;  %v9307_v39 = vcombine.high %v4840_v55, %v4848_v45  ;;  %v9309_v18 = vcombine.high %v4841_v10, %v4849_v28  ;;  %v9404_v55 = vcombine.low %v4937_v5, %v4945_v26  ;;  %v10739_v45 = vld [vmem:[#allocation22 + $0x4] ss:$8 sps:$4 sm:$0xff]  }
0x1474   : > { %6601 = vmatprep.subr.bf16.mxu0 %v9197_v24  ;;  %v4856_v24 = vld [vmem:[#allocation19 + $0x530] sm:$0xff] }
0x1475   : > { %v9322_v4 = vcombine.low %v4856_v24, %v4864_v9 }
0x1476   : > { %6561 = vmatpush1.bf16.msra.mxu1 %v9194_v46  ;;  %v9308_v46 = vcombine.low %v4841_v10, %v4849_v28  ;;  %v10742_v10 = vld [vmem:[#allocation22 + $0x104] ss:$8 sps:$4 sm:$0xff]   ;;  %v10737_v28 = vld [vmem:[#allocation22] ss:$8 sps:$4 sm:$0xff]  }
0x1477   : > { %6602 = vmatpush1.bf16.msra.mxu0 %v9196_v50  ;;  %6562 = vmatprep.subr.bf16.mxu1 %v9211_v43  ;;  %v9323_v50 = vcombine.high %v4856_v24, %v4864_v9  ;;  %v9325_v43 = vcombine.high %v4857_v29, %v4865_v30  ;;  %v10746_v24 = vld [vmem:[#allocation22 + $0x110] ss:$8 sps:$4 sm:$0xff]   ;;  %v10751_v9 = vld [vmem:[#allocation22 + $0x24] ss:$8 sps:$4 sm:$0xff]  }
0x1478   : > { %6603 = vmatprep.subr.bf16.mxu0 %v9213_v31  ;;  %v4872_v31 = vld [vmem:[#allocation19 + $0x5b0] sm:$0xff] }
0x1479   : > { %v9338_v42 = vcombine.low %v4872_v31, %v4880_v48 }
0x147a   : > { %6563 = vmatpush1.bf16.msra.mxu1 %v9210_v0  ;;  %v9324_v0 = vcombine.low %v4857_v29, %v4865_v30  ;;  %v10754_v29 = vld [vmem:[#allocation22 + $0x124] ss:$8 sps:$4 sm:$0xff]   ;;  %v10749_v30 = vld [vmem:[#allocation22 + $0x20] ss:$8 sps:$4 sm:$0xff]  }
0x147b   : > { %6604 = vmatpush1.bf16.msra.mxu0 %v9212_v23  ;;  %6564 = vmatprep.subr.bf16.mxu1 %v9227_v7  ;;  %v9339_v23 = vcombine.high %v4872_v31, %v4880_v48  ;;  %v9341_v7 = vcombine.high %v4873_v37, %v4881_v47  ;;  %v10763_v31 = vld [vmem:[#allocation22 + $0x44] ss:$8 sps:$4 sm:$0xff]  }
0x147c   : > { %6605 = vmatprep.subr.bf16.mxu0 %v9229_v49  ;;  %v4888_v49 = vld [vmem:[#allocation19 + $0x630] sm:$0xff] }
0x147d   : > { %v9354_v6 = vcombine.low %v4888_v49, %v4896_v21  ;;  %v10766_v48 = vld [vmem:[#allocation22 + $0x144] ss:$8 sps:$4 sm:$0xff]  }
0x147e   : > { %6565 = vmatpush1.bf16.msra.mxu1 %v9226_v25  ;;  %v9340_v25 = vcombine.low %v4873_v37, %v4881_v47  ;;  %v10761_v37 = vld [vmem:[#allocation22 + $0x40] ss:$8 sps:$4 sm:$0xff]   ;;  %v4964_v47 = vsub.s32 3, %v12774_v34 }
0x147f   : > { %6606 = vmatpush1.bf16.msra.mxu0 %v9228_v16  ;;  %6566 = vmatprep.subr.bf16.mxu1 %v9243_v11  ;;  %v9355_v16 = vcombine.high %v4888_v49, %v4896_v21  ;;  %v9357_v11 = vcombine.high %v4889_v38, %v4897_v22  ;;  %v10767_v49 = vld [vmem:[#allocation22 + $0x50] ss:$8 sps:$4 sm:$0xff]  }
0x1480   : > { %6607 = vmatprep.subr.bf16.mxu0 %v9245_v13  ;;  %v4904_v13 = vld [vmem:[#allocation19 + $0x6b0] sm:$0xff] }
0x1481   : > { %v9370_v1 = vcombine.low %v4904_v13, %v4912_v3 }
0x1482   : > { %6567 = vmatpush1.bf16.msra.mxu1 %v9242_v56  ;;  %v9356_v56 = vcombine.low %v4889_v38, %v4897_v22  ;;  %v10770_v22 = vld [vmem:[#allocation22 + $0x150] ss:$8 sps:$4 sm:$0xff]  }
0x1483   : > { %6608 = vmatpush1.bf16.msra.mxu0 %v9244_v52  ;;  %6568 = vmatprep.subr.bf16.mxu1 %v9259_v32  ;;  %v9371_v52 = vcombine.high %v4904_v13, %v4912_v3  ;;  %v9373_v32 = vcombine.high %v4905_v14, %v4913_v44 }
0x1484   : > { %6609 = vmatprep.subr.bf16.mxu0 %v9261_v63  ;;  %v4920_v63 = vld [vmem:[#allocation19 + $0x730] sm:$0xff] }
0x1485   : > { %v9386_v12 = vcombine.low %v4920_v63, %v4928_v40 }
0x1486   : > { %6569 = vmatpush1.bf16.msra.mxu1 %v9258_v57  ;;  %v9372_v57 = vcombine.low %v4905_v14, %v4913_v44 }
0x1487   : > { %6610 = vmatpush1.bf16.msra.mxu0 %v9260_v58  ;;  %6570 = vmatprep.subr.bf16.mxu1 %v9275_v59  ;;  %v9387_v58 = vcombine.high %v4920_v63, %v4928_v40  ;;  %v9389_v59 = vcombine.high %v4921_v17, %v4929_v53  ;;  %v10776_v40 = vld [vmem:[#allocation22 + $0x160] ss:$8 sps:$4 sm:$0xff]  }
0x1488   : > { %6611 = vmatprep.subr.bf16.mxu0 %v9277_v61  ;;  %v4936_v61 = vld [vmem:[#allocation19 + $0x7b0] sm:$0xff] }
0x148a   : > { %6571 = vmatpush1.bf16.msra.mxu1 %v9274_v62  ;;  %v9388_v62 = vcombine.low %v4921_v17, %v4929_v53  ;;  %v10781_v17 = vld [vmem:[#allocation22 + $0x74] ss:$8 sps:$4 sm:$0xff]  }
0x148b   : > { %6612 = vmatpush1.bf16.msra.mxu0 %v9276_v19  ;;  %6572 = vmatprep.subr.bf16.mxu1 %v9291_v60  ;;  %v9403_v19 = vcombine.high %v4936_v61, %v4944_v33  ;;  %v9405_v60 = vcombine.high %v4937_v5, %v4945_v26  ;;  %v10787_v5 = vld [vmem:[#allocation22 + $0x84] ss:$8 sps:$4 sm:$0xff]  }
0x148c   : > { %6613 = vmatprep.subr.bf16.mxu0 %v9293_v8  ;;  %v9402_v8 = vcombine.low %v4936_v61, %v4944_v33  ;;  %v10779_v61 = vld [vmem:[#allocation22 + $0x70] ss:$8 sps:$4 sm:$0xff]   ;;  %v10790_v26 = vld [vmem:[#allocation22 + $0x184] ss:$8 sps:$4 sm:$0xff]  }
0x148d   : > { %v10782_v33 = vld [vmem:[#allocation22 + $0x170] ss:$8 sps:$4 sm:$0xff]  }
0x148e   : > { %6573 = vmatpush1.bf16.msra.mxu1 %v9290_v15  ;;  %v10740_v15 = vld [vmem:[#allocation22 + $0x100] ss:$8 sps:$4 sm:$0xff]  }
0x148f   : > { %6614 = vmatpush1.bf16.msra.mxu0 %v9292_v20  ;;  %6574 = vmatprep.subr.bf16.mxu1 %v9307_v39  ;;  %v10745_v20 = vld [vmem:[#allocation22 + $0x14] ss:$8 sps:$4 sm:$0xff]  }
0x1490   : > { %6615 = vmatprep.subr.bf16.mxu0 %v9309_v18  ;;  %v10748_v39 = vld [vmem:[#allocation22 + $0x114] ss:$8 sps:$4 sm:$0xff]   ;;  %v10743_v18 = vld [vmem:[#allocation22 + $0x10] ss:$8 sps:$4 sm:$0xff]  }
0x1492   : > { %6575 = vmatpush1.bf16.msra.mxu1 %v9306_v54  ;;  %v10752_v54 = vld [vmem:[#allocation22 + $0x120] ss:$8 sps:$4 sm:$0xff]  }
0x1493   : > { %6616 = vmatpush1.bf16.msra.mxu0 %v9308_v46  ;;  %6576 = vmatprep.subr.bf16.mxu1 %v9323_v50  ;;  %v10757_v46 = vld [vmem:[#allocation22 + $0x34] ss:$8 sps:$4 sm:$0xff]  }
0x1494   : > { %6617 = vmatprep.subr.bf16.mxu0 %v9325_v43  ;;  %v10760_v50 = vld [vmem:[#allocation22 + $0x134] ss:$8 sps:$4 sm:$0xff]   ;;  %v10755_v43 = vld [vmem:[#allocation22 + $0x30] ss:$8 sps:$4 sm:$0xff]  }
0x1496   : > { %6577 = vmatpush1.bf16.msra.mxu1 %v9322_v4  ;;  %v10764_v4 = vld [vmem:[#allocation22 + $0x140] ss:$8 sps:$4 sm:$0xff]  }
0x1497   : > { %6618 = vmatpush1.bf16.msra.mxu0 %v9324_v0  ;;  %6578 = vmatprep.subr.bf16.mxu1 %v9339_v23  ;;  %v13685_v0 = vld [vmem:[#allocation20] sm:$0xff] }
0x1498   : > { %6619 = vmatprep.subr.bf16.mxu0 %v9341_v7  ;;  %v10769_v23 = vld [vmem:[#allocation22 + $0x54] ss:$8 sps:$4 sm:$0xff]   ;;  %v4957_v21 = vrot.slane %v13685_v0, %v12780_v36  ;;  %v4965_v38 = vrot.slane %v13685_v0, %v4964_v47 }
0x1499   : > { %v10772_v7 = vld [vmem:[#allocation22 + $0x154] ss:$8 sps:$4 sm:$0xff]  }
0x149a   : > { %6579 = vmatpush1.bf16.msra.mxu1 %v9338_v42  ;;  %v10775_v42 = vld [vmem:[#allocation22 + $0x64] ss:$8 sps:$4 sm:$0xff]  }
0x149b   : > { %6620 = vmatpush1.bf16.msra.mxu0 %v9340_v25  ;;  %6580 = vmatprep.subr.bf16.mxu1 %v9355_v16 }
0x149c   : > { %6621 = vmatprep.subr.bf16.mxu0 %v9357_v11  ;;  %v10778_v11 = vld [vmem:[#allocation22 + $0x164] ss:$8 sps:$4 sm:$0xff]  }
0x149e   : > { %6581 = vmatpush1.bf16.msra.mxu1 %v9354_v6 }
0x149f   : > { %6622 = vmatpush1.bf16.msra.mxu0 %v9356_v56  ;;  %6582 = vmatprep.subr.bf16.mxu1 %v9371_v52  ;;  %v10773_v52 = vld [vmem:[#allocation22 + $0x60] ss:$8 sps:$4 sm:$0xff]  }
0x14a0   : > { %6623 = vmatprep.subr.bf16.mxu0 %v9373_v32 }
0x14a2   : > { %6583 = vmatpush1.bf16.msra.mxu1 %v9370_v1 }
0x14a3   : > { %6624 = vmatpush1.bf16.msra.mxu0 %v9372_v57  ;;  %6584 = vmatprep.subr.bf16.mxu1 %v9387_v58  ;;  %v10784_v57 = vld [vmem:[#allocation22 + $0x174] ss:$8 sps:$4 sm:$0xff]  }
0x14a4   : > { %6625 = vmatprep.subr.bf16.mxu0 %v9389_v59 }
0x14a6   : > { %6585 = vmatpush1.bf16.msra.mxu1 %v9386_v12  ;;  %v10785_v12 = vld [vmem:[#allocation22 + $0x80] ss:$8 sps:$4 sm:$0xff]  }
0x14a7   : > { %6626 = vmatpush1.bf16.msra.mxu0 %v9388_v62  ;;  %6586 = vmatprep.subr.bf16.mxu1 %v9403_v19  ;;  %v10788_v62 = vld [vmem:[#allocation22 + $0x180] ss:$8 sps:$4 sm:$0xff]   ;;  %v10793_v19 = vld [vmem:[#allocation22 + $0x94] ss:$8 sps:$4 sm:$0xff]  }
0x14a8   : > { %6627 = vmatprep.subr.bf16.mxu0 %v9405_v60  ;;  %v10796_v60 = vld [vmem:[#allocation22 + $0x194] ss:$8 sps:$4 sm:$0xff]  }
0x14aa   : > { %6587 = vmatpush1.bf16.msra.mxu1 %v9402_v8  ;;  %v10791_v8 = vld [vmem:[#allocation22 + $0x90] ss:$8 sps:$4 sm:$0xff]  }
0x14ab   : > { %6628 = vmatpush1.bf16.msra.mxu0 %v9404_v55  ;;  %8218 = vmatprep.subr.bf16.mxu1 %v10739_v45  ;;  %v10794_v55 = vld [vmem:[#allocation22 + $0x190] ss:$8 sps:$4 sm:$0xff]   ;;  %v10799_v45 = vld [vmem:[#allocation22 + $0xa4] ss:$8 sps:$4 sm:$0xff]  }
0x14ac   : > { %8259 = vmatprep.subr.bf16.mxu0 %v10742_v10  ;;  %v10802_v10 = vld [vmem:[#allocation22 + $0x1a4] ss:$8 sps:$4 sm:$0xff]  }
0x14ad   : > { %6589 = vmatmul.mubr.bf16.vlgmr.msra.gmra.mrb[56].mxu1 %v13662_v27 }
0x14ae   : > { %6630 = vmatmul.mubr.bf16.vlgmr.msra.gmra.mrb[124].mxu0 %v13662_v27  ;;  %8219 = vmatpush1.bf16.msra.mxu1 %v10737_v28  ;;  %v10758_v27 = vld [vmem:[#allocation22 + $0x130] ss:$8 sps:$4 sm:$0xff]   ;;  %v10797_v28 = vld [vmem:[#allocation22 + $0xa0] ss:$8 sps:$4 sm:$0xff]  }
0x14af   : > { %8260 = vmatpush1.bf16.msra.mxu0 %v10740_v15  ;;  %8220 = vmatprep.subr.bf16.mxu1 %v10745_v20  ;;  %v10800_v15 = vld [vmem:[#allocation22 + $0x1a0] ss:$8 sps:$4 sm:$0xff]   ;;  %v10805_v20 = vld [vmem:[#allocation22 + $0xb4] ss:$8 sps:$4 sm:$0xff]  }
0x14b0   : > { %8261 = vmatprep.subr.bf16.mxu0 %v10748_v39  ;;  %v10808_v39 = vld [vmem:[#allocation22 + $0x1b4] ss:$8 sps:$4 sm:$0xff]  }
0x14b2   : > { %8221 = vmatpush1.bf16.msra.mxu1 %v10743_v18  ;;  %v10803_v18 = vld [vmem:[#allocation22 + $0xb0] ss:$8 sps:$4 sm:$0xff]  }
0x14b3   : > { %8262 = vmatpush1.bf16.msra.mxu0 %v10746_v24  ;;  %8222 = vmatprep.subr.bf16.mxu1 %v10751_v9  ;;  %v10806_v24 = vld [vmem:[#allocation22 + $0x1b0] ss:$8 sps:$4 sm:$0xff]   ;;  %v10811_v9 = vld [vmem:[#allocation22 + $0xc4] ss:$8 sps:$4 sm:$0xff]  }
0x14b4   : > { %8263 = vmatprep.subr.bf16.mxu0 %v10754_v29  ;;  %v10814_v29 = vld [vmem:[#allocation22 + $0x1c4] ss:$8 sps:$4 sm:$0xff]  }
0x14b6   : > { %8223 = vmatpush1.bf16.msra.mxu1 %v10749_v30  ;;  %v10809_v30 = vld [vmem:[#allocation22 + $0xc0] ss:$8 sps:$4 sm:$0xff]  }
0x14b7   : > { %8264 = vmatpush1.bf16.msra.mxu0 %v10752_v54  ;;  %8224 = vmatprep.subr.bf16.mxu1 %v10757_v46  ;;  %v10812_v54 = vld [vmem:[#allocation22 + $0x1c0] ss:$8 sps:$4 sm:$0xff]   ;;  %v10817_v46 = vld [vmem:[#allocation22 + $0xd4] ss:$8 sps:$4 sm:$0xff]  }
0x14b8   : > { %8265 = vmatprep.subr.bf16.mxu0 %v10760_v50  ;;  %v4960_v50 = vsub.s32 2, %v12774_v34 }
0x14ba   : > { %8225 = vmatpush1.bf16.msra.mxu1 %v10755_v43  ;;  %v10820_v43 = vld [vmem:[#allocation22 + $0x1d4] ss:$8 sps:$4 sm:$0xff]  }
0x14bb   : > { %8266 = vmatpush1.bf16.msra.mxu0 %v10758_v27  ;;  %8226 = vmatprep.subr.bf16.mxu1 %v10763_v31  ;;  %v10815_v27 = vld [vmem:[#allocation22 + $0xd0] ss:$8 sps:$4 sm:$0xff]   ;;  %v4953_v31 = vrot.slane %v13685_v0, %v12777_v35 }
0x14bc   : > { %8267 = vmatprep.subr.bf16.mxu0 %v10766_v48  ;;  %v10818_v48 = vld [vmem:[#allocation22 + $0x1d0] ss:$8 sps:$4 sm:$0xff]  }
0x14be   : > { %8227 = vmatpush1.bf16.msra.mxu1 %v10761_v37  ;;  %v10823_v37 = vld [vmem:[#allocation22 + $0xe4] ss:$8 sps:$4 sm:$0xff]  }
0x14bf   : > { %8268 = vmatpush1.bf16.msra.mxu0 %v10764_v4  ;;  %8228 = vmatprep.subr.bf16.mxu1 %v10769_v23  ;;  %v4961_v4 = vrot.slane %v13685_v0, %v4960_v50  ;;  %v10826_v23 = vld [vmem:[#allocation22 + $0x1e4] ss:$8 sps:$4 sm:$0xff]  }
0x14c0   : > { %v13692_v25 = vpop.f32.mrb[44].mxu1  ;;  %v13694_v16 = vpop.f32.mrb[112].mxu0  ;;  %8269 = vmatprep.subr.bf16.mxu0 %v10772_v7  ;;  %v10821_v7 = vld [vmem:[#allocation22 + $0xe0] ss:$8 sps:$4 sm:$0xff]  }
0x14c1   : > { %v6346_v13 = vpop.f32.mrb[45].mxu1  ;;  %v6387_v3 = vpop.f32.mrb[113].mxu0 }
0x14c2   : > { %v6347_v14 = vadd.f32 %v6346_v13, %v4957_v21  ;;  %v6388_v44 = vadd.f32 %v6387_v3, %v4965_v38  ;;  %8229 = vmatpush1.bf16.msra.mxu1 %v10767_v49  ;;  %v6348_v6 = vpop.f32.mrb[46].mxu1  ;;  %v6389_v56 = vpop.f32.mrb[114].mxu0  ;;  %v6345_v49 = vadd.f32 %v13692_v25, %v4953_v31  ;;  %v10824_v21 = vld [vmem:[#allocation22 + $0x1e0] ss:$8 sps:$4 sm:$0xff]   ;;  %v10829_v38 = vld [vmem:[#allocation22 + $0xf4] ss:$8 sps:$4 sm:$0xff]  }
0x14c3   : > { %8270 = vmatpush1.bf16.msra.mxu0 %v10770_v22  ;;  %v6349_v32 = vpop.f32.mrb[47].mxu1  ;;  %v6390_v63 = vpop.f32.mrb[115].mxu0  ;;  %8230 = vmatprep.subr.bf16.mxu1 %v10775_v42  ;;  %v6386_v22 = vadd.f32 %v13694_v16, %v4961_v4  ;;  %v10832_v42 = vld [vmem:[#allocation22 + $0x1f4] ss:$8 sps:$4 sm:$0xff]   ;;  %v10830_v3 = vld [vmem:[#allocation22 + $0x1f0] ss:$8 sps:$4 sm:$0xff]  }
0x14c4   : > { %v6639_v53 = vmax.f32 %v6347_v14, 0.0  ;;  %v6641_v1 = vmax.f32 %v6388_v44, 0.0  ;;  %8271 = vmatprep.subr.bf16.mxu0 %v10778_v11  ;;  %v10827_v11 = vld [vmem:[#allocation22 + $0xf0] ss:$8 sps:$4 sm:$0xff]   ;;  %v6638_v13 = vmax.f32 %v6345_v49, 0.0 }
0x14c5   : > { %v10835_v14 = vld [vmem:[#allocation22 + $0x204] ss:$8 sps:$4 sm:$0xff]   ;;  %v6640_v44 = vmax.f32 %v6386_v22, 0.0  ;;  %v10833_v25 = vld [vmem:[#allocation22 + $0x200] ss:$8 sps:$4 sm:$0xff]  }
0x14c6   : > { %v6655_v58 = vpack.c.bf16 %v6639_v53, %v6639_v53  ;;  %v6657_v59 = vpack.c.bf16 %v6641_v1, %v6641_v1  ;;  %8231 = vmatpush1.bf16.msra.mxu1 %v10773_v52  ;;  %v10838_v6 = vld [vmem:[#allocation22 + $0x304] ss:$8 sps:$4 sm:$0xff]   ;;  %v6654_v56 = vpack.c.bf16 %v6638_v13, %v6638_v13  ;;  %v10836_v52 = vld [vmem:[#allocation22 + $0x300] ss:$8 sps:$4 sm:$0xff]   ;;  %v10841_v32 = vld [vmem:[#allocation22 + $0x214] ss:$8 sps:$4 sm:$0xff]  }
0x14c7   : > { %8272 = vmatpush1.bf16.msra.mxu0 %v10776_v40  ;;  %8232 = vmatprep.subr.bf16.mxu1 %v10781_v17  ;;  %v6656_v16 = vpack.c.bf16 %v6640_v44, %v6640_v44  ;;  %v10844_v63 = vld [vmem:[#allocation22 + $0x314] ss:$8 sps:$4 sm:$0xff]   ;;  %v10839_v40 = vld [vmem:[#allocation22 + $0x210] ss:$8 sps:$4 sm:$0xff]   ;;  %v10847_v53 = vld [vmem:[#allocation22 + $0x224] ss:$8 sps:$4 sm:$0xff]  }
0x14c8   : > { %8250 = vmatprep.mubr.bf16.mxu1 %v6655_v58  ;;  %8273 = vmatprep.subr.bf16.mxu0 %v10784_v57  ;;  %v10842_v17 = vld [vmem:[#allocation22 + $0x310] ss:$8 sps:$4 sm:$0xff]   ;;  %v10850_v1 = vld [vmem:[#allocation22 + $0x324] ss:$8 sps:$4 sm:$0xff]   ;;  %v10845_v57 = vld [vmem:[#allocation22 + $0x220] ss:$8 sps:$4 sm:$0xff]  }
0x14c9   : > { %8291 = vmatprep.mubr.bf16.mxu0 %v6657_v59  ;;  %v10848_v58 = vld [vmem:[#allocation22 + $0x320] ss:$8 sps:$4 sm:$0xff]   ;;  %v10853_v59 = vld [vmem:[#allocation22 + $0x234] ss:$8 sps:$4 sm:$0xff]   ;;  %v10883_v13 = vld [vmem:[#allocation22 + $0x284] ss:$8 sps:$4 sm:$0xff]  }
0x14ca   : > { %8233 = vmatpush1.bf16.msra.mxu1 %v10779_v61  ;;  %v10856_v61 = vld [vmem:[#allocation22 + $0x334] ss:$8 sps:$4 sm:$0xff]   ;;  %v10869_v31 = vld [vmem:[#allocation22 + $0x260] ss:$8 sps:$4 sm:$0xff]  }
0x14cb   : > { %8274 = vmatpush1.bf16.msra.mxu0 %v10782_v33  ;;  %8234 = vmatprep.subr.bf16.mxu1 %v10787_v5  ;;  %v10851_v33 = vld [vmem:[#allocation22 + $0x230] ss:$8 sps:$4 sm:$0xff]   ;;  %v10872_v4 = vld [vmem:[#allocation22 + $0x360] ss:$8 sps:$4 sm:$0xff]  }
0x14cc   : > { %8275 = vmatprep.subr.bf16.mxu0 %v10790_v26  ;;  %v10854_v5 = vld [vmem:[#allocation22 + $0x330] ss:$8 sps:$4 sm:$0xff]   ;;  %v10859_v26 = vld [vmem:[#allocation22 + $0x244] ss:$8 sps:$4 sm:$0xff]   ;;  %v10884_v44 = vld [vmem:[#allocation22 + $0x380] ss:$8 sps:$4 sm:$0xff]  }
0x14ce   : > { %8235 = vmatpush1.bf16.msra.mxu1 %v10785_v12  ;;  %v10862_v12 = vld [vmem:[#allocation22 + $0x344] ss:$8 sps:$4 sm:$0xff]  }
0x14cf   : > { %8276 = vmatpush1.bf16.msra.mxu0 %v10788_v62  ;;  %8236 = vmatprep.subr.bf16.mxu1 %v10793_v19  ;;  %v10857_v62 = vld [vmem:[#allocation22 + $0x240] ss:$8 sps:$4 sm:$0xff]   ;;  %v4972_v19 = vsub.s32 5, %v12774_v34 }
0x14d0   : > { %8277 = vmatprep.subr.bf16.mxu0 %v10796_v60  ;;  %v4980_v60 = vsub.s32 7, %v12774_v34 }
0x14d2   : > { %8237 = vmatpush1.bf16.msra.mxu1 %v10791_v8  ;;  %v10860_v8 = vld [vmem:[#allocation22 + $0x340] ss:$8 sps:$4 sm:$0xff]  }
0x14d3   : > { %8278 = vmatpush1.bf16.msra.mxu0 %v10794_v55  ;;  %8238 = vmatprep.subr.bf16.mxu1 %v10799_v45  ;;  %v10865_v55 = vld [vmem:[#allocation22 + $0x254] ss:$8 sps:$4 sm:$0xff]  }
0x14d4   : > { %8279 = vmatprep.subr.bf16.mxu0 %v10802_v10  ;;  %v10868_v45 = vld [vmem:[#allocation22 + $0x354] ss:$8 sps:$4 sm:$0xff]   ;;  %v4973_v10 = vrot.slane %v13685_v0, %v4972_v19 }
0x14d6   : > { %8239 = vmatpush1.bf16.msra.mxu1 %v10797_v28  ;;  %v4981_v28 = vrot.slane %v13685_v0, %v4980_v60 }
0x14d7   : > { %8280 = vmatpush1.bf16.msra.mxu0 %v10800_v15  ;;  %8240 = vmatprep.subr.bf16.mxu1 %v10805_v20  ;;  %v10863_v15 = vld [vmem:[#allocation22 + $0x250] ss:$8 sps:$4 sm:$0xff]  }
0x14d8   : > { %8281 = vmatprep.subr.bf16.mxu0 %v10808_v39  ;;  %v10866_v20 = vld [vmem:[#allocation22 + $0x350] ss:$8 sps:$4 sm:$0xff]   ;;  %v10871_v39 = vld [vmem:[#allocation22 + $0x264] ss:$8 sps:$4 sm:$0xff]  }
0x14da   : > { %8241 = vmatpush1.bf16.msra.mxu1 %v10803_v18 }
0x14db   : > { %8282 = vmatpush1.bf16.msra.mxu0 %v10806_v24  ;;  %8242 = vmatprep.subr.bf16.mxu1 %v10811_v9  ;;  %v10874_v9 = vld [vmem:[#allocation22 + $0x364] ss:$8 sps:$4 sm:$0xff]  }
0x14dc   : > { %8283 = vmatprep.subr.bf16.mxu0 %v10814_v29 }
0x14de   : > { %8243 = vmatpush1.bf16.msra.mxu1 %v10809_v30 }
0x14df   : > { %8284 = vmatpush1.bf16.msra.mxu0 %v10812_v54  ;;  %8244 = vmatprep.subr.bf16.mxu1 %v10817_v46 }
0x14e0   : > { %8285 = vmatprep.subr.bf16.mxu0 %v10820_v43 }
0x14e2   : > { %8245 = vmatpush1.bf16.msra.mxu1 %v10815_v27 }
0x14e3   : > { %8286 = vmatpush1.bf16.msra.mxu0 %v10818_v48  ;;  %8246 = vmatprep.subr.bf16.mxu1 %v10823_v37 }
0x14e4   : > { %8287 = vmatprep.subr.bf16.mxu0 %v10826_v23  ;;  %v10877_v23 = vld [vmem:[#allocation22 + $0x274] ss:$8 sps:$4 sm:$0xff]  }
0x14e6   : > { %8247 = vmatpush1.bf16.msra.mxu1 %v10821_v7 }
0x14e7   : > { %8288 = vmatpush1.bf16.msra.mxu0 %v10824_v21  ;;  %8248 = vmatprep.subr.bf16.mxu1 %v10829_v38  ;;  %v10880_v21 = vld [vmem:[#allocation22 + $0x374] ss:$8 sps:$4 sm:$0xff]  }
0x14e8   : > { %8289 = vmatprep.subr.bf16.mxu0 %v10832_v42  ;;  %v10875_v42 = vld [vmem:[#allocation22 + $0x270] ss:$8 sps:$4 sm:$0xff]  }
0x14ea   : > { %8249 = vmatpush1.bf16.msra.mxu1 %v10827_v11  ;;  %v10878_v11 = vld [vmem:[#allocation22 + $0x370] ss:$8 sps:$4 sm:$0xff]  }
0x14eb   : > { %8290 = vmatpush1.bf16.msra.mxu0 %v10830_v3  ;;  %8300 = vmatprep.subr.bf16.mxu1 %v10835_v14  ;;  %v10886_v3 = vld [vmem:[#allocation22 + $0x384] ss:$8 sps:$4 sm:$0xff]   ;;  %v10881_v14 = vld [vmem:[#allocation22 + $0x280] ss:$8 sps:$4 sm:$0xff]  }
0x14ec   : > { %8341 = vmatprep.subr.bf16.mxu0 %v10838_v6  ;;  %v10889_v6 = vld [vmem:[#allocation22 + $0x294] ss:$8 sps:$4 sm:$0xff]  }
0x14ed   : > { %8251 = vmatmul.mubr.bf16.vlgmr.msra.gmra.mrb[60].mxu1 %v6654_v56  ;;  %v10887_v56 = vld [vmem:[#allocation22 + $0x290] ss:$8 sps:$4 sm:$0xff]  }
0x14ee   : > { %8292 = vmatmul.mubr.bf16.vlgmr.msra.gmra.mrb[128].mxu0 %v6656_v16  ;;  %8301 = vmatpush1.bf16.msra.mxu1 %v10833_v25  ;;  %v10892_v25 = vld [vmem:[#allocation22 + $0x394] ss:$8 sps:$4 sm:$0xff]   ;;  %v10898_v16 = vld [vmem:[#allocation22 + $0x3a4] ss:$8 sps:$4 sm:$0xff]  }
0x14ef   : > { %8342 = vmatpush1.bf16.msra.mxu0 %v10836_v52  ;;  %8302 = vmatprep.subr.bf16.mxu1 %v10841_v32  ;;  %v10890_v52 = vld [vmem:[#allocation22 + $0x390] ss:$8 sps:$4 sm:$0xff]   ;;  %v10895_v32 = vld [vmem:[#allocation22 + $0x2a4] ss:$8 sps:$4 sm:$0xff]  }
0x14f0   : > { %8343 = vmatprep.subr.bf16.mxu0 %v10844_v63  ;;  %v10893_v63 = vld [vmem:[#allocation22 + $0x2a0] ss:$8 sps:$4 sm:$0xff]  }
0x14f2   : > { %8303 = vmatpush1.bf16.msra.mxu1 %v10839_v40  ;;  %v10896_v40 = vld [vmem:[#allocation22 + $0x3a0] ss:$8 sps:$4 sm:$0xff]  }
0x14f3   : > { %8344 = vmatpush1.bf16.msra.mxu0 %v10842_v17  ;;  %8304 = vmatprep.subr.bf16.mxu1 %v10847_v53  ;;  %v10901_v17 = vld [vmem:[#allocation22 + $0x2b4] ss:$8 sps:$4 sm:$0xff]  }
0x14f4   : > { %8345 = vmatprep.subr.bf16.mxu0 %v10850_v1  ;;  %v10904_v53 = vld [vmem:[#allocation22 + $0x3b4] ss:$8 sps:$4 sm:$0xff]   ;;  %v10899_v1 = vld [vmem:[#allocation22 + $0x2b0] ss:$8 sps:$4 sm:$0xff]  }
0x14f6   : > { %8305 = vmatpush1.bf16.msra.mxu1 %v10845_v57  ;;  %v10902_v57 = vld [vmem:[#allocation22 + $0x3b0] ss:$8 sps:$4 sm:$0xff]  }
0x14f7   : > { %8346 = vmatpush1.bf16.msra.mxu0 %v10848_v58  ;;  %8306 = vmatprep.subr.bf16.mxu1 %v10853_v59  ;;  %v10907_v58 = vld [vmem:[#allocation22 + $0x2c4] ss:$8 sps:$4 sm:$0xff]  }
0x14f8   : > { %8347 = vmatprep.subr.bf16.mxu0 %v10856_v61  ;;  %v10910_v59 = vld [vmem:[#allocation22 + $0x3c4] ss:$8 sps:$4 sm:$0xff]   ;;  %v10905_v61 = vld [vmem:[#allocation22 + $0x2c0] ss:$8 sps:$4 sm:$0xff]  }
0x14fa   : > { %8307 = vmatpush1.bf16.msra.mxu1 %v10851_v33  ;;  %v4968_v33 = vsub.s32 4, %v12774_v34 }
0x14fb   : > { %8348 = vmatpush1.bf16.msra.mxu0 %v10854_v5  ;;  %8308 = vmatprep.subr.bf16.mxu1 %v10859_v26  ;;  %v10908_v5 = vld [vmem:[#allocation22 + $0x3c0] ss:$8 sps:$4 sm:$0xff]   ;;  %v10913_v26 = vld [vmem:[#allocation22 + $0x2d4] ss:$8 sps:$4 sm:$0xff]  }
0x14fc   : > { %8349 = vmatprep.subr.bf16.mxu0 %v10862_v12  ;;  %v4976_v12 = vsub.s32 6, %v12774_v34 }
0x14fe   : > { %8309 = vmatpush1.bf16.msra.mxu1 %v10857_v62  ;;  %v10916_v62 = vld [vmem:[#allocation22 + $0x3d4] ss:$8 sps:$4 sm:$0xff]  }
0x14ff   : > { %8350 = vmatpush1.bf16.msra.mxu0 %v10860_v8  ;;  %8310 = vmatprep.subr.bf16.mxu1 %v10865_v55  ;;  %v10911_v8 = vld [vmem:[#allocation22 + $0x2d0] ss:$8 sps:$4 sm:$0xff]   ;;  %v4969_v55 = vrot.slane %v13685_v0, %v4968_v33 }
0x1500   : > { %v13712_v18 = vpop.f32.mrb[48].mxu1  ;;  %v13714_v24 = vpop.f32.mrb[116].mxu0  ;;  %8351 = vmatprep.subr.bf16.mxu0 %v10868_v45  ;;  %v10914_v45 = vld [vmem:[#allocation22 + $0x3d0] ss:$8 sps:$4 sm:$0xff]  }
0x1501   : > { %v6428_v29 = vpop.f32.mrb[49].mxu1  ;;  %v6469_v30 = vpop.f32.mrb[117].mxu0 }
0x1502   : > { %v6429_v54 = vadd.f32 %v6428_v29, %v4973_v10  ;;  %v6470_v46 = vadd.f32 %v6469_v30, %v4981_v28  ;;  %v6430_v43 = vpop.f32.mrb[50].mxu1  ;;  %v6471_v27 = vpop.f32.mrb[118].mxu0  ;;  %8311 = vmatpush1.bf16.msra.mxu1 %v10863_v15  ;;  %v10919_v10 = vld [vmem:[#allocation22 + $0x2e4] ss:$8 sps:$4 sm:$0xff]   ;;  %v4977_v28 = vrot.slane %v13685_v0, %v4976_v12  ;;  %v10925_v29 = vld [vmem:[#allocation22 + $0x2f4] ss:$8 sps:$4 sm:$0xff]  }
0x1503   : > { %8352 = vmatpush1.bf16.msra.mxu0 %v10866_v20  ;;  %v6431_v48 = vpop.f32.mrb[51].mxu1  ;;  %v6472_v37 = vpop.f32.mrb[119].mxu0  ;;  %8312 = vmatprep.subr.bf16.mxu1 %v10871_v39  ;;  %v10922_v15 = vld [vmem:[#allocation22 + $0x3e4] ss:$8 sps:$4 sm:$0xff]   ;;  %v10917_v20 = vld [vmem:[#allocation22 + $0x2e0] ss:$8 sps:$4 sm:$0xff]   ;;  %v6427_v39 = vadd.f32 %v13712_v18, %v4969_v55 }
0x1504   : > { %v6643_v7 = vmax.f32 %v6429_v54, 0.0  ;;  %v6645_v49 = vmax.f32 %v6470_v46, 0.0  ;;  %8353 = vmatprep.subr.bf16.mxu0 %v10874_v9  ;;  %v10920_v9 = vld [vmem:[#allocation22 + $0x3e0] ss:$8 sps:$4 sm:$0xff]   ;;  %v6468_v30 = vadd.f32 %v13714_v24, %v4977_v28  ;;  %v10928_v54 = vld [vmem:[#allocation22 + $0x3f4] ss:$8 sps:$4 sm:$0xff]  }
0x1505   : > { %v10923_v46 = vld [vmem:[#allocation22 + $0x2f0] ss:$8 sps:$4 sm:$0xff]   ;;  %v6642_v43 = vmax.f32 %v6427_v39, 0.0  ;;  %v10931_v27 = vld [vmem:[#allocation22 + $0x404] ss:$8 sps:$4 sm:$0xff]  }
0x1506   : > { %v6659_v38 = vpack.c.bf16 %v6643_v7, %v6643_v7  ;;  %v6661_v22 = vpack.c.bf16 %v6645_v49, %v6645_v49  ;;  %8313 = vmatpush1.bf16.msra.mxu1 %v10869_v31  ;;  %v10926_v0 = vld [vmem:[#allocation22 + $0x3f0] ss:$8 sps:$4 sm:$0xff]   ;;  %v6644_v31 = vmax.f32 %v6468_v30, 0.0  ;;  %v10934_v48 = vld [vmem:[#allocation22 + $0x504] ss:$8 sps:$4 sm:$0xff]  }
0x1507   : > { %8354 = vmatpush1.bf16.msra.mxu0 %v10872_v4  ;;  %8314 = vmatprep.subr.bf16.mxu1 %v10877_v23  ;;  %v10929_v18 = vld [vmem:[#allocation22 + $0x400] ss:$8 sps:$4 sm:$0xff]   ;;  %v6658_v37 = vpack.c.bf16 %v6642_v43, %v6642_v43  ;;  %v10937_v23 = vld [vmem:[#allocation22 + $0x414] ss:$8 sps:$4 sm:$0xff]   ;;  %v10935_v49 = vld [vmem:[#allocation22 + $0x410] ss:$8 sps:$4 sm:$0xff]  }
0x1508   : > { %8332 = vmatprep.mubr.bf16.mxu1 %v6659_v38  ;;  %8373 = vmatprep.mubr.bf16.mxu0 %v6661_v22  ;;  %v10932_v4 = vld [vmem:[#allocation22 + $0x500] ss:$8 sps:$4 sm:$0xff]   ;;  %v6660_v24 = vpack.c.bf16 %v6644_v31, %v6644_v31  ;;  %v10940_v7 = vld [vmem:[#allocation22 + $0x514] ss:$8 sps:$4 sm:$0xff]   ;;  %v10943_v38 = vld [vmem:[#allocation22 + $0x424] ss:$8 sps:$4 sm:$0xff]  }
0x1509   : > { %8355 = vmatprep.subr.bf16.mxu0 %v10880_v21  ;;  %v10938_v21 = vld [vmem:[#allocation22 + $0x510] ss:$8 sps:$4 sm:$0xff]   ;;  %v10946_v22 = vld [vmem:[#allocation22 + $0x524] ss:$8 sps:$4 sm:$0xff]   ;;  %v10965_v55 = vld [vmem:[#allocation22 + $0x460] ss:$8 sps:$4 sm:$0xff]  }
0x150a   : > { %8315 = vmatpush1.bf16.msra.mxu1 %v10875_v42  ;;  %v10941_v42 = vld [vmem:[#allocation22 + $0x420] ss:$8 sps:$4 sm:$0xff]   ;;  %v10974_v43 = vld [vmem:[#allocation22 + $0x570] ss:$8 sps:$4 sm:$0xff]  }
0x150b   : > { %8356 = vmatpush1.bf16.msra.mxu0 %v10878_v11  ;;  %8316 = vmatprep.subr.bf16.mxu1 %v10883_v13  ;;  %v10944_v11 = vld [vmem:[#allocation22 + $0x520] ss:$8 sps:$4 sm:$0xff]   ;;  %v10949_v13 = vld [vmem:[#allocation22 + $0x434] ss:$8 sps:$4 sm:$0xff]  }
0x150c   : > { %8357 = vmatprep.subr.bf16.mxu0 %v10886_v3  ;;  %v10952_v3 = vld [vmem:[#allocation22 + $0x534] ss:$8 sps:$4 sm:$0xff]   ;;  %v10977_v31 = vld [vmem:[#allocation22 + $0x480] ss:$8 sps:$4 sm:$0xff]  }
0x150e   : > { %8317 = vmatpush1.bf16.msra.mxu1 %v10881_v14  ;;  %v10947_v14 = vld [vmem:[#allocation22 + $0x430] ss:$8 sps:$4 sm:$0xff]  }
0x150f   : > { %8358 = vmatpush1.bf16.msra.mxu0 %v10884_v44  ;;  %8318 = vmatprep.subr.bf16.mxu1 %v10889_v6  ;;  %v10950_v44 = vld [vmem:[#allocation22 + $0x530] ss:$8 sps:$4 sm:$0xff]   ;;  %v10955_v6 = vld [vmem:[#allocation22 + $0x444] ss:$8 sps:$4 sm:$0xff]  }
0x1510   : > { %8359 = vmatprep.subr.bf16.mxu0 %v10892_v25  ;;  %v10958_v25 = vld [vmem:[#allocation22 + $0x544] ss:$8 sps:$4 sm:$0xff]  }
0x1512   : > { %8319 = vmatpush1.bf16.msra.mxu1 %v10887_v56  ;;  %v10953_v56 = vld [vmem:[#allocation22 + $0x440] ss:$8 sps:$4 sm:$0xff]  }
0x1513   : > { %8360 = vmatpush1.bf16.msra.mxu0 %v10890_v52  ;;  %8320 = vmatprep.subr.bf16.mxu1 %v10895_v32  ;;  %v10956_v52 = vld [vmem:[#allocation22 + $0x540] ss:$8 sps:$4 sm:$0xff]   ;;  %v13726_v32 = vld [vmem:[#allocation20 + $0x8] sm:$0xff] }
0x1514   : > { %8361 = vmatprep.subr.bf16.mxu0 %v10898_v16  ;;  %v10961_v16 = vld [vmem:[#allocation22 + $0x454] ss:$8 sps:$4 sm:$0xff]  }
0x1516   : > { %8321 = vmatpush1.bf16.msra.mxu1 %v10893_v63  ;;  %v10964_v63 = vld [vmem:[#allocation22 + $0x554] ss:$8 sps:$4 sm:$0xff]  }
0x1517   : > { %8362 = vmatpush1.bf16.msra.mxu0 %v10896_v40  ;;  %8322 = vmatprep.subr.bf16.mxu1 %v10901_v17  ;;  %v4989_v40 = vrot.slane %v13726_v32, %v12780_v36  ;;  %v10959_v17 = vld [vmem:[#allocation22 + $0x450] ss:$8 sps:$4 sm:$0xff]  }
0x1518   : > { %8363 = vmatprep.subr.bf16.mxu0 %v10904_v53  ;;  %v4997_v53 = vrot.slane %v13726_v32, %v4964_v47  ;;  %v10968_v47 = vld [vmem:[#allocation22 + $0x560] ss:$8 sps:$4 sm:$0xff]  }
0x151a   : > { %8323 = vmatpush1.bf16.msra.mxu1 %v10899_v1  ;;  %v10962_v1 = vld [vmem:[#allocation22 + $0x550] ss:$8 sps:$4 sm:$0xff]  }
0x151b   : > { %8364 = vmatpush1.bf16.msra.mxu0 %v10902_v57  ;;  %8324 = vmatprep.subr.bf16.mxu1 %v10907_v58  ;;  %v10967_v57 = vld [vmem:[#allocation22 + $0x464] ss:$8 sps:$4 sm:$0xff]  }
0x151c   : > { %8365 = vmatprep.subr.bf16.mxu0 %v10910_v59  ;;  %v10970_v59 = vld [vmem:[#allocation22 + $0x564] ss:$8 sps:$4 sm:$0xff]  }
0x151e   : > { %8325 = vmatpush1.bf16.msra.mxu1 %v10905_v61 }
0x151f   : > { %8366 = vmatpush1.bf16.msra.mxu0 %v10908_v5  ;;  %8326 = vmatprep.subr.bf16.mxu1 %v10913_v26 }
0x1520   : > { %8367 = vmatprep.subr.bf16.mxu0 %v10916_v62 }
0x1522   : > { %8327 = vmatpush1.bf16.msra.mxu1 %v10911_v8 }
0x1523   : > { %8368 = vmatpush1.bf16.msra.mxu0 %v10914_v45  ;;  %8328 = vmatprep.subr.bf16.mxu1 %v10919_v10 }
0x1524   : > { %8369 = vmatprep.subr.bf16.mxu0 %v10922_v15  ;;  %v10973_v15 = vld [vmem:[#allocation22 + $0x474] ss:$8 sps:$4 sm:$0xff]  }
0x1526   : > { %8329 = vmatpush1.bf16.msra.mxu1 %v10917_v20 }
0x1527   : > { %8370 = vmatpush1.bf16.msra.mxu0 %v10920_v9  ;;  %8330 = vmatprep.subr.bf16.mxu1 %v10925_v29  ;;  %v10976_v9 = vld [vmem:[#allocation22 + $0x574] ss:$8 sps:$4 sm:$0xff]  }
0x1528   : > { %8371 = vmatprep.subr.bf16.mxu0 %v10928_v54  ;;  %v10971_v54 = vld [vmem:[#allocation22 + $0x470] ss:$8 sps:$4 sm:$0xff]  }
0x152a   : > { %8331 = vmatpush1.bf16.msra.mxu1 %v10923_v46 }
0x152b   : > { %8372 = vmatpush1.bf16.msra.mxu0 %v10926_v0  ;;  %8382 = vmatprep.subr.bf16.mxu1 %v10931_v27  ;;  %v10979_v0 = vld [vmem:[#allocation22 + $0x484] ss:$8 sps:$4 sm:$0xff]  }
0x152c   : > { %8423 = vmatprep.subr.bf16.mxu0 %v10934_v48  ;;  %v10982_v27 = vld [vmem:[#allocation22 + $0x584] ss:$8 sps:$4 sm:$0xff]   ;;  %v10980_v48 = vld [vmem:[#allocation22 + $0x580] ss:$8 sps:$4 sm:$0xff]  }
0x152d   : > { %8333 = vmatmul.mubr.bf16.vlgmr.msra.gmra.mrb[64].mxu1 %v6658_v37  ;;  %v10988_v37 = vld [vmem:[#allocation22 + $0x594] ss:$8 sps:$4 sm:$0xff]  }
0x152e   : > { %8374 = vmatmul.mubr.bf16.vlgmr.msra.gmra.mrb[132].mxu0 %v6660_v24  ;;  %8383 = vmatpush1.bf16.msra.mxu1 %v10929_v18  ;;  %v10985_v18 = vld [vmem:[#allocation22 + $0x494] ss:$8 sps:$4 sm:$0xff]   ;;  %v10991_v24 = vld [vmem:[#allocation22 + $0x4a4] ss:$8 sps:$4 sm:$0xff]  }
0x152f   : > { %8424 = vmatpush1.bf16.msra.mxu0 %v10932_v4  ;;  %8384 = vmatprep.subr.bf16.mxu1 %v10937_v23  ;;  %v10983_v4 = vld [vmem:[#allocation22 + $0x490] ss:$8 sps:$4 sm:$0xff]  }
0x1530   : > { %8425 = vmatprep.subr.bf16.mxu0 %v10940_v7  ;;  %v10986_v23 = vld [vmem:[#allocation22 + $0x590] ss:$8 sps:$4 sm:$0xff]   ;;  %v10994_v7 = vld [vmem:[#allocation22 + $0x5a4] ss:$8 sps:$4 sm:$0xff]  }
0x1532   : > { %8385 = vmatpush1.bf16.msra.mxu1 %v10935_v49  ;;  %v10989_v49 = vld [vmem:[#allocation22 + $0x4a0] ss:$8 sps:$4 sm:$0xff]  }
0x1533   : > { %8426 = vmatpush1.bf16.msra.mxu0 %v10938_v21  ;;  %8386 = vmatprep.subr.bf16.mxu1 %v10943_v38  ;;  %v10992_v21 = vld [vmem:[#allocation22 + $0x5a0] ss:$8 sps:$4 sm:$0xff]   ;;  %v10997_v38 = vld [vmem:[#allocation22 + $0x4b4] ss:$8 sps:$4 sm:$0xff]  }
0x1534   : > { %8427 = vmatprep.subr.bf16.mxu0 %v10946_v22  ;;  %v11000_v22 = vld [vmem:[#allocation22 + $0x5b4] ss:$8 sps:$4 sm:$0xff]  }
0x1536   : > { %8387 = vmatpush1.bf16.msra.mxu1 %v10941_v42  ;;  %v10995_v42 = vld [vmem:[#allocation22 + $0x4b0] ss:$8 sps:$4 sm:$0xff]  }
0x1537   : > { %8428 = vmatpush1.bf16.msra.mxu0 %v10944_v11  ;;  %8388 = vmatprep.subr.bf16.mxu1 %v10949_v13  ;;  %v10998_v11 = vld [vmem:[#allocation22 + $0x5b0] ss:$8 sps:$4 sm:$0xff]   ;;  %v11003_v13 = vld [vmem:[#allocation22 + $0x4c4] ss:$8 sps:$4 sm:$0xff]  }
0x1538   : > { %8429 = vmatprep.subr.bf16.mxu0 %v10952_v3  ;;  %v11006_v3 = vld [vmem:[#allocation22 + $0x5c4] ss:$8 sps:$4 sm:$0xff]  }
0x153a   : > { %8389 = vmatpush1.bf16.msra.mxu1 %v10947_v14  ;;  %v11001_v14 = vld [vmem:[#allocation22 + $0x4c0] ss:$8 sps:$4 sm:$0xff]  }
0x153b   : > { %8430 = vmatpush1.bf16.msra.mxu0 %v10950_v44  ;;  %8390 = vmatprep.subr.bf16.mxu1 %v10955_v6  ;;  %v11004_v44 = vld [vmem:[#allocation22 + $0x5c0] ss:$8 sps:$4 sm:$0xff]   ;;  %v11009_v6 = vld [vmem:[#allocation22 + $0x4d4] ss:$8 sps:$4 sm:$0xff]  }
0x153c   : > { %8431 = vmatprep.subr.bf16.mxu0 %v10958_v25  ;;  %v11012_v25 = vld [vmem:[#allocation22 + $0x5d4] ss:$8 sps:$4 sm:$0xff]  }
0x153e   : > { %8391 = vmatpush1.bf16.msra.mxu1 %v10953_v56  ;;  %v11007_v56 = vld [vmem:[#allocation22 + $0x4d0] ss:$8 sps:$4 sm:$0xff]  }
0x153f   : > { %8432 = vmatpush1.bf16.msra.mxu0 %v10956_v52  ;;  %8392 = vmatprep.subr.bf16.mxu1 %v10961_v16  ;;  %v4985_v52 = vrot.slane %v13726_v32, %v12777_v35  ;;  %v11010_v16 = vld [vmem:[#allocation22 + $0x5d0] ss:$8 sps:$4 sm:$0xff]  }
0x1540   : > { %v13733_v58 = vpop.f32.mrb[52].mxu1  ;;  %8433 = vmatprep.subr.bf16.mxu0 %v10964_v63  ;;  %v11015_v63 = vld [vmem:[#allocation22 + $0x4e4] ss:$8 sps:$4 sm:$0xff]  }
0x1541   : > { %v13735_v61 = vpop.f32.mrb[120].mxu0  ;;  %v6510_v5 = vpop.f32.mrb[53].mxu1 }
0x1542   : > { %v6511_v26 = vadd.f32 %v6510_v5, %v4989_v40  ;;  %v6551_v62 = vpop.f32.mrb[121].mxu0  ;;  %v6512_v8 = vpop.f32.mrb[54].mxu1  ;;  %8393 = vmatpush1.bf16.msra.mxu1 %v10959_v17  ;;  %v4993_v40 = vrot.slane %v13726_v32, %v4960_v50  ;;  %v11018_v17 = vld [vmem:[#allocation22 + $0x5e4] ss:$8 sps:$4 sm:$0xff]   ;;  %v11022_v50 = vld [vmem:[#allocation22 + $0x5f0] ss:$8 sps:$4 sm:$0xff]  }
0x1543   : > { %v6552_v45 = vadd.f32 %v6551_v62, %v4997_v53  ;;  %v6553_v10 = vpop.f32.mrb[122].mxu0  ;;  %8434 = vmatpush1.bf16.msra.mxu0 %v10962_v1  ;;  %v6513_v28 = vpop.f32.mrb[55].mxu1  ;;  %8394 = vmatprep.subr.bf16.mxu1 %v10967_v57  ;;  %v11013_v53 = vld [vmem:[#allocation22 + $0x4e0] ss:$8 sps:$4 sm:$0xff]   ;;  %v6509_v1 = vadd.f32 %v13733_v58, %v4985_v52  ;;  %v11019_v62 = vld [vmem:[#allocation22 + $0x4f0] ss:$8 sps:$4 sm:$0xff]  }
0x1544   : > { %v6647_v20 = vmax.f32 %v6511_v26, 0.0  ;;  %v6554_v39 = vpop.f32.mrb[123].mxu0  ;;  %8435 = vmatprep.subr.bf16.mxu0 %v10970_v59  ;;  %v11016_v57 = vld [vmem:[#allocation22 + $0x5e0] ss:$8 sps:$4 sm:$0xff]   ;;  %v11021_v59 = vld [vmem:[#allocation22 + $0x4f4] ss:$8 sps:$4 sm:$0xff]   ;;  %v6550_v5 = vadd.f32 %v13735_v61, %v4993_v40 }
0x1545   : > { %v6649_v29 = vmax.f32 %v6552_v45, 0.0  ;;  %v11024_v26 = vld [vmem:[#allocation22 + $0x5f4] ss:$8 sps:$4 sm:$0xff]   ;;  %v6646_v8 = vmax.f32 %v6509_v1, 0.0  ;;  %v11030_v10 = vld [vmem:[#allocation22 + $0x704] ss:$8 sps:$4 sm:$0xff]  }
0x1546   : > { %v6663_v30 = vpack.c.bf16 %v6647_v20, %v6647_v20  ;;  %8395 = vmatpush1.bf16.msra.mxu1 %v10965_v55  ;;  %v11027_v55 = vld [vmem:[#allocation22 + $0x604] ss:$8 sps:$4 sm:$0xff]   ;;  %v6648_v45 = vmax.f32 %v6550_v5, 0.0  ;;  %v11025_v58 = vld [vmem:[#allocation22 + $0x600] ss:$8 sps:$4 sm:$0xff]  }
0x1547   : > { %v6665_v46 = vpack.c.bf16 %v6649_v29, %v6649_v29  ;;  %8436 = vmatpush1.bf16.msra.mxu0 %v10968_v47  ;;  %8396 = vmatprep.subr.bf16.mxu1 %v10973_v15  ;;  %v6662_v28 = vpack.c.bf16 %v6646_v8, %v6646_v8  ;;  %v11028_v47 = vld [vmem:[#allocation22 + $0x700] ss:$8 sps:$4 sm:$0xff]   ;;  %v11033_v15 = vld [vmem:[#allocation22 + $0x614] ss:$8 sps:$4 sm:$0xff]   ;;  %v11031_v39 = vld [vmem:[#allocation22 + $0x610] ss:$8 sps:$4 sm:$0xff]  }
0x1548   : > { %8414 = vmatprep.mubr.bf16.mxu1 %v6663_v30  ;;  %8437 = vmatprep.subr.bf16.mxu0 %v10976_v9  ;;  %v6664_v61 = vpack.c.bf16 %v6648_v45, %v6648_v45  ;;  %v11036_v20 = vld [vmem:[#allocation22 + $0x714] ss:$8 sps:$4 sm:$0xff]   ;;  %v11034_v9 = vld [vmem:[#allocation22 + $0x710] ss:$8 sps:$4 sm:$0xff]   ;;  %v11039_v29 = vld [vmem:[#allocation22 + $0x624] ss:$8 sps:$4 sm:$0xff]  }
0x1549   : > { %8455 = vmatprep.mubr.bf16.mxu0 %v6665_v46  ;;  %v11042_v30 = vld [vmem:[#allocation22 + $0x724] ss:$8 sps:$4 sm:$0xff]   ;;  %v11040_v46 = vld [vmem:[#allocation22 + $0x720] ss:$8 sps:$4 sm:$0xff]   ;;  %v11070_v5 = vld [vmem:[#allocation22 + $0x770] ss:$8 sps:$4 sm:$0xff]  }
0x154a   : > { %8397 = vmatpush1.bf16.msra.mxu1 %v10971_v54  ;;  %v11037_v54 = vld [vmem:[#allocation22 + $0x620] ss:$8 sps:$4 sm:$0xff]   ;;  %v11084_v45 = vld [vmem:[#allocation22 + $0x794] ss:$8 sps:$4 sm:$0xff]  }
0x154b   : > { %8438 = vmatpush1.bf16.msra.mxu0 %v10974_v43  ;;  %8398 = vmatprep.subr.bf16.mxu1 %v10979_v0  ;;  %v11045_v43 = vld [vmem:[#allocation22 + $0x634] ss:$8 sps:$4 sm:$0xff]   ;;  %v11073_v8 = vld [vmem:[#allocation22 + $0x680] ss:$8 sps:$4 sm:$0xff]  }
0x154c   : > { %8439 = vmatprep.subr.bf16.mxu0 %v10982_v27  ;;  %v11048_v0 = vld [vmem:[#allocation22 + $0x734] ss:$8 sps:$4 sm:$0xff]   ;;  %v11043_v27 = vld [vmem:[#allocation22 + $0x630] ss:$8 sps:$4 sm:$0xff]  }
0x154e   : > { %8399 = vmatpush1.bf16.msra.mxu1 %v10977_v31  ;;  %v11046_v31 = vld [vmem:[#allocation22 + $0x730] ss:$8 sps:$4 sm:$0xff]  }
0x154f   : > { %8440 = vmatpush1.bf16.msra.mxu0 %v10980_v48  ;;  %8400 = vmatprep.subr.bf16.mxu1 %v10985_v18  ;;  %v11051_v48 = vld [vmem:[#allocation22 + $0x644] ss:$8 sps:$4 sm:$0xff]  }
0x1550   : > { %8441 = vmatprep.subr.bf16.mxu0 %v10988_v37  ;;  %v11054_v18 = vld [vmem:[#allocation22 + $0x744] ss:$8 sps:$4 sm:$0xff]   ;;  %v11049_v37 = vld [vmem:[#allocation22 + $0x640] ss:$8 sps:$4 sm:$0xff]  }
0x1552   : > { %8401 = vmatpush1.bf16.msra.mxu1 %v10983_v4  ;;  %v11052_v4 = vld [vmem:[#allocation22 + $0x740] ss:$8 sps:$4 sm:$0xff]  }
0x1553   : > { %8442 = vmatpush1.bf16.msra.mxu0 %v10986_v23  ;;  %8402 = vmatprep.subr.bf16.mxu1 %v10991_v24  ;;  %v11057_v23 = vld [vmem:[#allocation22 + $0x654] ss:$8 sps:$4 sm:$0xff]  }
0x1554   : > { %8443 = vmatprep.subr.bf16.mxu0 %v10994_v7  ;;  %v11060_v24 = vld [vmem:[#allocation22 + $0x754] ss:$8 sps:$4 sm:$0xff]   ;;  %v5005_v7 = vrot.slane %v13726_v32, %v4972_v19  ;;  %v11061_v19 = vld [vmem:[#allocation22 + $0x660] ss:$8 sps:$4 sm:$0xff]  }
0x1556   : > { %8403 = vmatpush1.bf16.msra.mxu1 %v10989_v49  ;;  %v11055_v49 = vld [vmem:[#allocation22 + $0x650] ss:$8 sps:$4 sm:$0xff]  }
0x1557   : > { %8444 = vmatpush1.bf16.msra.mxu0 %v10992_v21  ;;  %8404 = vmatprep.subr.bf16.mxu1 %v10997_v38  ;;  %v5013_v21 = vrot.slane %v13726_v32, %v4980_v60  ;;  %v11058_v38 = vld [vmem:[#allocation22 + $0x750] ss:$8 sps:$4 sm:$0xff]   ;;  %v11064_v60 = vld [vmem:[#allocation22 + $0x760] ss:$8 sps:$4 sm:$0xff]  }
0x1558   : > { %8445 = vmatprep.subr.bf16.mxu0 %v11000_v22  ;;  %v11063_v22 = vld [vmem:[#allocation22 + $0x664] ss:$8 sps:$4 sm:$0xff]  }
0x155a   : > { %8405 = vmatpush1.bf16.msra.mxu1 %v10995_v42 }
0x155b   : > { %8446 = vmatpush1.bf16.msra.mxu0 %v10998_v11  ;;  %8406 = vmatprep.subr.bf16.mxu1 %v11003_v13  ;;  %v11066_v11 = vld [vmem:[#allocation22 + $0x764] ss:$8 sps:$4 sm:$0xff]  }
0x155c   : > { %8447 = vmatprep.subr.bf16.mxu0 %v11006_v3 }
0x155e   : > { %8407 = vmatpush1.bf16.msra.mxu1 %v11001_v14 }
0x155f   : > { %8448 = vmatpush1.bf16.msra.mxu0 %v11004_v44  ;;  %8408 = vmatprep.subr.bf16.mxu1 %v11009_v6 }
0x1560   : > { %8449 = vmatprep.subr.bf16.mxu0 %v11012_v25 }
0x1562   : > { %8409 = vmatpush1.bf16.msra.mxu1 %v11007_v56 }
0x1563   : > { %8450 = vmatpush1.bf16.msra.mxu0 %v11010_v16  ;;  %8410 = vmatprep.subr.bf16.mxu1 %v11015_v63  ;;  %v11069_v16 = vld [vmem:[#allocation22 + $0x674] ss:$8 sps:$4 sm:$0xff]  }
0x1564   : > { %8451 = vmatprep.subr.bf16.mxu0 %v11018_v17  ;;  %v11072_v17 = vld [vmem:[#allocation22 + $0x774] ss:$8 sps:$4 sm:$0xff]  }
0x1566   : > { %8411 = vmatpush1.bf16.msra.mxu1 %v11013_v53 }
0x1567   : > { %8452 = vmatpush1.bf16.msra.mxu0 %v11016_v57  ;;  %8412 = vmatprep.subr.bf16.mxu1 %v11021_v59  ;;  %v11067_v57 = vld [vmem:[#allocation22 + $0x670] ss:$8 sps:$4 sm:$0xff]  }
0x1568   : > { %8453 = vmatprep.subr.bf16.mxu0 %v11024_v26  ;;  %v11075_v26 = vld [vmem:[#allocation22 + $0x684] ss:$8 sps:$4 sm:$0xff]  }
0x156a   : > { %8413 = vmatpush1.bf16.msra.mxu1 %v11019_v62  ;;  %v11078_v62 = vld [vmem:[#allocation22 + $0x784] ss:$8 sps:$4 sm:$0xff]  }
0x156b   : > { %8454 = vmatpush1.bf16.msra.mxu0 %v11022_v50  ;;  %8464 = vmatprep.subr.bf16.mxu1 %v11027_v55  ;;  %v11076_v50 = vld [vmem:[#allocation22 + $0x780] ss:$8 sps:$4 sm:$0xff]   ;;  %v11081_v55 = vld [vmem:[#allocation22 + $0x694] ss:$8 sps:$4 sm:$0xff]  }
0x156c   : > { %8505 = vmatprep.subr.bf16.mxu0 %v11030_v10  ;;  %v11079_v10 = vld [vmem:[#allocation22 + $0x690] ss:$8 sps:$4 sm:$0xff]  }
0x156d   : > { %8415 = vmatmul.mubr.bf16.vlgmr.msra.gmra.mrb[68].mxu1 %v6662_v28  ;;  %v11087_v28 = vld [vmem:[#allocation22 + $0x6a4] ss:$8 sps:$4 sm:$0xff]  }
0x156e   : > { %8456 = vmatmul.mubr.bf16.vlgmr.msra.gmra.mrb[136].mxu0 %v6664_v61  ;;  %8465 = vmatpush1.bf16.msra.mxu1 %v11025_v58  ;;  %v11082_v58 = vld [vmem:[#allocation22 + $0x790] ss:$8 sps:$4 sm:$0xff]   ;;  %v11088_v61 = vld [vmem:[#allocation22 + $0x7a0] ss:$8 sps:$4 sm:$0xff]  }
0x156f   : > { %8506 = vmatpush1.bf16.msra.mxu0 %v11028_v47  ;;  %8466 = vmatprep.subr.bf16.mxu1 %v11033_v15  ;;  %v11090_v47 = vld [vmem:[#allocation22 + $0x7a4] ss:$8 sps:$4 sm:$0xff]   ;;  %v11085_v15 = vld [vmem:[#allocation22 + $0x6a0] ss:$8 sps:$4 sm:$0xff]  }
0x1570   : > { %8507 = vmatprep.subr.bf16.mxu0 %v11036_v20  ;;  %v11093_v20 = vld [vmem:[#allocation22 + $0x6b4] ss:$8 sps:$4 sm:$0xff]  }
0x1572   : > { %8467 = vmatpush1.bf16.msra.mxu1 %v11031_v39  ;;  %v11096_v39 = vld [vmem:[#allocation22 + $0x7b4] ss:$8 sps:$4 sm:$0xff]  }
0x1573   : > { %8508 = vmatpush1.bf16.msra.mxu0 %v11034_v9  ;;  %8468 = vmatprep.subr.bf16.mxu1 %v11039_v29  ;;  %v11091_v9 = vld [vmem:[#allocation22 + $0x6b0] ss:$8 sps:$4 sm:$0xff]  }
0x1574   : > { %8509 = vmatprep.subr.bf16.mxu0 %v11042_v30  ;;  %v11094_v29 = vld [vmem:[#allocation22 + $0x7b0] ss:$8 sps:$4 sm:$0xff]   ;;  %v11099_v30 = vld [vmem:[#allocation22 + $0x6c4] ss:$8 sps:$4 sm:$0xff]  }
0x1576   : > { %8469 = vmatpush1.bf16.msra.mxu1 %v11037_v54  ;;  %v11102_v54 = vld [vmem:[#allocation22 + $0x7c4] ss:$8 sps:$4 sm:$0xff]  }
0x1577   : > { %8510 = vmatpush1.bf16.msra.mxu0 %v11040_v46  ;;  %8470 = vmatprep.subr.bf16.mxu1 %v11045_v43  ;;  %v11097_v46 = vld [vmem:[#allocation22 + $0x6c0] ss:$8 sps:$4 sm:$0xff]  }
0x1578   : > { %8511 = vmatprep.subr.bf16.mxu0 %v11048_v0  ;;  %v11100_v43 = vld [vmem:[#allocation22 + $0x7c0] ss:$8 sps:$4 sm:$0xff]   ;;  %v11105_v0 = vld [vmem:[#allocation22 + $0x6d4] ss:$8 sps:$4 sm:$0xff]  }
0x157a   : > { %8471 = vmatpush1.bf16.msra.mxu1 %v11043_v27  ;;  %v11108_v27 = vld [vmem:[#allocation22 + $0x7d4] ss:$8 sps:$4 sm:$0xff]  }
0x157b   : > { %8512 = vmatpush1.bf16.msra.mxu0 %v11046_v31  ;;  %8472 = vmatprep.subr.bf16.mxu1 %v11051_v48  ;;  %v11103_v31 = vld [vmem:[#allocation22 + $0x6d0] ss:$8 sps:$4 sm:$0xff]   ;;  %v5001_v48 = vrot.slane %v13726_v32, %v4968_v33 }
0x157c   : > { %8513 = vmatprep.subr.bf16.mxu0 %v11054_v18  ;;  %v11106_v18 = vld [vmem:[#allocation22 + $0x7d0] ss:$8 sps:$4 sm:$0xff]  }
0x157e   : > { %8473 = vmatpush1.bf16.msra.mxu1 %v11049_v37  ;;  %v11111_v37 = vld [vmem:[#allocation22 + $0x6e4] ss:$8 sps:$4 sm:$0xff]  }
0x157f   : > { %8514 = vmatpush1.bf16.msra.mxu0 %v11052_v4  ;;  %8474 = vmatprep.subr.bf16.mxu1 %v11057_v23  ;;  %v5009_v4 = vrot.slane %v13726_v32, %v4976_v12  ;;  %v11114_v23 = vld [vmem:[#allocation22 + $0x7e4] ss:$8 sps:$4 sm:$0xff]   ;;  %v11118_v12 = vld [vmem:[#allocation22 + $0x7f0] ss:$8 sps:$4 sm:$0xff]  }
0x1580   : > { %v13750_v42 = vpop.f32.mrb[56].mxu1  ;;  %8515 = vmatprep.subr.bf16.mxu0 %v11060_v24  ;;  %v11109_v24 = vld [vmem:[#allocation22 + $0x6e0] ss:$8 sps:$4 sm:$0xff]  }
0x1581   : > { %v13752_v13 = vpop.f32.mrb[124].mxu0  ;;  %v6592_v3 = vpop.f32.mrb[57].mxu1 }
0x1582   : > { %v6593_v14 = vadd.f32 %v6592_v3, %v5005_v7  ;;  %v6633_v44 = vpop.f32.mrb[125].mxu0  ;;  %v6594_v6 = vpop.f32.mrb[58].mxu1  ;;  %8475 = vmatpush1.bf16.msra.mxu1 %v11055_v49  ;;  %v6591_v7 = vadd.f32 %v13750_v42, %v5001_v48  ;;  %v11112_v49 = vld [vmem:[#allocation22 + $0x7e0] ss:$8 sps:$4 sm:$0xff]   ;;  %v6632_v33 = vadd.f32 %v13752_v13, %v5009_v4 }
0x1583   : > { %v6634_v25 = vadd.f32 %v6633_v44, %v5013_v21  ;;  %v6635_v56 = vpop.f32.mrb[126].mxu0  ;;  %8516 = vmatpush1.bf16.msra.mxu0 %v11058_v38  ;;  %v6595_v52 = vpop.f32.mrb[59].mxu1  ;;  %8476 = vmatprep.subr.bf16.mxu1 %v11063_v22  ;;  %v11117_v21 = vld [vmem:[#allocation22 + $0x6f4] ss:$8 sps:$4 sm:$0xff]   ;;  %v11115_v22 = vld [vmem:[#allocation22 + $0x6f0] ss:$8 sps:$4 sm:$0xff]  }
0x1584   : > { %v6651_v63 = vmax.f32 %v6593_v14, 0.0  ;;  %v6636_v40 = vpop.f32.mrb[127].mxu0  ;;  %8517 = vmatprep.subr.bf16.mxu0 %v11066_v11  ;;  %v11120_v38 = vld [vmem:[#allocation22 + $0x7f4] ss:$8 sps:$4 sm:$0xff]   ;;  %v6650_v11 = vmax.f32 %v6591_v7, 0.0  ;;  %v6652_v32 = vmax.f32 %v6632_v33, 0.0 }
0x1585   : > { %v6653_v53 = vmax.f32 %v6634_v25, 0.0  ;;  %v6926_v14 = vld [vmem:[#allocation23] sm:$0x3] }
0x1586   : > { %v6667_v1 = vpack.c.bf16 %v6651_v63, %v6651_v63  ;;  %8477 = vmatpush1.bf16.msra.mxu1 %v11061_v19  ;;  %v6666_v3 = vpack.c.bf16 %v6650_v11, %v6650_v11  ;;  %v6668_v42 = vpack.c.bf16 %v6652_v32, %v6652_v32  ;;  %v6931_v44 = vrot.slane %v6926_v14, %v12777_v35 }
0x1587   : > { %v6669_v59 = vpack.c.bf16 %v6653_v53, %v6653_v53  ;;  %8518 = vmatpush1.bf16.msra.mxu0 %v11064_v60  ;;  %8478 = vmatprep.subr.bf16.mxu1 %v11069_v16  ;;  %v6935_v13 = vrot.slane %v6926_v14, %v12780_v36 }
0x1588   : > { %8496 = vmatprep.mubr.bf16.mxu1 %v6667_v1  ;;  %8519 = vmatprep.subr.bf16.mxu0 %v11072_v17 }
0x1589   : > { %8537 = vmatprep.mubr.bf16.mxu0 %v6669_v59 }
0x158a   : > { %8479 = vmatpush1.bf16.msra.mxu1 %v11067_v57 }
0x158b   : > { %8520 = vmatpush1.bf16.msra.mxu0 %v11070_v5  ;;  %8480 = vmatprep.subr.bf16.mxu1 %v11075_v26 }
0x158c   : > { %8521 = vmatprep.subr.bf16.mxu0 %v11078_v62 }
0x158e   : > { %8481 = vmatpush1.bf16.msra.mxu1 %v11073_v8 }
0x158f   : > { %8522 = vmatpush1.bf16.msra.mxu0 %v11076_v50  ;;  %8482 = vmatprep.subr.bf16.mxu1 %v11081_v55 }
0x1590   : > { %8523 = vmatprep.subr.bf16.mxu0 %v11084_v45 }
0x1592   : > { %8483 = vmatpush1.bf16.msra.mxu1 %v11079_v10 }
0x1593   : > { %8524 = vmatpush1.bf16.msra.mxu0 %v11082_v58  ;;  %8484 = vmatprep.subr.bf16.mxu1 %v11087_v28 }
0x1594   : > { %8525 = vmatprep.subr.bf16.mxu0 %v11090_v47 }
0x1596   : > { %8485 = vmatpush1.bf16.msra.mxu1 %v11085_v15 }
0x1597   : > { %8526 = vmatpush1.bf16.msra.mxu0 %v11088_v61  ;;  %8486 = vmatprep.subr.bf16.mxu1 %v11093_v20 }
0x1598   : > { %8527 = vmatprep.subr.bf16.mxu0 %v11096_v39 }
0x159a   : > { %8487 = vmatpush1.bf16.msra.mxu1 %v11091_v9 }
0x159b   : > { %8528 = vmatpush1.bf16.msra.mxu0 %v11094_v29  ;;  %8488 = vmatprep.subr.bf16.mxu1 %v11099_v30 }
0x159c   : > { %8529 = vmatprep.subr.bf16.mxu0 %v11102_v54 }
0x159e   : > { %8489 = vmatpush1.bf16.msra.mxu1 %v11097_v46 }
0x159f   : > { %8530 = vmatpush1.bf16.msra.mxu0 %v11100_v43  ;;  %8490 = vmatprep.subr.bf16.mxu1 %v11105_v0 }
0x15a0   : > { %8531 = vmatprep.subr.bf16.mxu0 %v11108_v27 }
0x15a2   : > { %8491 = vmatpush1.bf16.msra.mxu1 %v11103_v31 }
0x15a3   : > { %8532 = vmatpush1.bf16.msra.mxu0 %v11106_v18  ;;  %8492 = vmatprep.subr.bf16.mxu1 %v11111_v37 }
0x15a4   : > { %8533 = vmatprep.subr.bf16.mxu0 %v11114_v23 }
0x15a6   : > { %8493 = vmatpush1.bf16.msra.mxu1 %v11109_v24 }
0x15a7   : > { %8534 = vmatpush1.bf16.msra.mxu0 %v11112_v49  ;;  %8494 = vmatprep.subr.bf16.mxu1 %v11117_v21 }
0x15a8   : > { %8535 = vmatprep.subr.bf16.mxu0 %v11120_v38 }
0x15aa   : > { %8495 = vmatpush1.bf16.msra.mxu1 %v11115_v22 }
0x15ab   : > { %8536 = vmatpush1.bf16.msra.mxu0 %v11118_v12 }
0x15ad   : > { %8497 = vmatmul.mubr.bf16.vlgmr.msra.gmra.mrb[72].mxu1 %v6666_v3 }
0x15ae   : > { %8538 = vmatmul.mubr.bf16.vlgmr.msra.gmra.mrb[140].mxu0 %v6668_v42 }
0x15c0   : > { %v8252_v6 = vpop.f32.mrb[60].mxu1 }
0x15c1   : > { %v8253_v19 = vadd.f32 %v8252_v6, %v6931_v44  ;;  %v8293_v25 = vpop.f32.mrb[128].mxu0  ;;  %v8254_v56 = vpop.f32.mrb[61].mxu1 }
0x15c2   : > { %v8255_v52 = vadd.f32 %v8254_v56, %v6935_v13  ;;  %v8295_v60 = vpop.f32.mrb[129].mxu0  ;;  %v8256_v16 = vpop.f32.mrb[62].mxu1  ;;  %v8548_v56 = vld [vmem:[#allocation25] sm:$0x3] }
0x15c3   : > { %v8294_v63 = vadd.f32 %v8293_v25, %v8253_v19  ;;  %v8297_v40 = vpop.f32.mrb[130].mxu0  ;;  %v8257_v17 = vpop.f32.mrb[63].mxu1  ;;  %v8574_v16 = vrot.slane %v8548_v56, %v12780_v36 }
0x15c4   : > { %v8296_v53 = vadd.f32 %v8295_v60, %v8255_v52  ;;  %v8298_v1 = vpop.f32.mrb[131].mxu0  ;;  %v8549_v52 = vld [vmem:[#allocation26] sm:$0x3] }
0x15c5   : > { %v8583_v40 = vrot.slane %v8549_v52, %v12777_v35  ;;  %v8587_v17 = vrot.slane %v8549_v52, %v12780_v36 }
0x1600   : > { %v8334_v57 = vpop.f32.mrb[64].mxu1 }
0x1601   : > { %v8335_v59 = vadd.f32 %v8334_v57, %v8294_v63  ;;  %v8375_v5 = vpop.f32.mrb[132].mxu0  ;;  %v8336_v26 = vpop.f32.mrb[65].mxu1 }
0x1602   : > { %v8337_v62 = vadd.f32 %v8336_v26, %v8296_v53  ;;  %v8377_v8 = vpop.f32.mrb[133].mxu0  ;;  %v8338_v50 = vpop.f32.mrb[66].mxu1 }
0x1603   : > { %v8376_v55 = vadd.f32 %v8375_v5, %v8335_v59  ;;  %v8379_v45 = vpop.f32.mrb[134].mxu0  ;;  %v8339_v10 = vpop.f32.mrb[67].mxu1 }
0x1604   : > { %v8378_v58 = vadd.f32 %v8377_v8, %v8337_v62  ;;  %v8380_v28 = vpop.f32.mrb[135].mxu0 }
0x1640   : > { %v8416_v47 = vpop.f32.mrb[68].mxu1 }
0x1641   : > { %v8417_v15 = vadd.f32 %v8416_v47, %v8376_v55  ;;  %v8457_v61 = vpop.f32.mrb[136].mxu0  ;;  %v8418_v20 = vpop.f32.mrb[69].mxu1 }
0x1642   : > { %v8419_v39 = vadd.f32 %v8418_v20, %v8378_v58  ;;  %v8459_v9 = vpop.f32.mrb[137].mxu0  ;;  %v8420_v29 = vpop.f32.mrb[70].mxu1 }
0x1643   : > { %v8458_v30 = vadd.f32 %v8457_v61, %v8417_v15  ;;  %v8461_v54 = vpop.f32.mrb[138].mxu0  ;;  %v8421_v46 = vpop.f32.mrb[71].mxu1 }
0x1644   : > { %v8460_v43 = vadd.f32 %v8459_v9, %v8419_v39  ;;  %v8462_v0 = vpop.f32.mrb[139].mxu0 }
0x1680   : > { %v8498_v27 = vpop.f32.mrb[72].mxu1 }
0x1681   : > { %v8499_v31 = vadd.f32 %v8498_v27, %v8458_v30  ;;  %v8539_v48 = vpop.f32.mrb[140].mxu0  ;;  %v8500_v18 = vpop.f32.mrb[73].mxu1 }
0x1682   : > { %v8501_v37 = vadd.f32 %v8500_v18, %v8460_v43  ;;  %v8541_v4 = vpop.f32.mrb[141].mxu0  ;;  %v8502_v23 = vpop.f32.mrb[74].mxu1 }
0x1683   : > { %v8540_v24 = vadd.f32 %v8539_v48, %v8499_v31  ;;  %v8543_v7 = vpop.f32.mrb[142].mxu0  ;;  %v8503_v49 = vpop.f32.mrb[75].mxu1 }
0x1684   : > { %v8542_v21 = vadd.f32 %v8541_v4, %v8501_v37  ;;  %v8544_v33 = vpop.f32.mrb[143].mxu0 }
0x1685   : > { %v8546_v38 = vadd.f32 %v8540_v24, %v13656_v41  ;;  %v11682_v41 = vmov 1966171168  }
0x1686   : > { %v8547_v22 = vadd.f32 %v8542_v21, %v13658_v2  ;;  %v8596_v60 = vunpack.c.l.s4 %v11682_v41  ;;  %v8570_v2 = vrot.slane %v8548_v56, %v12777_v35 }
0x1688   : > { %v8550_v11 = vadd.f32 %v8547_v22, %v8546_v38  ;;  %v8597_v53 = vunpack.c.0.s8 %v8596_v60 }
0x168a   : > { %8551 = vadd.xlane.f32.xlu0 %v8550_v11  ;;  %v8600_v26 = vsub.s32 %v8597_v53, %v12774_v34 }
0x1717   : > { %v8552_v12 = vpop.xlane.xlu0 %8551 }
0x1718   : > { %v8553_v32 = vmul.f32 0.00390625, %v8552_v12 }
0x171a   : > { %v8554_v3 = vsub.f32 %v8546_v38, %v8553_v32  ;;  %v8555_v42 = vsub.f32 %v8547_v22, %v8553_v32 }
0x171c   : > { %v8556_v14 = vmul.f32 %v8554_v3, %v8554_v3  ;;  %v8557_v44 = vmul.f32 %v8555_v42, %v8555_v42 }
0x171e   : > { %v8558_v13 = vadd.f32 %v8557_v44, %v8556_v14 }
0x1720   : > { %8559 = vadd.xlane.f32.xlu0 %v8558_v13 }
0x17ad   : > { %v8560_v6 = vpop.xlane.xlu0 %8559 }
0x17ae   : > { %v8561_v19 = vmul.f32 0.00390625, %v8560_v6 }
0x17b0   : > { %v8562_v25 = vadd.f32 1e-05, %v8561_v19 }
0x17b2   : > { %11155 = vrsqrt.f32 %v8562_v25 }
0x17bc   : > { %v11156_v63 = vpop.eup %11155 }
0x17bd   : > { %v8564_v1 = vmul.f32 %v11156_v63, %v8554_v3  ;;  %v8565_v57 = vmul.f32 %v11156_v63, %v8555_v42 }
0x17bf   : > { %v8577_v59 = vmul.f32 %v8570_v2, %v8564_v1  ;;  %v8578_v5 = vmul.f32 %v8574_v16, %v8565_v57 }
0x17c1   : > { %v8590_v62 = vadd.f32 %v8583_v40, %v8577_v59  ;;  %v8591_v8 = vadd.f32 %v8587_v17, %v8578_v5 }
0x17c3   : > { %v8594_v50 = vcombine.low %v8590_v62, %v8591_v8 }
0x17c5   : > { %v8601_v55 = vrot.slane %v8594_v50, %v8600_v26 }
0x17c7   : > { %v8608_v45 = vrot.slane %v8601_v55, %v8600_v26 }
0x17c9   : > { %8610 = vst.msk [vmem:[%s966_s25] sm:$0x3] %vm12563_vm0, %v8608_v45 }
0x17ca PF: > { %s13870_s5 = sld [smem:[#allocation37_spill]] }
0x17d0   : > { %s43_s5 = sadd.s32 1, %s13870_s5  }
0x17d1   : > { %p40_p5 = scmp.ge.s32.totalorder %s43_s5, 4  }
0x17d3   :  { %42 = sbr.rel (!%p40_p5) target bundleno = 22 (0x16), region = 215 }
0x17da   :  { %8630 = vsyncpa [#allocation4], 1 }
0x17db   :  { %8632 = vsyncpa [#allocation4 + $0x1], 1 }
0x17dc   :  { %8633 = vsyncpa [#allocation6], 1 }
0x17dd   :  { %8634 = vsyncpa [#allocation9], 1 }
0x17de   :  { %8635 = vsyncpa [#allocation12], 1 }
0x17df   :  { %8636 = vsyncpa [#allocation15], 1 }
0x17e0   :  { %8637 = vsyncpa [#allocation18], 1 }
0x17e1   :  { %8638 = vsyncpa [#allocation21], 1 }
0x17e2   :  { %8639 = vsyncpa [#allocation24], 1 }
0x17e3   :  { %8640 = vsyncpa [#allocation27], 1 }

</bundles_post_ra>
